<compile_context>
chip_gen: v6e
topology: v6e:2x2x1
jax: 0.10.0
libtpu: 0.0.40
codegen_flags: <defaults>
</compile_context>

<pallas_src>
import math
import functools

import jax
import jax.numpy as jnp
from jax import lax
from jax.experimental import pallas as pl
from jax.experimental.pallas import tpu as pltpu


NEG_INF = -1000000.0  # fill value used by the reference masked_softmax


# ------------------------------ Pallas kernel --------------------------------
def decoder_stack_kernel(x_ref, enc_ref, causal_ref, encb_ref,
                         wqkv1_ref, wo1_ref, wq2_ref, wkv2_ref, wo2_ref,
                         wf1_ref, bf1_ref, wf2_ref, bf2_ref,
                         lng_ref, lnb_ref, wd_ref, bd_ref,
                         logits_ref, cache_ref,
                         act_ref, *, num_heads):
    l = pl.program_id(0)
    num_layers = pl.num_programs(0)
    N, H = x_ref.shape                       # N = B * S
    B = encb_ref.shape[0]
    Se = encb_ref.shape[2]
    S = N // B
    d = H // num_heads
    scale = 1.0 / math.sqrt(d)
    f32, bf16 = jnp.float32, jnp.bfloat16

    def mm(a_bf16, b_bf16):                  # MXU matmul, bf16 operands, f32 accum
        return jnp.dot(a_bf16, b_bf16, preferred_element_type=f32)

    def bmm(eq, a_bf16, b_bf16):             # batch(B)-batched matmul, f32 accum
        return jnp.einsum(eq, a_bf16, b_bf16, preferred_element_type=f32)

    def softmax_last(s):                     # f32 softmax, EUP approx reciprocal
        m = jnp.max(s, axis=-1, keepdims=True)
        e = jnp.exp(s - m)
        return e * pl.reciprocal(jnp.sum(e, axis=-1, keepdims=True), approx=True)

    lng = lng_ref[0]                         # (3, H) gammas for the 3 AddNorms
    lnb = lnb_ref[0]                         # (3, H) betas

    def layer_norm(z, idx):
        mu = jnp.mean(z, axis=-1, keepdims=True)
        var = jnp.mean(jnp.square(z - mu), axis=-1, keepdims=True)
        return (z - mu) * lax.rsqrt(var + 1e-5) * lng[idx:idx + 1, :] + lnb[idx:idx + 1, :]

    def mha(q2d, k2d, v2d, wo, kv_len, bias):
        """Multi-head attention without a head-concat scratch.

        q2d: (N, H) bf16, k2d/v2d: (B*kv_len, H) bf16, wo: (H, H) bf16,
        bias: additive f32 mask broadcastable to (B, S, kv_len).
        Each head's output is projected through its Wo row-slice and the
        projections are summed -> single (N, H) f32 result, no narrow stores.
        """
        attn = None
        for h in range(num_heads):
            sl = slice(h * d, (h + 1) * d)
            qh = q2d[:, sl].reshape(B, S, d)
            kh = k2d[:, sl].reshape(B, kv_len, d)
            vh = v2d[:, sl].reshape(B, kv_len, d)
            s = bmm('bqd,bkd->bqk', qh, kh) * scale + bias
            p = softmax_last(s).astype(bf16)
            o = bmm('bqk,bkd->bqd', p, vh).reshape(N, d).astype(bf16)
            part = mm(o, wo[sl, :])          # (N, H) f32, accumulated across heads
            attn = part if attn is None else attn + part
        return attn

    # Layer 0: load the embedded decoder input into the resident activation.
    @pl.when(l == 0)
    def _():
        act_ref[...] = x_ref[...]

    X = act_ref[...]                         # (N, H) f32 — input to this block
    cache_ref[0] = X                         # state[2][l] = key_values (fresh state)

    # -------- masked multi-head self-attention (causal / training mode) --------
    Xb = X.astype(bf16)                      # cast once for this consumer chain
    qkv = mm(Xb, wqkv1_ref[0]).astype(bf16)  # fused (N, 3H): [q | k | v], cast once
    attn1 = mha(qkv[:, :H], qkv[:, H:2 * H], qkv[:, 2 * H:],
                wo1_ref[0], S, causal_ref[...])
    y = layer_norm(X + attn1, 0)             # AddNorm1

    # -------- cross attention over encoder outputs (enc_valid_lens mask) -------
    yb = y.astype(bf16)
    q2 = mm(yb, wq2_ref[0]).astype(bf16)     # (N, H)
    kv2 = mm(enc_ref[...], wkv2_ref[0]).astype(bf16)   # fused (B*Se, 2H): [k | v]
    attn2 = mha(q2, kv2[:, :H], kv2[:, H:], wo2_ref[0], Se, encb_ref[...])
    z = layer_norm(y + attn2, 1)             # AddNorm2

    # ------------------------- position-wise FFN ------------------------------
    # TODO(synk): at production H/Fh tile this over Fh chunks with a VMEM
    #             accumulator so the per-layer weight set fits v7x's 64 MiB VMEM.
    zb = z.astype(bf16)
    hid = jnp.maximum(mm(zb, wf1_ref[0]) + bf1_ref[0], 0.0).astype(bf16)
    ffn = mm(hid, wf2_ref[0]) + bf2_ref[0]
    out = layer_norm(z + ffn, 2)             # AddNorm3
    act_ref[...] = out                       # stays resident in VMEM for next layer

    # ------------------ final vocab projection on the last layer --------------
    # NOTE: logits_ref has a constant index map and is intentionally only written
    # on the last grid step; earlier steps leave it untouched (valid under the
    # constant-index-output writeback semantics — do not make this per-layer
    # indexed without also writing it every step).
    @pl.when(l == num_layers - 1)
    def _():
        logits_ref[...] = mm(out.astype(bf16), wd_ref[...]) + bd_ref[...]


# --------------------------------- wrapper -----------------------------------
def transformer_decoder_forward(tokens, enc_outputs, enc_valid_lens, params, *, num_heads):
    B, S = tokens.shape
    H = params["embedding"].shape[1]
    Se = enc_outputs.shape[1]
    V = params["wd"].shape[1]
    Vp = ((V + 127) // 128) * 128            # lane-dense (unmasked) final store
    L = params["wqkv1"].shape[0]
    Fh = params["wf1"].shape[2]
    N = B * S
    bf16 = jnp.bfloat16

    # glue: embedding lookup + positional encoding (dropout = identity)
    x = params["embedding"][tokens] * math.sqrt(H) + params["pos"][None, :S, :]
    x = x.astype(jnp.float32).reshape(N, H)
    enc_flat = enc_outputs.astype(bf16).reshape(B * Se, H)   # bf16 once, outside kernel
    enc_bias = jnp.where(jnp.arange(Se)[None, :] < enc_valid_lens[:, None],
                         0.0, NEG_INF).astype(jnp.float32).reshape(B, 1, Se)
    causal_bias = jnp.where(jnp.arange(S)[None, :] <= jnp.arange(S)[:, None],
                            0.0, NEG_INF).astype(jnp.float32).reshape(1, S, S)

    # Pad the vocab projection to a multiple of 128 lanes (zero columns -> zero
    # logits that the wrapper slices off).
    wd = jnp.zeros((H, Vp), bf16).at[:, :V].set(params["wd"].astype(bf16))
    bd = jnp.zeros((1, Vp), jnp.float32).at[:, :V].set(params["bd"])

    const2 = lambda l: (0, 0)
    const3 = lambda l: (0, 0, 0)
    per_layer = lambda l: (l, 0, 0)

    def build(single_buffer_consts):
        def cspec(shape, imap):
            # Constant-index operands never change across the layer grid:
            # single-buffer them to halve their VMEM footprint.
            if single_buffer_consts:
                return pl.BlockSpec(shape, imap, pipeline_mode=pl.Buffered(1))
            return pl.BlockSpec(shape, imap)

        grid_spec = pltpu.PrefetchScalarGridSpec(
            num_scalar_prefetch=0,
            grid=(L,),
            in_specs=[
                cspec((N, H), const2),                    # x (flattened, resident)
                cspec((B * Se, H), const2),               # enc outputs (flattened, bf16)
                cspec((1, S, S), const3),                 # additive causal bias
                cspec((B, 1, Se), const3),                # additive cross-attn key mask
                pl.BlockSpec((1, H, 3 * H), per_layer),   # fused Wq|Wk|Wv (self-attn)
                pl.BlockSpec((1, H, H), per_layer),       # Wo (self-attn)
                pl.BlockSpec((1, H, H), per_layer),       # Wq (cross-attn)
                pl.BlockSpec((1, H, 2 * H), per_layer),   # fused Wk|Wv (cross-attn)
                pl.BlockSpec((1, H, H), per_layer),       # Wo (cross-attn)
                pl.BlockSpec((1, H, Fh), per_layer),      # FFN dense1 W
                pl.BlockSpec((1, 1, Fh), per_layer),      # FFN dense1 b
                pl.BlockSpec((1, Fh, H), per_layer),      # FFN dense2 W
                pl.BlockSpec((1, 1, H), per_layer),       # FFN dense2 b
                pl.BlockSpec((1, 3, H), per_layer),       # LayerNorm gammas (3 AddNorms)
                pl.BlockSpec((1, 3, H), per_layer),       # LayerNorm betas
                cspec((H, Vp), const2),                   # final vocab projection W (padded)
                cspec((1, Vp), const2),                   # final vocab projection b (padded)
            ],
            out_specs=(
                pl.BlockSpec((N, Vp), const2),            # lane-dense logits (last layer)
                pl.BlockSpec((1, N, H), per_layer),       # per-layer key_values cache (state)
            ),
            scratch_shapes=[
                pltpu.VMEM((N, H), jnp.float32),          # resident activation across layers
            ],
        )
        return pl.pallas_call(
            functools.partial(decoder_stack_kernel, num_heads=num_heads),
            grid_spec=grid_spec,
            out_shape=(jax.ShapeDtypeStruct((N, Vp), jnp.float32),
                       jax.ShapeDtypeStruct((L, N, H), jnp.float32)),
            compiler_params=pltpu.CompilerParams(
                dimension_semantics=("arbitrary",),
                vmem_limit_bytes=64 * 1024 * 1024),
        )

    args = (x, enc_flat, causal_bias, enc_bias,
            params["wqkv1"].astype(bf16), params["wo1"].astype(bf16),
            params["wq2"].astype(bf16), params["wkv2"].astype(bf16),
            params["wo2"].astype(bf16),
            params["wf1"].astype(bf16), params["bf1"],
            params["wf2"].astype(bf16), params["bf2"],
            params["ln_g"], params["ln_b"], wd, bd)

    try:
        logits2d, caches = build(True)(*args)
    except Exception:
        # TODO(synk): pipeline_mode=pl.Buffered(1) unsupported in this JAX/Mosaic
        #             build; fall back to default double-buffering of the
        #             constant-index operands (correctness is unaffected).
        logits2d, caches = build(False)(*args)

    logits = logits2d.reshape(B, S, Vp)[:, :, :V]
    caches = caches.reshape(L, B, S, H)
    state = [enc_outputs, enc_valid_lens, [caches[i] for i in range(L)]]
    # TODO(synk): per-layer attention_weights (side attributes in PyTorch) are not
    #             returned; eval-mode incremental decoding (growing state[2][i]
    #             concat + unmasked self-attention) is not modeled — this is the
    #             training-mode full-sequence forward with a fresh init_state.
    return logits, state


# ----------------------------- parameter setup --------------------------------
def positional_encoding(max_len, num_hiddens):
    pos = jnp.arange(max_len, dtype=jnp.float32)[:, None]
    div = jnp.power(10000.0,
                    jnp.arange(0, num_hiddens, 2, dtype=jnp.float32) / num_hiddens)
    angles = pos / div
    P = jnp.zeros((max_len, num_hiddens), jnp.float32)
    P = P.at[:, 0::2].set(jnp.sin(angles))
    P = P.at[:, 1::2].set(jnp.cos(angles))
    return P


def init_params(key, vocab_size, num_hiddens, ffn_num_hiddens, num_layers, max_len=1000):
    H, Fh, L = num_hiddens, ffn_num_hiddens, num_layers

    def rand(k, shape, s=0.1):
        return jax.random.normal(k, shape, jnp.float32) * s

    key, k_emb, k_wd, k_bd = jax.random.split(key, 4)
    params = {
        "embedding": rand(k_emb, (vocab_size, H)),
        "pos": positional_encoding(max_len, H),
        "wd": rand(k_wd, (H, vocab_size)),
        "bd": rand(k_bd, (1, vocab_size), 0.05),
    }
    names = ["wqkv1", "wo1", "wq2", "wkv2", "wo2",
             "wf1", "bf1", "wf2", "bf2", "ln_g", "ln_b"]
    stacks = {n: [] for n in names}
    for _ in range(L):
        key, *ks = jax.random.split(key, 15)
        stacks["wqkv1"].append(jnp.concatenate(
            [rand(ks[0], (H, H)), rand(ks[1], (H, H)), rand(ks[2], (H, H))], axis=1))
        stacks["wo1"].append(rand(ks[3], (H, H)))
        stacks["wq2"].append(rand(ks[4], (H, H)))
        stacks["wkv2"].append(jnp.concatenate(
            [rand(ks[5], (H, H)), rand(ks[6], (H, H))], axis=1))
        stacks["wo2"].append(rand(ks[7], (H, H)))
        stacks["wf1"].append(rand(ks[8], (H, Fh)))
        stacks["bf1"].append(rand(ks[9], (1, Fh), 0.05))
        stacks["wf2"].append(rand(ks[10], (Fh, H)))
        stacks["bf2"].append(rand(ks[11], (1, H), 0.05))
        stacks["ln_g"].append(1.0 + rand(ks[12], (3, H), 0.05))
        stacks["ln_b"].append(rand(ks[13], (3, H), 0.05))
    for n in names:
        params[n] = jnp.stack(stacks[n])
    return params


# --------------------------- reference (pure JAX) ------------------------------
def reference_forward(tokens, enc_outputs, enc_valid_lens, params, *, num_heads):
    bf16 = jnp.bfloat16

    def mm(a, b):
        return jnp.dot(a.astype(bf16), b.astype(bf16), preferred_element_type=jnp.float32)

    B, S = tokens.shape
    H = params["embedding"].shape[1]
    Se = enc_outputs.shape[1]
    L = params["wqkv1"].shape[0]
    nh = num_heads
    d = H // nh

    def ln(z, g, b):
        mu = z.mean(-1, keepdims=True)
        var = ((z - mu) ** 2).mean(-1, keepdims=True)
        return (z - mu) * lax.rsqrt(var + 1e-5) * g + b

    def attention(q, k, v, keep, kv_len):
        qh = q.reshape(B, S, nh, d).transpose(0, 2, 1, 3)
        kh = k.reshape(B, kv_len, nh, d).transpose(0, 2, 1, 3)
        vh = v.reshape(B, kv_len, nh, d).transpose(0, 2, 1, 3)
        s = jnp.einsum("bhqd,bhkd->bhqk", qh.astype(bf16), kh.astype(bf16),
                       preferred_element_type=jnp.float32) / math.sqrt(d)
        s = jnp.where(keep, s, NEG_INF)
        p = jax.nn.softmax(s, axis=-1)
        o = jnp.einsum("bhqk,bhkd->bhqd", p.astype(bf16), vh.astype(bf16),
                       preferred_element_type=jnp.float32)
        return o.transpose(0, 2, 1, 3).reshape(B * S, H)

    x = params["embedding"][tokens] * math.sqrt(H) + params["pos"][None, :S, :]
    X = x.reshape(B * S, H)
    enc = enc_outputs.reshape(B * Se, H)
    causal = (jnp.arange(S)[None, :] <= jnp.arange(S)[:, None])[None, None, :, :]
    enc_keep = (jnp.arange(Se)[None, :] < enc_valid_lens[:, None])[:, None, None, :]

    caches = []
    for li in range(L):
        caches.append(X.reshape(B, S, H))
        qkv = mm(X, params["wqkv1"][li])
        a1 = mm(attention(qkv[:, :H], qkv[:, H:2 * H], qkv[:, 2 * H:], causal, S),
                params["wo1"][li])
        y = ln(X + a1, params["ln_g"][li, 0], params["ln_b"][li, 0])
        q2 = mm(y, params["wq2"][li])
        kv2 = mm(enc, params["wkv2"][li])
        a2 = mm(attention(q2, kv2[:, :H], kv2[:, H:], enc_keep, Se), params["wo2"][li])
        z = ln(y + a2, params["ln_g"][li, 1], params["ln_b"][li, 1])
        f = mm(jnp.maximum(mm(z, params["wf1"][li]) + params["bf1"][li], 0.0),
               params["wf2"][li]) + params["bf2"][li]
        X = ln(z + f, params["ln_g"][li, 2], params["ln_b"][li, 2])
    logits = (mm(X, params["wd"]) + params["bd"]).reshape(B, S, -1)
    return logits, caches


# ----------------------------------- main --------------------------------------
if __name__ == "__main__":
    vocab_size = 50
    num_hiddens = 32
    num_heads = 4
    ffn_num_hiddens = 64
    num_layers = 2
    B, S, S_enc = 2, 8, 16     # decoder steps / encoder sequence length
    # NOTE: at these toy shapes the kernel is bound by per-grid-step overhead,
    # not the MXU; scale H/d toward 128 lanes for meaningful benchmarking.

    key = jax.random.PRNGKey(0)
    key, k_par, k_tok, k_enc = jax.random.split(key, 4)
    params = init_params(k_par, vocab_size, num_hiddens, ffn_num_hiddens, num_layers)
    tokens = jax.random.randint(k_tok, (B, S), 0, vocab_size, dtype=jnp.int32)
    enc_outputs = jax.random.normal(k_enc, (B, S_enc, num_hiddens), jnp.float32) * 0.5
    enc_valid_lens = jnp.array([5, 13], dtype=jnp.int32)

    logits, state = transformer_decoder_forward(
        tokens, enc_outputs, enc_valid_lens, params, num_heads=num_heads)
    logits = jax.block_until_ready(logits)

    ref_logits, ref_caches = reference_forward(
        tokens, enc_outputs, enc_valid_lens, params, num_heads=num_heads)
    ref_logits = jax.block_until_ready(ref_logits)

    assert logits.shape == (B, S, vocab_size)
    # Tolerance covers the kernel's approximate EUP reciprocal in softmax and tiny
    # bf16 double-rounding / accumulation-order differences vs the mirrored reference.
    err = jnp.max(jnp.abs(logits - ref_logits))
    assert jnp.allclose(logits, ref_logits, atol=3e-2, rtol=3e-2), f"max abs err {err}"
    for li in range(num_layers):
        assert jnp.allclose(state[2][li], ref_caches[li], atol=3e-2, rtol=3e-2)

    print("KERNEL_OK")
</pallas_src>

<mosaic_0001>
module attributes {stable_mosaic.version = 11 : i64} {
  func.func @decoder_stack_kernel(%arg0: i32, %arg1: memref<16x32xf32, #tpu.memory_space<vmem>>, %arg2: memref<32x32xbf16, #tpu.memory_space<vmem>>, %arg3: memref<1x8x8xf32, #tpu.memory_space<vmem>>, %arg4: memref<2x1x16xf32, #tpu.memory_space<vmem>>, %arg5: memref<1x32x96xbf16, #tpu.memory_space<vmem>>, %arg6: memref<1x32x32xbf16, #tpu.memory_space<vmem>>, %arg7: memref<1x32x32xbf16, #tpu.memory_space<vmem>>, %arg8: memref<1x32x64xbf16, #tpu.memory_space<vmem>>, %arg9: memref<1x32x32xbf16, #tpu.memory_space<vmem>>, %arg10: memref<1x32x64xbf16, #tpu.memory_space<vmem>>, %arg11: memref<1x1x64xf32, #tpu.memory_space<vmem>>, %arg12: memref<1x64x32xbf16, #tpu.memory_space<vmem>>, %arg13: memref<1x1x32xf32, #tpu.memory_space<vmem>>, %arg14: memref<1x3x32xf32, #tpu.memory_space<vmem>>, %arg15: memref<1x3x32xf32, #tpu.memory_space<vmem>>, %arg16: memref<32x128xbf16, #tpu.memory_space<vmem>>, %arg17: memref<1x128xf32, #tpu.memory_space<vmem>>, %arg18: memref<16x128xf32, #tpu.memory_space<vmem>>, %arg19: memref<1x16x32xf32, #tpu.memory_space<vmem>>, %arg20: memref<16x32xf32, #tpu.memory_space<vmem>>) attributes {dimension_semantics = [#tpu.dimension_semantics<arbitrary>], iteration_bounds = array<i64: 2>, scalar_prefetch = 0 : i64, scratch_operands = 1 : i64, tpu.core_type = #tpu.core_type<tc>, window_params = [{pipeline_mode = #tpu.pipeline_mode<synchronous>, transform_indices = @transform_0, window_bounds = array<i64: 16, 32>}, {pipeline_mode = #tpu.pipeline_mode<synchronous>, transform_indices = @transform_1, window_bounds = array<i64: 32, 32>}, {pipeline_mode = #tpu.pipeline_mode<synchronous>, transform_indices = @transform_2, window_bounds = array<i64: 1, 8, 8>}, {pipeline_mode = #tpu.pipeline_mode<synchronous>, transform_indices = @transform_3, window_bounds = array<i64: 2, 1, 16>}, {transform_indices = @transform_4, window_bounds = array<i64: 1, 32, 96>}, {transform_indices = @transform_5, window_bounds = array<i64: 1, 32, 32>}, {transform_indices = @transform_6, window_bounds = array<i64: 1, 32, 32>}, {transform_indices = @transform_7, window_bounds = array<i64: 1, 32, 64>}, {transform_indices = @transform_8, window_bounds = array<i64: 1, 32, 32>}, {transform_indices = @transform_9, window_bounds = array<i64: 1, 32, 64>}, {transform_indices = @transform_10, window_bounds = array<i64: 1, 1, 64>}, {transform_indices = @transform_11, window_bounds = array<i64: 1, 64, 32>}, {transform_indices = @transform_12, window_bounds = array<i64: 1, 1, 32>}, {transform_indices = @transform_13, window_bounds = array<i64: 1, 3, 32>}, {transform_indices = @transform_14, window_bounds = array<i64: 1, 3, 32>}, {pipeline_mode = #tpu.pipeline_mode<synchronous>, transform_indices = @transform_15, window_bounds = array<i64: 32, 128>}, {pipeline_mode = #tpu.pipeline_mode<synchronous>, transform_indices = @transform_16, window_bounds = array<i64: 1, 128>}, {pipeline_mode = #tpu.pipeline_mode<synchronous>, transform_indices = @transform_17, window_bounds = array<i64: 16, 128>}, {transform_indices = @transform_18, window_bounds = array<i64: 1, 16, 32>}]} {
    %c0 = arith.constant 0 : index
    %c0_0 = arith.constant 0 : index
    %c0_1 = arith.constant 0 : index
    %0 = vector.load %arg14[%c0, %c0_0, %c0_1] : memref<1x3x32xf32, #tpu.memory_space<vmem>>, vector<1x3x32xf32>
    %1 = vector.shape_cast %0 : vector<1x3x32xf32> to vector<3x32xf32>
    %c0_2 = arith.constant 0 : index
    %c0_3 = arith.constant 0 : index
    %c0_4 = arith.constant 0 : index
    %2 = vector.load %arg15[%c0_2, %c0_3, %c0_4] : memref<1x3x32xf32, #tpu.memory_space<vmem>>, vector<1x3x32xf32>
    %3 = vector.shape_cast %2 : vector<1x3x32xf32> to vector<3x32xf32>
    %c0_i32 = arith.constant 0 : i32
    %4 = arith.cmpi eq, %arg0, %c0_i32 : i32
    %5 = arith.extui %4 : i1 to i32
    %c0_i32_5 = arith.constant 0 : i32
    %6 = arith.cmpi ne, %5, %c0_i32_5 : i32
    scf.if %6 {
      %c0_117 = arith.constant 0 : index
      %c0_118 = arith.constant 0 : index
      %356 = vector.load %arg1[%c0_117, %c0_118] : memref<16x32xf32, #tpu.memory_space<vmem>>, vector<16x32xf32>
      %c0_119 = arith.constant 0 : index
      %c0_120 = arith.constant 0 : index
      %357 = vector.load %arg20[%c0_119, %c0_120] : memref<16x32xf32, #tpu.memory_space<vmem>>, vector<16x32xf32>
      tpu.vector_store %arg20[%c0_119, %c0_120], %356 {strides = array<i32>} : memref<16x32xf32, #tpu.memory_space<vmem>>, vector<16x32xf32>,
    } else {
    }
    %c0_6 = arith.constant 0 : index
    %c0_7 = arith.constant 0 : index
    %7 = vector.load %arg20[%c0_6, %c0_7] : memref<16x32xf32, #tpu.memory_space<vmem>>, vector<16x32xf32>
    %c0_8 = arith.constant 0 : index
    %c0_9 = arith.constant 0 : index
    %c0_10 = arith.constant 0 : index
    %8 = vector.load %arg19[%c0_8, %c0_9, %c0_10] : memref<1x16x32xf32, #tpu.memory_space<vmem>>, vector<1x16x32xf32>
    %9 = vector.shape_cast %8 : vector<1x16x32xf32> to vector<16x32xf32>
    %10 = vector.shape_cast %7 : vector<16x32xf32> to vector<1x16x32xf32>
    tpu.vector_store %arg19[%c0_8, %c0_9, %c0_10], %10 {strides = array<i32>} : memref<1x16x32xf32, #tpu.memory_space<vmem>>, vector<1x16x32xf32>,
    %11 = arith.truncf %7 : vector<16x32xf32> to vector<16x32xbf16>
    %c0_11 = arith.constant 0 : index
    %c0_12 = arith.constant 0 : index
    %c0_13 = arith.constant 0 : index
    %12 = vector.load %arg5[%c0_11, %c0_12, %c0_13] : memref<1x32x96xbf16, #tpu.memory_space<vmem>>, vector<1x32x96xbf16>
    %13 = vector.shape_cast %12 : vector<1x32x96xbf16> to vector<32x96xbf16>
    %cst = arith.constant dense<0.000000e+00> : vector<16x96xf32>
    %14 = tpu.matmul %11, %13, %cst {dimension_numbers = #tpu.dot_dimension_numbers<[1], [0], [0], [1], [0, 0, 1, 1], [], []>} : vector<16x32xbf16>, vector<32x96xbf16>, vector<16x96xf32> -> vector<16x96xf32>
    %15 = arith.truncf %14 : vector<16x96xf32> to vector<16x96xbf16>
    %16 = vector.extract_strided_slice %15 {offsets = [0, 0], sizes = [16, 32], strides = [1, 1]} : vector<16x96xbf16> to vector<16x32xbf16>
    %17 = vector.extract_strided_slice %15 {offsets = [0, 32], sizes = [16, 32], strides = [1, 1]} : vector<16x96xbf16> to vector<16x32xbf16>
    %18 = vector.extract_strided_slice %15 {offsets = [0, 64], sizes = [16, 32], strides = [1, 1]} : vector<16x96xbf16> to vector<16x32xbf16>
    %c0_14 = arith.constant 0 : index
    %c0_15 = arith.constant 0 : index
    %c0_16 = arith.constant 0 : index
    %19 = vector.load %arg6[%c0_14, %c0_15, %c0_16] : memref<1x32x32xbf16, #tpu.memory_space<vmem>>, vector<1x32x32xbf16>
    %20 = vector.shape_cast %19 : vector<1x32x32xbf16> to vector<32x32xbf16>
    %c0_17 = arith.constant 0 : index
    %c0_18 = arith.constant 0 : index
    %c0_19 = arith.constant 0 : index
    %21 = vector.load %arg3[%c0_17, %c0_18, %c0_19] : memref<1x8x8xf32, #tpu.memory_space<vmem>>, vector<1x8x8xf32>
    %22 = vector.extract_strided_slice %16 {offsets = [0, 0], sizes = [16, 8], strides = [1, 1]} : vector<16x32xbf16> to vector<16x8xbf16>
    %23 = vector.shape_cast %22 : vector<16x8xbf16> to vector<2x8x8xbf16>
    %24 = vector.extract_strided_slice %17 {offsets = [0, 0], sizes = [16, 8], strides = [1, 1]} : vector<16x32xbf16> to vector<16x8xbf16>
    %25 = vector.shape_cast %24 : vector<16x8xbf16> to vector<2x8x8xbf16>
    %26 = vector.extract_strided_slice %18 {offsets = [0, 0], sizes = [16, 8], strides = [1, 1]} : vector<16x32xbf16> to vector<16x8xbf16>
    %27 = vector.shape_cast %26 : vector<16x8xbf16> to vector<2x8x8xbf16>
    "tpu.trace_start"() <{level = 10 : i32, message = "bqd,bkd->bqk"}> : () -> ()
    %cst_20 = arith.constant dense<0.000000e+00> : vector<2x8x8xf32>
    %28 = tpu.matmul %23, %25, %cst_20 {dimension_numbers = #tpu.dot_dimension_numbers<[2], [2], [1], [1], [0, 0, 0, 1, 1, 1], [0], [0]>} : vector<2x8x8xbf16>, vector<2x8x8xbf16>, vector<2x8x8xf32> -> vector<2x8x8xf32>
    "tpu.trace_stop"() : () -> ()
    %cst_21 = arith.constant 0.353553385 : f32
    %29 = vector.broadcast %cst_21 : f32 to vector<2x8x8xf32>
    %30 = arith.mulf %28, %29 : vector<2x8x8xf32>
    %31 = vector.broadcast %21 : vector<1x8x8xf32> to vector<2x8x8xf32>
    %32 = arith.addf %30, %31 : vector<2x8x8xf32>
    %cst_22 = arith.constant dense<0xFF800000> : vector<2x8xf32>
    %33 = vector.multi_reduction <maximumf>, %32, %cst_22 [2] : vector<2x8x8xf32> to vector<2x8xf32>
    %34 = vector.shape_cast %33 : vector<2x8xf32> to vector<2x8x1xf32>
    %35 = vector.broadcast %34 : vector<2x8x1xf32> to vector<2x8x8xf32>
    %36 = arith.subf %32, %35 : vector<2x8x8xf32>
    %37 = math.exp %36 : vector<2x8x8xf32>
    %cst_23 = arith.constant dense<0.000000e+00> : vector<2x8xf32>
    %38 = vector.multi_reduction <add>, %37, %cst_23 [2] : vector<2x8x8xf32> to vector<2x8xf32>
    %39 = vector.shape_cast %38 : vector<2x8xf32> to vector<2x8x1xf32>
    %40 = tpu.reciprocal %39 {approx = true} : vector<2x8x1xf32> -> vector<2x8x1xf32>
    %41 = vector.broadcast %40 : vector<2x8x1xf32> to vector<2x8x8xf32>
    %42 = arith.mulf %37, %41 : vector<2x8x8xf32>
    %43 = arith.truncf %42 : vector<2x8x8xf32> to vector<2x8x8xbf16>
    "tpu.trace_start"() <{level = 10 : i32, message = "bqk,bkd->bqd"}> : () -> ()
    %cst_24 = arith.constant dense<0.000000e+00> : vector<2x8x8xf32>
    %44 = tpu.matmul %43, %27, %cst_24 {dimension_numbers = #tpu.dot_dimension_numbers<[2], [1], [1], [2], [0, 0, 0, 1, 1, 2], [0], [0]>} : vector<2x8x8xbf16>, vector<2x8x8xbf16>, vector<2x8x8xf32> -> vector<2x8x8xf32>
    "tpu.trace_stop"() : () -> ()
    %45 = vector.shape_cast %44 : vector<2x8x8xf32> to vector<16x8xf32>
    %46 = arith.truncf %45 : vector<16x8xf32> to vector<16x8xbf16>
    %47 = vector.extract_strided_slice %20 {offsets = [0, 0], sizes = [8, 32], strides = [1, 1]} : vector<32x32xbf16> to vector<8x32xbf16>
    %cst_25 = arith.constant dense<0.000000e+00> : vector<16x32xf32>
    %48 = tpu.matmul %46, %47, %cst_25 {dimension_numbers = #tpu.dot_dimension_numbers<[1], [0], [0], [1], [0, 0, 1, 1], [], []>} : vector<16x8xbf16>, vector<8x32xbf16>, vector<16x32xf32> -> vector<16x32xf32>
    %49 = vector.extract_strided_slice %16 {offsets = [0, 8], sizes = [16, 8], strides = [1, 1]} : vector<16x32xbf16> to vector<16x8xbf16>
    %50 = vector.shape_cast %49 : vector<16x8xbf16> to vector<2x8x8xbf16>
    %51 = vector.extract_strided_slice %17 {offsets = [0, 8], sizes = [16, 8], strides = [1, 1]} : vector<16x32xbf16> to vector<16x8xbf16>
    %52 = vector.shape_cast %51 : vector<16x8xbf16> to vector<2x8x8xbf16>
    %53 = vector.extract_strided_slice %18 {offsets = [0, 8], sizes = [16, 8], strides = [1, 1]} : vector<16x32xbf16> to vector<16x8xbf16>
    %54 = vector.shape_cast %53 : vector<16x8xbf16> to vector<2x8x8xbf16>
    "tpu.trace_start"() <{level = 10 : i32, message = "bqd,bkd->bqk"}> : () -> ()
    %cst_26 = arith.constant dense<0.000000e+00> : vector<2x8x8xf32>
    %55 = tpu.matmul %50, %52, %cst_26 {dimension_numbers = #tpu.dot_dimension_numbers<[2], [2], [1], [1], [0, 0, 0, 1, 1, 1], [0], [0]>} : vector<2x8x8xbf16>, vector<2x8x8xbf16>, vector<2x8x8xf32> -> vector<2x8x8xf32>
    "tpu.trace_stop"() : () -> ()
    %cst_27 = arith.constant 0.353553385 : f32
    %56 = vector.broadcast %cst_27 : f32 to vector<2x8x8xf32>
    %57 = arith.mulf %55, %56 : vector<2x8x8xf32>
    %58 = vector.broadcast %21 : vector<1x8x8xf32> to vector<2x8x8xf32>
    %59 = arith.addf %57, %58 : vector<2x8x8xf32>
    %cst_28 = arith.constant dense<0xFF800000> : vector<2x8xf32>
    %60 = vector.multi_reduction <maximumf>, %59, %cst_28 [2] : vector<2x8x8xf32> to vector<2x8xf32>
    %61 = vector.shape_cast %60 : vector<2x8xf32> to vector<2x8x1xf32>
    %62 = vector.broadcast %61 : vector<2x8x1xf32> to vector<2x8x8xf32>
    %63 = arith.subf %59, %62 : vector<2x8x8xf32>
    %64 = math.exp %63 : vector<2x8x8xf32>
    %cst_29 = arith.constant dense<0.000000e+00> : vector<2x8xf32>
    %65 = vector.multi_reduction <add>, %64, %cst_29 [2] : vector<2x8x8xf32> to vector<2x8xf32>
    %66 = vector.shape_cast %65 : vector<2x8xf32> to vector<2x8x1xf32>
    %67 = tpu.reciprocal %66 {approx = true} : vector<2x8x1xf32> -> vector<2x8x1xf32>
    %68 = vector.broadcast %67 : vector<2x8x1xf32> to vector<2x8x8xf32>
    %69 = arith.mulf %64, %68 : vector<2x8x8xf32>
    %70 = arith.truncf %69 : vector<2x8x8xf32> to vector<2x8x8xbf16>
    "tpu.trace_start"() <{level = 10 : i32, message = "bqk,bkd->bqd"}> : () -> ()
    %cst_30 = arith.constant dense<0.000000e+00> : vector<2x8x8xf32>
    %71 = tpu.matmul %70, %54, %cst_30 {dimension_numbers = #tpu.dot_dimension_numbers<[2], [1], [1], [2], [0, 0, 0, 1, 1, 2], [0], [0]>} : vector<2x8x8xbf16>, vector<2x8x8xbf16>, vector<2x8x8xf32> -> vector<2x8x8xf32>
    "tpu.trace_stop"() : () -> ()
    %72 = vector.shape_cast %71 : vector<2x8x8xf32> to vector<16x8xf32>
    %73 = arith.truncf %72 : vector<16x8xf32> to vector<16x8xbf16>
    %74 = vector.extract_strided_slice %20 {offsets = [8, 0], sizes = [8, 32], strides = [1, 1]} : vector<32x32xbf16> to vector<8x32xbf16>
    %cst_31 = arith.constant dense<0.000000e+00> : vector<16x32xf32>
    %75 = tpu.matmul %73, %74, %cst_31 {dimension_numbers = #tpu.dot_dimension_numbers<[1], [0], [0], [1], [0, 0, 1, 1], [], []>} : vector<16x8xbf16>, vector<8x32xbf16>, vector<16x32xf32> -> vector<16x32xf32>
    %76 = arith.addf %48, %75 : vector<16x32xf32>
    %77 = vector.extract_strided_slice %16 {offsets = [0, 16], sizes = [16, 8], strides = [1, 1]} : vector<16x32xbf16> to vector<16x8xbf16>
    %78 = vector.shape_cast %77 : vector<16x8xbf16> to vector<2x8x8xbf16>
    %79 = vector.extract_strided_slice %17 {offsets = [0, 16], sizes = [16, 8], strides = [1, 1]} : vector<16x32xbf16> to vector<16x8xbf16>
    %80 = vector.shape_cast %79 : vector<16x8xbf16> to vector<2x8x8xbf16>
    %81 = vector.extract_strided_slice %18 {offsets = [0, 16], sizes = [16, 8], strides = [1, 1]} : vector<16x32xbf16> to vector<16x8xbf16>
    %82 = vector.shape_cast %81 : vector<16x8xbf16> to vector<2x8x8xbf16>
    "tpu.trace_start"() <{level = 10 : i32, message = "bqd,bkd->bqk"}> : () -> ()
    %cst_32 = arith.constant dense<0.000000e+00> : vector<2x8x8xf32>
    %83 = tpu.matmul %78, %80, %cst_32 {dimension_numbers = #tpu.dot_dimension_numbers<[2], [2], [1], [1], [0, 0, 0, 1, 1, 1], [0], [0]>} : vector<2x8x8xbf16>, vector<2x8x8xbf16>, vector<2x8x8xf32> -> vector<2x8x8xf32>
    "tpu.trace_stop"() : () -> ()
    %cst_33 = arith.constant 0.353553385 : f32
    %84 = vector.broadcast %cst_33 : f32 to vector<2x8x8xf32>
    %85 = arith.mulf %83, %84 : vector<2x8x8xf32>
    %86 = vector.broadcast %21 : vector<1x8x8xf32> to vector<2x8x8xf32>
    %87 = arith.addf %85, %86 : vector<2x8x8xf32>
    %cst_34 = arith.constant dense<0xFF800000> : vector<2x8xf32>
    %88 = vector.multi_reduction <maximumf>, %87, %cst_34 [2] : vector<2x8x8xf32> to vector<2x8xf32>
    %89 = vector.shape_cast %88 : vector<2x8xf32> to vector<2x8x1xf32>
    %90 = vector.broadcast %89 : vector<2x8x1xf32> to vector<2x8x8xf32>
    %91 = arith.subf %87, %90 : vector<2x8x8xf32>
    %92 = math.exp %91 : vector<2x8x8xf32>
    %cst_35 = arith.constant dense<0.000000e+00> : vector<2x8xf32>
    %93 = vector.multi_reduction <add>, %92, %cst_35 [2] : vector<2x8x8xf32> to vector<2x8xf32>
    %94 = vector.shape_cast %93 : vector<2x8xf32> to vector<2x8x1xf32>
    %95 = tpu.reciprocal %94 {approx = true} : vector<2x8x1xf32> -> vector<2x8x1xf32>
    %96 = vector.broadcast %95 : vector<2x8x1xf32> to vector<2x8x8xf32>
    %97 = arith.mulf %92, %96 : vector<2x8x8xf32>
    %98 = arith.truncf %97 : vector<2x8x8xf32> to vector<2x8x8xbf16>
    "tpu.trace_start"() <{level = 10 : i32, message = "bqk,bkd->bqd"}> : () -> ()
    %cst_36 = arith.constant dense<0.000000e+00> : vector<2x8x8xf32>
    %99 = tpu.matmul %98, %82, %cst_36 {dimension_numbers = #tpu.dot_dimension_numbers<[2], [1], [1], [2], [0, 0, 0, 1, 1, 2], [0], [0]>} : vector<2x8x8xbf16>, vector<2x8x8xbf16>, vector<2x8x8xf32> -> vector<2x8x8xf32>
    "tpu.trace_stop"() : () -> ()
    %100 = vector.shape_cast %99 : vector<2x8x8xf32> to vector<16x8xf32>
    %101 = arith.truncf %100 : vector<16x8xf32> to vector<16x8xbf16>
    %102 = vector.extract_strided_slice %20 {offsets = [16, 0], sizes = [8, 32], strides = [1, 1]} : vector<32x32xbf16> to vector<8x32xbf16>
    %cst_37 = arith.constant dense<0.000000e+00> : vector<16x32xf32>
    %103 = tpu.matmul %101, %102, %cst_37 {dimension_numbers = #tpu.dot_dimension_numbers<[1], [0], [0], [1], [0, 0, 1, 1], [], []>} : vector<16x8xbf16>, vector<8x32xbf16>, vector<16x32xf32> -> vector<16x32xf32>
    %104 = arith.addf %76, %103 : vector<16x32xf32>
    %105 = vector.extract_strided_slice %16 {offsets = [0, 24], sizes = [16, 8], strides = [1, 1]} : vector<16x32xbf16> to vector<16x8xbf16>
    %106 = vector.shape_cast %105 : vector<16x8xbf16> to vector<2x8x8xbf16>
    %107 = vector.extract_strided_slice %17 {offsets = [0, 24], sizes = [16, 8], strides = [1, 1]} : vector<16x32xbf16> to vector<16x8xbf16>
    %108 = vector.shape_cast %107 : vector<16x8xbf16> to vector<2x8x8xbf16>
    %109 = vector.extract_strided_slice %18 {offsets = [0, 24], sizes = [16, 8], strides = [1, 1]} : vector<16x32xbf16> to vector<16x8xbf16>
    %110 = vector.shape_cast %109 : vector<16x8xbf16> to vector<2x8x8xbf16>
    "tpu.trace_start"() <{level = 10 : i32, message = "bqd,bkd->bqk"}> : () -> ()
    %cst_38 = arith.constant dense<0.000000e+00> : vector<2x8x8xf32>
    %111 = tpu.matmul %106, %108, %cst_38 {dimension_numbers = #tpu.dot_dimension_numbers<[2], [2], [1], [1], [0, 0, 0, 1, 1, 1], [0], [0]>} : vector<2x8x8xbf16>, vector<2x8x8xbf16>, vector<2x8x8xf32> -> vector<2x8x8xf32>
    "tpu.trace_stop"() : () -> ()
    %cst_39 = arith.constant 0.353553385 : f32
    %112 = vector.broadcast %cst_39 : f32 to vector<2x8x8xf32>
    %113 = arith.mulf %111, %112 : vector<2x8x8xf32>
    %114 = vector.broadcast %21 : vector<1x8x8xf32> to vector<2x8x8xf32>
    %115 = arith.addf %113, %114 : vector<2x8x8xf32>
    %cst_40 = arith.constant dense<0xFF800000> : vector<2x8xf32>
    %116 = vector.multi_reduction <maximumf>, %115, %cst_40 [2] : vector<2x8x8xf32> to vector<2x8xf32>
    %117 = vector.shape_cast %116 : vector<2x8xf32> to vector<2x8x1xf32>
    %118 = vector.broadcast %117 : vector<2x8x1xf32> to vector<2x8x8xf32>
    %119 = arith.subf %115, %118 : vector<2x8x8xf32>
    %120 = math.exp %119 : vector<2x8x8xf32>
    %cst_41 = arith.constant dense<0.000000e+00> : vector<2x8xf32>
    %121 = vector.multi_reduction <add>, %120, %cst_41 [2] : vector<2x8x8xf32> to vector<2x8xf32>
    %122 = vector.shape_cast %121 : vector<2x8xf32> to vector<2x8x1xf32>
    %123 = tpu.reciprocal %122 {approx = true} : vector<2x8x1xf32> -> vector<2x8x1xf32>
    %124 = vector.broadcast %123 : vector<2x8x1xf32> to vector<2x8x8xf32>
    %125 = arith.mulf %120, %124 : vector<2x8x8xf32>
    %126 = arith.truncf %125 : vector<2x8x8xf32> to vector<2x8x8xbf16>
    "tpu.trace_start"() <{level = 10 : i32, message = "bqk,bkd->bqd"}> : () -> ()
    %cst_42 = arith.constant dense<0.000000e+00> : vector<2x8x8xf32>
    %127 = tpu.matmul %126, %110, %cst_42 {dimension_numbers = #tpu.dot_dimension_numbers<[2], [1], [1], [2], [0, 0, 0, 1, 1, 2], [0], [0]>} : vector<2x8x8xbf16>, vector<2x8x8xbf16>, vector<2x8x8xf32> -> vector<2x8x8xf32>
    "tpu.trace_stop"() : () -> ()
    %128 = vector.shape_cast %127 : vector<2x8x8xf32> to vector<16x8xf32>
    %129 = arith.truncf %128 : vector<16x8xf32> to vector<16x8xbf16>
    %130 = vector.extract_strided_slice %20 {offsets = [24, 0], sizes = [8, 32], strides = [1, 1]} : vector<32x32xbf16> to vector<8x32xbf16>
    %cst_43 = arith.constant dense<0.000000e+00> : vector<16x32xf32>
    %131 = tpu.matmul %129, %130, %cst_43 {dimension_numbers = #tpu.dot_dimension_numbers<[1], [0], [0], [1], [0, 0, 1, 1], [], []>} : vector<16x8xbf16>, vector<8x32xbf16>, vector<16x32xf32> -> vector<16x32xf32>
    %132 = arith.addf %104, %131 : vector<16x32xf32>
    %133 = arith.addf %7, %132 : vector<16x32xf32>
    %cst_44 = arith.constant dense<0.000000e+00> : vector<16xf32>
    %134 = vector.multi_reduction <add>, %133, %cst_44 [1] : vector<16x32xf32> to vector<16xf32>
    %135 = vector.shape_cast %134 : vector<16xf32> to vector<16x1xf32>
    %cst_45 = arith.constant 3.200000e+01 : f32
    %136 = vector.broadcast %cst_45 : f32 to vector<16x1xf32>
    %137 = arith.divf %135, %136 : vector<16x1xf32>
    %138 = vector.broadcast %137 : vector<16x1xf32> to vector<16x32xf32>
    %139 = arith.subf %133, %138 : vector<16x32xf32>
    %140 = arith.mulf %139, %139 : vector<16x32xf32>
    %cst_46 = arith.constant dense<0.000000e+00> : vector<16xf32>
    %141 = vector.multi_reduction <add>, %140, %cst_46 [1] : vector<16x32xf32> to vector<16xf32>
    %142 = vector.shape_cast %141 : vector<16xf32> to vector<16x1xf32>
    %cst_47 = arith.constant 3.200000e+01 : f32
    %143 = vector.broadcast %cst_47 : f32 to vector<16x1xf32>
    %144 = arith.divf %142, %143 : vector<16x1xf32>
    %145 = vector.broadcast %137 : vector<16x1xf32> to vector<16x32xf32>
    %146 = arith.subf %133, %145 : vector<16x32xf32>
    %cst_48 = arith.constant 9.99999974E-6 : f32
    %147 = vector.broadcast %cst_48 : f32 to vector<16x1xf32>
    %148 = arith.addf %144, %147 : vector<16x1xf32>
    %149 = math.rsqrt %148 : vector<16x1xf32>
    %150 = vector.broadcast %149 : vector<16x1xf32> to vector<16x32xf32>
    %151 = arith.mulf %146, %150 : vector<16x32xf32>
    %152 = vector.extract_strided_slice %1 {offsets = [0, 0], sizes = [1, 32], strides = [1, 1]} : vector<3x32xf32> to vector<1x32xf32>
    %153 = vector.broadcast %152 : vector<1x32xf32> to vector<16x32xf32>
    %154 = arith.mulf %151, %153 : vector<16x32xf32>
    %155 = vector.extract_strided_slice %3 {offsets = [0, 0], sizes = [1, 32], strides = [1, 1]} : vector<3x32xf32> to vector<1x32xf32>
    %156 = vector.broadcast %155 : vector<1x32xf32> to vector<16x32xf32>
    %157 = arith.addf %154, %156 : vector<16x32xf32>
    %158 = arith.truncf %157 : vector<16x32xf32> to vector<16x32xbf16>
    %c0_49 = arith.constant 0 : index
    %c0_50 = arith.constant 0 : index
    %c0_51 = arith.constant 0 : index
    %159 = vector.load %arg7[%c0_49, %c0_50, %c0_51] : memref<1x32x32xbf16, #tpu.memory_space<vmem>>, vector<1x32x32xbf16>
    %160 = vector.shape_cast %159 : vector<1x32x32xbf16> to vector<32x32xbf16>
    %cst_52 = arith.constant dense<0.000000e+00> : vector<16x32xf32>
    %161 = tpu.matmul %158, %160, %cst_52 {dimension_numbers = #tpu.dot_dimension_numbers<[1], [0], [0], [1], [0, 0, 1, 1], [], []>} : vector<16x32xbf16>, vector<32x32xbf16>, vector<16x32xf32> -> vector<16x32xf32>
    %162 = arith.truncf %161 : vector<16x32xf32> to vector<16x32xbf16>
    %c0_53 = arith.constant 0 : index
    %c0_54 = arith.constant 0 : index
    %163 = vector.load %arg2[%c0_53, %c0_54] : memref<32x32xbf16, #tpu.memory_space<vmem>>, vector<32x32xbf16>
    %c0_55 = arith.constant 0 : index
    %c0_56 = arith.constant 0 : index
    %c0_57 = arith.constant 0 : index
    %164 = vector.load %arg8[%c0_55, %c0_56, %c0_57] : memref<1x32x64xbf16, #tpu.memory_space<vmem>>, vector<1x32x64xbf16>
    %165 = vector.shape_cast %164 : vector<1x32x64xbf16> to vector<32x64xbf16>
    %cst_58 = arith.constant dense<0.000000e+00> : vector<32x64xf32>
    %166 = tpu.matmul %163, %165, %cst_58 {dimension_numbers = #tpu.dot_dimension_numbers<[1], [0], [0], [1], [0, 0, 1, 1], [], []>} : vector<32x32xbf16>, vector<32x64xbf16>, vector<32x64xf32> -> vector<32x64xf32>
    %167 = arith.truncf %166 : vector<32x64xf32> to vector<32x64xbf16>
    %168 = vector.extract_strided_slice %167 {offsets = [0, 0], sizes = [32, 32], strides = [1, 1]} : vector<32x64xbf16> to vector<32x32xbf16>
    %169 = vector.extract_strided_slice %167 {offsets = [0, 32], sizes = [32, 32], strides = [1, 1]} : vector<32x64xbf16> to vector<32x32xbf16>
    %c0_59 = arith.constant 0 : index
    %c0_60 = arith.constant 0 : index
    %c0_61 = arith.constant 0 : index
    %170 = vector.load %arg9[%c0_59, %c0_60, %c0_61] : memref<1x32x32xbf16, #tpu.memory_space<vmem>>, vector<1x32x32xbf16>
    %171 = vector.shape_cast %170 : vector<1x32x32xbf16> to vector<32x32xbf16>
    %c0_62 = arith.constant 0 : index
    %c0_63 = arith.constant 0 : index
    %c0_64 = arith.constant 0 : index
    %172 = vector.load %arg4[%c0_62, %c0_63, %c0_64] : memref<2x1x16xf32, #tpu.memory_space<vmem>>, vector<2x1x16xf32>
    %173 = vector.extract_strided_slice %162 {offsets = [0, 0], sizes = [16, 8], strides = [1, 1]} : vector<16x32xbf16> to vector<16x8xbf16>
    %174 = vector.shape_cast %173 : vector<16x8xbf16> to vector<2x8x8xbf16>
    %175 = vector.extract_strided_slice %168 {offsets = [0, 0], sizes = [32, 8], strides = [1, 1]} : vector<32x32xbf16> to vector<32x8xbf16>
    %176 = vector.shape_cast %175 : vector<32x8xbf16> to vector<2x16x8xbf16>
    %177 = vector.extract_strided_slice %169 {offsets = [0, 0], sizes = [32, 8], strides = [1, 1]} : vector<32x32xbf16> to vector<32x8xbf16>
    %178 = vector.shape_cast %177 : vector<32x8xbf16> to vector<2x16x8xbf16>
    "tpu.trace_start"() <{level = 10 : i32, message = "bqd,bkd->bqk"}> : () -> ()
    %cst_65 = arith.constant dense<0.000000e+00> : vector<2x8x16xf32>
    %179 = tpu.matmul %174, %176, %cst_65 {dimension_numbers = #tpu.dot_dimension_numbers<[2], [2], [1], [1], [0, 0, 0, 1, 1, 1], [0], [0]>} : vector<2x8x8xbf16>, vector<2x16x8xbf16>, vector<2x8x16xf32> -> vector<2x8x16xf32>
    "tpu.trace_stop"() : () -> ()
    %cst_66 = arith.constant 0.353553385 : f32
    %180 = vector.broadcast %cst_66 : f32 to vector<2x8x16xf32>
    %181 = arith.mulf %179, %180 : vector<2x8x16xf32>
    %182 = vector.broadcast %172 : vector<2x1x16xf32> to vector<2x8x16xf32>
    %183 = arith.addf %181, %182 : vector<2x8x16xf32>
    %cst_67 = arith.constant dense<0xFF800000> : vector<2x8xf32>
    %184 = vector.multi_reduction <maximumf>, %183, %cst_67 [2] : vector<2x8x16xf32> to vector<2x8xf32>
    %185 = vector.shape_cast %184 : vector<2x8xf32> to vector<2x8x1xf32>
    %186 = vector.broadcast %185 : vector<2x8x1xf32> to vector<2x8x16xf32>
    %187 = arith.subf %183, %186 : vector<2x8x16xf32>
    %188 = math.exp %187 : vector<2x8x16xf32>
    %cst_68 = arith.constant dense<0.000000e+00> : vector<2x8xf32>
    %189 = vector.multi_reduction <add>, %188, %cst_68 [2] : vector<2x8x16xf32> to vector<2x8xf32>
    %190 = vector.shape_cast %189 : vector<2x8xf32> to vector<2x8x1xf32>
    %191 = tpu.reciprocal %190 {approx = true} : vector<2x8x1xf32> -> vector<2x8x1xf32>
    %192 = vector.broadcast %191 : vector<2x8x1xf32> to vector<2x8x16xf32>
    %193 = arith.mulf %188, %192 : vector<2x8x16xf32>
    %194 = arith.truncf %193 : vector<2x8x16xf32> to vector<2x8x16xbf16>
    "tpu.trace_start"() <{level = 10 : i32, message = "bqk,bkd->bqd"}> : () -> ()
    %cst_69 = arith.constant dense<0.000000e+00> : vector<2x8x8xf32>
    %195 = tpu.matmul %194, %178, %cst_69 {dimension_numbers = #tpu.dot_dimension_numbers<[2], [1], [1], [2], [0, 0, 0, 1, 1, 2], [0], [0]>} : vector<2x8x16xbf16>, vector<2x16x8xbf16>, vector<2x8x8xf32> -> vector<2x8x8xf32>
    "tpu.trace_stop"() : () -> ()
    %196 = vector.shape_cast %195 : vector<2x8x8xf32> to vector<16x8xf32>
    %197 = arith.truncf %196 : vector<16x8xf32> to vector<16x8xbf16>
    %198 = vector.extract_strided_slice %171 {offsets = [0, 0], sizes = [8, 32], strides = [1, 1]} : vector<32x32xbf16> to vector<8x32xbf16>
    %cst_70 = arith.constant dense<0.000000e+00> : vector<16x32xf32>
    %199 = tpu.matmul %197, %198, %cst_70 {dimension_numbers = #tpu.dot_dimension_numbers<[1], [0], [0], [1], [0, 0, 1, 1], [], []>} : vector<16x8xbf16>, vector<8x32xbf16>, vector<16x32xf32> -> vector<16x32xf32>
    %200 = vector.extract_strided_slice %162 {offsets = [0, 8], sizes = [16, 8], strides = [1, 1]} : vector<16x32xbf16> to vector<16x8xbf16>
    %201 = vector.shape_cast %200 : vector<16x8xbf16> to vector<2x8x8xbf16>
    %202 = vector.extract_strided_slice %168 {offsets = [0, 8], sizes = [32, 8], strides = [1, 1]} : vector<32x32xbf16> to vector<32x8xbf16>
    %203 = vector.shape_cast %202 : vector<32x8xbf16> to vector<2x16x8xbf16>
    %204 = vector.extract_strided_slice %169 {offsets = [0, 8], sizes = [32, 8], strides = [1, 1]} : vector<32x32xbf16> to vector<32x8xbf16>
    %205 = vector.shape_cast %204 : vector<32x8xbf16> to vector<2x16x8xbf16>
    "tpu.trace_start"() <{level = 10 : i32, message = "bqd,bkd->bqk"}> : () -> ()
    %cst_71 = arith.constant dense<0.000000e+00> : vector<2x8x16xf32>
    %206 = tpu.matmul %201, %203, %cst_71 {dimension_numbers = #tpu.dot_dimension_numbers<[2], [2], [1], [1], [0, 0, 0, 1, 1, 1], [0], [0]>} : vector<2x8x8xbf16>, vector<2x16x8xbf16>, vector<2x8x16xf32> -> vector<2x8x16xf32>
    "tpu.trace_stop"() : () -> ()
    %cst_72 = arith.constant 0.353553385 : f32
    %207 = vector.broadcast %cst_72 : f32 to vector<2x8x16xf32>
    %208 = arith.mulf %206, %207 : vector<2x8x16xf32>
    %209 = vector.broadcast %172 : vector<2x1x16xf32> to vector<2x8x16xf32>
    %210 = arith.addf %208, %209 : vector<2x8x16xf32>
    %cst_73 = arith.constant dense<0xFF800000> : vector<2x8xf32>
    %211 = vector.multi_reduction <maximumf>, %210, %cst_73 [2] : vector<2x8x16xf32> to vector<2x8xf32>
    %212 = vector.shape_cast %211 : vector<2x8xf32> to vector<2x8x1xf32>
    %213 = vector.broadcast %212 : vector<2x8x1xf32> to vector<2x8x16xf32>
    %214 = arith.subf %210, %213 : vector<2x8x16xf32>
    %215 = math.exp %214 : vector<2x8x16xf32>
    %cst_74 = arith.constant dense<0.000000e+00> : vector<2x8xf32>
    %216 = vector.multi_reduction <add>, %215, %cst_74 [2] : vector<2x8x16xf32> to vector<2x8xf32>
    %217 = vector.shape_cast %216 : vector<2x8xf32> to vector<2x8x1xf32>
    %218 = tpu.reciprocal %217 {approx = true} : vector<2x8x1xf32> -> vector<2x8x1xf32>
    %219 = vector.broadcast %218 : vector<2x8x1xf32> to vector<2x8x16xf32>
    %220 = arith.mulf %215, %219 : vector<2x8x16xf32>
    %221 = arith.truncf %220 : vector<2x8x16xf32> to vector<2x8x16xbf16>
    "tpu.trace_start"() <{level = 10 : i32, message = "bqk,bkd->bqd"}> : () -> ()
    %cst_75 = arith.constant dense<0.000000e+00> : vector<2x8x8xf32>
    %222 = tpu.matmul %221, %205, %cst_75 {dimension_numbers = #tpu.dot_dimension_numbers<[2], [1], [1], [2], [0, 0, 0, 1, 1, 2], [0], [0]>} : vector<2x8x16xbf16>, vector<2x16x8xbf16>, vector<2x8x8xf32> -> vector<2x8x8xf32>
    "tpu.trace_stop"() : () -> ()
    %223 = vector.shape_cast %222 : vector<2x8x8xf32> to vector<16x8xf32>
    %224 = arith.truncf %223 : vector<16x8xf32> to vector<16x8xbf16>
    %225 = vector.extract_strided_slice %171 {offsets = [8, 0], sizes = [8, 32], strides = [1, 1]} : vector<32x32xbf16> to vector<8x32xbf16>
    %cst_76 = arith.constant dense<0.000000e+00> : vector<16x32xf32>
    %226 = tpu.matmul %224, %225, %cst_76 {dimension_numbers = #tpu.dot_dimension_numbers<[1], [0], [0], [1], [0, 0, 1, 1], [], []>} : vector<16x8xbf16>, vector<8x32xbf16>, vector<16x32xf32> -> vector<16x32xf32>
    %227 = arith.addf %199, %226 : vector<16x32xf32>
    %228 = vector.extract_strided_slice %162 {offsets = [0, 16], sizes = [16, 8], strides = [1, 1]} : vector<16x32xbf16> to vector<16x8xbf16>
    %229 = vector.shape_cast %228 : vector<16x8xbf16> to vector<2x8x8xbf16>
    %230 = vector.extract_strided_slice %168 {offsets = [0, 16], sizes = [32, 8], strides = [1, 1]} : vector<32x32xbf16> to vector<32x8xbf16>
    %231 = vector.shape_cast %230 : vector<32x8xbf16> to vector<2x16x8xbf16>
    %232 = vector.extract_strided_slice %169 {offsets = [0, 16], sizes = [32, 8], strides = [1, 1]} : vector<32x32xbf16> to vector<32x8xbf16>
    %233 = vector.shape_cast %232 : vector<32x8xbf16> to vector<2x16x8xbf16>
    "tpu.trace_start"() <{level = 10 : i32, message = "bqd,bkd->bqk"}> : () -> ()
    %cst_77 = arith.constant dense<0.000000e+00> : vector<2x8x16xf32>
    %234 = tpu.matmul %229, %231, %cst_77 {dimension_numbers = #tpu.dot_dimension_numbers<[2], [2], [1], [1], [0, 0, 0, 1, 1, 1], [0], [0]>} : vector<2x8x8xbf16>, vector<2x16x8xbf16>, vector<2x8x16xf32> -> vector<2x8x16xf32>
    "tpu.trace_stop"() : () -> ()
    %cst_78 = arith.constant 0.353553385 : f32
    %235 = vector.broadcast %cst_78 : f32 to vector<2x8x16xf32>
    %236 = arith.mulf %234, %235 : vector<2x8x16xf32>
    %237 = vector.broadcast %172 : vector<2x1x16xf32> to vector<2x8x16xf32>
    %238 = arith.addf %236, %237 : vector<2x8x16xf32>
    %cst_79 = arith.constant dense<0xFF800000> : vector<2x8xf32>
    %239 = vector.multi_reduction <maximumf>, %238, %cst_79 [2] : vector<2x8x16xf32> to vector<2x8xf32>
    %240 = vector.shape_cast %239 : vector<2x8xf32> to vector<2x8x1xf32>
    %241 = vector.broadcast %240 : vector<2x8x1xf32> to vector<2x8x16xf32>
    %242 = arith.subf %238, %241 : vector<2x8x16xf32>
    %243 = math.exp %242 : vector<2x8x16xf32>
    %cst_80 = arith.constant dense<0.000000e+00> : vector<2x8xf32>
    %244 = vector.multi_reduction <add>, %243, %cst_80 [2] : vector<2x8x16xf32> to vector<2x8xf32>
    %245 = vector.shape_cast %244 : vector<2x8xf32> to vector<2x8x1xf32>
    %246 = tpu.reciprocal %245 {approx = true} : vector<2x8x1xf32> -> vector<2x8x1xf32>
    %247 = vector.broadcast %246 : vector<2x8x1xf32> to vector<2x8x16xf32>
    %248 = arith.mulf %243, %247 : vector<2x8x16xf32>
    %249 = arith.truncf %248 : vector<2x8x16xf32> to vector<2x8x16xbf16>
    "tpu.trace_start"() <{level = 10 : i32, message = "bqk,bkd->bqd"}> : () -> ()
    %cst_81 = arith.constant dense<0.000000e+00> : vector<2x8x8xf32>
    %250 = tpu.matmul %249, %233, %cst_81 {dimension_numbers = #tpu.dot_dimension_numbers<[2], [1], [1], [2], [0, 0, 0, 1, 1, 2], [0], [0]>} : vector<2x8x16xbf16>, vector<2x16x8xbf16>, vector<2x8x8xf32> -> vector<2x8x8xf32>
    "tpu.trace_stop"() : () -> ()
    %251 = vector.shape_cast %250 : vector<2x8x8xf32> to vector<16x8xf32>
    %252 = arith.truncf %251 : vector<16x8xf32> to vector<16x8xbf16>
    %253 = vector.extract_strided_slice %171 {offsets = [16, 0], sizes = [8, 32], strides = [1, 1]} : vector<32x32xbf16> to vector<8x32xbf16>
    %cst_82 = arith.constant dense<0.000000e+00> : vector<16x32xf32>
    %254 = tpu.matmul %252, %253, %cst_82 {dimension_numbers = #tpu.dot_dimension_numbers<[1], [0], [0], [1], [0, 0, 1, 1], [], []>} : vector<16x8xbf16>, vector<8x32xbf16>, vector<16x32xf32> -> vector<16x32xf32>
    %255 = arith.addf %227, %254 : vector<16x32xf32>
    %256 = vector.extract_strided_slice %162 {offsets = [0, 24], sizes = [16, 8], strides = [1, 1]} : vector<16x32xbf16> to vector<16x8xbf16>
    %257 = vector.shape_cast %256 : vector<16x8xbf16> to vector<2x8x8xbf16>
    %258 = vector.extract_strided_slice %168 {offsets = [0, 24], sizes = [32, 8], strides = [1, 1]} : vector<32x32xbf16> to vector<32x8xbf16>
    %259 = vector.shape_cast %258 : vector<32x8xbf16> to vector<2x16x8xbf16>
    %260 = vector.extract_strided_slice %169 {offsets = [0, 24], sizes = [32, 8], strides = [1, 1]} : vector<32x32xbf16> to vector<32x8xbf16>
    %261 = vector.shape_cast %260 : vector<32x8xbf16> to vector<2x16x8xbf16>
    "tpu.trace_start"() <{level = 10 : i32, message = "bqd,bkd->bqk"}> : () -> ()
    %cst_83 = arith.constant dense<0.000000e+00> : vector<2x8x16xf32>
    %262 = tpu.matmul %257, %259, %cst_83 {dimension_numbers = #tpu.dot_dimension_numbers<[2], [2], [1], [1], [0, 0, 0, 1, 1, 1], [0], [0]>} : vector<2x8x8xbf16>, vector<2x16x8xbf16>, vector<2x8x16xf32> -> vector<2x8x16xf32>
    "tpu.trace_stop"() : () -> ()
    %cst_84 = arith.constant 0.353553385 : f32
    %263 = vector.broadcast %cst_84 : f32 to vector<2x8x16xf32>
    %264 = arith.mulf %262, %263 : vector<2x8x16xf32>
    %265 = vector.broadcast %172 : vector<2x1x16xf32> to vector<2x8x16xf32>
    %266 = arith.addf %264, %265 : vector<2x8x16xf32>
    %cst_85 = arith.constant dense<0xFF800000> : vector<2x8xf32>
    %267 = vector.multi_reduction <maximumf>, %266, %cst_85 [2] : vector<2x8x16xf32> to vector<2x8xf32>
    %268 = vector.shape_cast %267 : vector<2x8xf32> to vector<2x8x1xf32>
    %269 = vector.broadcast %268 : vector<2x8x1xf32> to vector<2x8x16xf32>
    %270 = arith.subf %266, %269 : vector<2x8x16xf32>
    %271 = math.exp %270 : vector<2x8x16xf32>
    %cst_86 = arith.constant dense<0.000000e+00> : vector<2x8xf32>
    %272 = vector.multi_reduction <add>, %271, %cst_86 [2] : vector<2x8x16xf32> to vector<2x8xf32>
    %273 = vector.shape_cast %272 : vector<2x8xf32> to vector<2x8x1xf32>
    %274 = tpu.reciprocal %273 {approx = true} : vector<2x8x1xf32> -> vector<2x8x1xf32>
    %275 = vector.broadcast %274 : vector<2x8x1xf32> to vector<2x8x16xf32>
    %276 = arith.mulf %271, %275 : vector<2x8x16xf32>
    %277 = arith.truncf %276 : vector<2x8x16xf32> to vector<2x8x16xbf16>
    "tpu.trace_start"() <{level = 10 : i32, message = "bqk,bkd->bqd"}> : () -> ()
    %cst_87 = arith.constant dense<0.000000e+00> : vector<2x8x8xf32>
    %278 = tpu.matmul %277, %261, %cst_87 {dimension_numbers = #tpu.dot_dimension_numbers<[2], [1], [1], [2], [0, 0, 0, 1, 1, 2], [0], [0]>} : vector<2x8x16xbf16>, vector<2x16x8xbf16>, vector<2x8x8xf32> -> vector<2x8x8xf32>
    "tpu.trace_stop"() : () -> ()
    %279 = vector.shape_cast %278 : vector<2x8x8xf32> to vector<16x8xf32>
    %280 = arith.truncf %279 : vector<16x8xf32> to vector<16x8xbf16>
    %281 = vector.extract_strided_slice %171 {offsets = [24, 0], sizes = [8, 32], strides = [1, 1]} : vector<32x32xbf16> to vector<8x32xbf16>
    %cst_88 = arith.constant dense<0.000000e+00> : vector<16x32xf32>
    %282 = tpu.matmul %280, %281, %cst_88 {dimension_numbers = #tpu.dot_dimension_numbers<[1], [0], [0], [1], [0, 0, 1, 1], [], []>} : vector<16x8xbf16>, vector<8x32xbf16>, vector<16x32xf32> -> vector<16x32xf32>
    %283 = arith.addf %255, %282 : vector<16x32xf32>
    %284 = arith.addf %157, %283 : vector<16x32xf32>
    %cst_89 = arith.constant dense<0.000000e+00> : vector<16xf32>
    %285 = vector.multi_reduction <add>, %284, %cst_89 [1] : vector<16x32xf32> to vector<16xf32>
    %286 = vector.shape_cast %285 : vector<16xf32> to vector<16x1xf32>
    %cst_90 = arith.constant 3.200000e+01 : f32
    %287 = vector.broadcast %cst_90 : f32 to vector<16x1xf32>
    %288 = arith.divf %286, %287 : vector<16x1xf32>
    %289 = vector.broadcast %288 : vector<16x1xf32> to vector<16x32xf32>
    %290 = arith.subf %284, %289 : vector<16x32xf32>
    %291 = arith.mulf %290, %290 : vector<16x32xf32>
    %cst_91 = arith.constant dense<0.000000e+00> : vector<16xf32>
    %292 = vector.multi_reduction <add>, %291, %cst_91 [1] : vector<16x32xf32> to vector<16xf32>
    %293 = vector.shape_cast %292 : vector<16xf32> to vector<16x1xf32>
    %cst_92 = arith.constant 3.200000e+01 : f32
    %294 = vector.broadcast %cst_92 : f32 to vector<16x1xf32>
    %295 = arith.divf %293, %294 : vector<16x1xf32>
    %296 = vector.broadcast %288 : vector<16x1xf32> to vector<16x32xf32>
    %297 = arith.subf %284, %296 : vector<16x32xf32>
    %cst_93 = arith.constant 9.99999974E-6 : f32
    %298 = vector.broadcast %cst_93 : f32 to vector<16x1xf32>
    %299 = arith.addf %295, %298 : vector<16x1xf32>
    %300 = math.rsqrt %299 : vector<16x1xf32>
    %301 = vector.broadcast %300 : vector<16x1xf32> to vector<16x32xf32>
    %302 = arith.mulf %297, %301 : vector<16x32xf32>
    %303 = vector.extract_strided_slice %1 {offsets = [1, 0], sizes = [1, 32], strides = [1, 1]} : vector<3x32xf32> to vector<1x32xf32>
    %304 = vector.broadcast %303 : vector<1x32xf32> to vector<16x32xf32>
    %305 = arith.mulf %302, %304 : vector<16x32xf32>
    %306 = vector.extract_strided_slice %3 {offsets = [1, 0], sizes = [1, 32], strides = [1, 1]} : vector<3x32xf32> to vector<1x32xf32>
    %307 = vector.broadcast %306 : vector<1x32xf32> to vector<16x32xf32>
    %308 = arith.addf %305, %307 : vector<16x32xf32>
    %309 = arith.truncf %308 : vector<16x32xf32> to vector<16x32xbf16>
    %c0_94 = arith.constant 0 : index
    %c0_95 = arith.constant 0 : index
    %c0_96 = arith.constant 0 : index
    %310 = vector.load %arg10[%c0_94, %c0_95, %c0_96] : memref<1x32x64xbf16, #tpu.memory_space<vmem>>, vector<1x32x64xbf16>
    %311 = vector.shape_cast %310 : vector<1x32x64xbf16> to vector<32x64xbf16>
    %cst_97 = arith.constant dense<0.000000e+00> : vector<16x64xf32>
    %312 = tpu.matmul %309, %311, %cst_97 {dimension_numbers = #tpu.dot_dimension_numbers<[1], [0], [0], [1], [0, 0, 1, 1], [], []>} : vector<16x32xbf16>, vector<32x64xbf16>, vector<16x64xf32> -> vector<16x64xf32>
    %c0_98 = arith.constant 0 : index
    %c0_99 = arith.constant 0 : index
    %c0_100 = arith.constant 0 : index
    %313 = vector.load %arg11[%c0_98, %c0_99, %c0_100] : memref<1x1x64xf32, #tpu.memory_space<vmem>>, vector<1x1x64xf32>
    %314 = vector.shape_cast %313 : vector<1x1x64xf32> to vector<1x64xf32>
    %315 = vector.broadcast %314 : vector<1x64xf32> to vector<16x64xf32>
    %316 = arith.addf %312, %315 : vector<16x64xf32>
    %cst_101 = arith.constant 0.000000e+00 : f32
    %317 = vector.broadcast %cst_101 : f32 to vector<16x64xf32>
    %318 = arith.maximumf %316, %317 : vector<16x64xf32>
    %319 = arith.truncf %318 : vector<16x64xf32> to vector<16x64xbf16>
    %c0_102 = arith.constant 0 : index
    %c0_103 = arith.constant 0 : index
    %c0_104 = arith.constant 0 : index
    %320 = vector.load %arg12[%c0_102, %c0_103, %c0_104] : memref<1x64x32xbf16, #tpu.memory_space<vmem>>, vector<1x64x32xbf16>
    %321 = vector.shape_cast %320 : vector<1x64x32xbf16> to vector<64x32xbf16>
    %cst_105 = arith.constant dense<0.000000e+00> : vector<16x32xf32>
    %322 = tpu.matmul %319, %321, %cst_105 {dimension_numbers = #tpu.dot_dimension_numbers<[1], [0], [0], [1], [0, 0, 1, 1], [], []>} : vector<16x64xbf16>, vector<64x32xbf16>, vector<16x32xf32> -> vector<16x32xf32>
    %c0_106 = arith.constant 0 : index
    %c0_107 = arith.constant 0 : index
    %c0_108 = arith.constant 0 : index
    %323 = vector.load %arg13[%c0_106, %c0_107, %c0_108] : memref<1x1x32xf32, #tpu.memory_space<vmem>>, vector<1x1x32xf32>
    %324 = vector.shape_cast %323 : vector<1x1x32xf32> to vector<1x32xf32>
    %325 = vector.broadcast %324 : vector<1x32xf32> to vector<16x32xf32>
    %326 = arith.addf %322, %325 : vector<16x32xf32>
    %327 = arith.addf %308, %326 : vector<16x32xf32>
    %cst_109 = arith.constant dense<0.000000e+00> : vector<16xf32>
    %328 = vector.multi_reduction <add>, %327, %cst_109 [1] : vector<16x32xf32> to vector<16xf32>
    %329 = vector.shape_cast %328 : vector<16xf32> to vector<16x1xf32>
    %cst_110 = arith.constant 3.200000e+01 : f32
    %330 = vector.broadcast %cst_110 : f32 to vector<16x1xf32>
    %331 = arith.divf %329, %330 : vector<16x1xf32>
    %332 = vector.broadcast %331 : vector<16x1xf32> to vector<16x32xf32>
    %333 = arith.subf %327, %332 : vector<16x32xf32>
    %334 = arith.mulf %333, %333 : vector<16x32xf32>
    %cst_111 = arith.constant dense<0.000000e+00> : vector<16xf32>
    %335 = vector.multi_reduction <add>, %334, %cst_111 [1] : vector<16x32xf32> to vector<16xf32>
    %336 = vector.shape_cast %335 : vector<16xf32> to vector<16x1xf32>
    %cst_112 = arith.constant 3.200000e+01 : f32
    %337 = vector.broadcast %cst_112 : f32 to vector<16x1xf32>
    %338 = arith.divf %336, %337 : vector<16x1xf32>
    %339 = vector.broadcast %331 : vector<16x1xf32> to vector<16x32xf32>
    %340 = arith.subf %327, %339 : vector<16x32xf32>
    %cst_113 = arith.constant 9.99999974E-6 : f32
    %341 = vector.broadcast %cst_113 : f32 to vector<16x1xf32>
    %342 = arith.addf %338, %341 : vector<16x1xf32>
    %343 = math.rsqrt %342 : vector<16x1xf32>
    %344 = vector.broadcast %343 : vector<16x1xf32> to vector<16x32xf32>
    %345 = arith.mulf %340, %344 : vector<16x32xf32>
    %346 = vector.extract_strided_slice %1 {offsets = [2, 0], sizes = [1, 32], strides = [1, 1]} : vector<3x32xf32> to vector<1x32xf32>
    %347 = vector.broadcast %346 : vector<1x32xf32> to vector<16x32xf32>
    %348 = arith.mulf %345, %347 : vector<16x32xf32>
    %349 = vector.extract_strided_slice %3 {offsets = [2, 0], sizes = [1, 32], strides = [1, 1]} : vector<3x32xf32> to vector<1x32xf32>
    %350 = vector.broadcast %349 : vector<1x32xf32> to vector<16x32xf32>
    %351 = arith.addf %348, %350 : vector<16x32xf32>
    %c0_114 = arith.constant 0 : index
    %c0_115 = arith.constant 0 : index
    %352 = vector.load %arg20[%c0_114, %c0_115] : memref<16x32xf32, #tpu.memory_space<vmem>>, vector<16x32xf32>
    tpu.vector_store %arg20[%c0_114, %c0_115], %351 {strides = array<i32>} : memref<16x32xf32, #tpu.memory_space<vmem>>, vector<16x32xf32>,
    %c1_i32 = arith.constant 1 : i32
    %353 = arith.cmpi eq, %arg0, %c1_i32 : i32
    %354 = arith.extui %353 : i1 to i32
    %c0_i32_116 = arith.constant 0 : i32
    %355 = arith.cmpi ne, %354, %c0_i32_116 : i32
    scf.if %355 {
      %356 = arith.truncf %351 : vector<16x32xf32> to vector<16x32xbf16>
      %c0_117 = arith.constant 0 : index
      %c0_118 = arith.constant 0 : index
      %357 = vector.load %arg16[%c0_117, %c0_118] : memref<32x128xbf16, #tpu.memory_space<vmem>>, vector<32x128xbf16>
      %cst_119 = arith.constant dense<0.000000e+00> : vector<16x128xf32>
      %358 = tpu.matmul %356, %357, %cst_119 {dimension_numbers = #tpu.dot_dimension_numbers<[1], [0], [0], [1], [0, 0, 1, 1], [], []>} : vector<16x32xbf16>, vector<32x128xbf16>, vector<16x128xf32> -> vector<16x128xf32>
      %c0_120 = arith.constant 0 : index
      %c0_121 = arith.constant 0 : index
      %359 = vector.load %arg17[%c0_120, %c0_121] : memref<1x128xf32, #tpu.memory_space<vmem>>, vector<1x128xf32>
      %360 = vector.broadcast %359 : vector<1x128xf32> to vector<16x128xf32>
      %361 = arith.addf %358, %360 : vector<16x128xf32>
      %c0_122 = arith.constant 0 : index
      %c0_123 = arith.constant 0 : index
      %362 = vector.load %arg18[%c0_122, %c0_123] : memref<16x128xf32, #tpu.memory_space<vmem>>, vector<16x128xf32>
      tpu.vector_store %arg18[%c0_122, %c0_123], %361 {strides = array<i32>} : memref<16x128xf32, #tpu.memory_space<vmem>>, vector<16x128xf32>,
    } else {
    }
    return
  }
  func.func @transform_0(%arg0: i32) -> (i32, i32) {
    %c0_i32 = arith.constant 0 : i32
    %c0_i32_0 = arith.constant 0 : i32
    %c0_i32_1 = arith.constant 0 : i32
    return %c0_i32, %c0_i32_0 : i32, i32
  }
  func.func @transform_1(%arg0: i32) -> (i32, i32) {
    %c0_i32 = arith.constant 0 : i32
    %c0_i32_0 = arith.constant 0 : i32
    %c0_i32_1 = arith.constant 0 : i32
    return %c0_i32, %c0_i32_0 : i32, i32
  }
  func.func @transform_2(%arg0: i32) -> (i32, i32, i32) {
    %c0_i32 = arith.constant 0 : i32
    %c0_i32_0 = arith.constant 0 : i32
    %c0_i32_1 = arith.constant 0 : i32
    %c0_i32_2 = arith.constant 0 : i32
    return %c0_i32, %c0_i32_0, %c0_i32_1 : i32, i32, i32
  }
  func.func @transform_3(%arg0: i32) -> (i32, i32, i32) {
    %c0_i32 = arith.constant 0 : i32
    %c0_i32_0 = arith.constant 0 : i32
    %c0_i32_1 = arith.constant 0 : i32
    %c0_i32_2 = arith.constant 0 : i32
    return %c0_i32, %c0_i32_0, %c0_i32_1 : i32, i32, i32
  }
  func.func @transform_4(%arg0: i32) -> (i32, i32, i32) {
    %c0_i32 = arith.constant 0 : i32
    %c0_i32_0 = arith.constant 0 : i32
    %c0_i32_1 = arith.constant 0 : i32
    return %arg0, %c0_i32, %c0_i32_0 : i32, i32, i32
  }
  func.func @transform_5(%arg0: i32) -> (i32, i32, i32) {
    %c0_i32 = arith.constant 0 : i32
    %c0_i32_0 = arith.constant 0 : i32
    %c0_i32_1 = arith.constant 0 : i32
    return %arg0, %c0_i32, %c0_i32_0 : i32, i32, i32
  }
  func.func @transform_6(%arg0: i32) -> (i32, i32, i32) {
    %c0_i32 = arith.constant 0 : i32
    %c0_i32_0 = arith.constant 0 : i32
    %c0_i32_1 = arith.constant 0 : i32
    return %arg0, %c0_i32, %c0_i32_0 : i32, i32, i32
  }
  func.func @transform_7(%arg0: i32) -> (i32, i32, i32) {
    %c0_i32 = arith.constant 0 : i32
    %c0_i32_0 = arith.constant 0 : i32
    %c0_i32_1 = arith.constant 0 : i32
    return %arg0, %c0_i32, %c0_i32_0 : i32, i32, i32
  }
  func.func @transform_8(%arg0: i32) -> (i32, i32, i32) {
    %c0_i32 = arith.constant 0 : i32
    %c0_i32_0 = arith.constant 0 : i32
    %c0_i32_1 = arith.constant 0 : i32
    return %arg0, %c0_i32, %c0_i32_0 : i32, i32, i32
  }
  func.func @transform_9(%arg0: i32) -> (i32, i32, i32) {
    %c0_i32 = arith.constant 0 : i32
    %c0_i32_0 = arith.constant 0 : i32
    %c0_i32_1 = arith.constant 0 : i32
    return %arg0, %c0_i32, %c0_i32_0 : i32, i32, i32
  }
  func.func @transform_10(%arg0: i32) -> (i32, i32, i32) {
    %c0_i32 = arith.constant 0 : i32
    %c0_i32_0 = arith.constant 0 : i32
    %c0_i32_1 = arith.constant 0 : i32
    return %arg0, %c0_i32, %c0_i32_0 : i32, i32, i32
  }
  func.func @transform_11(%arg0: i32) -> (i32, i32, i32) {
    %c0_i32 = arith.constant 0 : i32
    %c0_i32_0 = arith.constant 0 : i32
    %c0_i32_1 = arith.constant 0 : i32
    return %arg0, %c0_i32, %c0_i32_0 : i32, i32, i32
  }
  func.func @transform_12(%arg0: i32) -> (i32, i32, i32) {
    %c0_i32 = arith.constant 0 : i32
    %c0_i32_0 = arith.constant 0 : i32
    %c0_i32_1 = arith.constant 0 : i32
    return %arg0, %c0_i32, %c0_i32_0 : i32, i32, i32
  }
  func.func @transform_13(%arg0: i32) -> (i32, i32, i32) {
    %c0_i32 = arith.constant 0 : i32
    %c0_i32_0 = arith.constant 0 : i32
    %c0_i32_1 = arith.constant 0 : i32
    return %arg0, %c0_i32, %c0_i32_0 : i32, i32, i32
  }
  func.func @transform_14(%arg0: i32) -> (i32, i32, i32) {
    %c0_i32 = arith.constant 0 : i32
    %c0_i32_0 = arith.constant 0 : i32
    %c0_i32_1 = arith.constant 0 : i32
    return %arg0, %c0_i32, %c0_i32_0 : i32, i32, i32
  }
  func.func @transform_15(%arg0: i32) -> (i32, i32) {
    %c0_i32 = arith.constant 0 : i32
    %c0_i32_0 = arith.constant 0 : i32
    %c0_i32_1 = arith.constant 0 : i32
    return %c0_i32, %c0_i32_0 : i32, i32
  }
  func.func @transform_16(%arg0: i32) -> (i32, i32) {
    %c0_i32 = arith.constant 0 : i32
    %c0_i32_0 = arith.constant 0 : i32
    %c0_i32_1 = arith.constant 0 : i32
    return %c0_i32, %c0_i32_0 : i32, i32
  }
  func.func @transform_17(%arg0: i32) -> (i32, i32) {
    %c0_i32 = arith.constant 0 : i32
    %c0_i32_0 = arith.constant 0 : i32
    %c0_i32_1 = arith.constant 0 : i32
    return %c0_i32, %c0_i32_0 : i32, i32
  }
  func.func @transform_18(%arg0: i32) -> (i32, i32, i32) {
    %c0_i32 = arith.constant 0 : i32
    %c0_i32_0 = arith.constant 0 : i32
    %c0_i32_1 = arith.constant 0 : i32
    return %arg0, %c0_i32, %c0_i32_0 : i32, i32, i32
  }
}

module attributes {stable_mosaic.version = 11 : i64} {
  func.func @decoder_stack_kernel(%arg0: i32, %arg1: memref<16x32xf32, #tpu.memory_space<vmem>>, %arg2: memref<32x32xbf16, #tpu.memory_space<vmem>>, %arg3: memref<1x8x8xf32, #tpu.memory_space<vmem>>, %arg4: memref<2x1x16xf32, #tpu.memory_space<vmem>>, %arg5: memref<1x32x96xbf16, #tpu.memory_space<vmem>>, %arg6: memref<1x32x32xbf16, #tpu.memory_space<vmem>>, %arg7: memref<1x32x32xbf16, #tpu.memory_space<vmem>>, %arg8: memref<1x32x64xbf16, #tpu.memory_space<vmem>>, %arg9: memref<1x32x32xbf16, #tpu.memory_space<vmem>>, %arg10: memref<1x32x64xbf16, #tpu.memory_space<vmem>>, %arg11: memref<1x1x64xf32, #tpu.memory_space<vmem>>, %arg12: memref<1x64x32xbf16, #tpu.memory_space<vmem>>, %arg13: memref<1x1x32xf32, #tpu.memory_space<vmem>>, %arg14: memref<1x3x32xf32, #tpu.memory_space<vmem>>, %arg15: memref<1x3x32xf32, #tpu.memory_space<vmem>>, %arg16: memref<32x128xbf16, #tpu.memory_space<vmem>>, %arg17: memref<1x128xf32, #tpu.memory_space<vmem>>, %arg18: memref<16x128xf32, #tpu.memory_space<vmem>>, %arg19: memref<1x16x32xf32, #tpu.memory_space<vmem>>, %arg20: memref<16x32xf32, #tpu.memory_space<vmem>>) attributes {dimension_semantics = [#tpu.dimension_semantics<arbitrary>], iteration_bounds = array<i64: 2>, scalar_prefetch = 0 : i64, scratch_operands = 1 : i64, tpu.core_type = #tpu.core_type<tc>, window_params = [{pipeline_mode = #tpu.pipeline_mode<synchronous>, transform_indices = @transform_0, window_bounds = array<i64: 16, 32>}, {pipeline_mode = #tpu.pipeline_mode<synchronous>, transform_indices = @transform_1, window_bounds = array<i64: 32, 32>}, {pipeline_mode = #tpu.pipeline_mode<synchronous>, transform_indices = @transform_2, window_bounds = array<i64: 1, 8, 8>}, {pipeline_mode = #tpu.pipeline_mode<synchronous>, transform_indices = @transform_3, window_bounds = array<i64: 2, 1, 16>}, {transform_indices = @transform_4, window_bounds = array<i64: 1, 32, 96>}, {transform_indices = @transform_5, window_bounds = array<i64: 1, 32, 32>}, {transform_indices = @transform_6, window_bounds = array<i64: 1, 32, 32>}, {transform_indices = @transform_7, window_bounds = array<i64: 1, 32, 64>}, {transform_indices = @transform_8, window_bounds = array<i64: 1, 32, 32>}, {transform_indices = @transform_9, window_bounds = array<i64: 1, 32, 64>}, {transform_indices = @transform_10, window_bounds = array<i64: 1, 1, 64>}, {transform_indices = @transform_11, window_bounds = array<i64: 1, 64, 32>}, {transform_indices = @transform_12, window_bounds = array<i64: 1, 1, 32>}, {transform_indices = @transform_13, window_bounds = array<i64: 1, 3, 32>}, {transform_indices = @transform_14, window_bounds = array<i64: 1, 3, 32>}, {pipeline_mode = #tpu.pipeline_mode<synchronous>, transform_indices = @transform_15, window_bounds = array<i64: 32, 128>}, {pipeline_mode = #tpu.pipeline_mode<synchronous>, transform_indices = @transform_16, window_bounds = array<i64: 1, 128>}, {pipeline_mode = #tpu.pipeline_mode<synchronous>, transform_indices = @transform_17, window_bounds = array<i64: 16, 128>}, {transform_indices = @transform_18, window_bounds = array<i64: 1, 16, 32>}]} {
    %c0 = arith.constant 0 : index
    %c0_0 = arith.constant 0 : index
    %c0_1 = arith.constant 0 : index
    %0 = vector.load %arg14[%c0, %c0_0, %c0_1] : memref<1x3x32xf32, #tpu.memory_space<vmem>>, vector<1x3x32xf32>
    %1 = vector.shape_cast %0 : vector<1x3x32xf32> to vector<3x32xf32>
    %c0_2 = arith.constant 0 : index
    %c0_3 = arith.constant 0 : index
    %c0_4 = arith.constant 0 : index
    %2 = vector.load %arg15[%c0_2, %c0_3, %c0_4] : memref<1x3x32xf32, #tpu.memory_space<vmem>>, vector<1x3x32xf32>
    %3 = vector.shape_cast %2 : vector<1x3x32xf32> to vector<3x32xf32>
    %c0_i32 = arith.constant 0 : i32
    %4 = arith.cmpi eq, %arg0, %c0_i32 : i32
    %5 = arith.extui %4 : i1 to i32
    %c0_i32_5 = arith.constant 0 : i32
    %6 = arith.cmpi ne, %5, %c0_i32_5 : i32
    scf.if %6 {
      %c0_117 = arith.constant 0 : index
      %c0_118 = arith.constant 0 : index
      %356 = vector.load %arg1[%c0_117, %c0_118] : memref<16x32xf32, #tpu.memory_space<vmem>>, vector<16x32xf32>
      %c0_119 = arith.constant 0 : index
      %c0_120 = arith.constant 0 : index
      %357 = vector.load %arg20[%c0_119, %c0_120] : memref<16x32xf32, #tpu.memory_space<vmem>>, vector<16x32xf32>
      tpu.vector_store %arg20[%c0_119, %c0_120], %356 {strides = array<i32>} : memref<16x32xf32, #tpu.memory_space<vmem>>, vector<16x32xf32>,
    } else {
    }
    %c0_6 = arith.constant 0 : index
    %c0_7 = arith.constant 0 : index
    %7 = vector.load %arg20[%c0_6, %c0_7] : memref<16x32xf32, #tpu.memory_space<vmem>>, vector<16x32xf32>
    %c0_8 = arith.constant 0 : index
    %c0_9 = arith.constant 0 : index
    %c0_10 = arith.constant 0 : index
    %8 = vector.load %arg19[%c0_8, %c0_9, %c0_10] : memref<1x16x32xf32, #tpu.memory_space<vmem>>, vector<1x16x32xf32>
    %9 = vector.shape_cast %8 : vector<1x16x32xf32> to vector<16x32xf32>
    %10 = vector.shape_cast %7 : vector<16x32xf32> to vector<1x16x32xf32>
    tpu.vector_store %arg19[%c0_8, %c0_9, %c0_10], %10 {strides = array<i32>} : memref<1x16x32xf32, #tpu.memory_space<vmem>>, vector<1x16x32xf32>,
    %11 = arith.truncf %7 : vector<16x32xf32> to vector<16x32xbf16>
    %c0_11 = arith.constant 0 : index
    %c0_12 = arith.constant 0 : index
    %c0_13 = arith.constant 0 : index
    %12 = vector.load %arg5[%c0_11, %c0_12, %c0_13] : memref<1x32x96xbf16, #tpu.memory_space<vmem>>, vector<1x32x96xbf16>
    %13 = vector.shape_cast %12 : vector<1x32x96xbf16> to vector<32x96xbf16>
    %cst = arith.constant dense<0.000000e+00> : vector<16x96xf32>
    %14 = tpu.matmul %11, %13, %cst {dimension_numbers = #tpu.dot_dimension_numbers<[1], [0], [0], [1], [0, 0, 1, 1], [], []>} : vector<16x32xbf16>, vector<32x96xbf16>, vector<16x96xf32> -> vector<16x96xf32>
    %15 = arith.truncf %14 : vector<16x96xf32> to vector<16x96xbf16>
    %16 = vector.extract_strided_slice %15 {offsets = [0, 0], sizes = [16, 32], strides = [1, 1]} : vector<16x96xbf16> to vector<16x32xbf16>
    %17 = vector.extract_strided_slice %15 {offsets = [0, 32], sizes = [16, 32], strides = [1, 1]} : vector<16x96xbf16> to vector<16x32xbf16>
    %18 = vector.extract_strided_slice %15 {offsets = [0, 64], sizes = [16, 32], strides = [1, 1]} : vector<16x96xbf16> to vector<16x32xbf16>
    %c0_14 = arith.constant 0 : index
    %c0_15 = arith.constant 0 : index
    %c0_16 = arith.constant 0 : index
    %19 = vector.load %arg6[%c0_14, %c0_15, %c0_16] : memref<1x32x32xbf16, #tpu.memory_space<vmem>>, vector<1x32x32xbf16>
    %20 = vector.shape_cast %19 : vector<1x32x32xbf16> to vector<32x32xbf16>
    %c0_17 = arith.constant 0 : index
    %c0_18 = arith.constant 0 : index
    %c0_19 = arith.constant 0 : index
    %21 = vector.load %arg3[%c0_17, %c0_18, %c0_19] : memref<1x8x8xf32, #tpu.memory_space<vmem>>, vector<1x8x8xf32>
    %22 = vector.extract_strided_slice %16 {offsets = [0, 0], sizes = [16, 8], strides = [1, 1]} : vector<16x32xbf16> to vector<16x8xbf16>
    %23 = vector.shape_cast %22 : vector<16x8xbf16> to vector<2x8x8xbf16>
    %24 = vector.extract_strided_slice %17 {offsets = [0, 0], sizes = [16, 8], strides = [1, 1]} : vector<16x32xbf16> to vector<16x8xbf16>
    %25 = vector.shape_cast %24 : vector<16x8xbf16> to vector<2x8x8xbf16>
    %26 = vector.extract_strided_slice %18 {offsets = [0, 0], sizes = [16, 8], strides = [1, 1]} : vector<16x32xbf16> to vector<16x8xbf16>
    %27 = vector.shape_cast %26 : vector<16x8xbf16> to vector<2x8x8xbf16>
    "tpu.trace_start"() <{level = 10 : i32, message = "bqd,bkd->bqk"}> : () -> ()
    %cst_20 = arith.constant dense<0.000000e+00> : vector<2x8x8xf32>
    %28 = tpu.matmul %23, %25, %cst_20 {dimension_numbers = #tpu.dot_dimension_numbers<[2], [2], [1], [1], [0, 0, 0, 1, 1, 1], [0], [0]>} : vector<2x8x8xbf16>, vector<2x8x8xbf16>, vector<2x8x8xf32> -> vector<2x8x8xf32>
    "tpu.trace_stop"() : () -> ()
    %cst_21 = arith.constant 0.353553385 : f32
    %29 = vector.broadcast %cst_21 : f32 to vector<2x8x8xf32>
    %30 = arith.mulf %28, %29 : vector<2x8x8xf32>
    %31 = vector.broadcast %21 : vector<1x8x8xf32> to vector<2x8x8xf32>
    %32 = arith.addf %30, %31 : vector<2x8x8xf32>
    %cst_22 = arith.constant dense<0xFF800000> : vector<2x8xf32>
    %33 = vector.multi_reduction <maximumf>, %32, %cst_22 [2] : vector<2x8x8xf32> to vector<2x8xf32>
    %34 = vector.shape_cast %33 : vector<2x8xf32> to vector<2x8x1xf32>
    %35 = vector.broadcast %34 : vector<2x8x1xf32> to vector<2x8x8xf32>
    %36 = arith.subf %32, %35 : vector<2x8x8xf32>
    %37 = math.exp %36 : vector<2x8x8xf32>
    %cst_23 = arith.constant dense<0.000000e+00> : vector<2x8xf32>
    %38 = vector.multi_reduction <add>, %37, %cst_23 [2] : vector<2x8x8xf32> to vector<2x8xf32>
    %39 = vector.shape_cast %38 : vector<2x8xf32> to vector<2x8x1xf32>
    %40 = tpu.reciprocal %39 {approx = true} : vector<2x8x1xf32> -> vector<2x8x1xf32>
    %41 = vector.broadcast %40 : vector<2x8x1xf32> to vector<2x8x8xf32>
    %42 = arith.mulf %37, %41 : vector<2x8x8xf32>
    %43 = arith.truncf %42 : vector<2x8x8xf32> to vector<2x8x8xbf16>
    "tpu.trace_start"() <{level = 10 : i32, message = "bqk,bkd->bqd"}> : () -> ()
    %cst_24 = arith.constant dense<0.000000e+00> : vector<2x8x8xf32>
    %44 = tpu.matmul %43, %27, %cst_24 {dimension_numbers = #tpu.dot_dimension_numbers<[2], [1], [1], [2], [0, 0, 0, 1, 1, 2], [0], [0]>} : vector<2x8x8xbf16>, vector<2x8x8xbf16>, vector<2x8x8xf32> -> vector<2x8x8xf32>
    "tpu.trace_stop"() : () -> ()
    %45 = vector.shape_cast %44 : vector<2x8x8xf32> to vector<16x8xf32>
    %46 = arith.truncf %45 : vector<16x8xf32> to vector<16x8xbf16>
    %47 = vector.extract_strided_slice %20 {offsets = [0, 0], sizes = [8, 32], strides = [1, 1]} : vector<32x32xbf16> to vector<8x32xbf16>
    %cst_25 = arith.constant dense<0.000000e+00> : vector<16x32xf32>
    %48 = tpu.matmul %46, %47, %cst_25 {dimension_numbers = #tpu.dot_dimension_numbers<[1], [0], [0], [1], [0, 0, 1, 1], [], []>} : vector<16x8xbf16>, vector<8x32xbf16>, vector<16x32xf32> -> vector<16x32xf32>
    %49 = vector.extract_strided_slice %16 {offsets = [0, 8], sizes = [16, 8], strides = [1, 1]} : vector<16x32xbf16> to vector<16x8xbf16>
    %50 = vector.shape_cast %49 : vector<16x8xbf16> to vector<2x8x8xbf16>
    %51 = vector.extract_strided_slice %17 {offsets = [0, 8], sizes = [16, 8], strides = [1, 1]} : vector<16x32xbf16> to vector<16x8xbf16>
    %52 = vector.shape_cast %51 : vector<16x8xbf16> to vector<2x8x8xbf16>
    %53 = vector.extract_strided_slice %18 {offsets = [0, 8], sizes = [16, 8], strides = [1, 1]} : vector<16x32xbf16> to vector<16x8xbf16>
    %54 = vector.shape_cast %53 : vector<16x8xbf16> to vector<2x8x8xbf16>
    "tpu.trace_start"() <{level = 10 : i32, message = "bqd,bkd->bqk"}> : () -> ()
    %cst_26 = arith.constant dense<0.000000e+00> : vector<2x8x8xf32>
    %55 = tpu.matmul %50, %52, %cst_26 {dimension_numbers = #tpu.dot_dimension_numbers<[2], [2], [1], [1], [0, 0, 0, 1, 1, 1], [0], [0]>} : vector<2x8x8xbf16>, vector<2x8x8xbf16>, vector<2x8x8xf32> -> vector<2x8x8xf32>
    "tpu.trace_stop"() : () -> ()
    %cst_27 = arith.constant 0.353553385 : f32
    %56 = vector.broadcast %cst_27 : f32 to vector<2x8x8xf32>
    %57 = arith.mulf %55, %56 : vector<2x8x8xf32>
    %58 = vector.broadcast %21 : vector<1x8x8xf32> to vector<2x8x8xf32>
    %59 = arith.addf %57, %58 : vector<2x8x8xf32>
    %cst_28 = arith.constant dense<0xFF800000> : vector<2x8xf32>
    %60 = vector.multi_reduction <maximumf>, %59, %cst_28 [2] : vector<2x8x8xf32> to vector<2x8xf32>
    %61 = vector.shape_cast %60 : vector<2x8xf32> to vector<2x8x1xf32>
    %62 = vector.broadcast %61 : vector<2x8x1xf32> to vector<2x8x8xf32>
    %63 = arith.subf %59, %62 : vector<2x8x8xf32>
    %64 = math.exp %63 : vector<2x8x8xf32>
    %cst_29 = arith.constant dense<0.000000e+00> : vector<2x8xf32>
    %65 = vector.multi_reduction <add>, %64, %cst_29 [2] : vector<2x8x8xf32> to vector<2x8xf32>
    %66 = vector.shape_cast %65 : vector<2x8xf32> to vector<2x8x1xf32>
    %67 = tpu.reciprocal %66 {approx = true} : vector<2x8x1xf32> -> vector<2x8x1xf32>
    %68 = vector.broadcast %67 : vector<2x8x1xf32> to vector<2x8x8xf32>
    %69 = arith.mulf %64, %68 : vector<2x8x8xf32>
    %70 = arith.truncf %69 : vector<2x8x8xf32> to vector<2x8x8xbf16>
    "tpu.trace_start"() <{level = 10 : i32, message = "bqk,bkd->bqd"}> : () -> ()
    %cst_30 = arith.constant dense<0.000000e+00> : vector<2x8x8xf32>
    %71 = tpu.matmul %70, %54, %cst_30 {dimension_numbers = #tpu.dot_dimension_numbers<[2], [1], [1], [2], [0, 0, 0, 1, 1, 2], [0], [0]>} : vector<2x8x8xbf16>, vector<2x8x8xbf16>, vector<2x8x8xf32> -> vector<2x8x8xf32>
    "tpu.trace_stop"() : () -> ()
    %72 = vector.shape_cast %71 : vector<2x8x8xf32> to vector<16x8xf32>
    %73 = arith.truncf %72 : vector<16x8xf32> to vector<16x8xbf16>
    %74 = vector.extract_strided_slice %20 {offsets = [8, 0], sizes = [8, 32], strides = [1, 1]} : vector<32x32xbf16> to vector<8x32xbf16>
    %cst_31 = arith.constant dense<0.000000e+00> : vector<16x32xf32>
    %75 = tpu.matmul %73, %74, %cst_31 {dimension_numbers = #tpu.dot_dimension_numbers<[1], [0], [0], [1], [0, 0, 1, 1], [], []>} : vector<16x8xbf16>, vector<8x32xbf16>, vector<16x32xf32> -> vector<16x32xf32>
    %76 = arith.addf %48, %75 : vector<16x32xf32>
    %77 = vector.extract_strided_slice %16 {offsets = [0, 16], sizes = [16, 8], strides = [1, 1]} : vector<16x32xbf16> to vector<16x8xbf16>
    %78 = vector.shape_cast %77 : vector<16x8xbf16> to vector<2x8x8xbf16>
    %79 = vector.extract_strided_slice %17 {offsets = [0, 16], sizes = [16, 8], strides = [1, 1]} : vector<16x32xbf16> to vector<16x8xbf16>
    %80 = vector.shape_cast %79 : vector<16x8xbf16> to vector<2x8x8xbf16>
    %81 = vector.extract_strided_slice %18 {offsets = [0, 16], sizes = [16, 8], strides = [1, 1]} : vector<16x32xbf16> to vector<16x8xbf16>
    %82 = vector.shape_cast %81 : vector<16x8xbf16> to vector<2x8x8xbf16>
    "tpu.trace_start"() <{level = 10 : i32, message = "bqd,bkd->bqk"}> : () -> ()
    %cst_32 = arith.constant dense<0.000000e+00> : vector<2x8x8xf32>
    %83 = tpu.matmul %78, %80, %cst_32 {dimension_numbers = #tpu.dot_dimension_numbers<[2], [2], [1], [1], [0, 0, 0, 1, 1, 1], [0], [0]>} : vector<2x8x8xbf16>, vector<2x8x8xbf16>, vector<2x8x8xf32> -> vector<2x8x8xf32>
    "tpu.trace_stop"() : () -> ()
    %cst_33 = arith.constant 0.353553385 : f32
    %84 = vector.broadcast %cst_33 : f32 to vector<2x8x8xf32>
    %85 = arith.mulf %83, %84 : vector<2x8x8xf32>
    %86 = vector.broadcast %21 : vector<1x8x8xf32> to vector<2x8x8xf32>
    %87 = arith.addf %85, %86 : vector<2x8x8xf32>
    %cst_34 = arith.constant dense<0xFF800000> : vector<2x8xf32>
    %88 = vector.multi_reduction <maximumf>, %87, %cst_34 [2] : vector<2x8x8xf32> to vector<2x8xf32>
    %89 = vector.shape_cast %88 : vector<2x8xf32> to vector<2x8x1xf32>
    %90 = vector.broadcast %89 : vector<2x8x1xf32> to vector<2x8x8xf32>
    %91 = arith.subf %87, %90 : vector<2x8x8xf32>
    %92 = math.exp %91 : vector<2x8x8xf32>
    %cst_35 = arith.constant dense<0.000000e+00> : vector<2x8xf32>
    %93 = vector.multi_reduction <add>, %92, %cst_35 [2] : vector<2x8x8xf32> to vector<2x8xf32>
    %94 = vector.shape_cast %93 : vector<2x8xf32> to vector<2x8x1xf32>
    %95 = tpu.reciprocal %94 {approx = true} : vector<2x8x1xf32> -> vector<2x8x1xf32>
    %96 = vector.broadcast %95 : vector<2x8x1xf32> to vector<2x8x8xf32>
    %97 = arith.mulf %92, %96 : vector<2x8x8xf32>
    %98 = arith.truncf %97 : vector<2x8x8xf32> to vector<2x8x8xbf16>
    "tpu.trace_start"() <{level = 10 : i32, message = "bqk,bkd->bqd"}> : () -> ()
    %cst_36 = arith.constant dense<0.000000e+00> : vector<2x8x8xf32>
    %99 = tpu.matmul %98, %82, %cst_36 {dimension_numbers = #tpu.dot_dimension_numbers<[2], [1], [1], [2], [0, 0, 0, 1, 1, 2], [0], [0]>} : vector<2x8x8xbf16>, vector<2x8x8xbf16>, vector<2x8x8xf32> -> vector<2x8x8xf32>
    "tpu.trace_stop"() : () -> ()
    %100 = vector.shape_cast %99 : vector<2x8x8xf32> to vector<16x8xf32>
    %101 = arith.truncf %100 : vector<16x8xf32> to vector<16x8xbf16>
    %102 = vector.extract_strided_slice %20 {offsets = [16, 0], sizes = [8, 32], strides = [1, 1]} : vector<32x32xbf16> to vector<8x32xbf16>
    %cst_37 = arith.constant dense<0.000000e+00> : vector<16x32xf32>
    %103 = tpu.matmul %101, %102, %cst_37 {dimension_numbers = #tpu.dot_dimension_numbers<[1], [0], [0], [1], [0, 0, 1, 1], [], []>} : vector<16x8xbf16>, vector<8x32xbf16>, vector<16x32xf32> -> vector<16x32xf32>
    %104 = arith.addf %76, %103 : vector<16x32xf32>
    %105 = vector.extract_strided_slice %16 {offsets = [0, 24], sizes = [16, 8], strides = [1, 1]} : vector<16x32xbf16> to vector<16x8xbf16>
    %106 = vector.shape_cast %105 : vector<16x8xbf16> to vector<2x8x8xbf16>
    %107 = vector.extract_strided_slice %17 {offsets = [0, 24], sizes = [16, 8], strides = [1, 1]} : vector<16x32xbf16> to vector<16x8xbf16>
    %108 = vector.shape_cast %107 : vector<16x8xbf16> to vector<2x8x8xbf16>
    %109 = vector.extract_strided_slice %18 {offsets = [0, 24], sizes = [16, 8], strides = [1, 1]} : vector<16x32xbf16> to vector<16x8xbf16>
    %110 = vector.shape_cast %109 : vector<16x8xbf16> to vector<2x8x8xbf16>
    "tpu.trace_start"() <{level = 10 : i32, message = "bqd,bkd->bqk"}> : () -> ()
    %cst_38 = arith.constant dense<0.000000e+00> : vector<2x8x8xf32>
    %111 = tpu.matmul %106, %108, %cst_38 {dimension_numbers = #tpu.dot_dimension_numbers<[2], [2], [1], [1], [0, 0, 0, 1, 1, 1], [0], [0]>} : vector<2x8x8xbf16>, vector<2x8x8xbf16>, vector<2x8x8xf32> -> vector<2x8x8xf32>
    "tpu.trace_stop"() : () -> ()
    %cst_39 = arith.constant 0.353553385 : f32
    %112 = vector.broadcast %cst_39 : f32 to vector<2x8x8xf32>
    %113 = arith.mulf %111, %112 : vector<2x8x8xf32>
    %114 = vector.broadcast %21 : vector<1x8x8xf32> to vector<2x8x8xf32>
    %115 = arith.addf %113, %114 : vector<2x8x8xf32>
    %cst_40 = arith.constant dense<0xFF800000> : vector<2x8xf32>
    %116 = vector.multi_reduction <maximumf>, %115, %cst_40 [2] : vector<2x8x8xf32> to vector<2x8xf32>
    %117 = vector.shape_cast %116 : vector<2x8xf32> to vector<2x8x1xf32>
    %118 = vector.broadcast %117 : vector<2x8x1xf32> to vector<2x8x8xf32>
    %119 = arith.subf %115, %118 : vector<2x8x8xf32>
    %120 = math.exp %119 : vector<2x8x8xf32>
    %cst_41 = arith.constant dense<0.000000e+00> : vector<2x8xf32>
    %121 = vector.multi_reduction <add>, %120, %cst_41 [2] : vector<2x8x8xf32> to vector<2x8xf32>
    %122 = vector.shape_cast %121 : vector<2x8xf32> to vector<2x8x1xf32>
    %123 = tpu.reciprocal %122 {approx = true} : vector<2x8x1xf32> -> vector<2x8x1xf32>
    %124 = vector.broadcast %123 : vector<2x8x1xf32> to vector<2x8x8xf32>
    %125 = arith.mulf %120, %124 : vector<2x8x8xf32>
    %126 = arith.truncf %125 : vector<2x8x8xf32> to vector<2x8x8xbf16>
    "tpu.trace_start"() <{level = 10 : i32, message = "bqk,bkd->bqd"}> : () -> ()
    %cst_42 = arith.constant dense<0.000000e+00> : vector<2x8x8xf32>
    %127 = tpu.matmul %126, %110, %cst_42 {dimension_numbers = #tpu.dot_dimension_numbers<[2], [1], [1], [2], [0, 0, 0, 1, 1, 2], [0], [0]>} : vector<2x8x8xbf16>, vector<2x8x8xbf16>, vector<2x8x8xf32> -> vector<2x8x8xf32>
    "tpu.trace_stop"() : () -> ()
    %128 = vector.shape_cast %127 : vector<2x8x8xf32> to vector<16x8xf32>
    %129 = arith.truncf %128 : vector<16x8xf32> to vector<16x8xbf16>
    %130 = vector.extract_strided_slice %20 {offsets = [24, 0], sizes = [8, 32], strides = [1, 1]} : vector<32x32xbf16> to vector<8x32xbf16>
    %cst_43 = arith.constant dense<0.000000e+00> : vector<16x32xf32>
    %131 = tpu.matmul %129, %130, %cst_43 {dimension_numbers = #tpu.dot_dimension_numbers<[1], [0], [0], [1], [0, 0, 1, 1], [], []>} : vector<16x8xbf16>, vector<8x32xbf16>, vector<16x32xf32> -> vector<16x32xf32>
    %132 = arith.addf %104, %131 : vector<16x32xf32>
    %133 = arith.addf %7, %132 : vector<16x32xf32>
    %cst_44 = arith.constant dense<0.000000e+00> : vector<16xf32>
    %134 = vector.multi_reduction <add>, %133, %cst_44 [1] : vector<16x32xf32> to vector<16xf32>
    %135 = vector.shape_cast %134 : vector<16xf32> to vector<16x1xf32>
    %cst_45 = arith.constant 3.200000e+01 : f32
    %136 = vector.broadcast %cst_45 : f32 to vector<16x1xf32>
    %137 = arith.divf %135, %136 : vector<16x1xf32>
    %138 = vector.broadcast %137 : vector<16x1xf32> to vector<16x32xf32>
    %139 = arith.subf %133, %138 : vector<16x32xf32>
    %140 = arith.mulf %139, %139 : vector<16x32xf32>
    %cst_46 = arith.constant dense<0.000000e+00> : vector<16xf32>
    %141 = vector.multi_reduction <add>, %140, %cst_46 [1] : vector<16x32xf32> to vector<16xf32>
    %142 = vector.shape_cast %141 : vector<16xf32> to vector<16x1xf32>
    %cst_47 = arith.constant 3.200000e+01 : f32
    %143 = vector.broadcast %cst_47 : f32 to vector<16x1xf32>
    %144 = arith.divf %142, %143 : vector<16x1xf32>
    %145 = vector.broadcast %137 : vector<16x1xf32> to vector<16x32xf32>
    %146 = arith.subf %133, %145 : vector<16x32xf32>
    %cst_48 = arith.constant 9.99999974E-6 : f32
    %147 = vector.broadcast %cst_48 : f32 to vector<16x1xf32>
    %148 = arith.addf %144, %147 : vector<16x1xf32>
    %149 = math.rsqrt %148 : vector<16x1xf32>
    %150 = vector.broadcast %149 : vector<16x1xf32> to vector<16x32xf32>
    %151 = arith.mulf %146, %150 : vector<16x32xf32>
    %152 = vector.extract_strided_slice %1 {offsets = [0, 0], sizes = [1, 32], strides = [1, 1]} : vector<3x32xf32> to vector<1x32xf32>
    %153 = vector.broadcast %152 : vector<1x32xf32> to vector<16x32xf32>
    %154 = arith.mulf %151, %153 : vector<16x32xf32>
    %155 = vector.extract_strided_slice %3 {offsets = [0, 0], sizes = [1, 32], strides = [1, 1]} : vector<3x32xf32> to vector<1x32xf32>
    %156 = vector.broadcast %155 : vector<1x32xf32> to vector<16x32xf32>
    %157 = arith.addf %154, %156 : vector<16x32xf32>
    %158 = arith.truncf %157 : vector<16x32xf32> to vector<16x32xbf16>
    %c0_49 = arith.constant 0 : index
    %c0_50 = arith.constant 0 : index
    %c0_51 = arith.constant 0 : index
    %159 = vector.load %arg7[%c0_49, %c0_50, %c0_51] : memref<1x32x32xbf16, #tpu.memory_space<vmem>>, vector<1x32x32xbf16>
    %160 = vector.shape_cast %159 : vector<1x32x32xbf16> to vector<32x32xbf16>
    %cst_52 = arith.constant dense<0.000000e+00> : vector<16x32xf32>
    %161 = tpu.matmul %158, %160, %cst_52 {dimension_numbers = #tpu.dot_dimension_numbers<[1], [0], [0], [1], [0, 0, 1, 1], [], []>} : vector<16x32xbf16>, vector<32x32xbf16>, vector<16x32xf32> -> vector<16x32xf32>
    %162 = arith.truncf %161 : vector<16x32xf32> to vector<16x32xbf16>
    %c0_53 = arith.constant 0 : index
    %c0_54 = arith.constant 0 : index
    %163 = vector.load %arg2[%c0_53, %c0_54] : memref<32x32xbf16, #tpu.memory_space<vmem>>, vector<32x32xbf16>
    %c0_55 = arith.constant 0 : index
    %c0_56 = arith.constant 0 : index
    %c0_57 = arith.constant 0 : index
    %164 = vector.load %arg8[%c0_55, %c0_56, %c0_57] : memref<1x32x64xbf16, #tpu.memory_space<vmem>>, vector<1x32x64xbf16>
    %165 = vector.shape_cast %164 : vector<1x32x64xbf16> to vector<32x64xbf16>
    %cst_58 = arith.constant dense<0.000000e+00> : vector<32x64xf32>
    %166 = tpu.matmul %163, %165, %cst_58 {dimension_numbers = #tpu.dot_dimension_numbers<[1], [0], [0], [1], [0, 0, 1, 1], [], []>} : vector<32x32xbf16>, vector<32x64xbf16>, vector<32x64xf32> -> vector<32x64xf32>
    %167 = arith.truncf %166 : vector<32x64xf32> to vector<32x64xbf16>
    %168 = vector.extract_strided_slice %167 {offsets = [0, 0], sizes = [32, 32], strides = [1, 1]} : vector<32x64xbf16> to vector<32x32xbf16>
    %169 = vector.extract_strided_slice %167 {offsets = [0, 32], sizes = [32, 32], strides = [1, 1]} : vector<32x64xbf16> to vector<32x32xbf16>
    %c0_59 = arith.constant 0 : index
    %c0_60 = arith.constant 0 : index
    %c0_61 = arith.constant 0 : index
    %170 = vector.load %arg9[%c0_59, %c0_60, %c0_61] : memref<1x32x32xbf16, #tpu.memory_space<vmem>>, vector<1x32x32xbf16>
    %171 = vector.shape_cast %170 : vector<1x32x32xbf16> to vector<32x32xbf16>
    %c0_62 = arith.constant 0 : index
    %c0_63 = arith.constant 0 : index
    %c0_64 = arith.constant 0 : index
    %172 = vector.load %arg4[%c0_62, %c0_63, %c0_64] : memref<2x1x16xf32, #tpu.memory_space<vmem>>, vector<2x1x16xf32>
    %173 = vector.extract_strided_slice %162 {offsets = [0, 0], sizes = [16, 8], strides = [1, 1]} : vector<16x32xbf16> to vector<16x8xbf16>
    %174 = vector.shape_cast %173 : vector<16x8xbf16> to vector<2x8x8xbf16>
    %175 = vector.extract_strided_slice %168 {offsets = [0, 0], sizes = [32, 8], strides = [1, 1]} : vector<32x32xbf16> to vector<32x8xbf16>
    %176 = vector.shape_cast %175 : vector<32x8xbf16> to vector<2x16x8xbf16>
    %177 = vector.extract_strided_slice %169 {offsets = [0, 0], sizes = [32, 8], strides = [1, 1]} : vector<32x32xbf16> to vector<32x8xbf16>
    %178 = vector.shape_cast %177 : vector<32x8xbf16> to vector<2x16x8xbf16>
    "tpu.trace_start"() <{level = 10 : i32, message = "bqd,bkd->bqk"}> : () -> ()
    %cst_65 = arith.constant dense<0.000000e+00> : vector<2x8x16xf32>
    %179 = tpu.matmul %174, %176, %cst_65 {dimension_numbers = #tpu.dot_dimension_numbers<[2], [2], [1], [1], [0, 0, 0, 1, 1, 1], [0], [0]>} : vector<2x8x8xbf16>, vector<2x16x8xbf16>, vector<2x8x16xf32> -> vector<2x8x16xf32>
    "tpu.trace_stop"() : () -> ()
    %cst_66 = arith.constant 0.353553385 : f32
    %180 = vector.broadcast %cst_66 : f32 to vector<2x8x16xf32>
    %181 = arith.mulf %179, %180 : vector<2x8x16xf32>
    %182 = vector.broadcast %172 : vector<2x1x16xf32> to vector<2x8x16xf32>
    %183 = arith.addf %181, %182 : vector<2x8x16xf32>
    %cst_67 = arith.constant dense<0xFF800000> : vector<2x8xf32>
    %184 = vector.multi_reduction <maximumf>, %183, %cst_67 [2] : vector<2x8x16xf32> to vector<2x8xf32>
    %185 = vector.shape_cast %184 : vector<2x8xf32> to vector<2x8x1xf32>
    %186 = vector.broadcast %185 : vector<2x8x1xf32> to vector<2x8x16xf32>
    %187 = arith.subf %183, %186 : vector<2x8x16xf32>
    %188 = math.exp %187 : vector<2x8x16xf32>
    %cst_68 = arith.constant dense<0.000000e+00> : vector<2x8xf32>
    %189 = vector.multi_reduction <add>, %188, %cst_68 [2] : vector<2x8x16xf32> to vector<2x8xf32>
    %190 = vector.shape_cast %189 : vector<2x8xf32> to vector<2x8x1xf32>
    %191 = tpu.reciprocal %190 {approx = true} : vector<2x8x1xf32> -> vector<2x8x1xf32>
    %192 = vector.broadcast %191 : vector<2x8x1xf32> to vector<2x8x16xf32>
    %193 = arith.mulf %188, %192 : vector<2x8x16xf32>
    %194 = arith.truncf %193 : vector<2x8x16xf32> to vector<2x8x16xbf16>
    "tpu.trace_start"() <{level = 10 : i32, message = "bqk,bkd->bqd"}> : () -> ()
    %cst_69 = arith.constant dense<0.000000e+00> : vector<2x8x8xf32>
    %195 = tpu.matmul %194, %178, %cst_69 {dimension_numbers = #tpu.dot_dimension_numbers<[2], [1], [1], [2], [0, 0, 0, 1, 1, 2], [0], [0]>} : vector<2x8x16xbf16>, vector<2x16x8xbf16>, vector<2x8x8xf32> -> vector<2x8x8xf32>
    "tpu.trace_stop"() : () -> ()
    %196 = vector.shape_cast %195 : vector<2x8x8xf32> to vector<16x8xf32>
    %197 = arith.truncf %196 : vector<16x8xf32> to vector<16x8xbf16>
    %198 = vector.extract_strided_slice %171 {offsets = [0, 0], sizes = [8, 32], strides = [1, 1]} : vector<32x32xbf16> to vector<8x32xbf16>
    %cst_70 = arith.constant dense<0.000000e+00> : vector<16x32xf32>
    %199 = tpu.matmul %197, %198, %cst_70 {dimension_numbers = #tpu.dot_dimension_numbers<[1], [0], [0], [1], [0, 0, 1, 1], [], []>} : vector<16x8xbf16>, vector<8x32xbf16>, vector<16x32xf32> -> vector<16x32xf32>
    %200 = vector.extract_strided_slice %162 {offsets = [0, 8], sizes = [16, 8], strides = [1, 1]} : vector<16x32xbf16> to vector<16x8xbf16>
    %201 = vector.shape_cast %200 : vector<16x8xbf16> to vector<2x8x8xbf16>
    %202 = vector.extract_strided_slice %168 {offsets = [0, 8], sizes = [32, 8], strides = [1, 1]} : vector<32x32xbf16> to vector<32x8xbf16>
    %203 = vector.shape_cast %202 : vector<32x8xbf16> to vector<2x16x8xbf16>
    %204 = vector.extract_strided_slice %169 {offsets = [0, 8], sizes = [32, 8], strides = [1, 1]} : vector<32x32xbf16> to vector<32x8xbf16>
    %205 = vector.shape_cast %204 : vector<32x8xbf16> to vector<2x16x8xbf16>
    "tpu.trace_start"() <{level = 10 : i32, message = "bqd,bkd->bqk"}> : () -> ()
    %cst_71 = arith.constant dense<0.000000e+00> : vector<2x8x16xf32>
    %206 = tpu.matmul %201, %203, %cst_71 {dimension_numbers = #tpu.dot_dimension_numbers<[2], [2], [1], [1], [0, 0, 0, 1, 1, 1], [0], [0]>} : vector<2x8x8xbf16>, vector<2x16x8xbf16>, vector<2x8x16xf32> -> vector<2x8x16xf32>
    "tpu.trace_stop"() : () -> ()
    %cst_72 = arith.constant 0.353553385 : f32
    %207 = vector.broadcast %cst_72 : f32 to vector<2x8x16xf32>
    %208 = arith.mulf %206, %207 : vector<2x8x16xf32>
    %209 = vector.broadcast %172 : vector<2x1x16xf32> to vector<2x8x16xf32>
    %210 = arith.addf %208, %209 : vector<2x8x16xf32>
    %cst_73 = arith.constant dense<0xFF800000> : vector<2x8xf32>
    %211 = vector.multi_reduction <maximumf>, %210, %cst_73 [2] : vector<2x8x16xf32> to vector<2x8xf32>
    %212 = vector.shape_cast %211 : vector<2x8xf32> to vector<2x8x1xf32>
    %213 = vector.broadcast %212 : vector<2x8x1xf32> to vector<2x8x16xf32>
    %214 = arith.subf %210, %213 : vector<2x8x16xf32>
    %215 = math.exp %214 : vector<2x8x16xf32>
    %cst_74 = arith.constant dense<0.000000e+00> : vector<2x8xf32>
    %216 = vector.multi_reduction <add>, %215, %cst_74 [2] : vector<2x8x16xf32> to vector<2x8xf32>
    %217 = vector.shape_cast %216 : vector<2x8xf32> to vector<2x8x1xf32>
    %218 = tpu.reciprocal %217 {approx = true} : vector<2x8x1xf32> -> vector<2x8x1xf32>
    %219 = vector.broadcast %218 : vector<2x8x1xf32> to vector<2x8x16xf32>
    %220 = arith.mulf %215, %219 : vector<2x8x16xf32>
    %221 = arith.truncf %220 : vector<2x8x16xf32> to vector<2x8x16xbf16>
    "tpu.trace_start"() <{level = 10 : i32, message = "bqk,bkd->bqd"}> : () -> ()
    %cst_75 = arith.constant dense<0.000000e+00> : vector<2x8x8xf32>
    %222 = tpu.matmul %221, %205, %cst_75 {dimension_numbers = #tpu.dot_dimension_numbers<[2], [1], [1], [2], [0, 0, 0, 1, 1, 2], [0], [0]>} : vector<2x8x16xbf16>, vector<2x16x8xbf16>, vector<2x8x8xf32> -> vector<2x8x8xf32>
    "tpu.trace_stop"() : () -> ()
    %223 = vector.shape_cast %222 : vector<2x8x8xf32> to vector<16x8xf32>
    %224 = arith.truncf %223 : vector<16x8xf32> to vector<16x8xbf16>
    %225 = vector.extract_strided_slice %171 {offsets = [8, 0], sizes = [8, 32], strides = [1, 1]} : vector<32x32xbf16> to vector<8x32xbf16>
    %cst_76 = arith.constant dense<0.000000e+00> : vector<16x32xf32>
    %226 = tpu.matmul %224, %225, %cst_76 {dimension_numbers = #tpu.dot_dimension_numbers<[1], [0], [0], [1], [0, 0, 1, 1], [], []>} : vector<16x8xbf16>, vector<8x32xbf16>, vector<16x32xf32> -> vector<16x32xf32>
    %227 = arith.addf %199, %226 : vector<16x32xf32>
    %228 = vector.extract_strided_slice %162 {offsets = [0, 16], sizes = [16, 8], strides = [1, 1]} : vector<16x32xbf16> to vector<16x8xbf16>
    %229 = vector.shape_cast %228 : vector<16x8xbf16> to vector<2x8x8xbf16>
    %230 = vector.extract_strided_slice %168 {offsets = [0, 16], sizes = [32, 8], strides = [1, 1]} : vector<32x32xbf16> to vector<32x8xbf16>
    %231 = vector.shape_cast %230 : vector<32x8xbf16> to vector<2x16x8xbf16>
    %232 = vector.extract_strided_slice %169 {offsets = [0, 16], sizes = [32, 8], strides = [1, 1]} : vector<32x32xbf16> to vector<32x8xbf16>
    %233 = vector.shape_cast %232 : vector<32x8xbf16> to vector<2x16x8xbf16>
    "tpu.trace_start"() <{level = 10 : i32, message = "bqd,bkd->bqk"}> : () -> ()
    %cst_77 = arith.constant dense<0.000000e+00> : vector<2x8x16xf32>
    %234 = tpu.matmul %229, %231, %cst_77 {dimension_numbers = #tpu.dot_dimension_numbers<[2], [2], [1], [1], [0, 0, 0, 1, 1, 1], [0], [0]>} : vector<2x8x8xbf16>, vector<2x16x8xbf16>, vector<2x8x16xf32> -> vector<2x8x16xf32>
    "tpu.trace_stop"() : () -> ()
    %cst_78 = arith.constant 0.353553385 : f32
    %235 = vector.broadcast %cst_78 : f32 to vector<2x8x16xf32>
    %236 = arith.mulf %234, %235 : vector<2x8x16xf32>
    %237 = vector.broadcast %172 : vector<2x1x16xf32> to vector<2x8x16xf32>
    %238 = arith.addf %236, %237 : vector<2x8x16xf32>
    %cst_79 = arith.constant dense<0xFF800000> : vector<2x8xf32>
    %239 = vector.multi_reduction <maximumf>, %238, %cst_79 [2] : vector<2x8x16xf32> to vector<2x8xf32>
    %240 = vector.shape_cast %239 : vector<2x8xf32> to vector<2x8x1xf32>
    %241 = vector.broadcast %240 : vector<2x8x1xf32> to vector<2x8x16xf32>
    %242 = arith.subf %238, %241 : vector<2x8x16xf32>
    %243 = math.exp %242 : vector<2x8x16xf32>
    %cst_80 = arith.constant dense<0.000000e+00> : vector<2x8xf32>
    %244 = vector.multi_reduction <add>, %243, %cst_80 [2] : vector<2x8x16xf32> to vector<2x8xf32>
    %245 = vector.shape_cast %244 : vector<2x8xf32> to vector<2x8x1xf32>
    %246 = tpu.reciprocal %245 {approx = true} : vector<2x8x1xf32> -> vector<2x8x1xf32>
    %247 = vector.broadcast %246 : vector<2x8x1xf32> to vector<2x8x16xf32>
    %248 = arith.mulf %243, %247 : vector<2x8x16xf32>
    %249 = arith.truncf %248 : vector<2x8x16xf32> to vector<2x8x16xbf16>
    "tpu.trace_start"() <{level = 10 : i32, message = "bqk,bkd->bqd"}> : () -> ()
    %cst_81 = arith.constant dense<0.000000e+00> : vector<2x8x8xf32>
    %250 = tpu.matmul %249, %233, %cst_81 {dimension_numbers = #tpu.dot_dimension_numbers<[2], [1], [1], [2], [0, 0, 0, 1, 1, 2], [0], [0]>} : vector<2x8x16xbf16>, vector<2x16x8xbf16>, vector<2x8x8xf32> -> vector<2x8x8xf32>
    "tpu.trace_stop"() : () -> ()
    %251 = vector.shape_cast %250 : vector<2x8x8xf32> to vector<16x8xf32>
    %252 = arith.truncf %251 : vector<16x8xf32> to vector<16x8xbf16>
    %253 = vector.extract_strided_slice %171 {offsets = [16, 0], sizes = [8, 32], strides = [1, 1]} : vector<32x32xbf16> to vector<8x32xbf16>
    %cst_82 = arith.constant dense<0.000000e+00> : vector<16x32xf32>
    %254 = tpu.matmul %252, %253, %cst_82 {dimension_numbers = #tpu.dot_dimension_numbers<[1], [0], [0], [1], [0, 0, 1, 1], [], []>} : vector<16x8xbf16>, vector<8x32xbf16>, vector<16x32xf32> -> vector<16x32xf32>
    %255 = arith.addf %227, %254 : vector<16x32xf32>
    %256 = vector.extract_strided_slice %162 {offsets = [0, 24], sizes = [16, 8], strides = [1, 1]} : vector<16x32xbf16> to vector<16x8xbf16>
    %257 = vector.shape_cast %256 : vector<16x8xbf16> to vector<2x8x8xbf16>
    %258 = vector.extract_strided_slice %168 {offsets = [0, 24], sizes = [32, 8], strides = [1, 1]} : vector<32x32xbf16> to vector<32x8xbf16>
    %259 = vector.shape_cast %258 : vector<32x8xbf16> to vector<2x16x8xbf16>
    %260 = vector.extract_strided_slice %169 {offsets = [0, 24], sizes = [32, 8], strides = [1, 1]} : vector<32x32xbf16> to vector<32x8xbf16>
    %261 = vector.shape_cast %260 : vector<32x8xbf16> to vector<2x16x8xbf16>
    "tpu.trace_start"() <{level = 10 : i32, message = "bqd,bkd->bqk"}> : () -> ()
    %cst_83 = arith.constant dense<0.000000e+00> : vector<2x8x16xf32>
    %262 = tpu.matmul %257, %259, %cst_83 {dimension_numbers = #tpu.dot_dimension_numbers<[2], [2], [1], [1], [0, 0, 0, 1, 1, 1], [0], [0]>} : vector<2x8x8xbf16>, vector<2x16x8xbf16>, vector<2x8x16xf32> -> vector<2x8x16xf32>
    "tpu.trace_stop"() : () -> ()
    %cst_84 = arith.constant 0.353553385 : f32
    %263 = vector.broadcast %cst_84 : f32 to vector<2x8x16xf32>
    %264 = arith.mulf %262, %263 : vector<2x8x16xf32>
    %265 = vector.broadcast %172 : vector<2x1x16xf32> to vector<2x8x16xf32>
    %266 = arith.addf %264, %265 : vector<2x8x16xf32>
    %cst_85 = arith.constant dense<0xFF800000> : vector<2x8xf32>
    %267 = vector.multi_reduction <maximumf>, %266, %cst_85 [2] : vector<2x8x16xf32> to vector<2x8xf32>
    %268 = vector.shape_cast %267 : vector<2x8xf32> to vector<2x8x1xf32>
    %269 = vector.broadcast %268 : vector<2x8x1xf32> to vector<2x8x16xf32>
    %270 = arith.subf %266, %269 : vector<2x8x16xf32>
    %271 = math.exp %270 : vector<2x8x16xf32>
    %cst_86 = arith.constant dense<0.000000e+00> : vector<2x8xf32>
    %272 = vector.multi_reduction <add>, %271, %cst_86 [2] : vector<2x8x16xf32> to vector<2x8xf32>
    %273 = vector.shape_cast %272 : vector<2x8xf32> to vector<2x8x1xf32>
    %274 = tpu.reciprocal %273 {approx = true} : vector<2x8x1xf32> -> vector<2x8x1xf32>
    %275 = vector.broadcast %274 : vector<2x8x1xf32> to vector<2x8x16xf32>
    %276 = arith.mulf %271, %275 : vector<2x8x16xf32>
    %277 = arith.truncf %276 : vector<2x8x16xf32> to vector<2x8x16xbf16>
    "tpu.trace_start"() <{level = 10 : i32, message = "bqk,bkd->bqd"}> : () -> ()
    %cst_87 = arith.constant dense<0.000000e+00> : vector<2x8x8xf32>
    %278 = tpu.matmul %277, %261, %cst_87 {dimension_numbers = #tpu.dot_dimension_numbers<[2], [1], [1], [2], [0, 0, 0, 1, 1, 2], [0], [0]>} : vector<2x8x16xbf16>, vector<2x16x8xbf16>, vector<2x8x8xf32> -> vector<2x8x8xf32>
    "tpu.trace_stop"() : () -> ()
    %279 = vector.shape_cast %278 : vector<2x8x8xf32> to vector<16x8xf32>
    %280 = arith.truncf %279 : vector<16x8xf32> to vector<16x8xbf16>
    %281 = vector.extract_strided_slice %171 {offsets = [24, 0], sizes = [8, 32], strides = [1, 1]} : vector<32x32xbf16> to vector<8x32xbf16>
    %cst_88 = arith.constant dense<0.000000e+00> : vector<16x32xf32>
    %282 = tpu.matmul %280, %281, %cst_88 {dimension_numbers = #tpu.dot_dimension_numbers<[1], [0], [0], [1], [0, 0, 1, 1], [], []>} : vector<16x8xbf16>, vector<8x32xbf16>, vector<16x32xf32> -> vector<16x32xf32>
    %283 = arith.addf %255, %282 : vector<16x32xf32>
    %284 = arith.addf %157, %283 : vector<16x32xf32>
    %cst_89 = arith.constant dense<0.000000e+00> : vector<16xf32>
    %285 = vector.multi_reduction <add>, %284, %cst_89 [1] : vector<16x32xf32> to vector<16xf32>
    %286 = vector.shape_cast %285 : vector<16xf32> to vector<16x1xf32>
    %cst_90 = arith.constant 3.200000e+01 : f32
    %287 = vector.broadcast %cst_90 : f32 to vector<16x1xf32>
    %288 = arith.divf %286, %287 : vector<16x1xf32>
    %289 = vector.broadcast %288 : vector<16x1xf32> to vector<16x32xf32>
    %290 = arith.subf %284, %289 : vector<16x32xf32>
    %291 = arith.mulf %290, %290 : vector<16x32xf32>
    %cst_91 = arith.constant dense<0.000000e+00> : vector<16xf32>
    %292 = vector.multi_reduction <add>, %291, %cst_91 [1] : vector<16x32xf32> to vector<16xf32>
    %293 = vector.shape_cast %292 : vector<16xf32> to vector<16x1xf32>
    %cst_92 = arith.constant 3.200000e+01 : f32
    %294 = vector.broadcast %cst_92 : f32 to vector<16x1xf32>
    %295 = arith.divf %293, %294 : vector<16x1xf32>
    %296 = vector.broadcast %288 : vector<16x1xf32> to vector<16x32xf32>
    %297 = arith.subf %284, %296 : vector<16x32xf32>
    %cst_93 = arith.constant 9.99999974E-6 : f32
    %298 = vector.broadcast %cst_93 : f32 to vector<16x1xf32>
    %299 = arith.addf %295, %298 : vector<16x1xf32>
    %300 = math.rsqrt %299 : vector<16x1xf32>
    %301 = vector.broadcast %300 : vector<16x1xf32> to vector<16x32xf32>
    %302 = arith.mulf %297, %301 : vector<16x32xf32>
    %303 = vector.extract_strided_slice %1 {offsets = [1, 0], sizes = [1, 32], strides = [1, 1]} : vector<3x32xf32> to vector<1x32xf32>
    %304 = vector.broadcast %303 : vector<1x32xf32> to vector<16x32xf32>
    %305 = arith.mulf %302, %304 : vector<16x32xf32>
    %306 = vector.extract_strided_slice %3 {offsets = [1, 0], sizes = [1, 32], strides = [1, 1]} : vector<3x32xf32> to vector<1x32xf32>
    %307 = vector.broadcast %306 : vector<1x32xf32> to vector<16x32xf32>
    %308 = arith.addf %305, %307 : vector<16x32xf32>
    %309 = arith.truncf %308 : vector<16x32xf32> to vector<16x32xbf16>
    %c0_94 = arith.constant 0 : index
    %c0_95 = arith.constant 0 : index
    %c0_96 = arith.constant 0 : index
    %310 = vector.load %arg10[%c0_94, %c0_95, %c0_96] : memref<1x32x64xbf16, #tpu.memory_space<vmem>>, vector<1x32x64xbf16>
    %311 = vector.shape_cast %310 : vector<1x32x64xbf16> to vector<32x64xbf16>
    %cst_97 = arith.constant dense<0.000000e+00> : vector<16x64xf32>
    %312 = tpu.matmul %309, %311, %cst_97 {dimension_numbers = #tpu.dot_dimension_numbers<[1], [0], [0], [1], [0, 0, 1, 1], [], []>} : vector<16x32xbf16>, vector<32x64xbf16>, vector<16x64xf32> -> vector<16x64xf32>
    %c0_98 = arith.constant 0 : index
    %c0_99 = arith.constant 0 : index
    %c0_100 = arith.constant 0 : index
    %313 = vector.load %arg11[%c0_98, %c0_99, %c0_100] : memref<1x1x64xf32, #tpu.memory_space<vmem>>, vector<1x1x64xf32>
    %314 = vector.shape_cast %313 : vector<1x1x64xf32> to vector<1x64xf32>
    %315 = vector.broadcast %314 : vector<1x64xf32> to vector<16x64xf32>
    %316 = arith.addf %312, %315 : vector<16x64xf32>
    %cst_101 = arith.constant 0.000000e+00 : f32
    %317 = vector.broadcast %cst_101 : f32 to vector<16x64xf32>
    %318 = arith.maximumf %316, %317 : vector<16x64xf32>
    %319 = arith.truncf %318 : vector<16x64xf32> to vector<16x64xbf16>
    %c0_102 = arith.constant 0 : index
    %c0_103 = arith.constant 0 : index
    %c0_104 = arith.constant 0 : index
    %320 = vector.load %arg12[%c0_102, %c0_103, %c0_104] : memref<1x64x32xbf16, #tpu.memory_space<vmem>>, vector<1x64x32xbf16>
    %321 = vector.shape_cast %320 : vector<1x64x32xbf16> to vector<64x32xbf16>
    %cst_105 = arith.constant dense<0.000000e+00> : vector<16x32xf32>
    %322 = tpu.matmul %319, %321, %cst_105 {dimension_numbers = #tpu.dot_dimension_numbers<[1], [0], [0], [1], [0, 0, 1, 1], [], []>} : vector<16x64xbf16>, vector<64x32xbf16>, vector<16x32xf32> -> vector<16x32xf32>
    %c0_106 = arith.constant 0 : index
    %c0_107 = arith.constant 0 : index
    %c0_108 = arith.constant 0 : index
    %323 = vector.load %arg13[%c0_106, %c0_107, %c0_108] : memref<1x1x32xf32, #tpu.memory_space<vmem>>, vector<1x1x32xf32>
    %324 = vector.shape_cast %323 : vector<1x1x32xf32> to vector<1x32xf32>
    %325 = vector.broadcast %324 : vector<1x32xf32> to vector<16x32xf32>
    %326 = arith.addf %322, %325 : vector<16x32xf32>
    %327 = arith.addf %308, %326 : vector<16x32xf32>
    %cst_109 = arith.constant dense<0.000000e+00> : vector<16xf32>
    %328 = vector.multi_reduction <add>, %327, %cst_109 [1] : vector<16x32xf32> to vector<16xf32>
    %329 = vector.shape_cast %328 : vector<16xf32> to vector<16x1xf32>
    %cst_110 = arith.constant 3.200000e+01 : f32
    %330 = vector.broadcast %cst_110 : f32 to vector<16x1xf32>
    %331 = arith.divf %329, %330 : vector<16x1xf32>
    %332 = vector.broadcast %331 : vector<16x1xf32> to vector<16x32xf32>
    %333 = arith.subf %327, %332 : vector<16x32xf32>
    %334 = arith.mulf %333, %333 : vector<16x32xf32>
    %cst_111 = arith.constant dense<0.000000e+00> : vector<16xf32>
    %335 = vector.multi_reduction <add>, %334, %cst_111 [1] : vector<16x32xf32> to vector<16xf32>
    %336 = vector.shape_cast %335 : vector<16xf32> to vector<16x1xf32>
    %cst_112 = arith.constant 3.200000e+01 : f32
    %337 = vector.broadcast %cst_112 : f32 to vector<16x1xf32>
    %338 = arith.divf %336, %337 : vector<16x1xf32>
    %339 = vector.broadcast %331 : vector<16x1xf32> to vector<16x32xf32>
    %340 = arith.subf %327, %339 : vector<16x32xf32>
    %cst_113 = arith.constant 9.99999974E-6 : f32
    %341 = vector.broadcast %cst_113 : f32 to vector<16x1xf32>
    %342 = arith.addf %338, %341 : vector<16x1xf32>
    %343 = math.rsqrt %342 : vector<16x1xf32>
    %344 = vector.broadcast %343 : vector<16x1xf32> to vector<16x32xf32>
    %345 = arith.mulf %340, %344 : vector<16x32xf32>
    %346 = vector.extract_strided_slice %1 {offsets = [2, 0], sizes = [1, 32], strides = [1, 1]} : vector<3x32xf32> to vector<1x32xf32>
    %347 = vector.broadcast %346 : vector<1x32xf32> to vector<16x32xf32>
    %348 = arith.mulf %345, %347 : vector<16x32xf32>
    %349 = vector.extract_strided_slice %3 {offsets = [2, 0], sizes = [1, 32], strides = [1, 1]} : vector<3x32xf32> to vector<1x32xf32>
    %350 = vector.broadcast %349 : vector<1x32xf32> to vector<16x32xf32>
    %351 = arith.addf %348, %350 : vector<16x32xf32>
    %c0_114 = arith.constant 0 : index
    %c0_115 = arith.constant 0 : index
    %352 = vector.load %arg20[%c0_114, %c0_115] : memref<16x32xf32, #tpu.memory_space<vmem>>, vector<16x32xf32>
    tpu.vector_store %arg20[%c0_114, %c0_115], %351 {strides = array<i32>} : memref<16x32xf32, #tpu.memory_space<vmem>>, vector<16x32xf32>,
    %c1_i32 = arith.constant 1 : i32
    %353 = arith.cmpi eq, %arg0, %c1_i32 : i32
    %354 = arith.extui %353 : i1 to i32
    %c0_i32_116 = arith.constant 0 : i32
    %355 = arith.cmpi ne, %354, %c0_i32_116 : i32
    scf.if %355 {
      %356 = arith.truncf %351 : vector<16x32xf32> to vector<16x32xbf16>
      %c0_117 = arith.constant 0 : index
      %c0_118 = arith.constant 0 : index
      %357 = vector.load %arg16[%c0_117, %c0_118] : memref<32x128xbf16, #tpu.memory_space<vmem>>, vector<32x128xbf16>
      %cst_119 = arith.constant dense<0.000000e+00> : vector<16x128xf32>
      %358 = tpu.matmul %356, %357, %cst_119 {dimension_numbers = #tpu.dot_dimension_numbers<[1], [0], [0], [1], [0, 0, 1, 1], [], []>} : vector<16x32xbf16>, vector<32x128xbf16>, vector<16x128xf32> -> vector<16x128xf32>
      %c0_120 = arith.constant 0 : index
      %c0_121 = arith.constant 0 : index
      %359 = vector.load %arg17[%c0_120, %c0_121] : memref<1x128xf32, #tpu.memory_space<vmem>>, vector<1x128xf32>
      %360 = vector.broadcast %359 : vector<1x128xf32> to vector<16x128xf32>
      %361 = arith.addf %358, %360 : vector<16x128xf32>
      %c0_122 = arith.constant 0 : index
      %c0_123 = arith.constant 0 : index
      %362 = vector.load %arg18[%c0_122, %c0_123] : memref<16x128xf32, #tpu.memory_space<vmem>>, vector<16x128xf32>
      tpu.vector_store %arg18[%c0_122, %c0_123], %361 {strides = array<i32>} : memref<16x128xf32, #tpu.memory_space<vmem>>, vector<16x128xf32>,
    } else {
    }
    return
  }
  func.func @transform_0(%arg0: i32) -> (i32, i32) {
    %c0_i32 = arith.constant 0 : i32
    %c0_i32_0 = arith.constant 0 : i32
    %c0_i32_1 = arith.constant 0 : i32
    return %c0_i32, %c0_i32_0 : i32, i32
  }
  func.func @transform_1(%arg0: i32) -> (i32, i32) {
    %c0_i32 = arith.constant 0 : i32
    %c0_i32_0 = arith.constant 0 : i32
    %c0_i32_1 = arith.constant 0 : i32
    return %c0_i32, %c0_i32_0 : i32, i32
  }
  func.func @transform_2(%arg0: i32) -> (i32, i32, i32) {
    %c0_i32 = arith.constant 0 : i32
    %c0_i32_0 = arith.constant 0 : i32
    %c0_i32_1 = arith.constant 0 : i32
    %c0_i32_2 = arith.constant 0 : i32
    return %c0_i32, %c0_i32_0, %c0_i32_1 : i32, i32, i32
  }
  func.func @transform_3(%arg0: i32) -> (i32, i32, i32) {
    %c0_i32 = arith.constant 0 : i32
    %c0_i32_0 = arith.constant 0 : i32
    %c0_i32_1 = arith.constant 0 : i32
    %c0_i32_2 = arith.constant 0 : i32
    return %c0_i32, %c0_i32_0, %c0_i32_1 : i32, i32, i32
  }
  func.func @transform_4(%arg0: i32) -> (i32, i32, i32) {
    %c0_i32 = arith.constant 0 : i32
    %c0_i32_0 = arith.constant 0 : i32
    %c0_i32_1 = arith.constant 0 : i32
    return %arg0, %c0_i32, %c0_i32_0 : i32, i32, i32
  }
  func.func @transform_5(%arg0: i32) -> (i32, i32, i32) {
    %c0_i32 = arith.constant 0 : i32
    %c0_i32_0 = arith.constant 0 : i32
    %c0_i32_1 = arith.constant 0 : i32
    return %arg0, %c0_i32, %c0_i32_0 : i32, i32, i32
  }
  func.func @transform_6(%arg0: i32) -> (i32, i32, i32) {
    %c0_i32 = arith.constant 0 : i32
    %c0_i32_0 = arith.constant 0 : i32
    %c0_i32_1 = arith.constant 0 : i32
    return %arg0, %c0_i32, %c0_i32_0 : i32, i32, i32
  }
  func.func @transform_7(%arg0: i32) -> (i32, i32, i32) {
    %c0_i32 = arith.constant 0 : i32
    %c0_i32_0 = arith.constant 0 : i32
    %c0_i32_1 = arith.constant 0 : i32
    return %arg0, %c0_i32, %c0_i32_0 : i32, i32, i32
  }
  func.func @transform_8(%arg0: i32) -> (i32, i32, i32) {
    %c0_i32 = arith.constant 0 : i32
    %c0_i32_0 = arith.constant 0 : i32
    %c0_i32_1 = arith.constant 0 : i32
    return %arg0, %c0_i32, %c0_i32_0 : i32, i32, i32
  }
  func.func @transform_9(%arg0: i32) -> (i32, i32, i32) {
    %c0_i32 = arith.constant 0 : i32
    %c0_i32_0 = arith.constant 0 : i32
    %c0_i32_1 = arith.constant 0 : i32
    return %arg0, %c0_i32, %c0_i32_0 : i32, i32, i32
  }
  func.func @transform_10(%arg0: i32) -> (i32, i32, i32) {
    %c0_i32 = arith.constant 0 : i32
    %c0_i32_0 = arith.constant 0 : i32
    %c0_i32_1 = arith.constant 0 : i32
    return %arg0, %c0_i32, %c0_i32_0 : i32, i32, i32
  }
  func.func @transform_11(%arg0: i32) -> (i32, i32, i32) {
    %c0_i32 = arith.constant 0 : i32
    %c0_i32_0 = arith.constant 0 : i32
    %c0_i32_1 = arith.constant 0 : i32
    return %arg0, %c0_i32, %c0_i32_0 : i32, i32, i32
  }
  func.func @transform_12(%arg0: i32) -> (i32, i32, i32) {
    %c0_i32 = arith.constant 0 : i32
    %c0_i32_0 = arith.constant 0 : i32
    %c0_i32_1 = arith.constant 0 : i32
    return %arg0, %c0_i32, %c0_i32_0 : i32, i32, i32
  }
  func.func @transform_13(%arg0: i32) -> (i32, i32, i32) {
    %c0_i32 = arith.constant 0 : i32
    %c0_i32_0 = arith.constant 0 : i32
    %c0_i32_1 = arith.constant 0 : i32
    return %arg0, %c0_i32, %c0_i32_0 : i32, i32, i32
  }
  func.func @transform_14(%arg0: i32) -> (i32, i32, i32) {
    %c0_i32 = arith.constant 0 : i32
    %c0_i32_0 = arith.constant 0 : i32
    %c0_i32_1 = arith.constant 0 : i32
    return %arg0, %c0_i32, %c0_i32_0 : i32, i32, i32
  }
  func.func @transform_15(%arg0: i32) -> (i32, i32) {
    %c0_i32 = arith.constant 0 : i32
    %c0_i32_0 = arith.constant 0 : i32
    %c0_i32_1 = arith.constant 0 : i32
    return %c0_i32, %c0_i32_0 : i32, i32
  }
  func.func @transform_16(%arg0: i32) -> (i32, i32) {
    %c0_i32 = arith.constant 0 : i32
    %c0_i32_0 = arith.constant 0 : i32
    %c0_i32_1 = arith.constant 0 : i32
    return %c0_i32, %c0_i32_0 : i32, i32
  }
  func.func @transform_17(%arg0: i32) -> (i32, i32) {
    %c0_i32 = arith.constant 0 : i32
    %c0_i32_0 = arith.constant 0 : i32
    %c0_i32_1 = arith.constant 0 : i32
    return %c0_i32, %c0_i32_0 : i32, i32
  }
  func.func @transform_18(%arg0: i32) -> (i32, i32, i32) {
    %c0_i32 = arith.constant 0 : i32
    %c0_i32_0 = arith.constant 0 : i32
    %c0_i32_1 = arith.constant 0 : i32
    return %arg0, %c0_i32, %c0_i32_0 : i32, i32, i32
  }
}

</mosaic_0001>

<bundles_post_ra>
// kernel: tpu_custom_call.1
= control target key start
LH: loop header
LB: loop body
LE: loop exit
PB: predicated region body
PF: predicated region fallthrough
CT: control target
= control target key end

     0   :  { %s5991_s0 = inlined_call_operand.hbm [shape: f32[16,32], index: 0, kind: input, shape index: {}]   ;;  %s5992_s1 = inlined_call_operand.hbm [shape: bf16[32,32], index: 1, kind: input, shape index: {}]   ;;  %s5993_s2 = inlined_call_operand.hbm [shape: f32[1,8,8], index: 2, kind: input, shape index: {}]   ;;  %s5994_s3 = inlined_call_operand.hbm [shape: f32[2,1,16], index: 3, kind: input, shape index: {}]   ;;  %s5995_s4 = inlined_call_operand.vmem [shape: bf16[2,32,96], index: 4, kind: input, shape index: {}]   ;;  %s5996_s5 = inlined_call_operand.vmem [shape: bf16[2,32,32], index: 5, kind: input, shape index: {}]   ;;  %s5997_s6 = inlined_call_operand.vmem [shape: bf16[2,32,32], index: 6, kind: input, shape index: {}]   ;;  %s5998_s7 = inlined_call_operand.vmem [shape: bf16[2,32,64], index: 7, kind: input, shape index: {}]   ;;  %s5999_s8 = inlined_call_operand.hbm [shape: bf16[2,32,32], index: 8, kind: input, shape index: {}]   ;;  %s6000_s9 = inlined_call_operand.hbm [shape: bf16[2,32,64], index: 9, kind: input, shape index: {}]   ;;  %s6001_s10 = inlined_call_operand.hbm [shape: f32[2,1,64], index: 10, kind: input, shape index: {}]   ;;  %s6002_s11 = inlined_call_operand.vmem [shape: bf16[2,64,32], index: 11, kind: input, shape index: {}]   ;;  %s6003_s12 = inlined_call_operand.hbm [shape: f32[2,1,32], index: 12, kind: input, shape index: {}]   ;;  %s6004_s13 = inlined_call_operand.vmem [shape: f32[2,3,32], index: 13, kind: input, shape index: {}]   ;;  %s6005_s14 = inlined_call_operand.vmem [shape: f32[2,3,32], index: 14, kind: input, shape index: {}]   ;;  %s6006_s15 = inlined_call_operand.vmem [shape: bf16[32,128], index: 15, kind: input, shape index: {}]   ;;  %s6007_s16 = inlined_call_operand.vmem [shape: f32[1,128], index: 16, kind: input, shape index: {}]   ;;  %s6008_s17 = inlined_call_operand.hbm [shape: f32[16,128], index: 17, kind: output, shape index: {0}]   ;;  %s6009_s18 = inlined_call_operand.hbm [shape: f32[2,16,32], index: 18, kind: output, shape index: {1}]  }
   0x1   :  { %6031 = sst [smem:[#allocation30_spill]] %s5991_s0 }
   0x2   :  { %6032 = sst [smem:[#allocation31_spill]] %s5992_s1 }
   0x3   :  { %6033 = sst [smem:[#allocation32_spill]] %s5993_s2 }
   0x4   :  { %6034 = sst [smem:[#allocation33_spill]] %s5994_s3 }
   0x5   :  { %6035 = sst [smem:[#allocation34_spill]] %s5995_s4 }
   0x6   :  { %6036 = sst [smem:[#allocation35_spill]] %s5996_s5 }
   0x7   :  { %6037 = sst [smem:[#allocation36_spill]] %s5997_s6 }
   0x8   :  { %6038 = sst [smem:[#allocation37_spill]] %s5998_s7 }
   0x9   :  { %6039 = sst [smem:[#allocation38_spill]] %s5999_s8 }
   0xa   :  { %6040 = sst [smem:[#allocation39_spill]] %s6000_s9 }
   0xb   :  { %6041 = sst [smem:[#allocation40_spill]] %s6001_s10 }
   0xc   :  { %6042 = sst [smem:[#allocation41_spill]] %s6002_s11 }
   0xd   :  { %6043 = sst [smem:[#allocation42_spill]] %s6004_s13 }
   0xe   :  { %6044 = sst [smem:[#allocation43_spill]] %s6005_s14 }
   0xf   :  { %6045 = sst [smem:[#allocation44_spill]] %s6006_s15 }
  0x10   :  { %6046 = sst [smem:[#allocation45_spill]] %s6007_s16 }
  0x11   :  { %6047 = sst [smem:[#allocation46_spill]] %s6008_s17 }
  0x12   :  { %6048 = sst [smem:[#allocation47_spill]] %s6009_s18 }
  0x13   :  { %24 = vsyncpa [#allocation4], 0 }
  0x14   :  { %25 = vsyncpa [#allocation7], 0 }
  0x15   :  { %26 = vsyncpa [#allocation10], 0 }
  0x16   :  { %27 = vsyncpa [#allocation5], 0 }
  0x17   :  { %28 = vsyncpa [#allocation17], 0 }
  0x18   :  { %30 = vsyncpa [#allocation17 + $0x1], 0  ;;  %s5138_s27 = smov 0   ;;  %s5140_s28 = smov 0  }
  0x19   :  { %s5142_s29 = smov 0   ;;  %s5144_s30 = smov 0  }
  0x1a LB: > { %6049 = sst [smem:[#allocation24_spill]] %s4996_s27  ;;  %s5159_s0 = sadd.s32 4294967295, %s5008_s30   ;;  %s5008_s30 = sphi %s5144_s30, %s6108_s30   ;;  %s5004_s29 = sphi %s5142_s29, %s6110_s29   ;;  %s5000_s28 = sphi %s5140_s28, %s6112_s28   ;;  %s4996_s27 = sphi %s5138_s27, %s6111_s27  }
  0x1b   : > { %6050 = sst [smem:[#allocation25_spill]] %s5004_s29  ;;  %s3943_s19 = sadd.s32 4294967294, %s5008_s30  }
  0x1c   : > { %p244_p0 = scmp.ne.s32.totalorder %s5000_s28, %s4996_s27  ;;  %p6020_p1 = scmp.eq.s32.totalorder %s5159_s0, 0 }
  0x1d   : > { %p6019_p2 = scmp.eq.s32.totalorder %s5159_s0, 1  ;;  %p493_p3 = scmp.eq.s32.totalorder %s3943_s19, 1 }
  0x1e   : > { %p5168_p4 = por %p6020_p1, %p244_p0  ;;  %p3944_p5 = scmp.ge.s32.totalorder %s5008_s30, 1 }
  0x1f   : > { %p5173_p6 = por %p493_p3, %p244_p0  ;;  %p500_p7 = scmp.lt.s32.totalorder %s5008_s30, 3 }
  0x20   : > { %s6051_s1 = scalar_select %p5168_p4, 1, 0 }
  0x21   : > { %s6052_s20 = scalar_select %p5173_p6, 1, 0 }
  0x22   : > { %p5179_p9 = pnand %p3944_p5, %p500_p7  ;;  %s5010_s22 = smov [#allocation3]  }
  0x23   : > { %6053 = sst [smem:[#allocation26_spill]] %s6052_s20  ;;  %s512_s2 = sshll.u32 %s5010_s22, 4  ;;  %s513_s2 = int_to_ptr.vmem [resolvable:$true] %s512_s2 }
  0x24   : > { %s6054_s21 = scalar_select %p5179_p9, 1, 0 }
  0x25   : > { %p4494_p10 = pneg %p5179_p9  ;;  %s5193_s24 = sadd.s32 1, %s5008_s30  }
  0x26   : > { %6056 = sst [smem:[#allocation27_spill]] %s5193_s24  ;;  %s231_s25 = sadd.s32 1, %s5004_s29 }
  0x27   : > { %p5188_p12 = pnand %p4494_p10, %p6020_p1  ;;  %s228_s26 = ssub.s32 %s5008_s30, %s5193_s24 }
  0x28   : > { %s4699_s19 = scalar_lea.vmem %s513_s2, 256  ;;  %p4707_p7 = scmp.lt.s32.totalorder %s513_s2, %s513_s2 }
  0x29   : > { %s6055_s23 = scalar_select %p5188_p12, 1, 0 }
  0x2a   : > { %p6021_p13 = pneg %p5188_p12  ;;  %p4700_p0 = scmp.ne.s32.totalorder %s513_s2, %s4699_s19 }
  0x2b   : > { %p4708_p10 = scmp.lt.s32.totalorder %s4699_s19, %s4699_s19 }
  0x2c   : > { %p4702_p3 = pnand %p4700_p0, %p6021_p13 }
  0x2d   : > { %p4709_p11 = por %p4708_p10, %p4707_p7 }
  0x2e   : > { %p4703_p5 = pneg %p4702_p3 }
  0x30   : > { %p4710_p8 = pnand %p4709_p11, %p4703_p5 }
  0x32   : > { %4713 = shalt.err (!%p4710_p8)
}
  0x33   : > { %s5011_s22 = smov 128   ;;  %s5012_s24 = smov 8  }
  0x34   : > { %s6057_s18 = sld [smem:[#allocation30_spill]]  ;;  %p229_p0 = scmp.eq.s32.totalorder %s228_s26, 0 }
  0x35   : > { %p238_p11 = scmp.ne.s32.totalorder %s5004_s29, %s5000_s28  ;;  %p239_p8 = scmp.eq.s32.totalorder %s5008_s30, 0 }
  0x36   : > { %s5212_s19 = scalar_select %p229_p0, %s5004_s29, %s231_s25  }
  0x37   : > { %p240_p3 = por %p239_p8, %p238_p11  ;;  %p5216_p5 = por %p6019_p2, %p238_p11 }
  0x38   : > { %6058 = sst [smem:[#allocation28_spill]] %s5212_s19  ;;  %p4528_p7 = scmp.lt.s32.totalorder %s5008_s30, 2 }
  0x39   : > { %s6059_s17 = scalar_select %p5216_p5, 1, 0 }
  0x3a   : > { %4497 = dma.hbm_to_vmem [thread:$0]  (!%p5188_p12), %s6057_s18, 256, %s513_s2, [#allocation4], %s5011_s22, %s5011_s22, %s5012_s24  }
  0x3b   : > { %6060 = sst [smem:[#allocation29_spill]] %s6059_s17  ;;  %s601_s16 = sand.u32 1, %s5008_s30  }
  0x3c   : > { %s5223_s15 = sand.u32 1, %s5004_s29   ;;  %s4059_s13 = sshll.u32 %s5008_s30, 8 }
  0x3d   : > { %s3950_s14 = sshll.u32 %s5223_s15, 4  ;;  %s6061_s8 = sld [smem:[#allocation38_spill]] }
  0x3e   : > { %s605_s2 = scalar_lea.vmem [#allocation11], %s3950_s14  ;;  %p5234_p10 = pnand %p4528_p7, %p240_p3 }
  0x3f   : > { %s612_s24 = sshll.u32 %s605_s2, 4  ;;  %s6063_s9 = sld [smem:[#allocation39_spill]]  ;;  %s5232_s24 = int_to_ptr.vmem [resolvable:$true] %s612_s24 }
  0x40   : > { %s6062_s25 = scalar_select %p5234_p10, 1, 0 }
  0x41   : > { %s5243_s27 = scalar_lea.vmem [#allocation12], %s3950_s14  ;;  %s5246_s29 = scalar_lea.sflag [#allocation4], %s601_s16 }
  0x42   : > { %p5252_p11 = pneg %p5234_p10 }
  0x43   : > { %s5230_s20 = scalar_lea.hbm %s6061_s8, %s4059_s13  ;;  %s4719_s14 = scalar_lea.hbm %s6061_s8, 512 }
  0x44   : > { %s4714_s17 = scalar_lea.hbm %s5230_s20, 256  ;;  %p4720_p7 = scmp.lt.s32.totalorder %s5230_s20, %s6061_s8 }
  0x45   : > { %s5241_s19 = scalar_lea.hbm %s6063_s9, %s4059_s13  ;;  %p4715_p0 = scmp.ne.s32.totalorder %s5230_s20, %s4714_s17 }
  0x46   : > { %p4721_p2 = scmp.lt.s32.totalorder %s4719_s14, %s4714_s17 }
  0x47   : > { %p4717_p8 = pnand %p5252_p11, %p4715_p0 }
  0x48   : > { %p4722_p1 = por %p4721_p2, %p4720_p7 }
  0x49   : > { %p4718_p3 = pneg %p4717_p8 }
  0x4b   : > { %p4723_p13 = pnand %p4722_p1, %p4718_p3 }
  0x4d   : > { %4726 = shalt.err (!%p4723_p13)
}
  0x4e   : > { %s4727_s16 = scalar_lea.vmem %s5232_s24, 256  ;;  %s5013_s18 = smov [#allocation11]  }
  0x4f   : > { %p4728_p6 = scmp.ne.s32.totalorder %s5232_s24, %s4727_s16  ;;  %s4732_s26 = sshll.u32 %s5013_s18, 4  ;;  %s4733_s26 = int_to_ptr.vmem [resolvable:$false] %s4732_s26 }
  0x50   : > { %s4734_s13 = scalar_lea.vmem %s4733_s26, 512  ;;  %p4735_p5 = scmp.lt.s32.totalorder %s5232_s24, %s4733_s26 }
  0x51   : > { %p4730_p0 = pnand %p4728_p6, %p5252_p11  ;;  %p4736_p4 = scmp.lt.s32.totalorder %s4734_s13, %s4727_s16 }
  0x53   : > { %p4731_p8 = pneg %p4730_p0  ;;  %p4737_p9 = por %p4736_p4, %p4735_p5 }
  0x55   : > { %p4738_p12 = pnand %p4737_p9, %p4731_p8 }
  0x57   : > { %4741 = shalt.err (!%p4738_p12)
}
  0x58   : > { %s6027_s11 = smov 64   ;;  %s5015_s17 = smov 4  }
  0x59   : > { %4510 = dma.hbm_to_vmem [thread:$0]  (!%p5234_p10), %s5230_s20, 256, %s5232_s24, %s5246_s29, %s6027_s11, %s6027_s11, %s5015_s17  }
  0x5a   : > { %s6065_s18 = sshll.u32 %s5243_s27, 4  ;;  %s4742_s14 = scalar_lea.hbm %s5241_s19, 256  ;;  %s634_s18 = int_to_ptr.vmem [resolvable:$true] %s6065_s18 }
  0x5b   : > { %p4743_p1 = scmp.ne.s32.totalorder %s5241_s19, %s4742_s14  ;;  %s4747_s26 = scalar_lea.hbm %s6063_s9, 512 }
  0x5c   : > { %p4748_p6 = scmp.lt.s32.totalorder %s5241_s19, %s6063_s9  ;;  %p4749_p9 = scmp.lt.s32.totalorder %s4747_s26, %s4742_s14 }
  0x5d   : > { %p4745_p2 = pnand %p4743_p1, %p5252_p11 }
  0x5e   : > { %p4750_p12 = por %p4749_p9, %p4748_p6 }
  0x5f   : > { %p4746_p4 = pneg %p4745_p2 }
  0x61   : > { %p4751_p13 = pnand %p4750_p12, %p4746_p4 }
  0x63   : > { %4754 = shalt.err (!%p4751_p13)
}
  0x64   : > { %s4755_s20 = scalar_lea.vmem %s634_s18, 256  ;;  %s5016_s24 = smov [#allocation12]  }
  0x65   : > { %p4756_p5 = scmp.ne.s32.totalorder %s634_s18, %s4755_s20  ;;  %s4760_s27 = sshll.u32 %s5016_s24, 4  ;;  %s4761_s27 = int_to_ptr.vmem [resolvable:$false] %s4760_s27 }
  0x66   : > { %s4762_s11 = scalar_lea.vmem %s4761_s27, 512  ;;  %p4763_p0 = scmp.lt.s32.totalorder %s634_s18, %s4761_s27 }
  0x67   : > { %p4758_p3 = pnand %p4756_p5, %p5252_p11  ;;  %p4764_p8 = scmp.lt.s32.totalorder %s4762_s11, %s4755_s20 }
  0x69   : > { %p4759_p7 = pneg %p4758_p3  ;;  %p4765_p1 = por %p4764_p8, %p4763_p0 }
  0x6b   : > { %p4766_p2 = pnand %p4765_p1, %p4759_p7 }
  0x6d   : > { %4769 = shalt.err (!%p4766_p2)
}
  0x6e   : > { %s6066_s8 = smov 64   ;;  %s5017_s14 = smov [#allocation6]  }
  0x6f   : > { %4513 = dma.hbm_to_vmem [thread:$0]  (!%p5234_p10), %s5241_s19, 256, %s634_s18, %s5246_s29, %s6066_s8, %s6066_s8, %s5015_s17  }
  0x70   : > { %s525_s22 = sshll.u32 %s5017_s14, 4  ;;  %s3956_s16 = sshll.u32 %s5008_s30, 4  ;;  %s526_s22 = int_to_ptr.vmem [resolvable:$true] %s525_s22 }
  0x71   : > { %s4781_s26 = scalar_lea.vmem %s526_s22, 256  ;;  %p6067_p6 = scmp.ne.s32.totalorder %s6055_s23, 0 }
  0x72   : > { %p4782_p4 = scmp.ne.s32.totalorder %s526_s22, %s4781_s26  ;;  %p4789_p5 = scmp.lt.s32.totalorder %s526_s22, %s526_s22 }
  0x73   : > { %p6068_p9 = pneg %p6067_p6  ;;  %p4790_p3 = scmp.lt.s32.totalorder %s4781_s26, %s4781_s26 }
  0x75   : > { %p4784_p12 = pnand %p4782_p4, %p6068_p9  ;;  %p4791_p7 = por %p4790_p3, %p4789_p5 }
  0x77   : > { %p4785_p13 = pneg %p4784_p12 }
  0x79   : > { %p4792_p0 = pnand %p4791_p7, %p4785_p13 }
  0x7b   : > { %4795 = shalt.err (!%p4792_p0)
}
  0x7c   : > { %s6069_s18 = sld [smem:[#allocation31_spill]]  ;;  %s646_s27 = scalar_lea.vmem [#allocation13], %s5223_s15 }
  0x7d   : > { %s6070_s10 = sld [smem:[#allocation40_spill]]  ;;  %s653_s14 = sshll.u32 %s646_s27, 4  ;;  %s654_s14 = int_to_ptr.vmem [resolvable:$true] %s653_s14 }
  0x82   : > { %4500 = dma.hbm_to_vmem [thread:$0]  (!%p6067_p6), %s6069_s18, 256, %s526_s22, [#allocation7], %s6066_s8, %s6066_s8, %s5015_s17  }
  0x83   : > { %s651_s24 = scalar_lea.hbm %s6070_s10, %s3956_s16  ;;  %s4801_s19 = scalar_lea.hbm %s6070_s10, 32 }
  0x84   : > { %s4796_s26 = scalar_lea.hbm %s651_s24, 16  ;;  %p4802_p4 = scmp.lt.s32.totalorder %s651_s24, %s6070_s10 }
  0x85   : > { %p4797_p8 = scmp.ne.s32.totalorder %s651_s24, %s4796_s26  ;;  %p4803_p9 = scmp.lt.s32.totalorder %s4801_s19, %s4796_s26 }
  0x87   : > { %p4799_p1 = pnand %p4797_p8, %p5252_p11  ;;  %p4804_p12 = por %p4803_p9, %p4802_p4 }
  0x89   : > { %p4800_p2 = pneg %p4799_p1 }
  0x8b   : > { %p4805_p13 = pnand %p4804_p12, %p4800_p2 }
  0x8d   : > { %4808 = shalt.err (!%p4805_p13)
}
  0x8e   : > { %s4809_s17 = scalar_lea.vmem %s654_s14, 16  ;;  %s5018_s8 = smov [#allocation13]  }
  0x8f   : > { %p4810_p5 = scmp.ne.s32.totalorder %s654_s14, %s4809_s17  ;;  %s4814_s22 = sshll.u32 %s5018_s8, 4  ;;  %s4815_s22 = int_to_ptr.vmem [resolvable:$false] %s4814_s22 }
  0x90   : > { %s4816_s18 = scalar_lea.vmem %s4815_s22, 32  ;;  %p4817_p0 = scmp.lt.s32.totalorder %s654_s14, %s4815_s22 }
  0x91   : > { %p4812_p3 = pnand %p4810_p5, %p5252_p11  ;;  %p4818_p8 = scmp.lt.s32.totalorder %s4816_s18, %s4809_s17 }
  0x93   : > { %p4813_p7 = pneg %p4812_p3  ;;  %p4819_p1 = por %p4818_p8, %p4817_p0 }
  0x95   : > { %p4820_p6 = pnand %p4819_p1, %p4813_p7 }
  0x97   : > { %4823 = shalt.err (!%p4820_p6)
}
  0x98   : > { %4516 = dma.hbm_to_vmem [thread:$0]  (!%p5234_p10), %s651_s24, 16, %s654_s14, %s5246_s29  }
  0x99   : > { %s5019_s6 = smov [#allocation8]   ;;  %s5020_s9 = smov [#allocation9]  }
  0x9a   : > { %s539_s7 = sshll.u32 %s5019_s6, 4  ;;  %s549_s13 = sshll.u32 %s5020_s9, 4  ;;  %s540_s7 = int_to_ptr.vmem [resolvable:$true] %s539_s7  ;;  %s550_s13 = int_to_ptr.vmem [resolvable:$true] %s549_s13 }
  0x9b   : > { %s4835_s20 = scalar_lea.vmem %s540_s7, 128  ;;  %p6071_p4 = scmp.ne.s32.totalorder %s6055_s23, 0 }
  0x9c   : > { %p4836_p2 = scmp.ne.s32.totalorder %s540_s7, %s4835_s20  ;;  %p4843_p5 = scmp.lt.s32.totalorder %s540_s7, %s540_s7 }
  0x9d   : > { %p6072_p9 = pneg %p6071_p4  ;;  %p4844_p3 = scmp.lt.s32.totalorder %s4835_s20, %s4835_s20 }
  0x9f   : > { %p4838_p12 = pnand %p4836_p2, %p6072_p9  ;;  %p4845_p7 = por %p4844_p3, %p4843_p5 }
  0xa1   : > { %p4839_p13 = pneg %p4838_p12 }
  0xa3   : > { %p4846_p6 = pnand %p4845_p7, %p4839_p13 }
  0xa5   : > { %4849 = shalt.err (!%p4846_p6)
}
  0xa6   : > { %s6073_s14 = sld [smem:[#allocation32_spill]]  ;;  %s4861_s26 = scalar_lea.vmem %s550_s13, 32 }
  0xa7   : > { %p4862_p0 = scmp.ne.s32.totalorder %s550_s13, %s4861_s26  ;;  %p6074_p8 = pmov %p6072_p9 }
  0xa8   : > { %p4869_p9 = scmp.lt.s32.totalorder %s550_s13, %s550_s13  ;;  %p4870_p12 = scmp.lt.s32.totalorder %s4861_s26, %s4861_s26 }
  0xa9   : > { %p4864_p1 = pnand %p4862_p0, %p6074_p8 }
  0xaa   : > { %p4871_p10 = por %p4870_p12, %p4869_p9 }
  0xab   : > { %p4865_p2 = pneg %p4864_p1 }
  0xac   : > { %4503 = dma.hbm_to_vmem [thread:$0]  (!%p6071_p4), %s6073_s14, 128, %s540_s7, [#allocation7]  }
  0xad   : > { %p4872_p5 = pnand %p4871_p10, %p4865_p2 }
  0xaf   : > { %4875 = shalt.err (!%p4872_p5)
}
  0xb0   : > { %s5021_s19 = smov 16   ;;  %s5022_s11 = smov 1  }
  0xb1   : > { %s6075_s3 = sld [smem:[#allocation33_spill]]  ;;  %s676_s6 = scalar_lea.hbm %s6003_s12, %s3956_s16 }
  0xb2   : > { %s671_s7 = scalar_lea.vmem [#allocation14], %s5223_s15  ;;  %s4876_s20 = scalar_lea.hbm %s676_s6, 16 }
  0xb3   : > { %s678_s9 = sshll.u32 %s671_s7, 4  ;;  %p4877_p10 = scmp.ne.s32.totalorder %s676_s6, %s4876_s20  ;;  %s679_s9 = int_to_ptr.vmem [resolvable:$true] %s678_s9 }
  0xb4   : > { %s4881_s23 = scalar_lea.hbm %s6003_s12, 32 }
  0xb5   : > { %p4879_p13 = pnand %p4877_p10, %p5252_p11  ;;  %p4883_p7 = scmp.lt.s32.totalorder %s4881_s23, %s4876_s20 }
  0xb7   : > { %4506 = dma.hbm_to_vmem [thread:$0]  (!%p6071_p4), %s6075_s3, 32, %s550_s13, [#allocation10], %s5021_s19, %s5021_s19, %s5022_s11  }
  0xb8   : > { %p4880_p3 = pneg %p4879_p13  ;;  %p4882_p4 = scmp.lt.s32.totalorder %s676_s6, %s6003_s12 }
  0xba   : > { %p4884_p6 = por %p4883_p7, %p4882_p4 }
  0xbc   : > { %p4885_p0 = pnand %p4884_p6, %p4880_p3 }
  0xbe   : > { %4888 = shalt.err (!%p4885_p0)
}
  0xbf   : > { %s4889_s15 = scalar_lea.vmem %s679_s9, 16  ;;  %s5023_s16 = smov [#allocation14]  }
  0xc0   : > { %p4890_p8 = scmp.ne.s32.totalorder %s679_s9, %s4889_s15  ;;  %s4894_s13 = sshll.u32 %s5023_s16, 4  ;;  %s4895_s13 = int_to_ptr.vmem [resolvable:$false] %s4894_s13 }
  0xc1   : > { %s4896_s19 = scalar_lea.vmem %s4895_s13, 32  ;;  %p4897_p9 = scmp.lt.s32.totalorder %s679_s9, %s4895_s13 }
  0xc2   : > { %p4892_p1 = pnand %p4890_p8, %p5252_p11  ;;  %p4898_p12 = scmp.lt.s32.totalorder %s4896_s19, %s4889_s15 }
  0xc4   : > { %p4893_p2 = pneg %p4892_p1  ;;  %p4899_p5 = por %p4898_p12, %p4897_p9 }
  0xc6   : > { %p4900_p10 = pnand %p4899_p5, %p4893_p2 }
  0xc8   : > { %4903 = shalt.err (!%p4900_p10)
}
  0xc9   : > { %p6076_p13 = scmp.ne.s32.totalorder %s6062_s25, 0  ;;  %p6077_p3 = scmp.ne.s32.totalorder %s6054_s21, 0 }
  0xca   : > { %p6078_p4 = scmp.eq.s32.totalorder (!%p6077_p3), %s5159_s0, 0 }
  0xcb   : > { %4519 = dma.hbm_to_vmem [thread:$0]  (!%p6076_p13), %s676_s6, 16, %s679_s9, %s5246_s29  }
  0xcc   : > { %701 = sbr.rel (%p6077_p3) target bundleno = 8065 (0x1f81), region = 88 }
  0xd1   : > { %4971 = dma.done.wait (%p6078_p4), [#allocation4], 256   ;;  %p6079_p11 = pmov %p6078_p4 }
  0xd2   : > { %p6080_p7 = pmov %p6078_p4 }
  0xd3   : > { %4973 = vsyncadd (%p6079_p11), [#allocation4], 4294967040 }
  0xd4   : > { %4975 = dma.done.wait (%p6080_p7), [#allocation7], 384   ;;  %p6081_p6 = pmov %p6078_p4 }
  0xd5   : > { %p6082_p0 = pmov %p6078_p4 }
  0xd6   : > { %4977 = vsyncadd (%p6081_p6), [#allocation7], 4294966912 }
  0xd7   : > { %4979 = dma.done.wait (%p6082_p0), [#allocation10], 32   ;;  %p6083_p8 = pmov %p6082_p0 }
  0xd8   : > { %s719_s29 = sand.u32 1, %s5159_s0   ;;  %s5382_s21 = sand.u32 1, %s5000_s28  }
  0xd9   : > { %4981 = vsyncadd (%p6083_p8), [#allocation10], 4294967264  ;;  %s5385_s25 = sshll.u32 %s5382_s21, 4  ;;  %s720_s2 = scalar_lea.sflag [#allocation4], %s719_s29 }
  0xda   : > { %s5388_s11 = scalar_lea.vmem [#allocation11], %s5385_s25  ;;  %p6084_p1 = scmp.ne.s32.totalorder %s6051_s1, 0 }
  0xdc   : > { %4983 = dma.done.wait (%p6084_p1), %s720_s2, 544  }
  0xdd   : > { %4985 = vsyncadd (%p6084_p1), %s720_s2, 4294966752  ;;  %p847_p2 = scmp.lt.s32.totalorder %s5159_s0, 1  ;;  %s6085_s4 = sld [smem:[#allocation34_spill]] }
  0xde   : > { %s6086_s5 = sld [smem:[#allocation35_spill]]  ;;  %s748_s26 = scalar_lea.vmem [#allocation14], %s5382_s21 }
  0xdf   : > { %s848_s17 = scalar_select %p847_p2, %s5159_s0, 1 }
  0xe0   : > { %s6087_s23 = sld [smem:[#allocation36_spill]]  ;;  %s5433_s15 = scalar_lea.vmem [#allocation16], %s5385_s25 }
  0xe1   : > { %s4061_s8 = sshll.u32 %s848_s17, 4  ;;  %s4065_s22 = sshll.u32 %s848_s17, 5 }
  0xe2   : > { %s6088_s16 = sld [smem:[#allocation37_spill]]  ;;  %s3976_s6 = sshll.u32 %s848_s17, 2 }
  0xe3   : > { %s851_s7 = scalar_lea.vmem %s6085_s4, %s4061_s8  ;;  %s6089_s2 = sld [smem:[#allocation41_spill]] }
  0xe4   : > { %s5402_s27 = scalar_lea.vmem %s6086_s5, %s4061_s8  ;;  %s6090_s20 = sld [smem:[#allocation42_spill]] }
  0xe5   : > { %s6091_s1 = sld [smem:[#allocation43_spill]]  ;;  %p6092_p9 = scmp.ne.s32.totalorder %s5159_s0, 0 }
  0xe6   : > { %s5407_s14 = scalar_lea.vmem %s6087_s23, %s4061_s8  ;;  %s740_s23 = scalar_lea.vmem [#allocation13], %s5382_s21 }
  0xe8   : > { %s5412_s13 = scalar_lea.vmem %s6088_s16, %s4061_s8  ;;  %s732_s8 = scalar_lea.vmem [#allocation12], %s5385_s25 }
  0xe9   : > { %s5417_s18 = scalar_lea.vmem %s6089_s2, %s4065_s22  ;;  %886 = sbr.rel (%p6092_p9) target bundleno = 240 (0xf0), region = 124 }
  0xea   : > { %s875_s4 = scalar_lea.vmem %s6090_s20, %s3976_s6 }
  0xeb   : > { %s879_s24 = scalar_lea.vmem %s6091_s1, %s3976_s6  ;;  %v5425_v0 = vld [vmem:[%s875_s4] sm:$0x7] }
  0xec   : > { %v5427_v1 = vld [vmem:[%s879_s24] sm:$0x7] }
  0xee   : > { %v887_v2 = vld [vmem:[#allocation3] sm:$0xff]  ;;  %vm889_vm0 = vcmask 261120   ;;  %v888_v3 = vld [vmem:[#allocation3 + $0x8] sm:$0xff] }
  0xef   : > { %890 = vst.msk [vmem:[#allocation2] sm:$0xff] %vm889_vm0, %v887_v2  ;;  %891 = vst.msk [vmem:[#allocation2 + $0x8] sm:$0xff] %vm889_vm0, %v888_v3 }
  0xf0 PF: > { %v4596_v4 = vld [vmem:[%s851_s7 + $0x8] sm:$0xff]   ;;  %v5024_v5 = vmov 0.0   ;;  %v4597_v6 = vld [vmem:[%s851_s7] sm:$0xff]   ;;  %vm5025_vm1 = vmmov 0   ;;  %vm894_vm2 = vcmask 261120   ;;  %s5026_s3 = smov 96  }
  0xf1   : > { %4172 = vmatprep.subr.bf16.mxu1 %v5024_v5  ;;  %4186 = vmatprep.subr.bf16.mxu0 %v5024_v5  ;;  %vm971_vm3 = vcmask 64512   ;;  %v5480_v21 = vld [vmem:[#allocation8] sm:$0xff]  ;;  %s5027_s4 = smov 64   ;;  %s5028_s5 = smov 88   ;;  %vm1099_vm4 = vcmask 1043456   ;;  %vm2368_vm5 = vcmask 130048  }
  0xf2   : > { %4173 = vmatpush3.bf16.msra.mxu1 %v4596_v4  ;;  %4176 = vmatprep.mubr.msk.bf16.mxu1 %vm5025_vm1, %v5024_v5  ;;  %s5029_s10 = smov 120   ;;  %s5030_s17 = smov 56   ;;  %vm3493_vm6 = vcmask 523264  }
  0xf3   : > { %4174 = vmatprep.subr.bf16.mxu1 %v5024_v5  ;;  %4188 = vmatprep.mubr.msk.bf16.mxu0 %vm5025_vm1, %v5024_v5  ;;  %s5031_s22 = smov 112   ;;  %s5032_s7 = smov 80  }
  0xf4   : > { %s5033_s16 = smov 48   ;;  %s5034_s19 = smov 72  }
  0xf5   : > { %s5035_s29 = smov 104   ;;  %s5036_s2 = smov 40  }
  0xf6   : > { %v5441_v7 = vld [vmem:[#allocation2] sm:$0xff]  ;;  %v5443_v8 = vld [vmem:[#allocation2 + $0x8] sm:$0xff]  ;;  %4175 = vmatpush3.bf16.msra.mxu1 %v4597_v6  ;;  %p4047_p12 = scmp.ne.s32.totalorder %s5159_s0, 1 }
  0xf7   : > { %895 = vst.msk [vmem:[%s5433_s15] sm:$0xff] %vm894_vm2, %v5441_v7  ;;  %896 = vst.msk [vmem:[%s5433_s15 + $0x8] sm:$0xff] %vm894_vm2, %v5443_v8  ;;  %v897_v9 = vpack.c.bf16 %v5443_v8, %v5441_v7  ;;  %4180 = vmatprep.subr.bf16.mxu1 %v5024_v5  ;;  %s6095_s20 = sld [smem:[#allocation45_spill]] (!%p4047_p12) }
  0xf9   : > { %4177 = vmatmul.mubr.msk.bf16.vlgmr.msra.gmra.mxu1 %vm894_vm2, %v897_v9 }
  0xfa   : > { %4182 = vmatprep.mubr.msk.bf16.mxu1 %vm5025_vm1, %v5024_v5 }
 0x1b9   : > { %v951_v10 = vpop.f32.mrf.mxu1 }
 0x1ba   : > { %v5460_v11 = vpack.c.bf16 %v951_v10, %v951_v10 }
 0x1bb   : > { %v4178_v12 = vpop.f32.mrf.mxu1 }
 0x1bc   : > { %969 = vrot.lane.b32.xlu0 %v5460_v11, %s5026_s3 }
 0x1bd   : > { %v954_v13 = vpop.f32.mrf.mxu1 }
 0x1be   : > { %v5464_v14 = vpack.c.bf16 %v954_v13, %v954_v13 }
 0x1bf   : > { %v4179_v15 = vpop.f32.mrf.mxu1 }
 0x1c0   : > { %1018 = vrot.lane.b32.xlu0 %v5464_v14, %s5026_s3 }
 0x22e   : > { %v970_v16 = vpop.permute.xlu0 %969 }
 0x22f   : > { %v976_v17 = vsel %vm971_vm3, %v970_v16, 0 }
 0x230   : > { %4181 = vmatpush3.bf16.xpose.msra.mxu1 %v976_v17 }
 0x231   : > { %4192 = vmatprep.subr.bf16.mxu1 %v5024_v5 }
 0x232   : > { %v1019_v18 = vpop.permute.xlu0 %1018 }
 0x233   : > { %v1024_v19 = vsel %vm971_vm3, %v1019_v18, 0 }
 0x234   : > { %4187 = vmatpush3.bf16.xpose.msra.mxu0 %v1024_v19 }
 0x235   : > { %4198 = vmatprep.subr.bf16.mxu0 %v5024_v5 }
 0x237   : > { %4183 = vmatmul.mubr.msk.bf16.vlgmr.msra.gmra.mxu1 %vm971_vm3, %v5460_v11 }
 0x238   : > { %4194 = vmatprep.mubr.msk.bf16.mxu1 %vm5025_vm1, %v5024_v5 }
 0x23b   : > { %4189 = vmatmul.mubr.msk.bf16.vlgmr.msra.gmra.mxu0 %vm971_vm3, %v5464_v14 }
 0x23c   : > { %4200 = vmatprep.mubr.msk.bf16.mxu0 %vm5025_vm1, %v5024_v5 }
 0x2f7   : > { %v1012_v20 = vpop.f32.mrf.mxu1 }
 0x2f8   : > { %v1066_v22 = vmul.f32 0.35355338, %v1012_v20 }
 0x2f9   : > { %v4184_v23 = vpop.f32.mrf.mxu1 }
 0x2fa   : > { %v1068_v24 = vadd.f32 %v1066_v22, %v5480_v21 }
 0x2fb   : > { %v1015_v25 = vpop.f32.mrf.mxu1  ;;  %v1060_v26 = vpop.f32.mrf.mxu0 }
 0x2fc   : > { %v1067_v27 = vmul.f32 0.35355338, %v1060_v26  ;;  %v1070_v28 = vsel %vm971_vm3, %v1068_v24, -inf }
 0x2fd   : > { %v4190_v29 = vpop.f32.mrf.mxu0  ;;  %1071 = vmax.xlane.f32.xlu1 %v1070_v28  ;;  %v4185_v30 = vpop.f32.mrf.mxu1 }
 0x2fe   : > { %v1069_v31 = vadd.f32 %v1067_v27, %v5480_v21 }
 0x2ff   : > { %v1063_v32 = vpop.f32.mrf.mxu0 }
 0x300   : > { %v1073_v33 = vsel %vm971_vm3, %v1069_v31, -inf }
 0x301   : > { %v4191_v34 = vpop.f32.mrf.mxu0  ;;  %1074 = vmax.xlane.f32.xlu1 %v1073_v33 }
 0x312   : > { %1094 = vrot.lane.b32.xlu1 %v5460_v11, %s5027_s4 }
 0x316   : > { %1143 = vrot.lane.b32.xlu1 %v5464_v14, %s5027_s4 }
 0x31a   : > { %1194 = vrot.lane.b32.xlu1 %v5460_v11, %s5028_s5 }
 0x386   : > { %v1072_v35 = vpop.xlane.xlu1 %1071 }
 0x387   : > { %v1076_v36 = vsub.f32 %v1068_v24, %v1072_v35 }
 0x389   : > { %v1078_v37 = vmul.f32 1.442695, %v1076_v36 }
 0x38a   : > { %v1075_v38 = vpop.xlane.xlu1 %1074 }
 0x38b   : > { %4610 = vpow2.f32 %v1078_v37  ;;  %v1077_v39 = vsub.f32 %v1069_v31, %v1075_v38 }
 0x38d   : > { %v1080_v40 = vmul.f32 1.442695, %v1077_v39 }
 0x38e   : > { %v1095_v41 = vpop.permute.xlu1 %1094 }
 0x38f   : > { %4612 = vpow2.f32 %v1080_v40  ;;  %v1101_v42 = vsel %vm1099_vm4, %v1095_v41, 0 }
 0x390   : > { %4193 = vmatpush3.bf16.msra.mxu1 %v1101_v42 }
 0x391   : > { %4204 = vmatprep.subr.bf16.mxu1 %v5024_v5 }
 0x392   : > { %v1144_v43 = vpop.permute.xlu1 %1143 }
 0x393   : > { %v1149_v44 = vsel %vm1099_vm4, %v1144_v43, 0 }
 0x394   : > { %4199 = vmatpush3.bf16.msra.mxu0 %v1149_v44 }
 0x395   : > { %4210 = vmatprep.subr.bf16.mxu0 %v5024_v5 }
 0x396   : > { %v1195_v49 = vpop.permute.xlu1 %1194 }
 0x397   : > { %v1200_v56 = vsel %vm971_vm3, %v1195_v49, 0 }
 0x398   : > { %v4611_v45 = vpop.eup %4610 }
 0x399   : > { %v1082_v46 = vsel %vm971_vm3, %v4611_v45, 0.0 }
 0x39a   : > { %1083 = vadd.xlane.f32.xlu0 %v1082_v46 }
 0x39c   : > { %v4613_v47 = vpop.eup %4612 }
 0x39d   : > { %v1085_v48 = vsel %vm971_vm3, %v4613_v47, 0.0 }
 0x39e   : > { %1086 = vadd.xlane.f32.xlu1 %v1085_v48 }
 0x3af   : > { %1244 = vrot.lane.b32.xlu1 %v5464_v14, %s5028_s5 }
 0x3b0   : > { %1192 = vrot.lane.b32.xlu0 %v5460_v11, %s5029_s10 }
 0x3b3   : > { %1242 = vrot.lane.b32.xlu1 %v5464_v14, %s5029_s10 }
 0x423   : > { %v1084_v50 = vpop.xlane.xlu0 %1083 }
 0x424   : > { %4614 = vrcp.f32 %v1084_v50  ;;  %v959_v50 = vld [vmem:[%s5402_s27] sm:$0xf] }
 0x427   : > { %v1087_v51 = vpop.xlane.xlu1 %1086  ;;  %v1193_v61 = vpop.permute.xlu0 %1192 }
 0x428   : > { %4616 = vrcp.f32 %v1087_v51 }
 0x42b   : > { %v1245_v58 = vpop.permute.xlu1 %1244 }
 0x42c   : > { %v1250_v60 = vsel %vm971_vm3, %v1245_v58, 0  ;;  %v960_v58 = vld [vmem:[%s5402_s27 + $0x4] sm:$0xf] }
 0x42f   : > { %v1243_v62 = vpop.permute.xlu1 %1242 }
 0x431   : > { %v4615_v52 = vpop.eup %4614 }
 0x432   : > { %v1090_v53 = vmul.f32 %v4615_v52, %v4611_v45 }
 0x434   : > { %v1092_v54 = vpack.c.bf16 %v1090_v53, %v1090_v53  ;;  %v1468_v53 = vsel %vm1099_vm4, %v959_v50, 0 }
 0x435   : > { %v4617_v55 = vpop.eup %4616 }
 0x436   : > { %4195 = vmatmul.mubr.msk.bf16.vlgmr.msra.gmra.mxu1 %vm971_vm3, %v1092_v54  ;;  %v1091_v57 = vmul.f32 %v4617_v55, %v4613_v47 }
 0x437   : > { %4205 = vmatpush3.bf16.xpose.msra.mxu1 %v1200_v56  ;;  %4206 = vmatprep.mubr.msk.bf16.mxu1 %vm5025_vm1, %v5024_v5 }
 0x438   : > { %v1093_v59 = vpack.c.bf16 %v1091_v57, %v1091_v57  ;;  %4216 = vmatprep.subr.bf16.mxu1 %v5024_v5 }
 0x43a   : > { %4201 = vmatmul.mubr.msk.bf16.vlgmr.msra.gmra.mxu0 %vm971_vm3, %v1093_v59  ;;  %v1421_v59 = vsel %vm1099_vm4, %v960_v58, 0 }
 0x43b   : > { %4211 = vmatpush3.bf16.xpose.msra.mxu0 %v1250_v60  ;;  %4212 = vmatprep.mubr.msk.bf16.mxu0 %vm5025_vm1, %v5024_v5 }
 0x43c   : > { %4222 = vmatprep.subr.bf16.mxu0 %v5024_v5 }
 0x43e   : > { %4207 = vmatmul.mubr.msk.bf16.vlgmr.msra.gmra.mxu1 %vm971_vm3, %v1193_v61 }
 0x43f   : > { %4218 = vmatprep.mubr.msk.bf16.mxu1 %vm5025_vm1, %v5024_v5 }
 0x442   : > { %4213 = vmatmul.mubr.msk.bf16.vlgmr.msra.gmra.mxu0 %vm971_vm3, %v1243_v62 }
 0x443   : > { %4224 = vmatprep.mubr.msk.bf16.mxu0 %vm5025_vm1, %v5024_v5 }
 0x4f6   : > { %v5518_v63 = vpop.f32.mrf.mxu1 }
 0x4f8   : > { %v4196_v2 = vpop.f32.mrf.mxu1 }
 0x4fa   : > { %v1140_v3 = vpop.f32.mrf.mxu1  ;;  %v5520_v4 = vpop.f32.mrf.mxu0 }
 0x4fb   : > { %v1191_v6 = vpack.c.bf16 %v5520_v4, %v5518_v63 }
 0x4fc   : > { %v4197_v9 = vpop.f32.mrf.mxu1  ;;  %v4202_v10 = vpop.f32.mrf.mxu0 }
 0x4fe   : > { %v1188_v12 = vpop.f32.mrf.mxu0  ;;  %v1236_v13 = vpop.f32.mrf.mxu1 }
 0x4ff   : > { %v1292_v15 = vmul.f32 0.35355338, %v1236_v13 }
 0x500   : > { %v4203_v16 = vpop.f32.mrf.mxu0  ;;  %v4208_v17 = vpop.f32.mrf.mxu1 }
 0x501   : > { %v1294_v18 = vadd.f32 %v1292_v15, %v5480_v21 }
 0x502   : > { %v1239_v19 = vpop.f32.mrf.mxu1  ;;  %v1286_v20 = vpop.f32.mrf.mxu0 }
 0x503   : > { %v1293_v22 = vmul.f32 0.35355338, %v1286_v20  ;;  %v1296_v23 = vsel %vm971_vm3, %v1294_v18, -inf }
 0x504   : > { %v4214_v24 = vpop.f32.mrf.mxu0  ;;  %1297 = vmax.xlane.f32.xlu1 %v1296_v23  ;;  %v4209_v25 = vpop.f32.mrf.mxu1 }
 0x505   : > { %v1295_v26 = vadd.f32 %v1293_v22, %v5480_v21 }
 0x506   : > { %v1289_v27 = vpop.f32.mrf.mxu0 }
 0x507   : > { %v1299_v28 = vsel %vm971_vm3, %v1295_v26, -inf }
 0x508   : > { %1300 = vmax.xlane.f32.xlu0 %v1299_v28  ;;  %v4215_v29 = vpop.f32.mrf.mxu0 }
 0x51e   : > { %1368 = vrot.lane.b32.xlu0 %v5464_v14, %s5030_s17 }
 0x522   : > { %1511 = vrot.lane.b32.xlu0 %v5460_v11, %s5031_s22 }
 0x58d   : > { %v1298_v30 = vpop.xlane.xlu1 %1297 }
 0x58e   : > { %v1302_v31 = vsub.f32 %v1294_v18, %v1298_v30 }
 0x590   : > { %v1304_v32 = vmul.f32 1.442695, %v1302_v31 }
 0x591   : > { %v1301_v33 = vpop.xlane.xlu0 %1300 }
 0x592   : > { %4618 = vpow2.f32 %v1304_v32  ;;  %v1303_v34 = vsub.f32 %v1295_v26, %v1301_v33 }
 0x594   : > { %v1306_v35 = vmul.f32 1.442695, %v1303_v34 }
 0x595   : > { %v1369_v36 = vpop.permute.xlu0 %1368 }
 0x596   : > { %4620 = vpow2.f32 %v1306_v35  ;;  %v1374_v37 = vsel %vm1099_vm4, %v1369_v36, 0 }
 0x597   : > { %4223 = vmatpush3.bf16.msra.mxu0 %v1374_v37 }
 0x598   : > { %4234 = vmatprep.subr.bf16.mxu0 %v5024_v5 }
 0x599   : > { %v1512_v13 = vpop.permute.xlu0 %1511 }
 0x59f   : > { %v4619_v38 = vpop.eup %4618 }
 0x5a0   : > { %v1308_v39 = vsel %vm971_vm3, %v4619_v38, 0.0 }
 0x5a1   : > { %1309 = vadd.xlane.f32.xlu1 %v1308_v39 }
 0x5a3   : > { %v4621_v40 = vpop.eup %4620 }
 0x5a4   : > { %v1311_v41 = vsel %vm971_vm3, %v4621_v40, 0.0 }
 0x5a5   : > { %1312 = vadd.xlane.f32.xlu1 %v1311_v41 }
 0x5b6   : > { %1320 = vrot.lane.b32.xlu1 %v5460_v11, %s5030_s17 }
 0x5ba   : > { %1513 = vrot.lane.b32.xlu1 %v5460_v11, %s5032_s7 }
 0x5be   : > { %1563 = vrot.lane.b32.xlu1 %v5464_v14, %s5032_s7 }
 0x5c2   : > { %1561 = vrot.lane.b32.xlu1 %v5464_v14, %s5031_s22 }
 0x62a   : > { %v1310_v42 = vpop.xlane.xlu1 %1309 }
 0x62b   : > { %4622 = vrcp.f32 %v1310_v42 }
 0x62e   : > { %v1313_v43 = vpop.xlane.xlu1 %1312 }
 0x62f   : > { %4624 = vrcp.f32 %v1313_v43 }
 0x632   : > { %v1321_v44 = vpop.permute.xlu1 %1320 }
 0x633   : > { %v1326_v45 = vsel %vm1099_vm4, %v1321_v44, 0 }
 0x634   : > { %4217 = vmatpush3.bf16.msra.mxu1 %v1326_v45 }
 0x635   : > { %4228 = vmatprep.subr.bf16.mxu1 %v5024_v5 }
 0x636   : > { %v1514_v54 = vpop.permute.xlu1 %1513 }
 0x638   : > { %v4623_v46 = vpop.eup %4622 }
 0x639   : > { %v1316_v47 = vmul.f32 %v4623_v46, %v4619_v38 }
 0x63a   : > { %v1564_v55 = vpop.permute.xlu1 %1563 }
 0x63b   : > { %v1318_v48 = vpack.c.bf16 %v1316_v47, %v1316_v47  ;;  %v1569_v56 = vsel %vm971_vm3, %v1564_v55, 0 }
 0x63c   : > { %v4625_v49 = vpop.eup %4624 }
 0x63d   : > { %4219 = vmatmul.mubr.msk.bf16.vlgmr.msra.gmra.mxu1 %vm971_vm3, %v1318_v48  ;;  %v1317_v51 = vmul.f32 %v4625_v49, %v4621_v40 }
 0x63e   : > { %4230 = vmatprep.mubr.msk.bf16.mxu1 %vm5025_vm1, %v5024_v5  ;;  %v1562_v57 = vpop.permute.xlu1 %1561  ;;  %4229 = vmatpush3.bf16.msra.mxu1 %v1421_v59 }
 0x63f   : > { %v1319_v52 = vpack.c.bf16 %v1317_v51, %v1317_v51  ;;  %4240 = vmatprep.subr.bf16.mxu1 %v5024_v5 }
 0x641   : > { %4225 = vmatmul.mubr.msk.bf16.vlgmr.msra.gmra.mxu0 %vm971_vm3, %v1319_v52 }
 0x642   : > { %4235 = vmatpush3.bf16.msra.mxu0 %v1468_v53  ;;  %4236 = vmatprep.mubr.msk.bf16.mxu0 %vm5025_vm1, %v5024_v5 }
 0x643   : > { %4246 = vmatprep.subr.bf16.mxu0 %v5024_v5 }
 0x649   : > { %4237 = vmatmul.mubr.msk.bf16.vlgmr.msra.gmra.mxu0 %vm971_vm3, %v1191_v6  ;;  %v1519_v6 = vsel %vm971_vm3, %v1514_v54, 0 }
 0x64a   : > { %4247 = vmatpush3.bf16.xpose.msra.mxu0 %v1569_v56  ;;  %4248 = vmatprep.mubr.msk.bf16.mxu0 %vm5025_vm1, %v5024_v5 }
 0x64b   : > { %4258 = vmatprep.subr.bf16.mxu0 %v5024_v5 }
 0x651   : > { %4249 = vmatmul.mubr.msk.bf16.vlgmr.msra.gmra.mxu0 %vm971_vm3, %v1562_v57 }
 0x652   : > { %4260 = vmatprep.mubr.msk.bf16.mxu0 %vm5025_vm1, %v5024_v5 }
 0x6fd   : > { %v1362_v60 = vpop.f32.mrf.mxu1 }
 0x6ff   : > { %v4220_v61 = vpop.f32.mrf.mxu1 }
 0x701   : > { %v1365_v62 = vpop.f32.mrf.mxu1  ;;  %v1410_v63 = vpop.f32.mrf.mxu0 }
 0x702   : > { %v1416_v2 = vpack.c.bf16 %v1410_v63, %v1362_v60  ;;  %v961_v62 = vld [vmem:[%s5402_s27 + $0x8] sm:$0xf] }
 0x703   : > { %v4221_v3 = vpop.f32.mrf.mxu1  ;;  %v4226_v4 = vpop.f32.mrf.mxu0  ;;  %v1740_v63 = vsel %vm1099_vm4, %v961_v62, 0 }
 0x704   : > { %4231 = vmatmul.mubr.msk.bf16.vlgmr.msra.gmra.mxu1 %vm971_vm3, %v1416_v2 }
 0x705   : > { %4241 = vmatpush3.bf16.xpose.msra.mxu1 %v1519_v6  ;;  %v1413_v9 = vpop.f32.mrf.mxu0  ;;  %4242 = vmatprep.mubr.msk.bf16.mxu1 %vm5025_vm1, %v5024_v5 }
 0x706   : > { %4252 = vmatprep.subr.bf16.mxu1 %v5024_v5 }
 0x707   : > { %v4227_v10 = vpop.f32.mrf.mxu0 }
 0x709   : > { %v5572_v12 = vpop.f32.mrf.mxu0 }
 0x70b   : > { %v4238_v15 = vpop.f32.mrf.mxu0 }
 0x70c   : > { %4243 = vmatmul.mubr.msk.bf16.vlgmr.msra.gmra.mxu1 %vm971_vm3, %v1512_v13 }
 0x70d   : > { %v5575_v16 = vpop.f32.mrf.mxu0  ;;  %4254 = vmatprep.mubr.msk.bf16.mxu1 %vm5025_vm1, %v5024_v5 }
 0x70f   : > { %v4239_v17 = vpop.f32.mrf.mxu0 }
 0x711   : > { %v1605_v18 = vpop.f32.mrf.mxu0 }
 0x712   : > { %v1612_v19 = vmul.f32 0.35355338, %v1605_v18 }
 0x713   : > { %v4250_v20 = vpop.f32.mrf.mxu0 }
 0x714   : > { %v1614_v22 = vadd.f32 %v1612_v19, %v5480_v21 }
 0x715   : > { %v1608_v23 = vpop.f32.mrf.mxu0 }
 0x716   : > { %v1618_v24 = vsel %vm971_vm3, %v1614_v22, -inf }
 0x717   : > { %1619 = vmax.xlane.f32.xlu1 %v1618_v24  ;;  %v4251_v25 = vpop.f32.mrf.mxu0 }
 0x728   : > { %1639 = vrot.lane.b32.xlu1 %v5460_v11, %s5033_s16 }
 0x72c   : > { %1787 = vrot.lane.b32.xlu1 %v5460_v11, %s5034_s19 }
 0x730   : > { %1837 = vrot.lane.b32.xlu1 %v5464_v14, %s5034_s19 }
 0x734   : > { %1835 = vrot.lane.b32.xlu1 %v5464_v14, %s5035_s29 }
 0x7a0   : > { %v1620_v26 = vpop.xlane.xlu1 %1619 }
 0x7a1   : > { %v1622_v29 = vsub.f32 %v1614_v22, %v1620_v26 }
 0x7a3   : > { %v1625_v30 = vmul.f32 1.442695, %v1622_v29 }
 0x7a4   : > { %v1640_v27 = vpop.permute.xlu1 %1639 }
 0x7a5   : > { %v1645_v28 = vsel %vm1099_vm4, %v1640_v27, 0  ;;  %4626 = vpow2.f32 %v1625_v30 }
 0x7a6   : > { %4253 = vmatpush3.bf16.msra.mxu1 %v1645_v28 }
 0x7a7   : > { %4264 = vmatprep.subr.bf16.mxu1 %v5024_v5 }
 0x7a8   : > { %v1788_v55 = vpop.permute.xlu1 %1787 }
 0x7a9   : > { %v1793_v57 = vsel %vm971_vm3, %v1788_v55, 0 }
 0x7ac   : > { %v1838_v10 = vpop.permute.xlu1 %1837 }
 0x7ad   : > { %v1843_v23 = vsel %vm971_vm3, %v1838_v10, 0 }
 0x7b0   : > { %v1836_v28 = vpop.permute.xlu1 %1835 }
 0x7b2   : > { %v4627_v41 = vpop.eup %4626 }
 0x7b3   : > { %v1630_v43 = vsel %vm971_vm3, %v4627_v41, 0.0 }
 0x7c4   : > { %v5591_v31 = vpop.f32.mrf.mxu1 }
 0x7c6   : > { %v4232_v32 = vpop.f32.mrf.mxu1 }
 0x7c8   : > { %v5593_v33 = vpop.f32.mrf.mxu1 }
 0x7ca   : > { %v4233_v34 = vpop.f32.mrf.mxu1 }
 0x7cc   : > { %v1555_v35 = vpop.f32.mrf.mxu1 }
 0x7cd   : > { %v1611_v36 = vmul.f32 0.35355338, %v1555_v35 }
 0x7ce   : > { %v4244_v37 = vpop.f32.mrf.mxu1 }
 0x7cf   : > { %v1613_v38 = vadd.f32 %v1611_v36, %v5480_v21  ;;  %v1505_v36 = vadd.f32 %v5572_v12, %v5591_v31 }
 0x7d0   : > { %v1558_v39 = vpop.f32.mrf.mxu1 }
 0x7d1   : > { %v1615_v40 = vsel %vm971_vm3, %v1613_v38, -inf }
 0x7d2   : > { %1616 = vmax.xlane.f32.xlu0 %v1615_v40  ;;  %v4245_v42 = vpop.f32.mrf.mxu1  ;;  %v1508_v40 = vadd.f32 %v5575_v16, %v5593_v33 }
 0x7d6   : > { %1631 = vadd.xlane.f32.xlu0 %v1630_v43 }
 0x85b   : > { %v1617_v44 = vpop.xlane.xlu0 %1616 }
 0x85c   : > { %v1621_v45 = vsub.f32 %v1613_v38, %v1617_v44 }
 0x85e   : > { %v1623_v46 = vmul.f32 1.442695, %v1621_v45 }
 0x85f   : > { %v1632_v49 = vpop.xlane.xlu0 %1631 }
 0x860   : > { %4628 = vpow2.f32 %v1623_v46 }
 0x861   : > { %4630 = vrcp.f32 %v1632_v49 }
 0x86d   : > { %v4629_v47 = vpop.eup %4628 }
 0x86e   : > { %v1627_v48 = vsel %vm971_vm3, %v4629_v47, 0.0  ;;  %v4631_v50 = vpop.eup %4630 }
 0x86f   : > { %1628 = vadd.xlane.f32.xlu0 %v1627_v48  ;;  %v1636_v52 = vmul.f32 %v4631_v50, %v4627_v41 }
 0x871   : > { %v1638_v56 = vpack.c.bf16 %v1636_v52, %v1636_v52 }
 0x885   : > { %1687 = vrot.lane.b32.xlu0 %v5464_v14, %s5033_s16 }
 0x889   : > { %1785 = vrot.lane.b32.xlu0 %v5460_v11, %s5035_s29 }
 0x8f8   : > { %v1629_v51 = vpop.xlane.xlu0 %1628 }
 0x8f9   : > { %4632 = vrcp.f32 %v1629_v51 }
 0x8fc   : > { %v1688_v53 = vpop.permute.xlu0 %1687 }
 0x8fd   : > { %v1693_v54 = vsel %vm1099_vm4, %v1688_v53, 0 }
 0x8fe   : > { %4259 = vmatpush3.bf16.msra.mxu0 %v1693_v54 }
 0x8ff   : > { %4270 = vmatprep.subr.bf16.mxu0 %v5024_v5 }
 0x900   : > { %v1786_v60 = vpop.permute.xlu0 %1785 }
 0x901   : > { %4261 = vmatmul.mubr.msk.bf16.vlgmr.msra.gmra.mxu0 %vm971_vm3, %v1638_v56  ;;  %v962_v56 = vld [vmem:[%s5402_s27 + $0xc] sm:$0xf]  ;;  %s6093_s27 = sld [smem:[#allocation44_spill]] (!%p4047_p12) }
 0x902   : > { %4271 = vmatpush3.bf16.xpose.msra.mxu0 %v1793_v57  ;;  %4272 = vmatprep.mubr.msk.bf16.mxu0 %vm5025_vm1, %v5024_v5  ;;  %v2014_v57 = vsel %vm1099_vm4, %v962_v56, 0 }
 0x903   : > { %4282 = vmatprep.subr.bf16.mxu0 %v5024_v5 }
 0x906   : > { %v4633_v58 = vpop.eup %4632 }
 0x907   : > { %v1635_v59 = vmul.f32 %v4633_v58, %v4629_v47 }
 0x909   : > { %4273 = vmatmul.mubr.msk.bf16.vlgmr.msra.gmra.mxu0 %vm971_vm3, %v1786_v60  ;;  %v1637_v61 = vpack.c.bf16 %v1635_v59, %v1635_v59 }
 0x90a   : > { %4284 = vmatprep.mubr.msk.bf16.mxu0 %vm5025_vm1, %v5024_v5 }
 0x90b   : > { %4255 = vmatmul.mubr.msk.bf16.vlgmr.msra.gmra.mxu1 %vm971_vm3, %v1637_v61 }
 0x90c   : > { %4266 = vmatprep.mubr.msk.bf16.mxu1 %vm5025_vm1, %v5024_v5  ;;  %4265 = vmatpush3.bf16.msra.mxu1 %v1740_v63 }
 0x90d   : > { %4276 = vmatprep.subr.bf16.mxu1 %v5024_v5 }
 0x9c1   : > { %v1729_v2 = vpop.f32.mrf.mxu0 }
 0x9c3   : > { %v4262_v3 = vpop.f32.mrf.mxu0 }
 0x9c5   : > { %v1732_v4 = vpop.f32.mrf.mxu0 }
 0x9c7   : > { %v4263_v6 = vpop.f32.mrf.mxu0 }
 0x9c9   : > { %v1829_v9 = vpop.f32.mrf.mxu0 }
 0x9ca   : > { %v1885_v13 = vmul.f32 0.35355338, %v1829_v9 }
 0x9cb   : > { %v1681_v15 = vpop.f32.mrf.mxu1  ;;  %v4274_v17 = vpop.f32.mrf.mxu0 }
 0x9cc   : > { %v1735_v18 = vpack.c.bf16 %v1729_v2, %v1681_v15  ;;  %v1887_v19 = vadd.f32 %v1885_v13, %v5480_v21 }
 0x9cd   : > { %v4256_v20 = vpop.f32.mrf.mxu1  ;;  %v1832_v22 = vpop.f32.mrf.mxu0 }
 0x9ce   : > { %4267 = vmatmul.mubr.msk.bf16.vlgmr.msra.gmra.mxu1 %vm971_vm3, %v1735_v18  ;;  %v1889_v24 = vsel %vm971_vm3, %v1887_v19, -inf }
 0x9cf   : > { %4277 = vmatpush3.bf16.xpose.msra.mxu1 %v1843_v23  ;;  %1890 = vmax.xlane.f32.xlu0 %v1889_v24  ;;  %v1684_v25 = vpop.f32.mrf.mxu1  ;;  %v4275_v26 = vpop.f32.mrf.mxu0 }
 0x9d0   : > { %4278 = vmatprep.mubr.msk.bf16.mxu1 %vm5025_vm1, %v5024_v5  ;;  %4288 = vmatprep.subr.bf16.mxu1 %v5024_v5 }
 0x9d1   : > { %v4257_v27 = vpop.f32.mrf.mxu1 }
 0x9d6   : > { %4279 = vmatmul.mubr.msk.bf16.vlgmr.msra.gmra.mxu1 %vm971_vm3, %v1836_v28 }
 0x9d7   : > { %4290 = vmatprep.mubr.msk.bf16.mxu1 %vm5025_vm1, %v5024_v5 }
 0xa58   : > { %v1891_v29 = vpop.xlane.xlu0 %1890 }
 0xa59   : > { %v1895_v30 = vsub.f32 %v1887_v19, %v1891_v29 }
 0xa5b   : > { %v1897_v32 = vmul.f32 1.442695, %v1895_v30 }
 0xa5d   : > { %4634 = vpow2.f32 %v1897_v32 }
 0xa6a   : > { %v4635_v34 = vpop.eup %4634 }
 0xa6b   : > { %v1901_v35 = vsel %vm971_vm3, %v4635_v34, 0.0 }
 0xa6c   : > { %1902 = vadd.xlane.f32.xlu0 %v1901_v35 }
 0xa8e   : > { %v1776_v37 = vpop.f32.mrf.mxu1 }
 0xa8f   : > { %v1783_v38 = vadd.f32 %v1776_v37, %v1505_v36 }
 0xa90   : > { %v4268_v39 = vpop.f32.mrf.mxu1 }
 0xa91   : > { %v4599_v39 = vld [vmem:[%s5412_s13] sm:$0xff]  }
 0xa92   : > { %v1779_v41 = vpop.f32.mrf.mxu1 }
 0xa93   : > { %v1784_v42 = vadd.f32 %v1779_v41, %v1508_v40  ;;  %v4600_v40 = vld [vmem:[#allocation6] sm:$0xff]   ;;  %v4601_v41 = vld [vmem:[#allocation6 + $0x8] sm:$0xff]  }
 0xa94   : > { %v4269_v43 = vpop.f32.mrf.mxu1 }
 0xa95   : > { %v4603_v43 = vld [vmem:[%s5407_s14] sm:$0xff]  }
 0xa96   : > { %v1879_v44 = vpop.f32.mrf.mxu1 }
 0xa97   : > { %v1886_v45 = vmul.f32 0.35355338, %v1879_v44 }
 0xa98   : > { %v4280_v46 = vpop.f32.mrf.mxu1 }
 0xa99   : > { %v1888_v47 = vadd.f32 %v1886_v45, %v5480_v21 }
 0xa9a   : > { %v1882_v48 = vpop.f32.mrf.mxu1 }
 0xa9b   : > { %v1892_v49 = vsel %vm971_vm3, %v1888_v47, -inf }
 0xa9c   : > { %1893 = vmax.xlane.f32.xlu1 %v1892_v49  ;;  %v4281_v50 = vpop.f32.mrf.mxu1 }
 0xa9d   : > { %v2088_v50 = vlaneseq }
 0xaad   : > { %1913 = vrot.lane.b32.xlu1 %v5460_v11, %s5036_s2 }
 0xaf5   : > { %v1903_v12 = vpop.xlane.xlu0 %1902 }
 0xaf6   : > { %4636 = vrcp.f32 %v1903_v12  ;;  %v5669_v12 = vshrl.u32 %v2088_v50, 7 }
 0xb03   : > { %v4637_v31 = vpop.eup %4636 }
 0xb04   : > { %v1909_v52 = vmul.f32 %v4637_v31, %v4635_v34  ;;  %v2090_v31 = vsub.s32 0, %v5669_v12 }
 0xb06   : > { %v1911_v54 = vpack.c.bf16 %v1909_v52, %v1909_v52 }
 0xb25   : > { %v1894_v16 = vpop.xlane.xlu1 %1893 }
 0xb26   : > { %v1896_v33 = vsub.f32 %v1888_v47, %v1894_v16 }
 0xb28   : > { %v1899_v51 = vmul.f32 1.442695, %v1896_v33 }
 0xb29   : > { %v1914_v53 = vpop.permute.xlu1 %1913 }
 0xb2a   : > { %4638 = vpow2.f32 %v1899_v51  ;;  %v1919_v21 = vsel %vm1099_vm4, %v1914_v53, 0  ;;  %v2091_v51 = vrot.slane %v5425_v0, %v2090_v31 }
 0xb2b   : > { %4283 = vmatpush3.bf16.msra.mxu0 %v1919_v21 }
 0xb2c   : > { %4294 = vmatprep.subr.bf16.mxu0 %v5024_v5 }
 0xb2e   : > { %4285 = vmatmul.mubr.msk.bf16.vlgmr.msra.gmra.mxu0 %vm971_vm3, %v1911_v54  ;;  %v2097_v54 = vrot.slane %v5427_v1, %v2090_v31 }
 0xb2f   : > { %4296 = vmatprep.mubr.msk.bf16.mxu0 %vm5025_vm1, %v5024_v5  ;;  %4295 = vmatpush3.bf16.msra.mxu0 %v2014_v57 }
 0xb37   : > { %v4639_v11 = vpop.eup %4638 }
 0xb38   : > { %v1904_v55 = vsel %vm971_vm3, %v4639_v11, 0.0 }
 0xb39   : > { %1905 = vadd.xlane.f32.xlu0 %v1904_v55 }
 0xb4f   : > { %1961 = vrot.lane.b32.xlu0 %v5464_v14, %s5036_s2 }
 0xbc2   : > { %v1906_v58 = vpop.xlane.xlu0 %1905 }
 0xbc3   : > { %4640 = vrcp.f32 %v1906_v58 }
 0xbc6   : > { %v1962_v59 = vpop.permute.xlu0 %1961 }
 0xbc7   : > { %v1967_v60 = vsel %vm1099_vm4, %v1962_v59, 0 }
 0xbc8   : > { %4289 = vmatpush3.bf16.msra.mxu1 %v1967_v60 }
 0xbc9   : > { %4300 = vmatprep.subr.bf16.mxu1 %v5024_v5 }
 0xbd0   : > { %v4641_v61 = vpop.eup %4640 }
 0xbd1   : > { %v1910_v62 = vmul.f32 %v4641_v61, %v4639_v11 }
 0xbd3   : > { %v1912_v63 = vpack.c.bf16 %v1910_v62, %v1910_v62 }
 0xbd5   : > { %4291 = vmatmul.mubr.msk.bf16.vlgmr.msra.gmra.mxu1 %vm971_vm3, %v1912_v63 }
 0xbd6   : > { %4304 = vmatprep.mubr.msk.bf16.mxu1 %vm5025_vm1, %v5024_v5 }
 0xbee   : > { %v1955_v14 = vpop.f32.mrf.mxu0 }
 0xbf0   : > { %v4286_v2 = vpop.f32.mrf.mxu0 }
 0xbf2   : > { %v1958_v3 = vpop.f32.mrf.mxu0 }
 0xbf4   : > { %v4287_v4 = vpop.f32.mrf.mxu0 }
 0xc95   : > { %v2003_v6 = vpop.f32.mrf.mxu1 }
 0xc96   : > { %v2009_v9 = vpack.c.bf16 %v2003_v6, %v1955_v14 }
 0xc97   : > { %v4292_v10 = vpop.f32.mrf.mxu1 }
 0xc98   : > { %4297 = vmatmul.mubr.msk.bf16.vlgmr.msra.gmra.mxu0 %vm971_vm3, %v2009_v9 }
 0xc99   : > { %v2006_v13 = vpop.f32.mrf.mxu1  ;;  %4312 = vmatprep.mubr.msk.bf16.mxu0 %vm894_vm2, %v4600_v40 }
 0xc9b   : > { %v4293_v15 = vpop.f32.mrf.mxu1 }
 0xd58   : > { %v2050_v17 = vpop.f32.mrf.mxu0 }
 0xd59   : > { %v2057_v18 = vadd.f32 %v2050_v17, %v1783_v38  ;;  %v5705_v17 = vld [vmem:[#allocation9] ss:$0 sm:$0xff] }
 0xd5a   : > { %v4298_v19 = vpop.f32.mrf.mxu0 }
 0xd5b   : > { %v2059_v20 = vadd.f32 %v2057_v18, %v5441_v7 }
 0xd5c   : > { %v2053_v22 = vpop.f32.mrf.mxu0 }
 0xd5d   : > { %v2058_v23 = vadd.f32 %v2053_v22, %v1784_v42  ;;  %v2061_v24 = vsel %vm894_vm2, %v2059_v20, 0.0  ;;  %v4602_v42 = vld [vmem:[%s5407_s14 + $0x8] sm:$0xff]   ;;  %s6094_s14 = smov (!%p4047_p12), %s6093_s27 }
 0xd5e   : > { %2062 = vadd.xlane.f32.xlu1 %v2061_v24  ;;  %v4299_v25 = vpop.f32.mrf.mxu0  ;;  %4301 = vmatpush3.bf16.msra.mxu1 %v4602_v42  ;;  %v5708_v24 = vld [vmem:[#allocation9 + $0x1] ss:$0 sm:$0xff] }
 0xd5f   : > { %v2060_v26 = vadd.f32 %v2058_v23, %v5443_v8  ;;  %v4598_v8 = vld [vmem:[%s5412_s13 + $0x8] sm:$0xff]   ;;  %4302 = vmatprep.subr.bf16.mxu1 %v5024_v5 }
 0xd60   : > { %4308 = vmatprep.subr.bf16.mxu0 %v4598_v8 }
 0xd61   : > { %v2064_v27 = vsel %vm894_vm2, %v2060_v26, 0.0  ;;  %4309 = vmatpush3.bf16.msra.mxu0 %v4598_v8 }
 0xd62   : > { %2065 = vadd.xlane.f32.xlu0 %v2064_v27  ;;  %4310 = vmatprep.subr.bf16.mxu0 %v4599_v39 }
 0xd63   : > { %4303 = vmatpush3.bf16.msra.mxu1 %v4603_v43 }
 0xd64   : > { %4316 = vmatprep.subr.bf16.mxu1 %v5024_v5 }
 0xd65   : > { %4311 = vmatpush3.bf16.msra.mxu0 %v4599_v39 }
 0xd66   : > { %4322 = vmatprep.subr.bf16.mxu0 %v5024_v5 }
 0xd68   : > { %4313 = vmatmul.mubr.msk.bf16.vlgmr.msra.gmra.mxu0 %vm894_vm2, %v4601_v41 }
 0xd69   : > { %4324 = vmatprep.mubr.msk.bf16.mxu0 %vm5025_vm1, %v5024_v5 }
 0xde7   : > { %v2063_v28 = vpop.xlane.xlu1 %2062 }
 0xde8   : > { %v2068_v29 = vmul.f32 0.03125, %v2063_v28 }
 0xdea   : > { %v2070_v30 = vsub.f32 %v2059_v20, %v2068_v29 }
 0xdeb   : > { %v2066_v32 = vpop.xlane.xlu0 %2065 }
 0xdec   : > { %v2069_v34 = vmul.f32 0.03125, %v2066_v32  ;;  %v2072_v35 = vmul.f32 %v2070_v30, %v2070_v30 }
 0xdee   : > { %v2071_v7 = vsub.f32 %v2060_v26, %v2069_v34  ;;  %v2074_v36 = vsel %vm894_vm2, %v2072_v35, 0.0 }
 0xdef   : > { %2075 = vadd.xlane.f32.xlu1 %v2074_v36 }
 0xdf0   : > { %v2073_v37 = vmul.f32 %v2071_v7, %v2071_v7 }
 0xdf2   : > { %v2077_v38 = vsel %vm894_vm2, %v2073_v37, 0.0 }
 0xdf3   : > { %2078 = vadd.xlane.f32.xlu0 %v2077_v38 }
 0xe28   : > { %v4314_v58 = vpop.f32.mrf.mxu0 }
 0xe2a   : > { %v2232_v59 = vpop.f32.mrf.mxu0 }
 0xe2c   : > { %v4315_v60 = vpop.f32.mrf.mxu0 }
 0xe2d   : > { %v5683_v61 = vpack.c.bf16 %v4315_v60, %v4314_v58 }
 0xe2e   : > { %v2235_v62 = vpop.f32.mrf.mxu0 }
 0xe2f   : > { %v5685_v63 = vpack.c.bf16 %v2235_v62, %v2232_v59  ;;  %v2310_v14 = vsel %vm971_vm3, %v5683_v61, 0 }
 0xe30   : > { %4323 = vmatpush3.bf16.xpose.msra.mxu0 %v2310_v14 }
 0xe31   : > { %v2264_v2 = vsel %vm971_vm3, %v5685_v63, 0  ;;  %4334 = vmatprep.subr.bf16.mxu0 %v5024_v5 }
 0xe78   : > { %v2076_v44 = vpop.xlane.xlu1 %2075 }
 0xe79   : > { %v2080_v45 = vmul.f32 0.03125, %v2076_v44 }
 0xe7b   : > { %v2082_v46 = vadd.f32 1e-05, %v2080_v45 }
 0xe7c   : > { %v2079_v47 = vpop.xlane.xlu0 %2078 }
 0xe7d   : > { %4642 = vrsqrt.f32 %v2082_v46  ;;  %v2081_v48 = vmul.f32 0.03125, %v2079_v47 }
 0xe7f   : > { %v2083_v49 = vadd.f32 1e-05, %v2081_v48 }
 0xe81   : > { %4644 = vrsqrt.f32 %v2083_v49 }
 0xe8a   : > { %v4643_v16 = vpop.eup %4642 }
 0xe8b   : > { %v2086_v33 = vmul.f32 %v4643_v16, %v2070_v30 }
 0xe8d   : > { %v2092_v21 = vmul.f32 %v2091_v51, %v2086_v33 }
 0xe8e   : > { %v4645_v52 = vpop.eup %4644 }
 0xe8f   : > { %v2087_v53 = vmul.f32 %v4645_v52, %v2071_v7  ;;  %v5674_v55 = vadd.f32 %v2097_v54, %v2092_v21 }
 0xe91   : > { %v2093_v11 = vmul.f32 %v2091_v51, %v2087_v53 }
 0xe93   : > { %v5676_v56 = vadd.f32 %v2097_v54, %v2093_v11 }
 0xe95   : > { %v2100_v57 = vpack.c.bf16 %v5676_v56, %v5674_v55 }
 0xe97   : > { %4305 = vmatmul.mubr.msk.bf16.vlgmr.msra.gmra.mxu1 %vm894_vm2, %v2100_v57 }
 0xe98   : > { %4318 = vmatprep.mubr.msk.bf16.mxu1 %vm5025_vm1, %v5024_v5  ;;  %4317 = vmatpush3.bf16.xpose.msra.mxu1 %v2264_v2 }
 0xe99   : > { %4328 = vmatprep.subr.bf16.mxu1 %v5024_v5 }
 0xf57   : > { %v2154_v3 = vpop.f32.mrf.mxu1 }
 0xf58   : > { %v5693_v4 = vpack.c.bf16 %v2154_v3, %v2154_v3 }
 0xf59   : > { %v4306_v6 = vpop.f32.mrf.mxu1 }
 0xf5a   : > { %4319 = vmatmul.mubr.msk.bf16.vlgmr.msra.gmra.mxu1 %vm971_vm3, %v5693_v4 }
 0xf5b   : > { %v2157_v9 = vpop.f32.mrf.mxu1  ;;  %4330 = vmatprep.mubr.msk.bf16.mxu1 %vm5025_vm1, %v5024_v5 }
 0xf5c   : > { %v5699_v10 = vpack.c.bf16 %v2157_v9, %v2157_v9 }
 0xf5d   : > { %v4307_v13 = vpop.f32.mrf.mxu1 }
 0xf5e   : > { %4325 = vmatmul.mubr.msk.bf16.vlgmr.msra.gmra.mxu0 %vm971_vm3, %v5699_v10 }
 0xf5f   : > { %4336 = vmatprep.mubr.msk.bf16.mxu0 %vm5025_vm1, %v5024_v5 }
0x101a   : > { %v2300_v15 = vpop.f32.mrf.mxu1 }
0x101b   : > { %v2352_v18 = vmul.f32 0.35355338, %v2300_v15 }
0x101c   : > { %v4320_v19 = vpop.f32.mrf.mxu1 }
0x101d   : > { %v2366_v20 = vadd.f32 %v5705_v17, %v2352_v18 }
0x101e   : > { %v2303_v22 = vpop.f32.mrf.mxu1  ;;  %v2346_v23 = vpop.f32.mrf.mxu0 }
0x101f   : > { %v2353_v25 = vmul.f32 0.35355338, %v2346_v23  ;;  %v2369_v26 = vsel %vm2368_vm5, %v2366_v20, -inf }
0x1020   : > { %v4326_v27 = vpop.f32.mrf.mxu0  ;;  %2370 = vmax.xlane.f32.xlu1 %v2369_v26  ;;  %v4321_v28 = vpop.f32.mrf.mxu1 }
0x1021   : > { %v2367_v29 = vadd.f32 %v5708_v24, %v2353_v25 }
0x1022   : > { %v2349_v30 = vpop.f32.mrf.mxu0 }
0x1023   : > { %v2372_v32 = vsel %vm2368_vm5, %v2367_v29, -inf }
0x1024   : > { %2373 = vmax.xlane.f32.xlu0 %v2372_v32  ;;  %v4327_v34 = vpop.f32.mrf.mxu0 }
0x1031   : > { %2394 = vrot.lane.b32.xlu1 %v5685_v63, %s5026_s3 }
0x10a9   : > { %v2371_v35 = vpop.xlane.xlu1 %2370 }
0x10aa   : > { %v2375_v7 = vsub.f32 %v2366_v20, %v2371_v35 }
0x10ac   : > { %v2377_v36 = vmul.f32 1.442695, %v2375_v7 }
0x10ad   : > { %v2374_v37 = vpop.xlane.xlu0 %2373  ;;  %v2395_v38 = vpop.permute.xlu1 %2394 }
0x10ae   : > { %4646 = vpow2.f32 %v2377_v36  ;;  %v2376_v8 = vsub.f32 %v2367_v29, %v2374_v37  ;;  %4329 = vmatpush3.bf16.msra.mxu1 %v2395_v38 }
0x10af   : > { %4340 = vmatprep.subr.bf16.mxu1 %v5024_v5 }
0x10b0   : > { %v2379_v39 = vmul.f32 1.442695, %v2376_v8 }
0x10b2   : > { %4648 = vpow2.f32 %v2379_v39 }
0x10bb   : > { %v4647_v40 = vpop.eup %4646 }
0x10bc   : > { %v2381_v41 = vsel %vm2368_vm5, %v4647_v40, 0.0 }
0x10bd   : > { %2382 = vadd.xlane.f32.xlu1 %v2381_v41 }
0x10bf   : > { %v4649_v42 = vpop.eup %4648 }
0x10c0   : > { %v2384_v43 = vsel %vm2368_vm5, %v4649_v42, 0.0 }
0x10c1   : > { %2385 = vadd.xlane.f32.xlu0 %v2384_v43 }
0x10ce   : > { %2490 = vrot.lane.b32.xlu1 %v5685_v63, %s5029_s10 }
0x10d2   : > { %2540 = vrot.lane.b32.xlu1 %v5683_v61, %s5029_s10 }
0x10d6   : > { %2538 = vrot.lane.b32.xlu1 %v5699_v10, %s5029_s10 }
0x10d7   : > { %2441 = vrot.lane.b32.xlu0 %v5683_v61, %s5026_s3 }
0x10db   : > { %2488 = vrot.lane.b32.xlu0 %v5693_v4, %s5029_s10 }
0x1146   : > { %v2383_v44 = vpop.xlane.xlu1 %2382 }
0x1147   : > { %4650 = vrcp.f32 %v2383_v44 }
0x114a   : > { %v2386_v45 = vpop.xlane.xlu0 %2385  ;;  %v2491_v48 = vpop.permute.xlu1 %2490 }
0x114b   : > { %4652 = vrcp.f32 %v2386_v45  ;;  %v2496_v16 = vsel %vm971_vm3, %v2491_v48, 0  ;;  %v2249_v48 = vld [vmem:[%s5388_s11] sm:$0xf] }
0x114e   : > { %v2442_v46 = vpop.permute.xlu0 %2441  ;;  %v2541_v51 = vpop.permute.xlu1 %2540 }
0x114f   : > { %4335 = vmatpush3.bf16.msra.mxu0 %v2442_v46  ;;  %v2546_v53 = vsel %vm971_vm3, %v2541_v51, 0 }
0x1150   : > { %4346 = vmatprep.subr.bf16.mxu0 %v5024_v5 }
0x1152   : > { %v2489_v21 = vpop.permute.xlu0 %2488  ;;  %v2539_v54 = vpop.permute.xlu1 %2538 }
0x1154   : > { %v4651_v47 = vpop.eup %4650 }
0x1155   : > { %v2389_v49 = vmul.f32 %v4651_v47, %v4647_v40 }
0x1157   : > { %v2391_v50 = vpack.c.bf16 %v2389_v49, %v2389_v49 }
0x1158   : > { %v4653_v31 = vpop.eup %4652 }
0x1159   : > { %4331 = vmatmul.mubr.msk.bf16.vlgmr.msra.gmra.mxu1 %vm2368_vm5, %v2391_v50  ;;  %v2390_v33 = vmul.f32 %v4653_v31, %v4649_v42  ;;  %v2760_v31 = vsel %vm1099_vm4, %v2249_v48, 0 }
0x115a   : > { %4341 = vmatpush3.bf16.xpose.msra.mxu1 %v2496_v16  ;;  %4342 = vmatprep.mubr.msk.bf16.mxu1 %vm5025_vm1, %v5024_v5 }
0x115b   : > { %v2392_v52 = vpack.c.bf16 %v2390_v33, %v2390_v33  ;;  %4352 = vmatprep.subr.bf16.mxu1 %v5024_v5 }
0x115d   : > { %4337 = vmatmul.mubr.msk.bf16.vlgmr.msra.gmra.mxu0 %vm2368_vm5, %v2392_v52 }
0x115e   : > { %4347 = vmatpush3.bf16.xpose.msra.mxu0 %v2546_v53  ;;  %4348 = vmatprep.mubr.msk.bf16.mxu0 %vm5025_vm1, %v5024_v5  ;;  %v2250_v53 = vld [vmem:[%s5388_s11 + $0x4] sm:$0xf] }
0x115f   : > { %4358 = vmatprep.subr.bf16.mxu0 %v5024_v5 }
0x1161   : > { %4343 = vmatmul.mubr.msk.bf16.vlgmr.msra.gmra.mxu1 %vm971_vm3, %v2489_v21  ;;  %v2713_v21 = vsel %vm1099_vm4, %v2250_v53, 0 }
0x1162   : > { %4354 = vmatprep.mubr.msk.bf16.mxu1 %vm5025_vm1, %v5024_v5 }
0x1165   : > { %4349 = vmatmul.mubr.msk.bf16.vlgmr.msra.gmra.mxu0 %vm971_vm3, %v2539_v54 }
0x1166   : > { %4360 = vmatprep.mubr.msk.bf16.mxu0 %vm5025_vm1, %v5024_v5 }
0x1219   : > { %v5745_v11 = vpop.f32.mrf.mxu1 }
0x121b   : > { %v4332_v57 = vpop.f32.mrf.mxu1 }
0x121d   : > { %v2437_v58 = vpop.f32.mrf.mxu1  ;;  %v5747_v59 = vpop.f32.mrf.mxu0 }
0x121e   : > { %v2487_v60 = vpack.c.bf16 %v5747_v59, %v5745_v11 }
0x121f   : > { %v4333_v62 = vpop.f32.mrf.mxu1  ;;  %v4338_v14 = vpop.f32.mrf.mxu0 }
0x1221   : > { %v2484_v2 = vpop.f32.mrf.mxu0  ;;  %v2532_v3 = vpop.f32.mrf.mxu1 }
0x1222   : > { %v2588_v6 = vmul.f32 0.35355338, %v2532_v3 }
0x1223   : > { %v4339_v9 = vpop.f32.mrf.mxu0  ;;  %v4344_v13 = vpop.f32.mrf.mxu1 }
0x1224   : > { %v2590_v15 = vadd.f32 %v5705_v17, %v2588_v6 }
0x1225   : > { %v2535_v18 = vpop.f32.mrf.mxu1  ;;  %v2582_v19 = vpop.f32.mrf.mxu0 }
0x1226   : > { %v2589_v20 = vmul.f32 0.35355338, %v2582_v19  ;;  %v2592_v22 = vsel %vm2368_vm5, %v2590_v15, -inf }
0x1227   : > { %v4350_v23 = vpop.f32.mrf.mxu0  ;;  %2593 = vmax.xlane.f32.xlu0 %v2592_v22  ;;  %v4345_v25 = vpop.f32.mrf.mxu1 }
0x1228   : > { %v2591_v26 = vadd.f32 %v5708_v24, %v2589_v20 }
0x1229   : > { %v2585_v27 = vpop.f32.mrf.mxu0 }
0x122a   : > { %v2595_v28 = vsel %vm2368_vm5, %v2591_v26, -inf }
0x122b   : > { %2596 = vmax.xlane.f32.xlu1 %v2595_v28  ;;  %v4351_v29 = vpop.f32.mrf.mxu0 }
0x123c   : > { %2616 = vrot.lane.b32.xlu1 %v5685_v63, %s5028_s5 }
0x1240   : > { %2805 = vrot.lane.b32.xlu1 %v5685_v63, %s5031_s22 }
0x1244   : > { %2855 = vrot.lane.b32.xlu1 %v5683_v61, %s5031_s22 }
0x1248   : > { %2853 = vrot.lane.b32.xlu1 %v5699_v10, %s5031_s22 }
0x12b0   : > { %v2594_v30 = vpop.xlane.xlu0 %2593 }
0x12b1   : > { %v2598_v32 = vsub.f32 %v2590_v15, %v2594_v30 }
0x12b3   : > { %v2600_v34 = vmul.f32 1.442695, %v2598_v32 }
0x12b4   : > { %v2597_v35 = vpop.xlane.xlu1 %2596 }
0x12b5   : > { %4654 = vpow2.f32 %v2600_v34  ;;  %v2599_v7 = vsub.f32 %v2591_v26, %v2597_v35 }
0x12b7   : > { %v2602_v36 = vmul.f32 1.442695, %v2599_v7 }
0x12b8   : > { %v2617_v37 = vpop.permute.xlu1 %2616 }
0x12b9   : > { %4656 = vpow2.f32 %v2602_v36  ;;  %4353 = vmatpush3.bf16.msra.mxu1 %v2617_v37 }
0x12ba   : > { %4364 = vmatprep.subr.bf16.mxu1 %v5024_v5 }
0x12bc   : > { %v2806_v16 = vpop.permute.xlu1 %2805 }
0x12bd   : > { %v2811_v14 = vsel %vm971_vm3, %v2806_v16, 0 }
0x12c0   : > { %v2856_v33 = vpop.permute.xlu1 %2855 }
0x12c1   : > { %v2861_v51 = vsel %vm971_vm3, %v2856_v33, 0 }
0x12c2   : > { %v4655_v38 = vpop.eup %4654 }
0x12c3   : > { %v2604_v8 = vsel %vm2368_vm5, %v4655_v38, 0.0 }
0x12c4   : > { %2605 = vadd.xlane.f32.xlu0 %v2604_v8  ;;  %v2854_v52 = vpop.permute.xlu1 %2853 }
0x12c6   : > { %v4657_v39 = vpop.eup %4656 }
0x12c7   : > { %v2607_v40 = vsel %vm2368_vm5, %v4657_v39, 0.0 }
0x12c8   : > { %2608 = vadd.xlane.f32.xlu0 %v2607_v40 }
0x12de   : > { %2662 = vrot.lane.b32.xlu0 %v5683_v61, %s5028_s5 }
0x12e2   : > { %2803 = vrot.lane.b32.xlu0 %v5693_v4, %s5031_s22 }
0x134d   : > { %v2606_v41 = vpop.xlane.xlu0 %2605 }
0x134e   : > { %4658 = vrcp.f32 %v2606_v41 }
0x1351   : > { %v2609_v42 = vpop.xlane.xlu0 %2608 }
0x1352   : > { %4660 = vrcp.f32 %v2609_v42 }
0x1355   : > { %v2663_v43 = vpop.permute.xlu0 %2662 }
0x1356   : > { %4359 = vmatpush3.bf16.msra.mxu0 %v2663_v43 }
0x1357   : > { %4370 = vmatprep.subr.bf16.mxu0 %v5024_v5 }
0x1359   : > { %v2804_v9 = vpop.permute.xlu0 %2803 }
0x135b   : > { %v4659_v44 = vpop.eup %4658 }
0x135c   : > { %v2612_v45 = vmul.f32 %v4659_v44, %v4655_v38 }
0x135e   : > { %v2614_v46 = vpack.c.bf16 %v2612_v45, %v2612_v45 }
0x135f   : > { %v4661_v47 = vpop.eup %4660 }
0x1360   : > { %4355 = vmatmul.mubr.msk.bf16.vlgmr.msra.gmra.mxu1 %vm2368_vm5, %v2614_v46  ;;  %v2613_v49 = vmul.f32 %v4661_v47, %v4657_v39 }
0x1361   : > { %4366 = vmatprep.mubr.msk.bf16.mxu1 %vm5025_vm1, %v5024_v5  ;;  %4365 = vmatpush3.bf16.msra.mxu1 %v2713_v21 }
0x1362   : > { %v2615_v50 = vpack.c.bf16 %v2613_v49, %v2613_v49  ;;  %4376 = vmatprep.subr.bf16.mxu1 %v5024_v5 }
0x1364   : > { %4361 = vmatmul.mubr.msk.bf16.vlgmr.msra.gmra.mxu0 %vm2368_vm5, %v2615_v50 }
0x1365   : > { %4371 = vmatpush3.bf16.msra.mxu0 %v2760_v31  ;;  %4372 = vmatprep.mubr.msk.bf16.mxu0 %vm5025_vm1, %v5024_v5 }
0x1366   : > { %4382 = vmatprep.subr.bf16.mxu0 %v5024_v5 }
0x136c   : > { %4373 = vmatmul.mubr.msk.bf16.vlgmr.msra.gmra.mxu0 %vm971_vm3, %v2487_v60 }
0x136d   : > { %4383 = vmatpush3.bf16.xpose.msra.mxu0 %v2861_v51  ;;  %4384 = vmatprep.mubr.msk.bf16.mxu0 %vm5025_vm1, %v5024_v5 }
0x136e   : > { %4394 = vmatprep.subr.bf16.mxu0 %v5024_v5 }
0x1374   : > { %4385 = vmatmul.mubr.msk.bf16.vlgmr.msra.gmra.mxu0 %vm971_vm3, %v2854_v52 }
0x1375   : > { %4396 = vmatprep.mubr.msk.bf16.mxu0 %vm5025_vm1, %v5024_v5 }
0x1420   : > { %v2656_v54 = vpop.f32.mrf.mxu1 }
0x1422   : > { %v4356_v11 = vpop.f32.mrf.mxu1 }
0x1424   : > { %v2659_v57 = vpop.f32.mrf.mxu1  ;;  %v2702_v58 = vpop.f32.mrf.mxu0 }
0x1425   : > { %v2708_v59 = vpack.c.bf16 %v2702_v58, %v2656_v54  ;;  %v2251_v57 = vld [vmem:[%s5388_s11 + $0x8] sm:$0xf] }
0x1426   : > { %v4357_v60 = vpop.f32.mrf.mxu1  ;;  %v4362_v62 = vpop.f32.mrf.mxu0  ;;  %v3028_v58 = vsel %vm1099_vm4, %v2251_v57, 0 }
0x1427   : > { %4367 = vmatmul.mubr.msk.bf16.vlgmr.msra.gmra.mxu1 %vm971_vm3, %v2708_v59 }
0x1428   : > { %4377 = vmatpush3.bf16.xpose.msra.mxu1 %v2811_v14  ;;  %v2705_v2 = vpop.f32.mrf.mxu0  ;;  %4378 = vmatprep.mubr.msk.bf16.mxu1 %vm5025_vm1, %v5024_v5 }
0x1429   : > { %4388 = vmatprep.subr.bf16.mxu1 %v5024_v5 }
0x142a   : > { %v4363_v3 = vpop.f32.mrf.mxu0 }
0x142c   : > { %v5799_v6 = vpop.f32.mrf.mxu0 }
0x142e   : > { %v4374_v13 = vpop.f32.mrf.mxu0 }
0x142f   : > { %4379 = vmatmul.mubr.msk.bf16.vlgmr.msra.gmra.mxu1 %vm971_vm3, %v2804_v9 }
0x1430   : > { %v5802_v15 = vpop.f32.mrf.mxu0  ;;  %4390 = vmatprep.mubr.msk.bf16.mxu1 %vm5025_vm1, %v5024_v5 }
0x1432   : > { %v4375_v18 = vpop.f32.mrf.mxu0 }
0x1434   : > { %v2897_v19 = vpop.f32.mrf.mxu0 }
0x1435   : > { %v2904_v20 = vmul.f32 0.35355338, %v2897_v19 }
0x1436   : > { %v4386_v22 = vpop.f32.mrf.mxu0 }
0x1437   : > { %v2906_v23 = vadd.f32 %v5708_v24, %v2904_v20 }
0x1438   : > { %v2900_v25 = vpop.f32.mrf.mxu0 }
0x1439   : > { %v2910_v26 = vsel %vm2368_vm5, %v2906_v23, -inf }
0x143a   : > { %2911 = vmax.xlane.f32.xlu1 %v2910_v26  ;;  %v4387_v27 = vpop.f32.mrf.mxu0 }
0x144b   : > { %2931 = vrot.lane.b32.xlu1 %v5685_v63, %s5032_s7 }
0x144f   : > { %3075 = vrot.lane.b32.xlu1 %v5685_v63, %s5035_s29 }
0x1453   : > { %3125 = vrot.lane.b32.xlu1 %v5683_v61, %s5035_s29 }
0x1457   : > { %3123 = vrot.lane.b32.xlu1 %v5699_v10, %s5035_s29 }
0x14c3   : > { %v2912_v28 = vpop.xlane.xlu1 %2911 }
0x14c4   : > { %v2914_v30 = vsub.f32 %v2906_v23, %v2912_v28 }
0x14c6   : > { %v2917_v32 = vmul.f32 1.442695, %v2914_v30 }
0x14c7   : > { %v2932_v29 = vpop.permute.xlu1 %2931 }
0x14c8   : > { %4389 = vmatpush3.bf16.msra.mxu1 %v2932_v29  ;;  %4662 = vpow2.f32 %v2917_v32 }
0x14c9   : > { %4400 = vmatprep.subr.bf16.mxu1 %v5024_v5 }
0x14cb   : > { %v3076_v51 = vpop.permute.xlu1 %3075 }
0x14cc   : > { %v3081_v53 = vsel %vm971_vm3, %v3076_v51, 0 }
0x14cf   : > { %v3126_v13 = vpop.permute.xlu1 %3125 }
0x14d0   : > { %v3131_v26 = vsel %vm971_vm3, %v3126_v13, 0 }
0x14d5   : > { %v4663_v41 = vpop.eup %4662 }
0x14d6   : > { %v2922_v43 = vsel %vm2368_vm5, %v4663_v41, 0.0 }
0x14e7   : > { %v5817_v34 = vpop.f32.mrf.mxu1 }
0x14e9   : > { %v4368_v35 = vpop.f32.mrf.mxu1 }
0x14eb   : > { %v5819_v7 = vpop.f32.mrf.mxu1 }
0x14ed   : > { %v4369_v36 = vpop.f32.mrf.mxu1 }
0x14ef   : > { %v2847_v37 = vpop.f32.mrf.mxu1 }
0x14f0   : > { %v2903_v38 = vmul.f32 0.35355338, %v2847_v37 }
0x14f1   : > { %v4380_v8 = vpop.f32.mrf.mxu1 }
0x14f2   : > { %v2905_v39 = vadd.f32 %v5705_v17, %v2903_v38  ;;  %v2797_v38 = vadd.f32 %v5799_v6, %v5817_v34 }
0x14f3   : > { %v2850_v10 = vpop.f32.mrf.mxu1 }
0x14f4   : > { %v2907_v40 = vsel %vm2368_vm5, %v2905_v39, -inf }
0x14f5   : > { %2908 = vmax.xlane.f32.xlu0 %v2907_v40  ;;  %v4381_v42 = vpop.f32.mrf.mxu1  ;;  %v2800_v40 = vadd.f32 %v5802_v15, %v5819_v7 }
0x14f9   : > { %2923 = vadd.xlane.f32.xlu0 %v2922_v43 }
0x157e   : > { %v2909_v44 = vpop.xlane.xlu0 %2908 }
0x157f   : > { %v2913_v45 = vsub.f32 %v2905_v39, %v2909_v44 }
0x1581   : > { %v2915_v46 = vmul.f32 1.442695, %v2913_v45 }
0x1582   : > { %v2924_v49 = vpop.xlane.xlu0 %2923 }
0x1583   : > { %4664 = vpow2.f32 %v2915_v46 }
0x1584   : > { %4666 = vrcp.f32 %v2924_v49 }
0x1590   : > { %v4665_v47 = vpop.eup %4664 }
0x1591   : > { %v2919_v48 = vsel %vm2368_vm5, %v4665_v47, 0.0  ;;  %v4667_v50 = vpop.eup %4666 }
0x1592   : > { %2920 = vadd.xlane.f32.xlu0 %v2919_v48  ;;  %v2928_v16 = vmul.f32 %v4667_v50, %v4663_v41 }
0x1594   : > { %v2930_v52 = vpack.c.bf16 %v2928_v16, %v2928_v16 }
0x15a8   : > { %2977 = vrot.lane.b32.xlu0 %v5683_v61, %s5032_s7 }
0x15ac   : > { %3073 = vrot.lane.b32.xlu0 %v5693_v4, %s5035_s29 }
0x161b   : > { %v2921_v31 = vpop.xlane.xlu0 %2920 }
0x161c   : > { %4668 = vrcp.f32 %v2921_v31 }
0x161f   : > { %v2978_v33 = vpop.permute.xlu0 %2977 }
0x1620   : > { %4395 = vmatpush3.bf16.msra.mxu0 %v2978_v33 }
0x1621   : > { %4406 = vmatprep.subr.bf16.mxu0 %v5024_v5 }
0x1623   : > { %4397 = vmatmul.mubr.msk.bf16.vlgmr.msra.gmra.mxu0 %vm2368_vm5, %v2930_v52  ;;  %v3074_v21 = vpop.permute.xlu0 %3073  ;;  %v2252_v52 = vld [vmem:[%s5388_s11 + $0xc] sm:$0xf] }
0x1624   : > { %4407 = vmatpush3.bf16.xpose.msra.mxu0 %v3081_v53  ;;  %4408 = vmatprep.mubr.msk.bf16.mxu0 %vm5025_vm1, %v5024_v5  ;;  %v3298_v53 = vsel %vm1099_vm4, %v2252_v52, 0  ;;  %v4037_v52 = vld [vmem:[%s740_s23] ss:$0 sm:$0xff] }
0x1625   : > { %4418 = vmatprep.subr.bf16.mxu0 %v5024_v5 }
0x1629   : > { %v4669_v4 = vpop.eup %4668 }
0x162a   : > { %v2927_v54 = vmul.f32 %v4669_v4, %v4665_v47 }
0x162b   : > { %4409 = vmatmul.mubr.msk.bf16.vlgmr.msra.gmra.mxu0 %vm971_vm3, %v3074_v21 }
0x162c   : > { %v2929_v11 = vpack.c.bf16 %v2927_v54, %v2927_v54  ;;  %4420 = vmatprep.mubr.msk.bf16.mxu0 %vm5025_vm1, %v5024_v5 }
0x162e   : > { %4391 = vmatmul.mubr.msk.bf16.vlgmr.msra.gmra.mxu1 %vm2368_vm5, %v2929_v11 }
0x162f   : > { %4402 = vmatprep.mubr.msk.bf16.mxu1 %vm5025_vm1, %v5024_v5  ;;  %4401 = vmatpush3.bf16.msra.mxu1 %v3028_v58 }
0x1630   : > { %4412 = vmatprep.subr.bf16.mxu1 %v5024_v5 }
0x16e3   : > { %v3017_v59 = vpop.f32.mrf.mxu0 }
0x16e5   : > { %v4398_v60 = vpop.f32.mrf.mxu0 }
0x16e7   : > { %v3020_v62 = vpop.f32.mrf.mxu0 }
0x16e9   : > { %v4399_v14 = vpop.f32.mrf.mxu0 }
0x16eb   : > { %v3117_v2 = vpop.f32.mrf.mxu0 }
0x16ec   : > { %v3173_v3 = vmul.f32 0.35355338, %v3117_v2 }
0x16ed   : > { %v4410_v9 = vpop.f32.mrf.mxu0 }
0x16ee   : > { %v2971_v18 = vpop.f32.mrf.mxu1  ;;  %v3175_v19 = vadd.f32 %v5705_v17, %v3173_v3  ;;  %v3124_v17 = vpop.permute.xlu1 %3123 }
0x16ef   : > { %v3023_v20 = vpack.c.bf16 %v3017_v59, %v2971_v18  ;;  %v3120_v22 = vpop.f32.mrf.mxu0 }
0x16f0   : > { %v4392_v23 = vpop.f32.mrf.mxu1  ;;  %v3177_v25 = vsel %vm2368_vm5, %v3175_v19, -inf }
0x16f1   : > { %3178 = vmax.xlane.f32.xlu0 %v3177_v25  ;;  %4403 = vmatmul.mubr.msk.bf16.vlgmr.msra.gmra.mxu1 %vm971_vm3, %v3023_v20  ;;  %v4411_v27 = vpop.f32.mrf.mxu0 }
0x16f2   : > { %4413 = vmatpush3.bf16.xpose.msra.mxu1 %v3131_v26  ;;  %v2974_v28 = vpop.f32.mrf.mxu1  ;;  %4414 = vmatprep.mubr.msk.bf16.mxu1 %vm5025_vm1, %v5024_v5 }
0x16f3   : > { %4424 = vmatprep.subr.bf16.mxu1 %v5024_v5 }
0x16f4   : > { %v4393_v29 = vpop.f32.mrf.mxu1 }
0x16f9   : > { %4415 = vmatmul.mubr.msk.bf16.vlgmr.msra.gmra.mxu1 %vm971_vm3, %v3124_v17 }
0x16fa   : > { %4426 = vmatprep.mubr.msk.bf16.mxu1 %vm5025_vm1, %v5024_v5 }
0x177a   : > { %v3179_v30 = vpop.xlane.xlu0 %3178 }
0x177b   : > { %v3183_v32 = vsub.f32 %v3175_v19, %v3179_v30 }
0x177d   : > { %v3185_v35 = vmul.f32 1.442695, %v3183_v32 }
0x177f   : > { %4670 = vpow2.f32 %v3185_v35 }
0x178c   : > { %v4671_v36 = vpop.eup %4670 }
0x178d   : > { %v3189_v37 = vsel %vm2368_vm5, %v4671_v36, 0.0 }
0x178e   : > { %3190 = vadd.xlane.f32.xlu0 %v3189_v37 }
0x17b1   : > { %v3064_v8 = vpop.f32.mrf.mxu1 }
0x17b2   : > { %v3071_v39 = vadd.f32 %v3064_v8, %v2797_v38 }
0x17b3   : > { %v4404_v10 = vpop.f32.mrf.mxu1 }
0x17b4   : > { %v4606_v10 = vld [vmem:[%s5417_s18 + $0x18] sm:$0xff]  }
0x17b5   : > { %v3067_v41 = vpop.f32.mrf.mxu1 }
0x17b6   : > { %v3072_v42 = vadd.f32 %v3067_v41, %v2800_v40 }
0x17b7   : > { %v4405_v43 = vpop.f32.mrf.mxu1 }
0x17b9   : > { %v3167_v44 = vpop.f32.mrf.mxu1 }
0x17ba   : > { %v3174_v45 = vmul.f32 0.35355338, %v3167_v44 }
0x17bb   : > { %v4416_v46 = vpop.f32.mrf.mxu1 }
0x17bc   : > { %v3176_v47 = vadd.f32 %v5708_v24, %v3174_v45  ;;  %v3373_v46 = vsub.s32 1, %v5669_v12 }
0x17bd   : > { %v3170_v48 = vpop.f32.mrf.mxu1 }
0x17be   : > { %v3180_v49 = vsel %vm2368_vm5, %v3176_v47, -inf }
0x17bf   : > { %3181 = vmax.xlane.f32.xlu1 %v3180_v49  ;;  %v4417_v50 = vpop.f32.mrf.mxu1  ;;  %v3374_v49 = vrot.slane %v5425_v0, %v3373_v46 }
0x17d0   : > { %3201 = vrot.lane.b32.xlu1 %v5685_v63, %s5034_s19 }
0x1817   : > { %v3191_v6 = vpop.xlane.xlu0 %3190 }
0x1818   : > { %4672 = vrcp.f32 %v3191_v6 }
0x1825   : > { %v4673_v34 = vpop.eup %4672 }
0x1826   : > { %v3197_v31 = vmul.f32 %v4673_v34, %v4671_v36 }
0x1828   : > { %v3199_v24 = vpack.c.bf16 %v3197_v31, %v3197_v31 }
0x1848   : > { %v3182_v15 = vpop.xlane.xlu1 %3181 }
0x1849   : > { %v3184_v7 = vsub.f32 %v3176_v47, %v3182_v15  ;;  %v3380_v15 = vrot.slane %v5427_v1, %v3373_v46 }
0x184b   : > { %v3187_v16 = vmul.f32 1.442695, %v3184_v7 }
0x184c   : > { %v3202_v33 = vpop.permute.xlu1 %3201 }
0x184d   : > { %4674 = vpow2.f32 %v3187_v16  ;;  %4419 = vmatpush3.bf16.msra.mxu0 %v3202_v33 }
0x184e   : > { %4430 = vmatprep.subr.bf16.mxu0 %v5024_v5 }
0x1850   : > { %4421 = vmatmul.mubr.msk.bf16.vlgmr.msra.gmra.mxu0 %vm2368_vm5, %v3199_v24  ;;  %v4607_v24 = vld [vmem:[%s5417_s18 + $0x10] sm:$0xff]  }
0x1851   : > { %4432 = vmatprep.mubr.msk.bf16.mxu0 %vm5025_vm1, %v5024_v5  ;;  %4431 = vmatpush3.bf16.msra.mxu0 %v3298_v53 }
0x1852   : > { %4444 = vmatprep.subr.bf16.mxu0 %v5024_v5 }
0x185a   : > { %v4675_v63 = vpop.eup %4674 }
0x185b   : > { %v3192_v51 = vsel %vm2368_vm5, %v4675_v63, 0.0 }
0x185c   : > { %3193 = vadd.xlane.f32.xlu0 %v3192_v51  ;;  %v4609_v51 = vld [vmem:[%s5417_s18] sm:$0xff]  }
0x1872   : > { %3247 = vrot.lane.b32.xlu0 %v5683_v61, %s5034_s19 }
0x18e5   : > { %v3194_v4 = vpop.xlane.xlu0 %3193 }
0x18e6   : > { %4676 = vrcp.f32 %v3194_v4 }
0x18e9   : > { %v3248_v21 = vpop.permute.xlu0 %3247 }
0x18ea   : > { %4425 = vmatpush3.bf16.msra.mxu1 %v3248_v21 }
0x18eb   : > { %4436 = vmatprep.subr.bf16.mxu1 %v5024_v5 }
0x18f3   : > { %v4677_v54 = vpop.eup %4676 }
0x18f4   : > { %v3198_v11 = vmul.f32 %v4677_v54, %v4675_v63  ;;  %v4608_v63 = vld [vmem:[%s5417_s18 + $0x8] sm:$0xff]  }
0x18f6   : > { %v3200_v57 = vpack.c.bf16 %v3198_v11, %v3198_v11 }
0x18f8   : > { %4427 = vmatmul.mubr.msk.bf16.vlgmr.msra.gmra.mxu1 %vm2368_vm5, %v3200_v57 }
0x18f9   : > { %4440 = vmatprep.mubr.msk.bf16.mxu1 %vm5025_vm1, %v5024_v5 }
0x1910   : > { %v3241_v61 = vpop.f32.mrf.mxu0 }
0x1912   : > { %v4422_v58 = vpop.f32.mrf.mxu0 }
0x1914   : > { %v3244_v59 = vpop.f32.mrf.mxu0 }
0x1916   : > { %v4423_v60 = vpop.f32.mrf.mxu0 }
0x1917   : > { %v4041_v60 = vld [vmem:[%s748_s26] ss:$0 sm:$0xff] }
0x19b8   : > { %v3287_v62 = vpop.f32.mrf.mxu1 }
0x19b9   : > { %v3293_v14 = vpack.c.bf16 %v3287_v62, %v3241_v61 }
0x19ba   : > { %v4428_v2 = vpop.f32.mrf.mxu1 }
0x19bb   : > { %4433 = vmatmul.mubr.msk.bf16.vlgmr.msra.gmra.mxu0 %vm971_vm3, %v3293_v14 }
0x19bc   : > { %v3290_v3 = vpop.f32.mrf.mxu1  ;;  %4452 = vmatprep.mubr.msk.bf16.mxu0 %vm5025_vm1, %v5024_v5  ;;  %4445 = vmatpush3.bf16.msra.mxu0 %v4606_v10 }
0x19bd   : > { %4446 = vmatprep.subr.bf16.mxu0 %v5024_v5 }
0x19be   : > { %v4429_v9 = vpop.f32.mrf.mxu1 }
0x19c0   : > { %4447 = vmatpush3.bf16.msra.mxu0 %v4607_v24 }
0x19c1   : > { %4448 = vmatprep.subr.bf16.mxu0 %v5024_v5 }
0x19c4   : > { %4449 = vmatpush3.bf16.msra.mxu0 %v4608_v63 }
0x19c5   : > { %4450 = vmatprep.subr.bf16.mxu0 %v5024_v5 }
0x19c8   : > { %4451 = vmatpush3.bf16.msra.mxu0 %v4609_v51 }
0x1a7b   : > { %v3334_v13 = vpop.f32.mrf.mxu0 }
0x1a7c   : > { %v3341_v18 = vadd.f32 %v3334_v13, %v3071_v39  ;;  %v4605_v39 = vld [vmem:[%s732_s8] sm:$0xff]  }
0x1a7d   : > { %v4434_v19 = vpop.f32.mrf.mxu0 }
0x1a7e   : > { %v3343_v20 = vadd.f32 %v3341_v18, %v5674_v55 }
0x1a7f   : > { %v3337_v22 = vpop.f32.mrf.mxu0 }
0x1a80   : > { %v3342_v23 = vadd.f32 %v3337_v22, %v3072_v42  ;;  %v3345_v25 = vsel %vm894_vm2, %v3343_v20, 0.0 }
0x1a81   : > { %3346 = vadd.xlane.f32.xlu1 %v3345_v25  ;;  %v4435_v26 = vpop.f32.mrf.mxu0 }
0x1a82   : > { %v3344_v27 = vadd.f32 %v3342_v23, %v5676_v56  ;;  %v4604_v56 = vld [vmem:[%s732_s8 + $0x8] sm:$0xff]  }
0x1a83   : > { %4437 = vmatpush3.bf16.msra.mxu1 %v4604_v56  ;;  %v3568_v56 = vsub.s32 2, %v5669_v12 }
0x1a84   : > { %v3348_v28 = vsel %vm894_vm2, %v3344_v27, 0.0  ;;  %4438 = vmatprep.subr.bf16.mxu1 %v5024_v5 }
0x1a85   : > { %3349 = vadd.xlane.f32.xlu0 %v3348_v28 }
0x1a87   : > { %4439 = vmatpush3.bf16.msra.mxu1 %v4605_v39  ;;  %v3569_v39 = vrot.slane %v5425_v0, %v3568_v56 }
0x1b0a   : > { %v3347_v29 = vpop.xlane.xlu1 %3346 }
0x1b0b   : > { %v3351_v17 = vmul.f32 0.03125, %v3347_v29 }
0x1b0d   : > { %v3353_v30 = vsub.f32 %v3343_v20, %v3351_v17 }
0x1b0e   : > { %v3350_v32 = vpop.xlane.xlu0 %3349 }
0x1b0f   : > { %v3352_v35 = vmul.f32 0.03125, %v3350_v32  ;;  %v3355_v55 = vmul.f32 %v3353_v30, %v3353_v30 }
0x1b11   : > { %v3354_v36 = vsub.f32 %v3344_v27, %v3352_v35  ;;  %v3357_v37 = vsel %vm894_vm2, %v3355_v55, 0.0 }
0x1b12   : > { %3358 = vadd.xlane.f32.xlu1 %v3357_v37 }
0x1b13   : > { %v3356_v38 = vmul.f32 %v3354_v36, %v3354_v36 }
0x1b15   : > { %v3360_v8 = vsel %vm894_vm2, %v3356_v38, 0.0 }
0x1b16   : > { %3361 = vadd.xlane.f32.xlu0 %v3360_v8 }
0x1b9b   : > { %v3359_v40 = vpop.xlane.xlu1 %3358 }
0x1b9c   : > { %v3363_v41 = vmul.f32 0.03125, %v3359_v40  ;;  %v3575_v40 = vrot.slane %v5427_v1, %v3568_v56 }
0x1b9e   : > { %v3365_v42 = vadd.f32 1e-05, %v3363_v41 }
0x1b9f   : > { %v3362_v43 = vpop.xlane.xlu0 %3361 }
0x1ba0   : > { %4678 = vrsqrt.f32 %v3365_v42  ;;  %v3364_v44 = vmul.f32 0.03125, %v3362_v43 }
0x1ba2   : > { %v3366_v45 = vadd.f32 1e-05, %v3364_v44 }
0x1ba4   : > { %4680 = vrsqrt.f32 %v3366_v45 }
0x1bad   : > { %v4679_v47 = vpop.eup %4678 }
0x1bae   : > { %v3369_v48 = vmul.f32 %v4679_v47, %v3353_v30 }
0x1bb0   : > { %v3375_v34 = vmul.f32 %v3374_v49, %v3369_v48 }
0x1bb1   : > { %v4681_v50 = vpop.eup %4680 }
0x1bb2   : > { %v3370_v6 = vmul.f32 %v4681_v50, %v3354_v36  ;;  %v3381_v31 = vadd.f32 %v3380_v15, %v3375_v34 }
0x1bb4   : > { %v3376_v7 = vmul.f32 %v3374_v49, %v3370_v6 }
0x1bb6   : > { %v3382_v16 = vadd.f32 %v3380_v15, %v3376_v7 }
0x1bb8   : > { %v3383_v33 = vpack.c.bf16 %v3382_v16, %v3381_v31 }
0x1bba   : > { %4441 = vmatmul.mubr.msk.bf16.vlgmr.msra.gmra.mxu1 %vm894_vm2, %v3383_v33 }
0x1c7a   : > { %v3444_v53 = vpop.f32.mrf.mxu1 }
0x1c7b   : > { %v3445_v21 = vadd.f32 %v4037_v52, %v3444_v53 }
0x1c7c   : > { %v4442_v4 = vpop.f32.mrf.mxu1 }
0x1c7d   : > { %v3451_v61 = vmax.f32 %v3445_v21, 0.0 }
0x1c7e   : > { %v3447_v54 = vpop.f32.mrf.mxu1 }
0x1c7f   : > { %v3448_v11 = vadd.f32 %v4037_v52, %v3447_v54 }
0x1c80   : > { %v4443_v57 = vpop.f32.mrf.mxu1 }
0x1c81   : > { %v3452_v58 = vmax.f32 %v3448_v11, 0.0 }
0x1c83   : > { %v3453_v59 = vpack.c.bf16 %v3452_v58, %v3451_v61 }
0x1c85   : > { %4453 = vmatmul.mubr.msk.bf16.vlgmr.msra.gmra.mxu0 %vm3493_vm6, %v3453_v59 }
0x1d45   : > { %v3531_v62 = vpop.f32.mrf.mxu0 }
0x1d46   : > { %v3532_v14 = vadd.f32 %v4041_v60, %v3531_v62 }
0x1d47   : > { %v4454_v5 = vpop.f32.mrf.mxu0 }
0x1d48   : > { %v3538_v2 = vadd.f32 %v3532_v14, %v3381_v31 }
0x1d49   : > { %v3534_v3 = vpop.f32.mrf.mxu0 }
0x1d4a   : > { %v3535_v9 = vadd.f32 %v4041_v60, %v3534_v3  ;;  %v3540_v13 = vsel %vm894_vm2, %v3538_v2, 0.0 }
0x1d4b   : > { %3541 = vadd.xlane.f32.xlu1 %v3540_v13  ;;  %v4455_v18 = vpop.f32.mrf.mxu0 }
0x1d4c   : > { %v3539_v19 = vadd.f32 %v3535_v9, %v3382_v16 }
0x1d4e   : > { %v3543_v20 = vsel %vm894_vm2, %v3539_v19, 0.0 }
0x1d4f   : > { %3544 = vadd.xlane.f32.xlu0 %v3543_v20 }
0x1dd4   : > { %v3542_v22 = vpop.xlane.xlu1 %3541 }
0x1dd5   : > { %v3546_v23 = vmul.f32 0.03125, %v3542_v22 }
0x1dd7   : > { %v3548_v25 = vsub.f32 %v3538_v2, %v3546_v23 }
0x1dd8   : > { %v3545_v26 = vpop.xlane.xlu0 %3544 }
0x1dd9   : > { %v3547_v27 = vmul.f32 0.03125, %v3545_v26  ;;  %v3550_v28 = vmul.f32 %v3548_v25, %v3548_v25 }
0x1ddb   : > { %v3549_v29 = vsub.f32 %v3539_v19, %v3547_v27  ;;  %v3552_v17 = vsel %vm894_vm2, %v3550_v28, 0.0 }
0x1ddc   : > { %3553 = vadd.xlane.f32.xlu1 %v3552_v17 }
0x1ddd   : > { %v3551_v30 = vmul.f32 %v3549_v29, %v3549_v29 }
0x1ddf   : > { %v3555_v32 = vsel %vm894_vm2, %v3551_v30, 0.0 }
0x1de0   : > { %3556 = vadd.xlane.f32.xlu0 %v3555_v32 }
0x1e65   : > { %v3554_v35 = vpop.xlane.xlu1 %3553 }
0x1e66   : > { %v3558_v55 = vmul.f32 0.03125, %v3554_v35 }
0x1e68   : > { %v3560_v36 = vadd.f32 1e-05, %v3558_v55 }
0x1e69   : > { %v3557_v37 = vpop.xlane.xlu0 %3556 }
0x1e6a   : > { %4682 = vrsqrt.f32 %v3560_v36  ;;  %v3559_v38 = vmul.f32 0.03125, %v3557_v37 }
0x1e6c   : > { %v3561_v8 = vadd.f32 1e-05, %v3559_v38 }
0x1e6e   : > { %4684 = vrsqrt.f32 %v3561_v8 }
0x1e77   : > { %v4683_v10 = vpop.eup %4682 }
0x1e78   : > { %v3564_v41 = vmul.f32 %v4683_v10, %v3548_v25 }
0x1e7a   : > { %v3570_v42 = vmul.f32 %v3569_v39, %v3564_v41 }
0x1e7b   : > { %v4685_v43 = vpop.eup %4684 }
0x1e7c   : > { %v3576_v44 = vadd.f32 %v3575_v40, %v3570_v42  ;;  %v3565_v45 = vmul.f32 %v4685_v43, %v3549_v29 }
0x1e7e   : > { %3578 = vst.msk [vmem:[#allocation2] sm:$0xff] %vm894_vm2, %v3576_v44  ;;  %v3571_v46 = vmul.f32 %v3569_v39, %v3565_v45  ;;  %3583 = sbr.rel (%p4047_p12) target bundleno = 8020 (0x1f54), region = 128 }
0x1e80   : > { %v3577_v47 = vadd.f32 %v3575_v40, %v3571_v46 }
0x1e82   : > { %3579 = vst.msk [vmem:[#allocation2 + $0x8] sm:$0xff] %vm894_vm2, %v3577_v47 }
0x1e83   : > { %v4686_v0 = vld [vmem:[%s6093_s27 + $0x8] sm:$0xff]   ;;  %v5037_v12 = vmov 0.0   ;;  %v4687_v1 = vld [vmem:[%s6094_s14] sm:$0xff]   ;;  %vm5038_vm7 = vmmov 0   ;;  %v3584_v48 = vpack.c.bf16 %v3577_v47, %v3576_v44 }
0x1e84   : > { %4456 = vmatprep.subr.bf16.mxu0 %v5037_v12  ;;  %4460 = vmatprep.mubr.msk.bf16.mxu0 %vm5038_vm7, %v5037_v12  ;;  %v4048_v49 = vld [vmem:[%s6095_s20] ss:$0 sm:$0xff] }
0x1e85   : > { %4457 = vmatpush3.bf16.msra.mxu0 %v4686_v0 }
0x1e86   : > { %4458 = vmatprep.subr.bf16.mxu0 %v5037_v12 }
0x1e89   : > { %4459 = vmatpush3.bf16.msra.mxu0 %v4687_v1 }
0x1e8c   : > { %4461 = vmatmul.mubr.msk.bf16.vlgmr.msra.gmra.mxu0 %vm894_vm2, %v3584_v48 }
0x1f4c   : > { %v3645_v50 = vpop.f32.mrf.mxu0 }
0x1f4d   : > { %v3646_v6 = vadd.f32 %v4048_v49, %v3645_v50 }
0x1f4e   : > { %v4462_v34 = vpop.f32.mrf.mxu0 }
0x1f4f   : > { %3652 = vst [vmem:[#allocation15] sm:$0xff] %v3646_v6 }
0x1f50   : > { %v3648_v15 = vpop.f32.mrf.mxu0 }
0x1f51   : > { %v3649_v7 = vadd.f32 %v4048_v49, %v3648_v15 }
0x1f52   : > { %v4463_v31 = vpop.f32.mrf.mxu0 }
0x1f53   : > { %3653 = vst [vmem:[#allocation15 + $0x8] sm:$0xff] %v3649_v7 }
0x1f54 PF: > { %s5039_s1 = smov [#allocation15]   ;;  %p6096_p10 = scmp.eq.s32.totalorder %s5159_s0, 1 }
0x1f55   : > { %s3665_s24 = sshll.u32 %s5039_s1, 4  ;;  %s3666_s24 = int_to_ptr.vmem [resolvable:$true] %s3665_s24 }
0x1f56   : > { %s4904_s8 = scalar_lea.vmem %s3666_s24, 256  ;;  %p4911_p4 = scmp.lt.s32.totalorder %s3666_s24, %s3666_s24 }
0x1f57   : > { %p4905_p5 = scmp.ne.s32.totalorder %s3666_s24, %s4904_s8  ;;  %p4912_p11 = scmp.lt.s32.totalorder %s4904_s8, %s4904_s8 }
0x1f59   : > { %p4906_p13 = pnand %p4905_p5, %p6096_p10  ;;  %p4913_p7 = por %p4912_p11, %p4911_p4 }
0x1f5b   : > { %p4907_p3 = pneg %p4906_p13 }
0x1f5d   : > { %p4914_p6 = pnand %p4913_p7, %p4907_p3 }
0x1f5f   : > { %4917 = shalt.err (!%p4914_p6)
}
0x1f60   : > { %s5040_s23 = smov 128   ;;  %s6097_s26 = sld [smem:[#allocation29_spill]] }
0x1f61   : > { %s5041_s3 = smov 8   ;;  %p6098_p0 = pmov %p6096_p10 }
0x1f62   : > { %s6099_s10 = sld [smem:[#allocation46_spill]]  ;;  %s4070_s17 = sshll.u32 %s5159_s0, 8 }
0x1f63   : > { %s3681_s22 = sshll.u32 %s5433_s15, 4  ;;  %s6100_s19 = sld [smem:[#allocation47_spill]]  ;;  %s5943_s22 = int_to_ptr.vmem [resolvable:$true] %s3681_s22 }
0x1f64   : > { %s3655_s2 = scalar_lea.sflag [#allocation17], %s5382_s21  ;;  %s4928_s25 = scalar_lea.vmem %s5943_s22, 256 }
0x1f65   : > { %p4929_p8 = scmp.ne.s32.totalorder %s5943_s22, %s4928_s25  ;;  %s5042_s11 = smov [#allocation16]  }
0x1f66   : > { %p6101_p1 = scmp.ne.s32.totalorder %s6097_s26, 0  ;;  %s4932_s27 = sshll.u32 %s5042_s11, 4  ;;  %s4933_s27 = int_to_ptr.vmem [resolvable:$false] %s4932_s27 }
0x1f67   : > { %s4934_s15 = scalar_lea.vmem %s4933_s27, 512  ;;  %p4935_p12 = scmp.lt.s32.totalorder %s5943_s22, %s4933_s27 }
0x1f68   : > { %4489 = dma.vmem_to_hbm [thread:$0]  (%p6098_p0), %s3666_s24, 256, %s6099_s10, [#allocation5], %s5040_s23, %s5040_s23, %s5041_s3  }
0x1f69   : > { %s5941_s29 = scalar_lea.hbm %s6100_s19, %s4070_s17  ;;  %p4930_p2 = pnand %p4929_p8, %p6101_p1 }
0x1f6a   : > { %p4936_p5 = scmp.lt.s32.totalorder %s4934_s15, %s4928_s25 }
0x1f6b   : > { %p4931_p9 = pneg %p4930_p2 }
0x1f6c   : > { %p4937_p10 = por %p4936_p5, %p4935_p12 }
0x1f6e   : > { %p4938_p13 = pnand %p4937_p10, %p4931_p9 }
0x1f70   : > { %4941 = shalt.err (!%p4938_p13)
}
0x1f71   : > { %s4942_s13 = scalar_lea.hbm %s5941_s29, 256  ;;  %s4946_s6 = scalar_lea.hbm %s6100_s19, 512 }
0x1f72   : > { %p4943_p3 = scmp.ne.s32.totalorder %s5941_s29, %s4942_s13  ;;  %p4947_p7 = scmp.lt.s32.totalorder %s5941_s29, %s6100_s19 }
0x1f73   : > { %p4948_p6 = scmp.lt.s32.totalorder %s4946_s6, %s4942_s13 }
0x1f74   : > { %p4944_p4 = pnand %p4943_p3, %p6101_p1 }
0x1f75   : > { %p4949_p0 = por %p4948_p6, %p4947_p7 }
0x1f76   : > { %p4945_p11 = pneg %p4944_p4 }
0x1f78   : > { %p4950_p8 = pnand %p4949_p0, %p4945_p11 }
0x1f7a   : > { %4953 = shalt.err (!%p4950_p8)
}
0x1f7b   : > { %4490 = dma.vmem_to_hbm [thread:$0]  (%p6101_p1), %s5943_s22, 256, %s5941_s29, %s3655_s2, %s5040_s23, %s5040_s23, %s5041_s3  }
0x1f7c   : > { %p6102_p2 = scmp.eq.s32.totalorder %s5159_s0, 1 }
0x1f7e   : > { %4987 = dma.done.wait (%p6102_p2), [#allocation5], 256   ;;  %p6103_p9 = pmov %p6102_p2 }
0x1f80   : > { %4989 = vsyncadd (%p6103_p9), [#allocation5], 4294967040 }
0x1f81 PF: > { %s6104_s1 = sld [smem:[#allocation24_spill]]  ;;  %p6107_p5 = scmp.ge.s32.totalorder %s5008_s30, 2 }
0x1f82   : > { %s6105_s24 = sld [smem:[#allocation26_spill]] }
0x1f87   : > { %s3700_s8 = sand.u32 1, %s6104_s1  }
0x1f88   : > { %p6106_p12 = scmp.ne.s32.totalorder %s6105_s24, 0  ;;  %s3701_s26 = scalar_lea.sflag [#allocation17], %s3700_s8 }
0x1f8a   : > { %p4521_p10 = pnand %p6107_p5, %p6106_p12 }
0x1f8c   : > { %p4522_p13 = pneg %p4521_p10 }
0x1f8e   : > { %4991 = dma.done.wait (%p4522_p13), %s3701_s26, 256  }
0x1f8f   : > { %4993 = vsyncadd (%p4522_p13), %s3701_s26, 4294967040  ;;  %s6108_s30 = sld [smem:[#allocation27_spill]]  ;;  %s6111_s27 = smov %s5000_s28 }
0x1f90   : > { %s6109_s23 = sld [smem:[#allocation25_spill]] }
0x1f91   : > { %s6110_s29 = sld [smem:[#allocation28_spill]] }
0x1f95   : > { %p33_p1 = scmp.ge.s32.totalorder %s6108_s30, 4  }
0x1f96   : > { %s6112_s28 = smov %s6109_s23 }
0x1f97   :  { %35 = sbr.rel (!%p33_p1) target bundleno = 26 (0x1a), region = 219 }
0x1f9c   :  { %3706 = vsyncpa [#allocation4], 1 }
0x1f9d   :  { %3708 = vsyncpa [#allocation4 + $0x1], 1 }
0x1f9e   :  { %3709 = vsyncpa [#allocation7], 1 }
0x1f9f   :  { %3710 = vsyncpa [#allocation10], 1 }
0x1fa0   :  { %3711 = vsyncpa [#allocation5], 1 }
0x1fa1   :  { %3713 = vsyncpa [#allocation5 + $0x1], 1 }
0x1fa2   :  { %3714 = vsyncpa [#allocation17], 1 }
0x1fa3   :  { %3716 = vsyncpa [#allocation17 + $0x1], 1 }

// kernel: tpu_custom_call.1
= control target key start
LH: loop header
LB: loop body
LE: loop exit
PB: predicated region body
PF: predicated region fallthrough
CT: control target
= control target key end

     0   :  { %s5991_s0 = inlined_call_operand.hbm [shape: f32[16,32], index: 0, kind: input, shape index: {}]   ;;  %s5992_s1 = inlined_call_operand.hbm [shape: bf16[32,32], index: 1, kind: input, shape index: {}]   ;;  %s5993_s2 = inlined_call_operand.hbm [shape: f32[1,8,8], index: 2, kind: input, shape index: {}]   ;;  %s5994_s3 = inlined_call_operand.hbm [shape: f32[2,1,16], index: 3, kind: input, shape index: {}]   ;;  %s5995_s4 = inlined_call_operand.vmem [shape: bf16[2,32,96], index: 4, kind: input, shape index: {}]   ;;  %s5996_s5 = inlined_call_operand.vmem [shape: bf16[2,32,32], index: 5, kind: input, shape index: {}]   ;;  %s5997_s6 = inlined_call_operand.vmem [shape: bf16[2,32,32], index: 6, kind: input, shape index: {}]   ;;  %s5998_s7 = inlined_call_operand.vmem [shape: bf16[2,32,64], index: 7, kind: input, shape index: {}]   ;;  %s5999_s8 = inlined_call_operand.hbm [shape: bf16[2,32,32], index: 8, kind: input, shape index: {}]   ;;  %s6000_s9 = inlined_call_operand.hbm [shape: bf16[2,32,64], index: 9, kind: input, shape index: {}]   ;;  %s6001_s10 = inlined_call_operand.hbm [shape: f32[2,1,64], index: 10, kind: input, shape index: {}]   ;;  %s6002_s11 = inlined_call_operand.vmem [shape: bf16[2,64,32], index: 11, kind: input, shape index: {}]   ;;  %s6003_s12 = inlined_call_operand.hbm [shape: f32[2,1,32], index: 12, kind: input, shape index: {}]   ;;  %s6004_s13 = inlined_call_operand.vmem [shape: f32[2,3,32], index: 13, kind: input, shape index: {}]   ;;  %s6005_s14 = inlined_call_operand.vmem [shape: f32[2,3,32], index: 14, kind: input, shape index: {}]   ;;  %s6006_s15 = inlined_call_operand.vmem [shape: bf16[32,128], index: 15, kind: input, shape index: {}]   ;;  %s6007_s16 = inlined_call_operand.vmem [shape: f32[1,128], index: 16, kind: input, shape index: {}]   ;;  %s6008_s17 = inlined_call_operand.hbm [shape: f32[16,128], index: 17, kind: output, shape index: {0}]   ;;  %s6009_s18 = inlined_call_operand.hbm [shape: f32[2,16,32], index: 18, kind: output, shape index: {1}]  }
   0x1   :  { %6031 = sst [smem:[#allocation30_spill]] %s5991_s0 }
   0x2   :  { %6032 = sst [smem:[#allocation31_spill]] %s5992_s1 }
   0x3   :  { %6033 = sst [smem:[#allocation32_spill]] %s5993_s2 }
   0x4   :  { %6034 = sst [smem:[#allocation33_spill]] %s5994_s3 }
   0x5   :  { %6035 = sst [smem:[#allocation34_spill]] %s5995_s4 }
   0x6   :  { %6036 = sst [smem:[#allocation35_spill]] %s5996_s5 }
   0x7   :  { %6037 = sst [smem:[#allocation36_spill]] %s5997_s6 }
   0x8   :  { %6038 = sst [smem:[#allocation37_spill]] %s5998_s7 }
   0x9   :  { %6039 = sst [smem:[#allocation38_spill]] %s5999_s8 }
   0xa   :  { %6040 = sst [smem:[#allocation39_spill]] %s6000_s9 }
   0xb   :  { %6041 = sst [smem:[#allocation40_spill]] %s6001_s10 }
   0xc   :  { %6042 = sst [smem:[#allocation41_spill]] %s6002_s11 }
   0xd   :  { %6043 = sst [smem:[#allocation42_spill]] %s6004_s13 }
   0xe   :  { %6044 = sst [smem:[#allocation43_spill]] %s6005_s14 }
   0xf   :  { %6045 = sst [smem:[#allocation44_spill]] %s6006_s15 }
  0x10   :  { %6046 = sst [smem:[#allocation45_spill]] %s6007_s16 }
  0x11   :  { %6047 = sst [smem:[#allocation46_spill]] %s6008_s17 }
  0x12   :  { %6048 = sst [smem:[#allocation47_spill]] %s6009_s18 }
  0x13   :  { %24 = vsyncpa [#allocation4], 0 }
  0x14   :  { %25 = vsyncpa [#allocation7], 0 }
  0x15   :  { %26 = vsyncpa [#allocation10], 0 }
  0x16   :  { %27 = vsyncpa [#allocation5], 0 }
  0x17   :  { %28 = vsyncpa [#allocation17], 0 }
  0x18   :  { %30 = vsyncpa [#allocation17 + $0x1], 0  ;;  %s5138_s27 = smov 0   ;;  %s5140_s28 = smov 0  }
  0x19   :  { %s5142_s29 = smov 0   ;;  %s5144_s30 = smov 0  }
  0x1a LB: > { %6049 = sst [smem:[#allocation24_spill]] %s4996_s27  ;;  %s5159_s0 = sadd.s32 4294967295, %s5008_s30   ;;  %s5008_s30 = sphi %s5144_s30, %s6108_s30   ;;  %s5004_s29 = sphi %s5142_s29, %s6110_s29   ;;  %s5000_s28 = sphi %s5140_s28, %s6112_s28   ;;  %s4996_s27 = sphi %s5138_s27, %s6111_s27  }
  0x1b   : > { %6050 = sst [smem:[#allocation25_spill]] %s5004_s29  ;;  %s3943_s19 = sadd.s32 4294967294, %s5008_s30  }
  0x1c   : > { %p244_p0 = scmp.ne.s32.totalorder %s5000_s28, %s4996_s27  ;;  %p6020_p1 = scmp.eq.s32.totalorder %s5159_s0, 0 }
  0x1d   : > { %p6019_p2 = scmp.eq.s32.totalorder %s5159_s0, 1  ;;  %p493_p3 = scmp.eq.s32.totalorder %s3943_s19, 1 }
  0x1e   : > { %p5168_p4 = por %p6020_p1, %p244_p0  ;;  %p3944_p5 = scmp.ge.s32.totalorder %s5008_s30, 1 }
  0x1f   : > { %p5173_p6 = por %p493_p3, %p244_p0  ;;  %p500_p7 = scmp.lt.s32.totalorder %s5008_s30, 3 }
  0x20   : > { %s6051_s1 = scalar_select %p5168_p4, 1, 0 }
  0x21   : > { %s6052_s20 = scalar_select %p5173_p6, 1, 0 }
  0x22   : > { %p5179_p9 = pnand %p3944_p5, %p500_p7  ;;  %s5010_s22 = smov [#allocation3]  }
  0x23   : > { %6053 = sst [smem:[#allocation26_spill]] %s6052_s20  ;;  %s512_s2 = sshll.u32 %s5010_s22, 4  ;;  %s513_s2 = int_to_ptr.vmem [resolvable:$true] %s512_s2 }
  0x24   : > { %s6054_s21 = scalar_select %p5179_p9, 1, 0 }
  0x25   : > { %p4494_p10 = pneg %p5179_p9  ;;  %s5193_s24 = sadd.s32 1, %s5008_s30  }
  0x26   : > { %6056 = sst [smem:[#allocation27_spill]] %s5193_s24  ;;  %s231_s25 = sadd.s32 1, %s5004_s29 }
  0x27   : > { %p5188_p12 = pnand %p4494_p10, %p6020_p1  ;;  %s228_s26 = ssub.s32 %s5008_s30, %s5193_s24 }
  0x28   : > { %s4699_s19 = scalar_lea.vmem %s513_s2, 256  ;;  %p4707_p7 = scmp.lt.s32.totalorder %s513_s2, %s513_s2 }
  0x29   : > { %s6055_s23 = scalar_select %p5188_p12, 1, 0 }
  0x2a   : > { %p6021_p13 = pneg %p5188_p12  ;;  %p4700_p0 = scmp.ne.s32.totalorder %s513_s2, %s4699_s19 }
  0x2b   : > { %p4708_p10 = scmp.lt.s32.totalorder %s4699_s19, %s4699_s19 }
  0x2c   : > { %p4702_p3 = pnand %p4700_p0, %p6021_p13 }
  0x2d   : > { %p4709_p11 = por %p4708_p10, %p4707_p7 }
  0x2e   : > { %p4703_p5 = pneg %p4702_p3 }
  0x30   : > { %p4710_p8 = pnand %p4709_p11, %p4703_p5 }
  0x32   : > { %4713 = shalt.err (!%p4710_p8)
}
  0x33   : > { %s5011_s22 = smov 128   ;;  %s5012_s24 = smov 8  }
  0x34   : > { %s6057_s18 = sld [smem:[#allocation30_spill]]  ;;  %p229_p0 = scmp.eq.s32.totalorder %s228_s26, 0 }
  0x35   : > { %p238_p11 = scmp.ne.s32.totalorder %s5004_s29, %s5000_s28  ;;  %p239_p8 = scmp.eq.s32.totalorder %s5008_s30, 0 }
  0x36   : > { %s5212_s19 = scalar_select %p229_p0, %s5004_s29, %s231_s25  }
  0x37   : > { %p240_p3 = por %p239_p8, %p238_p11  ;;  %p5216_p5 = por %p6019_p2, %p238_p11 }
  0x38   : > { %6058 = sst [smem:[#allocation28_spill]] %s5212_s19  ;;  %p4528_p7 = scmp.lt.s32.totalorder %s5008_s30, 2 }
  0x39   : > { %s6059_s17 = scalar_select %p5216_p5, 1, 0 }
  0x3a   : > { %4497 = dma.hbm_to_vmem [thread:$0]  (!%p5188_p12), %s6057_s18, 256, %s513_s2, [#allocation4], %s5011_s22, %s5011_s22, %s5012_s24  }
  0x3b   : > { %6060 = sst [smem:[#allocation29_spill]] %s6059_s17  ;;  %s601_s16 = sand.u32 1, %s5008_s30  }
  0x3c   : > { %s5223_s15 = sand.u32 1, %s5004_s29   ;;  %s4059_s13 = sshll.u32 %s5008_s30, 8 }
  0x3d   : > { %s3950_s14 = sshll.u32 %s5223_s15, 4  ;;  %s6061_s8 = sld [smem:[#allocation38_spill]] }
  0x3e   : > { %s605_s2 = scalar_lea.vmem [#allocation11], %s3950_s14  ;;  %p5234_p10 = pnand %p4528_p7, %p240_p3 }
  0x3f   : > { %s612_s24 = sshll.u32 %s605_s2, 4  ;;  %s6063_s9 = sld [smem:[#allocation39_spill]]  ;;  %s5232_s24 = int_to_ptr.vmem [resolvable:$true] %s612_s24 }
  0x40   : > { %s6062_s25 = scalar_select %p5234_p10, 1, 0 }
  0x41   : > { %s5243_s27 = scalar_lea.vmem [#allocation12], %s3950_s14  ;;  %s5246_s29 = scalar_lea.sflag [#allocation4], %s601_s16 }
  0x42   : > { %p5252_p11 = pneg %p5234_p10 }
  0x43   : > { %s5230_s20 = scalar_lea.hbm %s6061_s8, %s4059_s13  ;;  %s4719_s14 = scalar_lea.hbm %s6061_s8, 512 }
  0x44   : > { %s4714_s17 = scalar_lea.hbm %s5230_s20, 256  ;;  %p4720_p7 = scmp.lt.s32.totalorder %s5230_s20, %s6061_s8 }
  0x45   : > { %s5241_s19 = scalar_lea.hbm %s6063_s9, %s4059_s13  ;;  %p4715_p0 = scmp.ne.s32.totalorder %s5230_s20, %s4714_s17 }
  0x46   : > { %p4721_p2 = scmp.lt.s32.totalorder %s4719_s14, %s4714_s17 }
  0x47   : > { %p4717_p8 = pnand %p5252_p11, %p4715_p0 }
  0x48   : > { %p4722_p1 = por %p4721_p2, %p4720_p7 }
  0x49   : > { %p4718_p3 = pneg %p4717_p8 }
  0x4b   : > { %p4723_p13 = pnand %p4722_p1, %p4718_p3 }
  0x4d   : > { %4726 = shalt.err (!%p4723_p13)
}
  0x4e   : > { %s4727_s16 = scalar_lea.vmem %s5232_s24, 256  ;;  %s5013_s18 = smov [#allocation11]  }
  0x4f   : > { %p4728_p6 = scmp.ne.s32.totalorder %s5232_s24, %s4727_s16  ;;  %s4732_s26 = sshll.u32 %s5013_s18, 4  ;;  %s4733_s26 = int_to_ptr.vmem [resolvable:$false] %s4732_s26 }
  0x50   : > { %s4734_s13 = scalar_lea.vmem %s4733_s26, 512  ;;  %p4735_p5 = scmp.lt.s32.totalorder %s5232_s24, %s4733_s26 }
  0x51   : > { %p4730_p0 = pnand %p4728_p6, %p5252_p11  ;;  %p4736_p4 = scmp.lt.s32.totalorder %s4734_s13, %s4727_s16 }
  0x53   : > { %p4731_p8 = pneg %p4730_p0  ;;  %p4737_p9 = por %p4736_p4, %p4735_p5 }
  0x55   : > { %p4738_p12 = pnand %p4737_p9, %p4731_p8 }
  0x57   : > { %4741 = shalt.err (!%p4738_p12)
}
  0x58   : > { %s6027_s11 = smov 64   ;;  %s5015_s17 = smov 4  }
  0x59   : > { %4510 = dma.hbm_to_vmem [thread:$0]  (!%p5234_p10), %s5230_s20, 256, %s5232_s24, %s5246_s29, %s6027_s11, %s6027_s11, %s5015_s17  }
  0x5a   : > { %s6065_s18 = sshll.u32 %s5243_s27, 4  ;;  %s4742_s14 = scalar_lea.hbm %s5241_s19, 256  ;;  %s634_s18 = int_to_ptr.vmem [resolvable:$true] %s6065_s18 }
  0x5b   : > { %p4743_p1 = scmp.ne.s32.totalorder %s5241_s19, %s4742_s14  ;;  %s4747_s26 = scalar_lea.hbm %s6063_s9, 512 }
  0x5c   : > { %p4748_p6 = scmp.lt.s32.totalorder %s5241_s19, %s6063_s9  ;;  %p4749_p9 = scmp.lt.s32.totalorder %s4747_s26, %s4742_s14 }
  0x5d   : > { %p4745_p2 = pnand %p4743_p1, %p5252_p11 }
  0x5e   : > { %p4750_p12 = por %p4749_p9, %p4748_p6 }
  0x5f   : > { %p4746_p4 = pneg %p4745_p2 }
  0x61   : > { %p4751_p13 = pnand %p4750_p12, %p4746_p4 }
  0x63   : > { %4754 = shalt.err (!%p4751_p13)
}
  0x64   : > { %s4755_s20 = scalar_lea.vmem %s634_s18, 256  ;;  %s5016_s24 = smov [#allocation12]  }
  0x65   : > { %p4756_p5 = scmp.ne.s32.totalorder %s634_s18, %s4755_s20  ;;  %s4760_s27 = sshll.u32 %s5016_s24, 4  ;;  %s4761_s27 = int_to_ptr.vmem [resolvable:$false] %s4760_s27 }
  0x66   : > { %s4762_s11 = scalar_lea.vmem %s4761_s27, 512  ;;  %p4763_p0 = scmp.lt.s32.totalorder %s634_s18, %s4761_s27 }
  0x67   : > { %p4758_p3 = pnand %p4756_p5, %p5252_p11  ;;  %p4764_p8 = scmp.lt.s32.totalorder %s4762_s11, %s4755_s20 }
  0x69   : > { %p4759_p7 = pneg %p4758_p3  ;;  %p4765_p1 = por %p4764_p8, %p4763_p0 }
  0x6b   : > { %p4766_p2 = pnand %p4765_p1, %p4759_p7 }
  0x6d   : > { %4769 = shalt.err (!%p4766_p2)
}
  0x6e   : > { %s6066_s8 = smov 64   ;;  %s5017_s14 = smov [#allocation6]  }
  0x6f   : > { %4513 = dma.hbm_to_vmem [thread:$0]  (!%p5234_p10), %s5241_s19, 256, %s634_s18, %s5246_s29, %s6066_s8, %s6066_s8, %s5015_s17  }
  0x70   : > { %s525_s22 = sshll.u32 %s5017_s14, 4  ;;  %s3956_s16 = sshll.u32 %s5008_s30, 4  ;;  %s526_s22 = int_to_ptr.vmem [resolvable:$true] %s525_s22 }
  0x71   : > { %s4781_s26 = scalar_lea.vmem %s526_s22, 256  ;;  %p6067_p6 = scmp.ne.s32.totalorder %s6055_s23, 0 }
  0x72   : > { %p4782_p4 = scmp.ne.s32.totalorder %s526_s22, %s4781_s26  ;;  %p4789_p5 = scmp.lt.s32.totalorder %s526_s22, %s526_s22 }
  0x73   : > { %p6068_p9 = pneg %p6067_p6  ;;  %p4790_p3 = scmp.lt.s32.totalorder %s4781_s26, %s4781_s26 }
  0x75   : > { %p4784_p12 = pnand %p4782_p4, %p6068_p9  ;;  %p4791_p7 = por %p4790_p3, %p4789_p5 }
  0x77   : > { %p4785_p13 = pneg %p4784_p12 }
  0x79   : > { %p4792_p0 = pnand %p4791_p7, %p4785_p13 }
  0x7b   : > { %4795 = shalt.err (!%p4792_p0)
}
  0x7c   : > { %s6069_s18 = sld [smem:[#allocation31_spill]]  ;;  %s646_s27 = scalar_lea.vmem [#allocation13], %s5223_s15 }
  0x7d   : > { %s6070_s10 = sld [smem:[#allocation40_spill]]  ;;  %s653_s14 = sshll.u32 %s646_s27, 4  ;;  %s654_s14 = int_to_ptr.vmem [resolvable:$true] %s653_s14 }
  0x82   : > { %4500 = dma.hbm_to_vmem [thread:$0]  (!%p6067_p6), %s6069_s18, 256, %s526_s22, [#allocation7], %s6066_s8, %s6066_s8, %s5015_s17  }
  0x83   : > { %s651_s24 = scalar_lea.hbm %s6070_s10, %s3956_s16  ;;  %s4801_s19 = scalar_lea.hbm %s6070_s10, 32 }
  0x84   : > { %s4796_s26 = scalar_lea.hbm %s651_s24, 16  ;;  %p4802_p4 = scmp.lt.s32.totalorder %s651_s24, %s6070_s10 }
  0x85   : > { %p4797_p8 = scmp.ne.s32.totalorder %s651_s24, %s4796_s26  ;;  %p4803_p9 = scmp.lt.s32.totalorder %s4801_s19, %s4796_s26 }
  0x87   : > { %p4799_p1 = pnand %p4797_p8, %p5252_p11  ;;  %p4804_p12 = por %p4803_p9, %p4802_p4 }
  0x89   : > { %p4800_p2 = pneg %p4799_p1 }
  0x8b   : > { %p4805_p13 = pnand %p4804_p12, %p4800_p2 }
  0x8d   : > { %4808 = shalt.err (!%p4805_p13)
}
  0x8e   : > { %s4809_s17 = scalar_lea.vmem %s654_s14, 16  ;;  %s5018_s8 = smov [#allocation13]  }
  0x8f   : > { %p4810_p5 = scmp.ne.s32.totalorder %s654_s14, %s4809_s17  ;;  %s4814_s22 = sshll.u32 %s5018_s8, 4  ;;  %s4815_s22 = int_to_ptr.vmem [resolvable:$false] %s4814_s22 }
  0x90   : > { %s4816_s18 = scalar_lea.vmem %s4815_s22, 32  ;;  %p4817_p0 = scmp.lt.s32.totalorder %s654_s14, %s4815_s22 }
  0x91   : > { %p4812_p3 = pnand %p4810_p5, %p5252_p11  ;;  %p4818_p8 = scmp.lt.s32.totalorder %s4816_s18, %s4809_s17 }
  0x93   : > { %p4813_p7 = pneg %p4812_p3  ;;  %p4819_p1 = por %p4818_p8, %p4817_p0 }
  0x95   : > { %p4820_p6 = pnand %p4819_p1, %p4813_p7 }
  0x97   : > { %4823 = shalt.err (!%p4820_p6)
}
  0x98   : > { %4516 = dma.hbm_to_vmem [thread:$0]  (!%p5234_p10), %s651_s24, 16, %s654_s14, %s5246_s29  }
  0x99   : > { %s5019_s6 = smov [#allocation8]   ;;  %s5020_s9 = smov [#allocation9]  }
  0x9a   : > { %s539_s7 = sshll.u32 %s5019_s6, 4  ;;  %s549_s13 = sshll.u32 %s5020_s9, 4  ;;  %s540_s7 = int_to_ptr.vmem [resolvable:$true] %s539_s7  ;;  %s550_s13 = int_to_ptr.vmem [resolvable:$true] %s549_s13 }
  0x9b   : > { %s4835_s20 = scalar_lea.vmem %s540_s7, 128  ;;  %p6071_p4 = scmp.ne.s32.totalorder %s6055_s23, 0 }
  0x9c   : > { %p4836_p2 = scmp.ne.s32.totalorder %s540_s7, %s4835_s20  ;;  %p4843_p5 = scmp.lt.s32.totalorder %s540_s7, %s540_s7 }
  0x9d   : > { %p6072_p9 = pneg %p6071_p4  ;;  %p4844_p3 = scmp.lt.s32.totalorder %s4835_s20, %s4835_s20 }
  0x9f   : > { %p4838_p12 = pnand %p4836_p2, %p6072_p9  ;;  %p4845_p7 = por %p4844_p3, %p4843_p5 }
  0xa1   : > { %p4839_p13 = pneg %p4838_p12 }
  0xa3   : > { %p4846_p6 = pnand %p4845_p7, %p4839_p13 }
  0xa5   : > { %4849 = shalt.err (!%p4846_p6)
}
  0xa6   : > { %s6073_s14 = sld [smem:[#allocation32_spill]]  ;;  %s4861_s26 = scalar_lea.vmem %s550_s13, 32 }
  0xa7   : > { %p4862_p0 = scmp.ne.s32.totalorder %s550_s13, %s4861_s26  ;;  %p6074_p8 = pmov %p6072_p9 }
  0xa8   : > { %p4869_p9 = scmp.lt.s32.totalorder %s550_s13, %s550_s13  ;;  %p4870_p12 = scmp.lt.s32.totalorder %s4861_s26, %s4861_s26 }
  0xa9   : > { %p4864_p1 = pnand %p4862_p0, %p6074_p8 }
  0xaa   : > { %p4871_p10 = por %p4870_p12, %p4869_p9 }
  0xab   : > { %p4865_p2 = pneg %p4864_p1 }
  0xac   : > { %4503 = dma.hbm_to_vmem [thread:$0]  (!%p6071_p4), %s6073_s14, 128, %s540_s7, [#allocation7]  }
  0xad   : > { %p4872_p5 = pnand %p4871_p10, %p4865_p2 }
  0xaf   : > { %4875 = shalt.err (!%p4872_p5)
}
  0xb0   : > { %s5021_s19 = smov 16   ;;  %s5022_s11 = smov 1  }
  0xb1   : > { %s6075_s3 = sld [smem:[#allocation33_spill]]  ;;  %s676_s6 = scalar_lea.hbm %s6003_s12, %s3956_s16 }
  0xb2   : > { %s671_s7 = scalar_lea.vmem [#allocation14], %s5223_s15  ;;  %s4876_s20 = scalar_lea.hbm %s676_s6, 16 }
  0xb3   : > { %s678_s9 = sshll.u32 %s671_s7, 4  ;;  %p4877_p10 = scmp.ne.s32.totalorder %s676_s6, %s4876_s20  ;;  %s679_s9 = int_to_ptr.vmem [resolvable:$true] %s678_s9 }
  0xb4   : > { %s4881_s23 = scalar_lea.hbm %s6003_s12, 32 }
  0xb5   : > { %p4879_p13 = pnand %p4877_p10, %p5252_p11  ;;  %p4883_p7 = scmp.lt.s32.totalorder %s4881_s23, %s4876_s20 }
  0xb7   : > { %4506 = dma.hbm_to_vmem [thread:$0]  (!%p6071_p4), %s6075_s3, 32, %s550_s13, [#allocation10], %s5021_s19, %s5021_s19, %s5022_s11  }
  0xb8   : > { %p4880_p3 = pneg %p4879_p13  ;;  %p4882_p4 = scmp.lt.s32.totalorder %s676_s6, %s6003_s12 }
  0xba   : > { %p4884_p6 = por %p4883_p7, %p4882_p4 }
  0xbc   : > { %p4885_p0 = pnand %p4884_p6, %p4880_p3 }
  0xbe   : > { %4888 = shalt.err (!%p4885_p0)
}
  0xbf   : > { %s4889_s15 = scalar_lea.vmem %s679_s9, 16  ;;  %s5023_s16 = smov [#allocation14]  }
  0xc0   : > { %p4890_p8 = scmp.ne.s32.totalorder %s679_s9, %s4889_s15  ;;  %s4894_s13 = sshll.u32 %s5023_s16, 4  ;;  %s4895_s13 = int_to_ptr.vmem [resolvable:$false] %s4894_s13 }
  0xc1   : > { %s4896_s19 = scalar_lea.vmem %s4895_s13, 32  ;;  %p4897_p9 = scmp.lt.s32.totalorder %s679_s9, %s4895_s13 }
  0xc2   : > { %p4892_p1 = pnand %p4890_p8, %p5252_p11  ;;  %p4898_p12 = scmp.lt.s32.totalorder %s4896_s19, %s4889_s15 }
  0xc4   : > { %p4893_p2 = pneg %p4892_p1  ;;  %p4899_p5 = por %p4898_p12, %p4897_p9 }
  0xc6   : > { %p4900_p10 = pnand %p4899_p5, %p4893_p2 }
  0xc8   : > { %4903 = shalt.err (!%p4900_p10)
}
  0xc9   : > { %p6076_p13 = scmp.ne.s32.totalorder %s6062_s25, 0  ;;  %p6077_p3 = scmp.ne.s32.totalorder %s6054_s21, 0 }
  0xca   : > { %p6078_p4 = scmp.eq.s32.totalorder (!%p6077_p3), %s5159_s0, 0 }
  0xcb   : > { %4519 = dma.hbm_to_vmem [thread:$0]  (!%p6076_p13), %s676_s6, 16, %s679_s9, %s5246_s29  }
  0xcc   : > { %701 = sbr.rel (%p6077_p3) target bundleno = 8065 (0x1f81), region = 88 }
  0xd1   : > { %4971 = dma.done.wait (%p6078_p4), [#allocation4], 256   ;;  %p6079_p11 = pmov %p6078_p4 }
  0xd2   : > { %p6080_p7 = pmov %p6078_p4 }
  0xd3   : > { %4973 = vsyncadd (%p6079_p11), [#allocation4], 4294967040 }
  0xd4   : > { %4975 = dma.done.wait (%p6080_p7), [#allocation7], 384   ;;  %p6081_p6 = pmov %p6078_p4 }
  0xd5   : > { %p6082_p0 = pmov %p6078_p4 }
  0xd6   : > { %4977 = vsyncadd (%p6081_p6), [#allocation7], 4294966912 }
  0xd7   : > { %4979 = dma.done.wait (%p6082_p0), [#allocation10], 32   ;;  %p6083_p8 = pmov %p6082_p0 }
  0xd8   : > { %s719_s29 = sand.u32 1, %s5159_s0   ;;  %s5382_s21 = sand.u32 1, %s5000_s28  }
  0xd9   : > { %4981 = vsyncadd (%p6083_p8), [#allocation10], 4294967264  ;;  %s5385_s25 = sshll.u32 %s5382_s21, 4  ;;  %s720_s2 = scalar_lea.sflag [#allocation4], %s719_s29 }
  0xda   : > { %s5388_s11 = scalar_lea.vmem [#allocation11], %s5385_s25  ;;  %p6084_p1 = scmp.ne.s32.totalorder %s6051_s1, 0 }
  0xdc   : > { %4983 = dma.done.wait (%p6084_p1), %s720_s2, 544  }
  0xdd   : > { %4985 = vsyncadd (%p6084_p1), %s720_s2, 4294966752  ;;  %p847_p2 = scmp.lt.s32.totalorder %s5159_s0, 1  ;;  %s6085_s4 = sld [smem:[#allocation34_spill]] }
  0xde   : > { %s6086_s5 = sld [smem:[#allocation35_spill]]  ;;  %s748_s26 = scalar_lea.vmem [#allocation14], %s5382_s21 }
  0xdf   : > { %s848_s17 = scalar_select %p847_p2, %s5159_s0, 1 }
  0xe0   : > { %s6087_s23 = sld [smem:[#allocation36_spill]]  ;;  %s5433_s15 = scalar_lea.vmem [#allocation16], %s5385_s25 }
  0xe1   : > { %s4061_s8 = sshll.u32 %s848_s17, 4  ;;  %s4065_s22 = sshll.u32 %s848_s17, 5 }
  0xe2   : > { %s6088_s16 = sld [smem:[#allocation37_spill]]  ;;  %s3976_s6 = sshll.u32 %s848_s17, 2 }
  0xe3   : > { %s851_s7 = scalar_lea.vmem %s6085_s4, %s4061_s8  ;;  %s6089_s2 = sld [smem:[#allocation41_spill]] }
  0xe4   : > { %s5402_s27 = scalar_lea.vmem %s6086_s5, %s4061_s8  ;;  %s6090_s20 = sld [smem:[#allocation42_spill]] }
  0xe5   : > { %s6091_s1 = sld [smem:[#allocation43_spill]]  ;;  %p6092_p9 = scmp.ne.s32.totalorder %s5159_s0, 0 }
  0xe6   : > { %s5407_s14 = scalar_lea.vmem %s6087_s23, %s4061_s8  ;;  %s740_s23 = scalar_lea.vmem [#allocation13], %s5382_s21 }
  0xe8   : > { %s5412_s13 = scalar_lea.vmem %s6088_s16, %s4061_s8  ;;  %s732_s8 = scalar_lea.vmem [#allocation12], %s5385_s25 }
  0xe9   : > { %s5417_s18 = scalar_lea.vmem %s6089_s2, %s4065_s22  ;;  %886 = sbr.rel (%p6092_p9) target bundleno = 240 (0xf0), region = 124 }
  0xea   : > { %s875_s4 = scalar_lea.vmem %s6090_s20, %s3976_s6 }
  0xeb   : > { %s879_s24 = scalar_lea.vmem %s6091_s1, %s3976_s6  ;;  %v5425_v0 = vld [vmem:[%s875_s4] sm:$0x7] }
  0xec   : > { %v5427_v1 = vld [vmem:[%s879_s24] sm:$0x7] }
  0xee   : > { %v887_v2 = vld [vmem:[#allocation3] sm:$0xff]  ;;  %vm889_vm0 = vcmask 261120   ;;  %v888_v3 = vld [vmem:[#allocation3 + $0x8] sm:$0xff] }
  0xef   : > { %890 = vst.msk [vmem:[#allocation2] sm:$0xff] %vm889_vm0, %v887_v2  ;;  %891 = vst.msk [vmem:[#allocation2 + $0x8] sm:$0xff] %vm889_vm0, %v888_v3 }
  0xf0 PF: > { %v4596_v4 = vld [vmem:[%s851_s7 + $0x8] sm:$0xff]   ;;  %v5024_v5 = vmov 0.0   ;;  %v4597_v6 = vld [vmem:[%s851_s7] sm:$0xff]   ;;  %vm5025_vm1 = vmmov 0   ;;  %vm894_vm2 = vcmask 261120   ;;  %s5026_s3 = smov 96  }
  0xf1   : > { %4172 = vmatprep.subr.bf16.mxu1 %v5024_v5  ;;  %4186 = vmatprep.subr.bf16.mxu0 %v5024_v5  ;;  %vm971_vm3 = vcmask 64512   ;;  %v5480_v21 = vld [vmem:[#allocation8] sm:$0xff]  ;;  %s5027_s4 = smov 64   ;;  %s5028_s5 = smov 88   ;;  %vm1099_vm4 = vcmask 1043456   ;;  %vm2368_vm5 = vcmask 130048  }
  0xf2   : > { %4173 = vmatpush3.bf16.msra.mxu1 %v4596_v4  ;;  %4176 = vmatprep.mubr.msk.bf16.mxu1 %vm5025_vm1, %v5024_v5  ;;  %s5029_s10 = smov 120   ;;  %s5030_s17 = smov 56   ;;  %vm3493_vm6 = vcmask 523264  }
  0xf3   : > { %4174 = vmatprep.subr.bf16.mxu1 %v5024_v5  ;;  %4188 = vmatprep.mubr.msk.bf16.mxu0 %vm5025_vm1, %v5024_v5  ;;  %s5031_s22 = smov 112   ;;  %s5032_s7 = smov 80  }
  0xf4   : > { %s5033_s16 = smov 48   ;;  %s5034_s19 = smov 72  }
  0xf5   : > { %s5035_s29 = smov 104   ;;  %s5036_s2 = smov 40  }
  0xf6   : > { %v5441_v7 = vld [vmem:[#allocation2] sm:$0xff]  ;;  %v5443_v8 = vld [vmem:[#allocation2 + $0x8] sm:$0xff]  ;;  %4175 = vmatpush3.bf16.msra.mxu1 %v4597_v6  ;;  %p4047_p12 = scmp.ne.s32.totalorder %s5159_s0, 1 }
  0xf7   : > { %895 = vst.msk [vmem:[%s5433_s15] sm:$0xff] %vm894_vm2, %v5441_v7  ;;  %896 = vst.msk [vmem:[%s5433_s15 + $0x8] sm:$0xff] %vm894_vm2, %v5443_v8  ;;  %v897_v9 = vpack.c.bf16 %v5443_v8, %v5441_v7  ;;  %4180 = vmatprep.subr.bf16.mxu1 %v5024_v5  ;;  %s6095_s20 = sld [smem:[#allocation45_spill]] (!%p4047_p12) }
  0xf9   : > { %4177 = vmatmul.mubr.msk.bf16.vlgmr.msra.gmra.mxu1 %vm894_vm2, %v897_v9 }
  0xfa   : > { %4182 = vmatprep.mubr.msk.bf16.mxu1 %vm5025_vm1, %v5024_v5 }
 0x1b9   : > { %v951_v10 = vpop.f32.mrf.mxu1 }
 0x1ba   : > { %v5460_v11 = vpack.c.bf16 %v951_v10, %v951_v10 }
 0x1bb   : > { %v4178_v12 = vpop.f32.mrf.mxu1 }
 0x1bc   : > { %969 = vrot.lane.b32.xlu0 %v5460_v11, %s5026_s3 }
 0x1bd   : > { %v954_v13 = vpop.f32.mrf.mxu1 }
 0x1be   : > { %v5464_v14 = vpack.c.bf16 %v954_v13, %v954_v13 }
 0x1bf   : > { %v4179_v15 = vpop.f32.mrf.mxu1 }
 0x1c0   : > { %1018 = vrot.lane.b32.xlu0 %v5464_v14, %s5026_s3 }
 0x22e   : > { %v970_v16 = vpop.permute.xlu0 %969 }
 0x22f   : > { %v976_v17 = vsel %vm971_vm3, %v970_v16, 0 }
 0x230   : > { %4181 = vmatpush3.bf16.xpose.msra.mxu1 %v976_v17 }
 0x231   : > { %4192 = vmatprep.subr.bf16.mxu1 %v5024_v5 }
 0x232   : > { %v1019_v18 = vpop.permute.xlu0 %1018 }
 0x233   : > { %v1024_v19 = vsel %vm971_vm3, %v1019_v18, 0 }
 0x234   : > { %4187 = vmatpush3.bf16.xpose.msra.mxu0 %v1024_v19 }
 0x235   : > { %4198 = vmatprep.subr.bf16.mxu0 %v5024_v5 }
 0x237   : > { %4183 = vmatmul.mubr.msk.bf16.vlgmr.msra.gmra.mxu1 %vm971_vm3, %v5460_v11 }
 0x238   : > { %4194 = vmatprep.mubr.msk.bf16.mxu1 %vm5025_vm1, %v5024_v5 }
 0x23b   : > { %4189 = vmatmul.mubr.msk.bf16.vlgmr.msra.gmra.mxu0 %vm971_vm3, %v5464_v14 }
 0x23c   : > { %4200 = vmatprep.mubr.msk.bf16.mxu0 %vm5025_vm1, %v5024_v5 }
 0x2f7   : > { %v1012_v20 = vpop.f32.mrf.mxu1 }
 0x2f8   : > { %v1066_v22 = vmul.f32 0.35355338, %v1012_v20 }
 0x2f9   : > { %v4184_v23 = vpop.f32.mrf.mxu1 }
 0x2fa   : > { %v1068_v24 = vadd.f32 %v1066_v22, %v5480_v21 }
 0x2fb   : > { %v1015_v25 = vpop.f32.mrf.mxu1  ;;  %v1060_v26 = vpop.f32.mrf.mxu0 }
 0x2fc   : > { %v1067_v27 = vmul.f32 0.35355338, %v1060_v26  ;;  %v1070_v28 = vsel %vm971_vm3, %v1068_v24, -inf }
 0x2fd   : > { %v4190_v29 = vpop.f32.mrf.mxu0  ;;  %1071 = vmax.xlane.f32.xlu1 %v1070_v28  ;;  %v4185_v30 = vpop.f32.mrf.mxu1 }
 0x2fe   : > { %v1069_v31 = vadd.f32 %v1067_v27, %v5480_v21 }
 0x2ff   : > { %v1063_v32 = vpop.f32.mrf.mxu0 }
 0x300   : > { %v1073_v33 = vsel %vm971_vm3, %v1069_v31, -inf }
 0x301   : > { %v4191_v34 = vpop.f32.mrf.mxu0  ;;  %1074 = vmax.xlane.f32.xlu1 %v1073_v33 }
 0x312   : > { %1094 = vrot.lane.b32.xlu1 %v5460_v11, %s5027_s4 }
 0x316   : > { %1143 = vrot.lane.b32.xlu1 %v5464_v14, %s5027_s4 }
 0x31a   : > { %1194 = vrot.lane.b32.xlu1 %v5460_v11, %s5028_s5 }
 0x386   : > { %v1072_v35 = vpop.xlane.xlu1 %1071 }
 0x387   : > { %v1076_v36 = vsub.f32 %v1068_v24, %v1072_v35 }
 0x389   : > { %v1078_v37 = vmul.f32 1.442695, %v1076_v36 }
 0x38a   : > { %v1075_v38 = vpop.xlane.xlu1 %1074 }
 0x38b   : > { %4610 = vpow2.f32 %v1078_v37  ;;  %v1077_v39 = vsub.f32 %v1069_v31, %v1075_v38 }
 0x38d   : > { %v1080_v40 = vmul.f32 1.442695, %v1077_v39 }
 0x38e   : > { %v1095_v41 = vpop.permute.xlu1 %1094 }
 0x38f   : > { %4612 = vpow2.f32 %v1080_v40  ;;  %v1101_v42 = vsel %vm1099_vm4, %v1095_v41, 0 }
 0x390   : > { %4193 = vmatpush3.bf16.msra.mxu1 %v1101_v42 }
 0x391   : > { %4204 = vmatprep.subr.bf16.mxu1 %v5024_v5 }
 0x392   : > { %v1144_v43 = vpop.permute.xlu1 %1143 }
 0x393   : > { %v1149_v44 = vsel %vm1099_vm4, %v1144_v43, 0 }
 0x394   : > { %4199 = vmatpush3.bf16.msra.mxu0 %v1149_v44 }
 0x395   : > { %4210 = vmatprep.subr.bf16.mxu0 %v5024_v5 }
 0x396   : > { %v1195_v49 = vpop.permute.xlu1 %1194 }
 0x397   : > { %v1200_v56 = vsel %vm971_vm3, %v1195_v49, 0 }
 0x398   : > { %v4611_v45 = vpop.eup %4610 }
 0x399   : > { %v1082_v46 = vsel %vm971_vm3, %v4611_v45, 0.0 }
 0x39a   : > { %1083 = vadd.xlane.f32.xlu0 %v1082_v46 }
 0x39c   : > { %v4613_v47 = vpop.eup %4612 }
 0x39d   : > { %v1085_v48 = vsel %vm971_vm3, %v4613_v47, 0.0 }
 0x39e   : > { %1086 = vadd.xlane.f32.xlu1 %v1085_v48 }
 0x3af   : > { %1244 = vrot.lane.b32.xlu1 %v5464_v14, %s5028_s5 }
 0x3b0   : > { %1192 = vrot.lane.b32.xlu0 %v5460_v11, %s5029_s10 }
 0x3b3   : > { %1242 = vrot.lane.b32.xlu1 %v5464_v14, %s5029_s10 }
 0x423   : > { %v1084_v50 = vpop.xlane.xlu0 %1083 }
 0x424   : > { %4614 = vrcp.f32 %v1084_v50  ;;  %v959_v50 = vld [vmem:[%s5402_s27] sm:$0xf] }
 0x427   : > { %v1087_v51 = vpop.xlane.xlu1 %1086  ;;  %v1193_v61 = vpop.permute.xlu0 %1192 }
 0x428   : > { %4616 = vrcp.f32 %v1087_v51 }
 0x42b   : > { %v1245_v58 = vpop.permute.xlu1 %1244 }
 0x42c   : > { %v1250_v60 = vsel %vm971_vm3, %v1245_v58, 0  ;;  %v960_v58 = vld [vmem:[%s5402_s27 + $0x4] sm:$0xf] }
 0x42f   : > { %v1243_v62 = vpop.permute.xlu1 %1242 }
 0x431   : > { %v4615_v52 = vpop.eup %4614 }
 0x432   : > { %v1090_v53 = vmul.f32 %v4615_v52, %v4611_v45 }
 0x434   : > { %v1092_v54 = vpack.c.bf16 %v1090_v53, %v1090_v53  ;;  %v1468_v53 = vsel %vm1099_vm4, %v959_v50, 0 }
 0x435   : > { %v4617_v55 = vpop.eup %4616 }
 0x436   : > { %4195 = vmatmul.mubr.msk.bf16.vlgmr.msra.gmra.mxu1 %vm971_vm3, %v1092_v54  ;;  %v1091_v57 = vmul.f32 %v4617_v55, %v4613_v47 }
 0x437   : > { %4205 = vmatpush3.bf16.xpose.msra.mxu1 %v1200_v56  ;;  %4206 = vmatprep.mubr.msk.bf16.mxu1 %vm5025_vm1, %v5024_v5 }
 0x438   : > { %v1093_v59 = vpack.c.bf16 %v1091_v57, %v1091_v57  ;;  %4216 = vmatprep.subr.bf16.mxu1 %v5024_v5 }
 0x43a   : > { %4201 = vmatmul.mubr.msk.bf16.vlgmr.msra.gmra.mxu0 %vm971_vm3, %v1093_v59  ;;  %v1421_v59 = vsel %vm1099_vm4, %v960_v58, 0 }
 0x43b   : > { %4211 = vmatpush3.bf16.xpose.msra.mxu0 %v1250_v60  ;;  %4212 = vmatprep.mubr.msk.bf16.mxu0 %vm5025_vm1, %v5024_v5 }
 0x43c   : > { %4222 = vmatprep.subr.bf16.mxu0 %v5024_v5 }
 0x43e   : > { %4207 = vmatmul.mubr.msk.bf16.vlgmr.msra.gmra.mxu1 %vm971_vm3, %v1193_v61 }
 0x43f   : > { %4218 = vmatprep.mubr.msk.bf16.mxu1 %vm5025_vm1, %v5024_v5 }
 0x442   : > { %4213 = vmatmul.mubr.msk.bf16.vlgmr.msra.gmra.mxu0 %vm971_vm3, %v1243_v62 }
 0x443   : > { %4224 = vmatprep.mubr.msk.bf16.mxu0 %vm5025_vm1, %v5024_v5 }
 0x4f6   : > { %v5518_v63 = vpop.f32.mrf.mxu1 }
 0x4f8   : > { %v4196_v2 = vpop.f32.mrf.mxu1 }
 0x4fa   : > { %v1140_v3 = vpop.f32.mrf.mxu1  ;;  %v5520_v4 = vpop.f32.mrf.mxu0 }
 0x4fb   : > { %v1191_v6 = vpack.c.bf16 %v5520_v4, %v5518_v63 }
 0x4fc   : > { %v4197_v9 = vpop.f32.mrf.mxu1  ;;  %v4202_v10 = vpop.f32.mrf.mxu0 }
 0x4fe   : > { %v1188_v12 = vpop.f32.mrf.mxu0  ;;  %v1236_v13 = vpop.f32.mrf.mxu1 }
 0x4ff   : > { %v1292_v15 = vmul.f32 0.35355338, %v1236_v13 }
 0x500   : > { %v4203_v16 = vpop.f32.mrf.mxu0  ;;  %v4208_v17 = vpop.f32.mrf.mxu1 }
 0x501   : > { %v1294_v18 = vadd.f32 %v1292_v15, %v5480_v21 }
 0x502   : > { %v1239_v19 = vpop.f32.mrf.mxu1  ;;  %v1286_v20 = vpop.f32.mrf.mxu0 }
 0x503   : > { %v1293_v22 = vmul.f32 0.35355338, %v1286_v20  ;;  %v1296_v23 = vsel %vm971_vm3, %v1294_v18, -inf }
 0x504   : > { %v4214_v24 = vpop.f32.mrf.mxu0  ;;  %1297 = vmax.xlane.f32.xlu1 %v1296_v23  ;;  %v4209_v25 = vpop.f32.mrf.mxu1 }
 0x505   : > { %v1295_v26 = vadd.f32 %v1293_v22, %v5480_v21 }
 0x506   : > { %v1289_v27 = vpop.f32.mrf.mxu0 }
 0x507   : > { %v1299_v28 = vsel %vm971_vm3, %v1295_v26, -inf }
 0x508   : > { %1300 = vmax.xlane.f32.xlu0 %v1299_v28  ;;  %v4215_v29 = vpop.f32.mrf.mxu0 }
 0x51e   : > { %1368 = vrot.lane.b32.xlu0 %v5464_v14, %s5030_s17 }
 0x522   : > { %1511 = vrot.lane.b32.xlu0 %v5460_v11, %s5031_s22 }
 0x58d   : > { %v1298_v30 = vpop.xlane.xlu1 %1297 }
 0x58e   : > { %v1302_v31 = vsub.f32 %v1294_v18, %v1298_v30 }
 0x590   : > { %v1304_v32 = vmul.f32 1.442695, %v1302_v31 }
 0x591   : > { %v1301_v33 = vpop.xlane.xlu0 %1300 }
 0x592   : > { %4618 = vpow2.f32 %v1304_v32  ;;  %v1303_v34 = vsub.f32 %v1295_v26, %v1301_v33 }
 0x594   : > { %v1306_v35 = vmul.f32 1.442695, %v1303_v34 }
 0x595   : > { %v1369_v36 = vpop.permute.xlu0 %1368 }
 0x596   : > { %4620 = vpow2.f32 %v1306_v35  ;;  %v1374_v37 = vsel %vm1099_vm4, %v1369_v36, 0 }
 0x597   : > { %4223 = vmatpush3.bf16.msra.mxu0 %v1374_v37 }
 0x598   : > { %4234 = vmatprep.subr.bf16.mxu0 %v5024_v5 }
 0x599   : > { %v1512_v13 = vpop.permute.xlu0 %1511 }
 0x59f   : > { %v4619_v38 = vpop.eup %4618 }
 0x5a0   : > { %v1308_v39 = vsel %vm971_vm3, %v4619_v38, 0.0 }
 0x5a1   : > { %1309 = vadd.xlane.f32.xlu1 %v1308_v39 }
 0x5a3   : > { %v4621_v40 = vpop.eup %4620 }
 0x5a4   : > { %v1311_v41 = vsel %vm971_vm3, %v4621_v40, 0.0 }
 0x5a5   : > { %1312 = vadd.xlane.f32.xlu1 %v1311_v41 }
 0x5b6   : > { %1320 = vrot.lane.b32.xlu1 %v5460_v11, %s5030_s17 }
 0x5ba   : > { %1513 = vrot.lane.b32.xlu1 %v5460_v11, %s5032_s7 }
 0x5be   : > { %1563 = vrot.lane.b32.xlu1 %v5464_v14, %s5032_s7 }
 0x5c2   : > { %1561 = vrot.lane.b32.xlu1 %v5464_v14, %s5031_s22 }
 0x62a   : > { %v1310_v42 = vpop.xlane.xlu1 %1309 }
 0x62b   : > { %4622 = vrcp.f32 %v1310_v42 }
 0x62e   : > { %v1313_v43 = vpop.xlane.xlu1 %1312 }
 0x62f   : > { %4624 = vrcp.f32 %v1313_v43 }
 0x632   : > { %v1321_v44 = vpop.permute.xlu1 %1320 }
 0x633   : > { %v1326_v45 = vsel %vm1099_vm4, %v1321_v44, 0 }
 0x634   : > { %4217 = vmatpush3.bf16.msra.mxu1 %v1326_v45 }
 0x635   : > { %4228 = vmatprep.subr.bf16.mxu1 %v5024_v5 }
 0x636   : > { %v1514_v54 = vpop.permute.xlu1 %1513 }
 0x638   : > { %v4623_v46 = vpop.eup %4622 }
 0x639   : > { %v1316_v47 = vmul.f32 %v4623_v46, %v4619_v38 }
 0x63a   : > { %v1564_v55 = vpop.permute.xlu1 %1563 }
 0x63b   : > { %v1318_v48 = vpack.c.bf16 %v1316_v47, %v1316_v47  ;;  %v1569_v56 = vsel %vm971_vm3, %v1564_v55, 0 }
 0x63c   : > { %v4625_v49 = vpop.eup %4624 }
 0x63d   : > { %4219 = vmatmul.mubr.msk.bf16.vlgmr.msra.gmra.mxu1 %vm971_vm3, %v1318_v48  ;;  %v1317_v51 = vmul.f32 %v4625_v49, %v4621_v40 }
 0x63e   : > { %4230 = vmatprep.mubr.msk.bf16.mxu1 %vm5025_vm1, %v5024_v5  ;;  %v1562_v57 = vpop.permute.xlu1 %1561  ;;  %4229 = vmatpush3.bf16.msra.mxu1 %v1421_v59 }
 0x63f   : > { %v1319_v52 = vpack.c.bf16 %v1317_v51, %v1317_v51  ;;  %4240 = vmatprep.subr.bf16.mxu1 %v5024_v5 }
 0x641   : > { %4225 = vmatmul.mubr.msk.bf16.vlgmr.msra.gmra.mxu0 %vm971_vm3, %v1319_v52 }
 0x642   : > { %4235 = vmatpush3.bf16.msra.mxu0 %v1468_v53  ;;  %4236 = vmatprep.mubr.msk.bf16.mxu0 %vm5025_vm1, %v5024_v5 }
 0x643   : > { %4246 = vmatprep.subr.bf16.mxu0 %v5024_v5 }
 0x649   : > { %4237 = vmatmul.mubr.msk.bf16.vlgmr.msra.gmra.mxu0 %vm971_vm3, %v1191_v6  ;;  %v1519_v6 = vsel %vm971_vm3, %v1514_v54, 0 }
 0x64a   : > { %4247 = vmatpush3.bf16.xpose.msra.mxu0 %v1569_v56  ;;  %4248 = vmatprep.mubr.msk.bf16.mxu0 %vm5025_vm1, %v5024_v5 }
 0x64b   : > { %4258 = vmatprep.subr.bf16.mxu0 %v5024_v5 }
 0x651   : > { %4249 = vmatmul.mubr.msk.bf16.vlgmr.msra.gmra.mxu0 %vm971_vm3, %v1562_v57 }
 0x652   : > { %4260 = vmatprep.mubr.msk.bf16.mxu0 %vm5025_vm1, %v5024_v5 }
 0x6fd   : > { %v1362_v60 = vpop.f32.mrf.mxu1 }
 0x6ff   : > { %v4220_v61 = vpop.f32.mrf.mxu1 }
 0x701   : > { %v1365_v62 = vpop.f32.mrf.mxu1  ;;  %v1410_v63 = vpop.f32.mrf.mxu0 }
 0x702   : > { %v1416_v2 = vpack.c.bf16 %v1410_v63, %v1362_v60  ;;  %v961_v62 = vld [vmem:[%s5402_s27 + $0x8] sm:$0xf] }
 0x703   : > { %v4221_v3 = vpop.f32.mrf.mxu1  ;;  %v4226_v4 = vpop.f32.mrf.mxu0  ;;  %v1740_v63 = vsel %vm1099_vm4, %v961_v62, 0 }
 0x704   : > { %4231 = vmatmul.mubr.msk.bf16.vlgmr.msra.gmra.mxu1 %vm971_vm3, %v1416_v2 }
 0x705   : > { %4241 = vmatpush3.bf16.xpose.msra.mxu1 %v1519_v6  ;;  %v1413_v9 = vpop.f32.mrf.mxu0  ;;  %4242 = vmatprep.mubr.msk.bf16.mxu1 %vm5025_vm1, %v5024_v5 }
 0x706   : > { %4252 = vmatprep.subr.bf16.mxu1 %v5024_v5 }
 0x707   : > { %v4227_v10 = vpop.f32.mrf.mxu0 }
 0x709   : > { %v5572_v12 = vpop.f32.mrf.mxu0 }
 0x70b   : > { %v4238_v15 = vpop.f32.mrf.mxu0 }
 0x70c   : > { %4243 = vmatmul.mubr.msk.bf16.vlgmr.msra.gmra.mxu1 %vm971_vm3, %v1512_v13 }
 0x70d   : > { %v5575_v16 = vpop.f32.mrf.mxu0  ;;  %4254 = vmatprep.mubr.msk.bf16.mxu1 %vm5025_vm1, %v5024_v5 }
 0x70f   : > { %v4239_v17 = vpop.f32.mrf.mxu0 }
 0x711   : > { %v1605_v18 = vpop.f32.mrf.mxu0 }
 0x712   : > { %v1612_v19 = vmul.f32 0.35355338, %v1605_v18 }
 0x713   : > { %v4250_v20 = vpop.f32.mrf.mxu0 }
 0x714   : > { %v1614_v22 = vadd.f32 %v1612_v19, %v5480_v21 }
 0x715   : > { %v1608_v23 = vpop.f32.mrf.mxu0 }
 0x716   : > { %v1618_v24 = vsel %vm971_vm3, %v1614_v22, -inf }
 0x717   : > { %1619 = vmax.xlane.f32.xlu1 %v1618_v24  ;;  %v4251_v25 = vpop.f32.mrf.mxu0 }
 0x728   : > { %1639 = vrot.lane.b32.xlu1 %v5460_v11, %s5033_s16 }
 0x72c   : > { %1787 = vrot.lane.b32.xlu1 %v5460_v11, %s5034_s19 }
 0x730   : > { %1837 = vrot.lane.b32.xlu1 %v5464_v14, %s5034_s19 }
 0x734   : > { %1835 = vrot.lane.b32.xlu1 %v5464_v14, %s5035_s29 }
 0x7a0   : > { %v1620_v26 = vpop.xlane.xlu1 %1619 }
 0x7a1   : > { %v1622_v29 = vsub.f32 %v1614_v22, %v1620_v26 }
 0x7a3   : > { %v1625_v30 = vmul.f32 1.442695, %v1622_v29 }
 0x7a4   : > { %v1640_v27 = vpop.permute.xlu1 %1639 }
 0x7a5   : > { %v1645_v28 = vsel %vm1099_vm4, %v1640_v27, 0  ;;  %4626 = vpow2.f32 %v1625_v30 }
 0x7a6   : > { %4253 = vmatpush3.bf16.msra.mxu1 %v1645_v28 }
 0x7a7   : > { %4264 = vmatprep.subr.bf16.mxu1 %v5024_v5 }
 0x7a8   : > { %v1788_v55 = vpop.permute.xlu1 %1787 }
 0x7a9   : > { %v1793_v57 = vsel %vm971_vm3, %v1788_v55, 0 }
 0x7ac   : > { %v1838_v10 = vpop.permute.xlu1 %1837 }
 0x7ad   : > { %v1843_v23 = vsel %vm971_vm3, %v1838_v10, 0 }
 0x7b0   : > { %v1836_v28 = vpop.permute.xlu1 %1835 }
 0x7b2   : > { %v4627_v41 = vpop.eup %4626 }
 0x7b3   : > { %v1630_v43 = vsel %vm971_vm3, %v4627_v41, 0.0 }
 0x7c4   : > { %v5591_v31 = vpop.f32.mrf.mxu1 }
 0x7c6   : > { %v4232_v32 = vpop.f32.mrf.mxu1 }
 0x7c8   : > { %v5593_v33 = vpop.f32.mrf.mxu1 }
 0x7ca   : > { %v4233_v34 = vpop.f32.mrf.mxu1 }
 0x7cc   : > { %v1555_v35 = vpop.f32.mrf.mxu1 }
 0x7cd   : > { %v1611_v36 = vmul.f32 0.35355338, %v1555_v35 }
 0x7ce   : > { %v4244_v37 = vpop.f32.mrf.mxu1 }
 0x7cf   : > { %v1613_v38 = vadd.f32 %v1611_v36, %v5480_v21  ;;  %v1505_v36 = vadd.f32 %v5572_v12, %v5591_v31 }
 0x7d0   : > { %v1558_v39 = vpop.f32.mrf.mxu1 }
 0x7d1   : > { %v1615_v40 = vsel %vm971_vm3, %v1613_v38, -inf }
 0x7d2   : > { %1616 = vmax.xlane.f32.xlu0 %v1615_v40  ;;  %v4245_v42 = vpop.f32.mrf.mxu1  ;;  %v1508_v40 = vadd.f32 %v5575_v16, %v5593_v33 }
 0x7d6   : > { %1631 = vadd.xlane.f32.xlu0 %v1630_v43 }
 0x85b   : > { %v1617_v44 = vpop.xlane.xlu0 %1616 }
 0x85c   : > { %v1621_v45 = vsub.f32 %v1613_v38, %v1617_v44 }
 0x85e   : > { %v1623_v46 = vmul.f32 1.442695, %v1621_v45 }
 0x85f   : > { %v1632_v49 = vpop.xlane.xlu0 %1631 }
 0x860   : > { %4628 = vpow2.f32 %v1623_v46 }
 0x861   : > { %4630 = vrcp.f32 %v1632_v49 }
 0x86d   : > { %v4629_v47 = vpop.eup %4628 }
 0x86e   : > { %v1627_v48 = vsel %vm971_vm3, %v4629_v47, 0.0  ;;  %v4631_v50 = vpop.eup %4630 }
 0x86f   : > { %1628 = vadd.xlane.f32.xlu0 %v1627_v48  ;;  %v1636_v52 = vmul.f32 %v4631_v50, %v4627_v41 }
 0x871   : > { %v1638_v56 = vpack.c.bf16 %v1636_v52, %v1636_v52 }
 0x885   : > { %1687 = vrot.lane.b32.xlu0 %v5464_v14, %s5033_s16 }
 0x889   : > { %1785 = vrot.lane.b32.xlu0 %v5460_v11, %s5035_s29 }
 0x8f8   : > { %v1629_v51 = vpop.xlane.xlu0 %1628 }
 0x8f9   : > { %4632 = vrcp.f32 %v1629_v51 }
 0x8fc   : > { %v1688_v53 = vpop.permute.xlu0 %1687 }
 0x8fd   : > { %v1693_v54 = vsel %vm1099_vm4, %v1688_v53, 0 }
 0x8fe   : > { %4259 = vmatpush3.bf16.msra.mxu0 %v1693_v54 }
 0x8ff   : > { %4270 = vmatprep.subr.bf16.mxu0 %v5024_v5 }
 0x900   : > { %v1786_v60 = vpop.permute.xlu0 %1785 }
 0x901   : > { %4261 = vmatmul.mubr.msk.bf16.vlgmr.msra.gmra.mxu0 %vm971_vm3, %v1638_v56  ;;  %v962_v56 = vld [vmem:[%s5402_s27 + $0xc] sm:$0xf]  ;;  %s6093_s27 = sld [smem:[#allocation44_spill]] (!%p4047_p12) }
 0x902   : > { %4271 = vmatpush3.bf16.xpose.msra.mxu0 %v1793_v57  ;;  %4272 = vmatprep.mubr.msk.bf16.mxu0 %vm5025_vm1, %v5024_v5  ;;  %v2014_v57 = vsel %vm1099_vm4, %v962_v56, 0 }
 0x903   : > { %4282 = vmatprep.subr.bf16.mxu0 %v5024_v5 }
 0x906   : > { %v4633_v58 = vpop.eup %4632 }
 0x907   : > { %v1635_v59 = vmul.f32 %v4633_v58, %v4629_v47 }
 0x909   : > { %4273 = vmatmul.mubr.msk.bf16.vlgmr.msra.gmra.mxu0 %vm971_vm3, %v1786_v60  ;;  %v1637_v61 = vpack.c.bf16 %v1635_v59, %v1635_v59 }
 0x90a   : > { %4284 = vmatprep.mubr.msk.bf16.mxu0 %vm5025_vm1, %v5024_v5 }
 0x90b   : > { %4255 = vmatmul.mubr.msk.bf16.vlgmr.msra.gmra.mxu1 %vm971_vm3, %v1637_v61 }
 0x90c   : > { %4266 = vmatprep.mubr.msk.bf16.mxu1 %vm5025_vm1, %v5024_v5  ;;  %4265 = vmatpush3.bf16.msra.mxu1 %v1740_v63 }
 0x90d   : > { %4276 = vmatprep.subr.bf16.mxu1 %v5024_v5 }
 0x9c1   : > { %v1729_v2 = vpop.f32.mrf.mxu0 }
 0x9c3   : > { %v4262_v3 = vpop.f32.mrf.mxu0 }
 0x9c5   : > { %v1732_v4 = vpop.f32.mrf.mxu0 }
 0x9c7   : > { %v4263_v6 = vpop.f32.mrf.mxu0 }
 0x9c9   : > { %v1829_v9 = vpop.f32.mrf.mxu0 }
 0x9ca   : > { %v1885_v13 = vmul.f32 0.35355338, %v1829_v9 }
 0x9cb   : > { %v1681_v15 = vpop.f32.mrf.mxu1  ;;  %v4274_v17 = vpop.f32.mrf.mxu0 }
 0x9cc   : > { %v1735_v18 = vpack.c.bf16 %v1729_v2, %v1681_v15  ;;  %v1887_v19 = vadd.f32 %v1885_v13, %v5480_v21 }
 0x9cd   : > { %v4256_v20 = vpop.f32.mrf.mxu1  ;;  %v1832_v22 = vpop.f32.mrf.mxu0 }
 0x9ce   : > { %4267 = vmatmul.mubr.msk.bf16.vlgmr.msra.gmra.mxu1 %vm971_vm3, %v1735_v18  ;;  %v1889_v24 = vsel %vm971_vm3, %v1887_v19, -inf }
 0x9cf   : > { %4277 = vmatpush3.bf16.xpose.msra.mxu1 %v1843_v23  ;;  %1890 = vmax.xlane.f32.xlu0 %v1889_v24  ;;  %v1684_v25 = vpop.f32.mrf.mxu1  ;;  %v4275_v26 = vpop.f32.mrf.mxu0 }
 0x9d0   : > { %4278 = vmatprep.mubr.msk.bf16.mxu1 %vm5025_vm1, %v5024_v5  ;;  %4288 = vmatprep.subr.bf16.mxu1 %v5024_v5 }
 0x9d1   : > { %v4257_v27 = vpop.f32.mrf.mxu1 }
 0x9d6   : > { %4279 = vmatmul.mubr.msk.bf16.vlgmr.msra.gmra.mxu1 %vm971_vm3, %v1836_v28 }
 0x9d7   : > { %4290 = vmatprep.mubr.msk.bf16.mxu1 %vm5025_vm1, %v5024_v5 }
 0xa58   : > { %v1891_v29 = vpop.xlane.xlu0 %1890 }
 0xa59   : > { %v1895_v30 = vsub.f32 %v1887_v19, %v1891_v29 }
 0xa5b   : > { %v1897_v32 = vmul.f32 1.442695, %v1895_v30 }
 0xa5d   : > { %4634 = vpow2.f32 %v1897_v32 }
 0xa6a   : > { %v4635_v34 = vpop.eup %4634 }
 0xa6b   : > { %v1901_v35 = vsel %vm971_vm3, %v4635_v34, 0.0 }
 0xa6c   : > { %1902 = vadd.xlane.f32.xlu0 %v1901_v35 }
 0xa8e   : > { %v1776_v37 = vpop.f32.mrf.mxu1 }
 0xa8f   : > { %v1783_v38 = vadd.f32 %v1776_v37, %v1505_v36 }
 0xa90   : > { %v4268_v39 = vpop.f32.mrf.mxu1 }
 0xa91   : > { %v4599_v39 = vld [vmem:[%s5412_s13] sm:$0xff]  }
 0xa92   : > { %v1779_v41 = vpop.f32.mrf.mxu1 }
 0xa93   : > { %v1784_v42 = vadd.f32 %v1779_v41, %v1508_v40  ;;  %v4600_v40 = vld [vmem:[#allocation6] sm:$0xff]   ;;  %v4601_v41 = vld [vmem:[#allocation6 + $0x8] sm:$0xff]  }
 0xa94   : > { %v4269_v43 = vpop.f32.mrf.mxu1 }
 0xa95   : > { %v4603_v43 = vld [vmem:[%s5407_s14] sm:$0xff]  }
 0xa96   : > { %v1879_v44 = vpop.f32.mrf.mxu1 }
 0xa97   : > { %v1886_v45 = vmul.f32 0.35355338, %v1879_v44 }
 0xa98   : > { %v4280_v46 = vpop.f32.mrf.mxu1 }
 0xa99   : > { %v1888_v47 = vadd.f32 %v1886_v45, %v5480_v21 }
 0xa9a   : > { %v1882_v48 = vpop.f32.mrf.mxu1 }
 0xa9b   : > { %v1892_v49 = vsel %vm971_vm3, %v1888_v47, -inf }
 0xa9c   : > { %1893 = vmax.xlane.f32.xlu1 %v1892_v49  ;;  %v4281_v50 = vpop.f32.mrf.mxu1 }
 0xa9d   : > { %v2088_v50 = vlaneseq }
 0xaad   : > { %1913 = vrot.lane.b32.xlu1 %v5460_v11, %s5036_s2 }
 0xaf5   : > { %v1903_v12 = vpop.xlane.xlu0 %1902 }
 0xaf6   : > { %4636 = vrcp.f32 %v1903_v12  ;;  %v5669_v12 = vshrl.u32 %v2088_v50, 7 }
 0xb03   : > { %v4637_v31 = vpop.eup %4636 }
 0xb04   : > { %v1909_v52 = vmul.f32 %v4637_v31, %v4635_v34  ;;  %v2090_v31 = vsub.s32 0, %v5669_v12 }
 0xb06   : > { %v1911_v54 = vpack.c.bf16 %v1909_v52, %v1909_v52 }
 0xb25   : > { %v1894_v16 = vpop.xlane.xlu1 %1893 }
 0xb26   : > { %v1896_v33 = vsub.f32 %v1888_v47, %v1894_v16 }
 0xb28   : > { %v1899_v51 = vmul.f32 1.442695, %v1896_v33 }
 0xb29   : > { %v1914_v53 = vpop.permute.xlu1 %1913 }
 0xb2a   : > { %4638 = vpow2.f32 %v1899_v51  ;;  %v1919_v21 = vsel %vm1099_vm4, %v1914_v53, 0  ;;  %v2091_v51 = vrot.slane %v5425_v0, %v2090_v31 }
 0xb2b   : > { %4283 = vmatpush3.bf16.msra.mxu0 %v1919_v21 }
 0xb2c   : > { %4294 = vmatprep.subr.bf16.mxu0 %v5024_v5 }
 0xb2e   : > { %4285 = vmatmul.mubr.msk.bf16.vlgmr.msra.gmra.mxu0 %vm971_vm3, %v1911_v54  ;;  %v2097_v54 = vrot.slane %v5427_v1, %v2090_v31 }
 0xb2f   : > { %4296 = vmatprep.mubr.msk.bf16.mxu0 %vm5025_vm1, %v5024_v5  ;;  %4295 = vmatpush3.bf16.msra.mxu0 %v2014_v57 }
 0xb37   : > { %v4639_v11 = vpop.eup %4638 }
 0xb38   : > { %v1904_v55 = vsel %vm971_vm3, %v4639_v11, 0.0 }
 0xb39   : > { %1905 = vadd.xlane.f32.xlu0 %v1904_v55 }
 0xb4f   : > { %1961 = vrot.lane.b32.xlu0 %v5464_v14, %s5036_s2 }
 0xbc2   : > { %v1906_v58 = vpop.xlane.xlu0 %1905 }
 0xbc3   : > { %4640 = vrcp.f32 %v1906_v58 }
 0xbc6   : > { %v1962_v59 = vpop.permute.xlu0 %1961 }
 0xbc7   : > { %v1967_v60 = vsel %vm1099_vm4, %v1962_v59, 0 }
 0xbc8   : > { %4289 = vmatpush3.bf16.msra.mxu1 %v1967_v60 }
 0xbc9   : > { %4300 = vmatprep.subr.bf16.mxu1 %v5024_v5 }
 0xbd0   : > { %v4641_v61 = vpop.eup %4640 }
 0xbd1   : > { %v1910_v62 = vmul.f32 %v4641_v61, %v4639_v11 }
 0xbd3   : > { %v1912_v63 = vpack.c.bf16 %v1910_v62, %v1910_v62 }
 0xbd5   : > { %4291 = vmatmul.mubr.msk.bf16.vlgmr.msra.gmra.mxu1 %vm971_vm3, %v1912_v63 }
 0xbd6   : > { %4304 = vmatprep.mubr.msk.bf16.mxu1 %vm5025_vm1, %v5024_v5 }
 0xbee   : > { %v1955_v14 = vpop.f32.mrf.mxu0 }
 0xbf0   : > { %v4286_v2 = vpop.f32.mrf.mxu0 }
 0xbf2   : > { %v1958_v3 = vpop.f32.mrf.mxu0 }
 0xbf4   : > { %v4287_v4 = vpop.f32.mrf.mxu0 }
 0xc95   : > { %v2003_v6 = vpop.f32.mrf.mxu1 }
 0xc96   : > { %v2009_v9 = vpack.c.bf16 %v2003_v6, %v1955_v14 }
 0xc97   : > { %v4292_v10 = vpop.f32.mrf.mxu1 }
 0xc98   : > { %4297 = vmatmul.mubr.msk.bf16.vlgmr.msra.gmra.mxu0 %vm971_vm3, %v2009_v9 }
 0xc99   : > { %v2006_v13 = vpop.f32.mrf.mxu1  ;;  %4312 = vmatprep.mubr.msk.bf16.mxu0 %vm894_vm2, %v4600_v40 }
 0xc9b   : > { %v4293_v15 = vpop.f32.mrf.mxu1 }
 0xd58   : > { %v2050_v17 = vpop.f32.mrf.mxu0 }
 0xd59   : > { %v2057_v18 = vadd.f32 %v2050_v17, %v1783_v38  ;;  %v5705_v17 = vld [vmem:[#allocation9] ss:$0 sm:$0xff] }
 0xd5a   : > { %v4298_v19 = vpop.f32.mrf.mxu0 }
 0xd5b   : > { %v2059_v20 = vadd.f32 %v2057_v18, %v5441_v7 }
 0xd5c   : > { %v2053_v22 = vpop.f32.mrf.mxu0 }
 0xd5d   : > { %v2058_v23 = vadd.f32 %v2053_v22, %v1784_v42  ;;  %v2061_v24 = vsel %vm894_vm2, %v2059_v20, 0.0  ;;  %v4602_v42 = vld [vmem:[%s5407_s14 + $0x8] sm:$0xff]   ;;  %s6094_s14 = smov (!%p4047_p12), %s6093_s27 }
 0xd5e   : > { %2062 = vadd.xlane.f32.xlu1 %v2061_v24  ;;  %v4299_v25 = vpop.f32.mrf.mxu0  ;;  %4301 = vmatpush3.bf16.msra.mxu1 %v4602_v42  ;;  %v5708_v24 = vld [vmem:[#allocation9 + $0x1] ss:$0 sm:$0xff] }
 0xd5f   : > { %v2060_v26 = vadd.f32 %v2058_v23, %v5443_v8  ;;  %v4598_v8 = vld [vmem:[%s5412_s13 + $0x8] sm:$0xff]   ;;  %4302 = vmatprep.subr.bf16.mxu1 %v5024_v5 }
 0xd60   : > { %4308 = vmatprep.subr.bf16.mxu0 %v4598_v8 }
 0xd61   : > { %v2064_v27 = vsel %vm894_vm2, %v2060_v26, 0.0  ;;  %4309 = vmatpush3.bf16.msra.mxu0 %v4598_v8 }
 0xd62   : > { %2065 = vadd.xlane.f32.xlu0 %v2064_v27  ;;  %4310 = vmatprep.subr.bf16.mxu0 %v4599_v39 }
 0xd63   : > { %4303 = vmatpush3.bf16.msra.mxu1 %v4603_v43 }
 0xd64   : > { %4316 = vmatprep.subr.bf16.mxu1 %v5024_v5 }
 0xd65   : > { %4311 = vmatpush3.bf16.msra.mxu0 %v4599_v39 }
 0xd66   : > { %4322 = vmatprep.subr.bf16.mxu0 %v5024_v5 }
 0xd68   : > { %4313 = vmatmul.mubr.msk.bf16.vlgmr.msra.gmra.mxu0 %vm894_vm2, %v4601_v41 }
 0xd69   : > { %4324 = vmatprep.mubr.msk.bf16.mxu0 %vm5025_vm1, %v5024_v5 }
 0xde7   : > { %v2063_v28 = vpop.xlane.xlu1 %2062 }
 0xde8   : > { %v2068_v29 = vmul.f32 0.03125, %v2063_v28 }
 0xdea   : > { %v2070_v30 = vsub.f32 %v2059_v20, %v2068_v29 }
 0xdeb   : > { %v2066_v32 = vpop.xlane.xlu0 %2065 }
 0xdec   : > { %v2069_v34 = vmul.f32 0.03125, %v2066_v32  ;;  %v2072_v35 = vmul.f32 %v2070_v30, %v2070_v30 }
 0xdee   : > { %v2071_v7 = vsub.f32 %v2060_v26, %v2069_v34  ;;  %v2074_v36 = vsel %vm894_vm2, %v2072_v35, 0.0 }
 0xdef   : > { %2075 = vadd.xlane.f32.xlu1 %v2074_v36 }
 0xdf0   : > { %v2073_v37 = vmul.f32 %v2071_v7, %v2071_v7 }
 0xdf2   : > { %v2077_v38 = vsel %vm894_vm2, %v2073_v37, 0.0 }
 0xdf3   : > { %2078 = vadd.xlane.f32.xlu0 %v2077_v38 }
 0xe28   : > { %v4314_v58 = vpop.f32.mrf.mxu0 }
 0xe2a   : > { %v2232_v59 = vpop.f32.mrf.mxu0 }
 0xe2c   : > { %v4315_v60 = vpop.f32.mrf.mxu0 }
 0xe2d   : > { %v5683_v61 = vpack.c.bf16 %v4315_v60, %v4314_v58 }
 0xe2e   : > { %v2235_v62 = vpop.f32.mrf.mxu0 }
 0xe2f   : > { %v5685_v63 = vpack.c.bf16 %v2235_v62, %v2232_v59  ;;  %v2310_v14 = vsel %vm971_vm3, %v5683_v61, 0 }
 0xe30   : > { %4323 = vmatpush3.bf16.xpose.msra.mxu0 %v2310_v14 }
 0xe31   : > { %v2264_v2 = vsel %vm971_vm3, %v5685_v63, 0  ;;  %4334 = vmatprep.subr.bf16.mxu0 %v5024_v5 }
 0xe78   : > { %v2076_v44 = vpop.xlane.xlu1 %2075 }
 0xe79   : > { %v2080_v45 = vmul.f32 0.03125, %v2076_v44 }
 0xe7b   : > { %v2082_v46 = vadd.f32 1e-05, %v2080_v45 }
 0xe7c   : > { %v2079_v47 = vpop.xlane.xlu0 %2078 }
 0xe7d   : > { %4642 = vrsqrt.f32 %v2082_v46  ;;  %v2081_v48 = vmul.f32 0.03125, %v2079_v47 }
 0xe7f   : > { %v2083_v49 = vadd.f32 1e-05, %v2081_v48 }
 0xe81   : > { %4644 = vrsqrt.f32 %v2083_v49 }
 0xe8a   : > { %v4643_v16 = vpop.eup %4642 }
 0xe8b   : > { %v2086_v33 = vmul.f32 %v4643_v16, %v2070_v30 }
 0xe8d   : > { %v2092_v21 = vmul.f32 %v2091_v51, %v2086_v33 }
 0xe8e   : > { %v4645_v52 = vpop.eup %4644 }
 0xe8f   : > { %v2087_v53 = vmul.f32 %v4645_v52, %v2071_v7  ;;  %v5674_v55 = vadd.f32 %v2097_v54, %v2092_v21 }
 0xe91   : > { %v2093_v11 = vmul.f32 %v2091_v51, %v2087_v53 }
 0xe93   : > { %v5676_v56 = vadd.f32 %v2097_v54, %v2093_v11 }
 0xe95   : > { %v2100_v57 = vpack.c.bf16 %v5676_v56, %v5674_v55 }
 0xe97   : > { %4305 = vmatmul.mubr.msk.bf16.vlgmr.msra.gmra.mxu1 %vm894_vm2, %v2100_v57 }
 0xe98   : > { %4318 = vmatprep.mubr.msk.bf16.mxu1 %vm5025_vm1, %v5024_v5  ;;  %4317 = vmatpush3.bf16.xpose.msra.mxu1 %v2264_v2 }
 0xe99   : > { %4328 = vmatprep.subr.bf16.mxu1 %v5024_v5 }
 0xf57   : > { %v2154_v3 = vpop.f32.mrf.mxu1 }
 0xf58   : > { %v5693_v4 = vpack.c.bf16 %v2154_v3, %v2154_v3 }
 0xf59   : > { %v4306_v6 = vpop.f32.mrf.mxu1 }
 0xf5a   : > { %4319 = vmatmul.mubr.msk.bf16.vlgmr.msra.gmra.mxu1 %vm971_vm3, %v5693_v4 }
 0xf5b   : > { %v2157_v9 = vpop.f32.mrf.mxu1  ;;  %4330 = vmatprep.mubr.msk.bf16.mxu1 %vm5025_vm1, %v5024_v5 }
 0xf5c   : > { %v5699_v10 = vpack.c.bf16 %v2157_v9, %v2157_v9 }
 0xf5d   : > { %v4307_v13 = vpop.f32.mrf.mxu1 }
 0xf5e   : > { %4325 = vmatmul.mubr.msk.bf16.vlgmr.msra.gmra.mxu0 %vm971_vm3, %v5699_v10 }
 0xf5f   : > { %4336 = vmatprep.mubr.msk.bf16.mxu0 %vm5025_vm1, %v5024_v5 }
0x101a   : > { %v2300_v15 = vpop.f32.mrf.mxu1 }
0x101b   : > { %v2352_v18 = vmul.f32 0.35355338, %v2300_v15 }
0x101c   : > { %v4320_v19 = vpop.f32.mrf.mxu1 }
0x101d   : > { %v2366_v20 = vadd.f32 %v5705_v17, %v2352_v18 }
0x101e   : > { %v2303_v22 = vpop.f32.mrf.mxu1  ;;  %v2346_v23 = vpop.f32.mrf.mxu0 }
0x101f   : > { %v2353_v25 = vmul.f32 0.35355338, %v2346_v23  ;;  %v2369_v26 = vsel %vm2368_vm5, %v2366_v20, -inf }
0x1020   : > { %v4326_v27 = vpop.f32.mrf.mxu0  ;;  %2370 = vmax.xlane.f32.xlu1 %v2369_v26  ;;  %v4321_v28 = vpop.f32.mrf.mxu1 }
0x1021   : > { %v2367_v29 = vadd.f32 %v5708_v24, %v2353_v25 }
0x1022   : > { %v2349_v30 = vpop.f32.mrf.mxu0 }
0x1023   : > { %v2372_v32 = vsel %vm2368_vm5, %v2367_v29, -inf }
0x1024   : > { %2373 = vmax.xlane.f32.xlu0 %v2372_v32  ;;  %v4327_v34 = vpop.f32.mrf.mxu0 }
0x1031   : > { %2394 = vrot.lane.b32.xlu1 %v5685_v63, %s5026_s3 }
0x10a9   : > { %v2371_v35 = vpop.xlane.xlu1 %2370 }
0x10aa   : > { %v2375_v7 = vsub.f32 %v2366_v20, %v2371_v35 }
0x10ac   : > { %v2377_v36 = vmul.f32 1.442695, %v2375_v7 }
0x10ad   : > { %v2374_v37 = vpop.xlane.xlu0 %2373  ;;  %v2395_v38 = vpop.permute.xlu1 %2394 }
0x10ae   : > { %4646 = vpow2.f32 %v2377_v36  ;;  %v2376_v8 = vsub.f32 %v2367_v29, %v2374_v37  ;;  %4329 = vmatpush3.bf16.msra.mxu1 %v2395_v38 }
0x10af   : > { %4340 = vmatprep.subr.bf16.mxu1 %v5024_v5 }
0x10b0   : > { %v2379_v39 = vmul.f32 1.442695, %v2376_v8 }
0x10b2   : > { %4648 = vpow2.f32 %v2379_v39 }
0x10bb   : > { %v4647_v40 = vpop.eup %4646 }
0x10bc   : > { %v2381_v41 = vsel %vm2368_vm5, %v4647_v40, 0.0 }
0x10bd   : > { %2382 = vadd.xlane.f32.xlu1 %v2381_v41 }
0x10bf   : > { %v4649_v42 = vpop.eup %4648 }
0x10c0   : > { %v2384_v43 = vsel %vm2368_vm5, %v4649_v42, 0.0 }
0x10c1   : > { %2385 = vadd.xlane.f32.xlu0 %v2384_v43 }
0x10ce   : > { %2490 = vrot.lane.b32.xlu1 %v5685_v63, %s5029_s10 }
0x10d2   : > { %2540 = vrot.lane.b32.xlu1 %v5683_v61, %s5029_s10 }
0x10d6   : > { %2538 = vrot.lane.b32.xlu1 %v5699_v10, %s5029_s10 }
0x10d7   : > { %2441 = vrot.lane.b32.xlu0 %v5683_v61, %s5026_s3 }
0x10db   : > { %2488 = vrot.lane.b32.xlu0 %v5693_v4, %s5029_s10 }
0x1146   : > { %v2383_v44 = vpop.xlane.xlu1 %2382 }
0x1147   : > { %4650 = vrcp.f32 %v2383_v44 }
0x114a   : > { %v2386_v45 = vpop.xlane.xlu0 %2385  ;;  %v2491_v48 = vpop.permute.xlu1 %2490 }
0x114b   : > { %4652 = vrcp.f32 %v2386_v45  ;;  %v2496_v16 = vsel %vm971_vm3, %v2491_v48, 0  ;;  %v2249_v48 = vld [vmem:[%s5388_s11] sm:$0xf] }
0x114e   : > { %v2442_v46 = vpop.permute.xlu0 %2441  ;;  %v2541_v51 = vpop.permute.xlu1 %2540 }
0x114f   : > { %4335 = vmatpush3.bf16.msra.mxu0 %v2442_v46  ;;  %v2546_v53 = vsel %vm971_vm3, %v2541_v51, 0 }
0x1150   : > { %4346 = vmatprep.subr.bf16.mxu0 %v5024_v5 }
0x1152   : > { %v2489_v21 = vpop.permute.xlu0 %2488  ;;  %v2539_v54 = vpop.permute.xlu1 %2538 }
0x1154   : > { %v4651_v47 = vpop.eup %4650 }
0x1155   : > { %v2389_v49 = vmul.f32 %v4651_v47, %v4647_v40 }
0x1157   : > { %v2391_v50 = vpack.c.bf16 %v2389_v49, %v2389_v49 }
0x1158   : > { %v4653_v31 = vpop.eup %4652 }
0x1159   : > { %4331 = vmatmul.mubr.msk.bf16.vlgmr.msra.gmra.mxu1 %vm2368_vm5, %v2391_v50  ;;  %v2390_v33 = vmul.f32 %v4653_v31, %v4649_v42  ;;  %v2760_v31 = vsel %vm1099_vm4, %v2249_v48, 0 }
0x115a   : > { %4341 = vmatpush3.bf16.xpose.msra.mxu1 %v2496_v16  ;;  %4342 = vmatprep.mubr.msk.bf16.mxu1 %vm5025_vm1, %v5024_v5 }
0x115b   : > { %v2392_v52 = vpack.c.bf16 %v2390_v33, %v2390_v33  ;;  %4352 = vmatprep.subr.bf16.mxu1 %v5024_v5 }
0x115d   : > { %4337 = vmatmul.mubr.msk.bf16.vlgmr.msra.gmra.mxu0 %vm2368_vm5, %v2392_v52 }
0x115e   : > { %4347 = vmatpush3.bf16.xpose.msra.mxu0 %v2546_v53  ;;  %4348 = vmatprep.mubr.msk.bf16.mxu0 %vm5025_vm1, %v5024_v5  ;;  %v2250_v53 = vld [vmem:[%s5388_s11 + $0x4] sm:$0xf] }
0x115f   : > { %4358 = vmatprep.subr.bf16.mxu0 %v5024_v5 }
0x1161   : > { %4343 = vmatmul.mubr.msk.bf16.vlgmr.msra.gmra.mxu1 %vm971_vm3, %v2489_v21  ;;  %v2713_v21 = vsel %vm1099_vm4, %v2250_v53, 0 }
0x1162   : > { %4354 = vmatprep.mubr.msk.bf16.mxu1 %vm5025_vm1, %v5024_v5 }
0x1165   : > { %4349 = vmatmul.mubr.msk.bf16.vlgmr.msra.gmra.mxu0 %vm971_vm3, %v2539_v54 }
0x1166   : > { %4360 = vmatprep.mubr.msk.bf16.mxu0 %vm5025_vm1, %v5024_v5 }
0x1219   : > { %v5745_v11 = vpop.f32.mrf.mxu1 }
0x121b   : > { %v4332_v57 = vpop.f32.mrf.mxu1 }
0x121d   : > { %v2437_v58 = vpop.f32.mrf.mxu1  ;;  %v5747_v59 = vpop.f32.mrf.mxu0 }
0x121e   : > { %v2487_v60 = vpack.c.bf16 %v5747_v59, %v5745_v11 }
0x121f   : > { %v4333_v62 = vpop.f32.mrf.mxu1  ;;  %v4338_v14 = vpop.f32.mrf.mxu0 }
0x1221   : > { %v2484_v2 = vpop.f32.mrf.mxu0  ;;  %v2532_v3 = vpop.f32.mrf.mxu1 }
0x1222   : > { %v2588_v6 = vmul.f32 0.35355338, %v2532_v3 }
0x1223   : > { %v4339_v9 = vpop.f32.mrf.mxu0  ;;  %v4344_v13 = vpop.f32.mrf.mxu1 }
0x1224   : > { %v2590_v15 = vadd.f32 %v5705_v17, %v2588_v6 }
0x1225   : > { %v2535_v18 = vpop.f32.mrf.mxu1  ;;  %v2582_v19 = vpop.f32.mrf.mxu0 }
0x1226   : > { %v2589_v20 = vmul.f32 0.35355338, %v2582_v19  ;;  %v2592_v22 = vsel %vm2368_vm5, %v2590_v15, -inf }
0x1227   : > { %v4350_v23 = vpop.f32.mrf.mxu0  ;;  %2593 = vmax.xlane.f32.xlu0 %v2592_v22  ;;  %v4345_v25 = vpop.f32.mrf.mxu1 }
0x1228   : > { %v2591_v26 = vadd.f32 %v5708_v24, %v2589_v20 }
0x1229   : > { %v2585_v27 = vpop.f32.mrf.mxu0 }
0x122a   : > { %v2595_v28 = vsel %vm2368_vm5, %v2591_v26, -inf }
0x122b   : > { %2596 = vmax.xlane.f32.xlu1 %v2595_v28  ;;  %v4351_v29 = vpop.f32.mrf.mxu0 }
0x123c   : > { %2616 = vrot.lane.b32.xlu1 %v5685_v63, %s5028_s5 }
0x1240   : > { %2805 = vrot.lane.b32.xlu1 %v5685_v63, %s5031_s22 }
0x1244   : > { %2855 = vrot.lane.b32.xlu1 %v5683_v61, %s5031_s22 }
0x1248   : > { %2853 = vrot.lane.b32.xlu1 %v5699_v10, %s5031_s22 }
0x12b0   : > { %v2594_v30 = vpop.xlane.xlu0 %2593 }
0x12b1   : > { %v2598_v32 = vsub.f32 %v2590_v15, %v2594_v30 }
0x12b3   : > { %v2600_v34 = vmul.f32 1.442695, %v2598_v32 }
0x12b4   : > { %v2597_v35 = vpop.xlane.xlu1 %2596 }
0x12b5   : > { %4654 = vpow2.f32 %v2600_v34  ;;  %v2599_v7 = vsub.f32 %v2591_v26, %v2597_v35 }
0x12b7   : > { %v2602_v36 = vmul.f32 1.442695, %v2599_v7 }
0x12b8   : > { %v2617_v37 = vpop.permute.xlu1 %2616 }
0x12b9   : > { %4656 = vpow2.f32 %v2602_v36  ;;  %4353 = vmatpush3.bf16.msra.mxu1 %v2617_v37 }
0x12ba   : > { %4364 = vmatprep.subr.bf16.mxu1 %v5024_v5 }
0x12bc   : > { %v2806_v16 = vpop.permute.xlu1 %2805 }
0x12bd   : > { %v2811_v14 = vsel %vm971_vm3, %v2806_v16, 0 }
0x12c0   : > { %v2856_v33 = vpop.permute.xlu1 %2855 }
0x12c1   : > { %v2861_v51 = vsel %vm971_vm3, %v2856_v33, 0 }
0x12c2   : > { %v4655_v38 = vpop.eup %4654 }
0x12c3   : > { %v2604_v8 = vsel %vm2368_vm5, %v4655_v38, 0.0 }
0x12c4   : > { %2605 = vadd.xlane.f32.xlu0 %v2604_v8  ;;  %v2854_v52 = vpop.permute.xlu1 %2853 }
0x12c6   : > { %v4657_v39 = vpop.eup %4656 }
0x12c7   : > { %v2607_v40 = vsel %vm2368_vm5, %v4657_v39, 0.0 }
0x12c8   : > { %2608 = vadd.xlane.f32.xlu0 %v2607_v40 }
0x12de   : > { %2662 = vrot.lane.b32.xlu0 %v5683_v61, %s5028_s5 }
0x12e2   : > { %2803 = vrot.lane.b32.xlu0 %v5693_v4, %s5031_s22 }
0x134d   : > { %v2606_v41 = vpop.xlane.xlu0 %2605 }
0x134e   : > { %4658 = vrcp.f32 %v2606_v41 }
0x1351   : > { %v2609_v42 = vpop.xlane.xlu0 %2608 }
0x1352   : > { %4660 = vrcp.f32 %v2609_v42 }
0x1355   : > { %v2663_v43 = vpop.permute.xlu0 %2662 }
0x1356   : > { %4359 = vmatpush3.bf16.msra.mxu0 %v2663_v43 }
0x1357   : > { %4370 = vmatprep.subr.bf16.mxu0 %v5024_v5 }
0x1359   : > { %v2804_v9 = vpop.permute.xlu0 %2803 }
0x135b   : > { %v4659_v44 = vpop.eup %4658 }
0x135c   : > { %v2612_v45 = vmul.f32 %v4659_v44, %v4655_v38 }
0x135e   : > { %v2614_v46 = vpack.c.bf16 %v2612_v45, %v2612_v45 }
0x135f   : > { %v4661_v47 = vpop.eup %4660 }
0x1360   : > { %4355 = vmatmul.mubr.msk.bf16.vlgmr.msra.gmra.mxu1 %vm2368_vm5, %v2614_v46  ;;  %v2613_v49 = vmul.f32 %v4661_v47, %v4657_v39 }
0x1361   : > { %4366 = vmatprep.mubr.msk.bf16.mxu1 %vm5025_vm1, %v5024_v5  ;;  %4365 = vmatpush3.bf16.msra.mxu1 %v2713_v21 }
0x1362   : > { %v2615_v50 = vpack.c.bf16 %v2613_v49, %v2613_v49  ;;  %4376 = vmatprep.subr.bf16.mxu1 %v5024_v5 }
0x1364   : > { %4361 = vmatmul.mubr.msk.bf16.vlgmr.msra.gmra.mxu0 %vm2368_vm5, %v2615_v50 }
0x1365   : > { %4371 = vmatpush3.bf16.msra.mxu0 %v2760_v31  ;;  %4372 = vmatprep.mubr.msk.bf16.mxu0 %vm5025_vm1, %v5024_v5 }
0x1366   : > { %4382 = vmatprep.subr.bf16.mxu0 %v5024_v5 }
0x136c   : > { %4373 = vmatmul.mubr.msk.bf16.vlgmr.msra.gmra.mxu0 %vm971_vm3, %v2487_v60 }
0x136d   : > { %4383 = vmatpush3.bf16.xpose.msra.mxu0 %v2861_v51  ;;  %4384 = vmatprep.mubr.msk.bf16.mxu0 %vm5025_vm1, %v5024_v5 }
0x136e   : > { %4394 = vmatprep.subr.bf16.mxu0 %v5024_v5 }
0x1374   : > { %4385 = vmatmul.mubr.msk.bf16.vlgmr.msra.gmra.mxu0 %vm971_vm3, %v2854_v52 }
0x1375   : > { %4396 = vmatprep.mubr.msk.bf16.mxu0 %vm5025_vm1, %v5024_v5 }
0x1420   : > { %v2656_v54 = vpop.f32.mrf.mxu1 }
0x1422   : > { %v4356_v11 = vpop.f32.mrf.mxu1 }
0x1424   : > { %v2659_v57 = vpop.f32.mrf.mxu1  ;;  %v2702_v58 = vpop.f32.mrf.mxu0 }
0x1425   : > { %v2708_v59 = vpack.c.bf16 %v2702_v58, %v2656_v54  ;;  %v2251_v57 = vld [vmem:[%s5388_s11 + $0x8] sm:$0xf] }
0x1426   : > { %v4357_v60 = vpop.f32.mrf.mxu1  ;;  %v4362_v62 = vpop.f32.mrf.mxu0  ;;  %v3028_v58 = vsel %vm1099_vm4, %v2251_v57, 0 }
0x1427   : > { %4367 = vmatmul.mubr.msk.bf16.vlgmr.msra.gmra.mxu1 %vm971_vm3, %v2708_v59 }
0x1428   : > { %4377 = vmatpush3.bf16.xpose.msra.mxu1 %v2811_v14  ;;  %v2705_v2 = vpop.f32.mrf.mxu0  ;;  %4378 = vmatprep.mubr.msk.bf16.mxu1 %vm5025_vm1, %v5024_v5 }
0x1429   : > { %4388 = vmatprep.subr.bf16.mxu1 %v5024_v5 }
0x142a   : > { %v4363_v3 = vpop.f32.mrf.mxu0 }
0x142c   : > { %v5799_v6 = vpop.f32.mrf.mxu0 }
0x142e   : > { %v4374_v13 = vpop.f32.mrf.mxu0 }
0x142f   : > { %4379 = vmatmul.mubr.msk.bf16.vlgmr.msra.gmra.mxu1 %vm971_vm3, %v2804_v9 }
0x1430   : > { %v5802_v15 = vpop.f32.mrf.mxu0  ;;  %4390 = vmatprep.mubr.msk.bf16.mxu1 %vm5025_vm1, %v5024_v5 }
0x1432   : > { %v4375_v18 = vpop.f32.mrf.mxu0 }
0x1434   : > { %v2897_v19 = vpop.f32.mrf.mxu0 }
0x1435   : > { %v2904_v20 = vmul.f32 0.35355338, %v2897_v19 }
0x1436   : > { %v4386_v22 = vpop.f32.mrf.mxu0 }
0x1437   : > { %v2906_v23 = vadd.f32 %v5708_v24, %v2904_v20 }
0x1438   : > { %v2900_v25 = vpop.f32.mrf.mxu0 }
0x1439   : > { %v2910_v26 = vsel %vm2368_vm5, %v2906_v23, -inf }
0x143a   : > { %2911 = vmax.xlane.f32.xlu1 %v2910_v26  ;;  %v4387_v27 = vpop.f32.mrf.mxu0 }
0x144b   : > { %2931 = vrot.lane.b32.xlu1 %v5685_v63, %s5032_s7 }
0x144f   : > { %3075 = vrot.lane.b32.xlu1 %v5685_v63, %s5035_s29 }
0x1453   : > { %3125 = vrot.lane.b32.xlu1 %v5683_v61, %s5035_s29 }
0x1457   : > { %3123 = vrot.lane.b32.xlu1 %v5699_v10, %s5035_s29 }
0x14c3   : > { %v2912_v28 = vpop.xlane.xlu1 %2911 }
0x14c4   : > { %v2914_v30 = vsub.f32 %v2906_v23, %v2912_v28 }
0x14c6   : > { %v2917_v32 = vmul.f32 1.442695, %v2914_v30 }
0x14c7   : > { %v2932_v29 = vpop.permute.xlu1 %2931 }
0x14c8   : > { %4389 = vmatpush3.bf16.msra.mxu1 %v2932_v29  ;;  %4662 = vpow2.f32 %v2917_v32 }
0x14c9   : > { %4400 = vmatprep.subr.bf16.mxu1 %v5024_v5 }
0x14cb   : > { %v3076_v51 = vpop.permute.xlu1 %3075 }
0x14cc   : > { %v3081_v53 = vsel %vm971_vm3, %v3076_v51, 0 }
0x14cf   : > { %v3126_v13 = vpop.permute.xlu1 %3125 }
0x14d0   : > { %v3131_v26 = vsel %vm971_vm3, %v3126_v13, 0 }
0x14d5   : > { %v4663_v41 = vpop.eup %4662 }
0x14d6   : > { %v2922_v43 = vsel %vm2368_vm5, %v4663_v41, 0.0 }
0x14e7   : > { %v5817_v34 = vpop.f32.mrf.mxu1 }
0x14e9   : > { %v4368_v35 = vpop.f32.mrf.mxu1 }
0x14eb   : > { %v5819_v7 = vpop.f32.mrf.mxu1 }
0x14ed   : > { %v4369_v36 = vpop.f32.mrf.mxu1 }
0x14ef   : > { %v2847_v37 = vpop.f32.mrf.mxu1 }
0x14f0   : > { %v2903_v38 = vmul.f32 0.35355338, %v2847_v37 }
0x14f1   : > { %v4380_v8 = vpop.f32.mrf.mxu1 }
0x14f2   : > { %v2905_v39 = vadd.f32 %v5705_v17, %v2903_v38  ;;  %v2797_v38 = vadd.f32 %v5799_v6, %v5817_v34 }
0x14f3   : > { %v2850_v10 = vpop.f32.mrf.mxu1 }
0x14f4   : > { %v2907_v40 = vsel %vm2368_vm5, %v2905_v39, -inf }
0x14f5   : > { %2908 = vmax.xlane.f32.xlu0 %v2907_v40  ;;  %v4381_v42 = vpop.f32.mrf.mxu1  ;;  %v2800_v40 = vadd.f32 %v5802_v15, %v5819_v7 }
0x14f9   : > { %2923 = vadd.xlane.f32.xlu0 %v2922_v43 }
0x157e   : > { %v2909_v44 = vpop.xlane.xlu0 %2908 }
0x157f   : > { %v2913_v45 = vsub.f32 %v2905_v39, %v2909_v44 }
0x1581   : > { %v2915_v46 = vmul.f32 1.442695, %v2913_v45 }
0x1582   : > { %v2924_v49 = vpop.xlane.xlu0 %2923 }
0x1583   : > { %4664 = vpow2.f32 %v2915_v46 }
0x1584   : > { %4666 = vrcp.f32 %v2924_v49 }
0x1590   : > { %v4665_v47 = vpop.eup %4664 }
0x1591   : > { %v2919_v48 = vsel %vm2368_vm5, %v4665_v47, 0.0  ;;  %v4667_v50 = vpop.eup %4666 }
0x1592   : > { %2920 = vadd.xlane.f32.xlu0 %v2919_v48  ;;  %v2928_v16 = vmul.f32 %v4667_v50, %v4663_v41 }
0x1594   : > { %v2930_v52 = vpack.c.bf16 %v2928_v16, %v2928_v16 }
0x15a8   : > { %2977 = vrot.lane.b32.xlu0 %v5683_v61, %s5032_s7 }
0x15ac   : > { %3073 = vrot.lane.b32.xlu0 %v5693_v4, %s5035_s29 }
0x161b   : > { %v2921_v31 = vpop.xlane.xlu0 %2920 }
0x161c   : > { %4668 = vrcp.f32 %v2921_v31 }
0x161f   : > { %v2978_v33 = vpop.permute.xlu0 %2977 }
0x1620   : > { %4395 = vmatpush3.bf16.msra.mxu0 %v2978_v33 }
0x1621   : > { %4406 = vmatprep.subr.bf16.mxu0 %v5024_v5 }
0x1623   : > { %4397 = vmatmul.mubr.msk.bf16.vlgmr.msra.gmra.mxu0 %vm2368_vm5, %v2930_v52  ;;  %v3074_v21 = vpop.permute.xlu0 %3073  ;;  %v2252_v52 = vld [vmem:[%s5388_s11 + $0xc] sm:$0xf] }
0x1624   : > { %4407 = vmatpush3.bf16.xpose.msra.mxu0 %v3081_v53  ;;  %4408 = vmatprep.mubr.msk.bf16.mxu0 %vm5025_vm1, %v5024_v5  ;;  %v3298_v53 = vsel %vm1099_vm4, %v2252_v52, 0  ;;  %v4037_v52 = vld [vmem:[%s740_s23] ss:$0 sm:$0xff] }
0x1625   : > { %4418 = vmatprep.subr.bf16.mxu0 %v5024_v5 }
0x1629   : > { %v4669_v4 = vpop.eup %4668 }
0x162a   : > { %v2927_v54 = vmul.f32 %v4669_v4, %v4665_v47 }
0x162b   : > { %4409 = vmatmul.mubr.msk.bf16.vlgmr.msra.gmra.mxu0 %vm971_vm3, %v3074_v21 }
0x162c   : > { %v2929_v11 = vpack.c.bf16 %v2927_v54, %v2927_v54  ;;  %4420 = vmatprep.mubr.msk.bf16.mxu0 %vm5025_vm1, %v5024_v5 }
0x162e   : > { %4391 = vmatmul.mubr.msk.bf16.vlgmr.msra.gmra.mxu1 %vm2368_vm5, %v2929_v11 }
0x162f   : > { %4402 = vmatprep.mubr.msk.bf16.mxu1 %vm5025_vm1, %v5024_v5  ;;  %4401 = vmatpush3.bf16.msra.mxu1 %v3028_v58 }
0x1630   : > { %4412 = vmatprep.subr.bf16.mxu1 %v5024_v5 }
0x16e3   : > { %v3017_v59 = vpop.f32.mrf.mxu0 }
0x16e5   : > { %v4398_v60 = vpop.f32.mrf.mxu0 }
0x16e7   : > { %v3020_v62 = vpop.f32.mrf.mxu0 }
0x16e9   : > { %v4399_v14 = vpop.f32.mrf.mxu0 }
0x16eb   : > { %v3117_v2 = vpop.f32.mrf.mxu0 }
0x16ec   : > { %v3173_v3 = vmul.f32 0.35355338, %v3117_v2 }
0x16ed   : > { %v4410_v9 = vpop.f32.mrf.mxu0 }
0x16ee   : > { %v2971_v18 = vpop.f32.mrf.mxu1  ;;  %v3175_v19 = vadd.f32 %v5705_v17, %v3173_v3  ;;  %v3124_v17 = vpop.permute.xlu1 %3123 }
0x16ef   : > { %v3023_v20 = vpack.c.bf16 %v3017_v59, %v2971_v18  ;;  %v3120_v22 = vpop.f32.mrf.mxu0 }
0x16f0   : > { %v4392_v23 = vpop.f32.mrf.mxu1  ;;  %v3177_v25 = vsel %vm2368_vm5, %v3175_v19, -inf }
0x16f1   : > { %3178 = vmax.xlane.f32.xlu0 %v3177_v25  ;;  %4403 = vmatmul.mubr.msk.bf16.vlgmr.msra.gmra.mxu1 %vm971_vm3, %v3023_v20  ;;  %v4411_v27 = vpop.f32.mrf.mxu0 }
0x16f2   : > { %4413 = vmatpush3.bf16.xpose.msra.mxu1 %v3131_v26  ;;  %v2974_v28 = vpop.f32.mrf.mxu1  ;;  %4414 = vmatprep.mubr.msk.bf16.mxu1 %vm5025_vm1, %v5024_v5 }
0x16f3   : > { %4424 = vmatprep.subr.bf16.mxu1 %v5024_v5 }
0x16f4   : > { %v4393_v29 = vpop.f32.mrf.mxu1 }
0x16f9   : > { %4415 = vmatmul.mubr.msk.bf16.vlgmr.msra.gmra.mxu1 %vm971_vm3, %v3124_v17 }
0x16fa   : > { %4426 = vmatprep.mubr.msk.bf16.mxu1 %vm5025_vm1, %v5024_v5 }
0x177a   : > { %v3179_v30 = vpop.xlane.xlu0 %3178 }
0x177b   : > { %v3183_v32 = vsub.f32 %v3175_v19, %v3179_v30 }
0x177d   : > { %v3185_v35 = vmul.f32 1.442695, %v3183_v32 }
0x177f   : > { %4670 = vpow2.f32 %v3185_v35 }
0x178c   : > { %v4671_v36 = vpop.eup %4670 }
0x178d   : > { %v3189_v37 = vsel %vm2368_vm5, %v4671_v36, 0.0 }
0x178e   : > { %3190 = vadd.xlane.f32.xlu0 %v3189_v37 }
0x17b1   : > { %v3064_v8 = vpop.f32.mrf.mxu1 }
0x17b2   : > { %v3071_v39 = vadd.f32 %v3064_v8, %v2797_v38 }
0x17b3   : > { %v4404_v10 = vpop.f32.mrf.mxu1 }
0x17b4   : > { %v4606_v10 = vld [vmem:[%s5417_s18 + $0x18] sm:$0xff]  }
0x17b5   : > { %v3067_v41 = vpop.f32.mrf.mxu1 }
0x17b6   : > { %v3072_v42 = vadd.f32 %v3067_v41, %v2800_v40 }
0x17b7   : > { %v4405_v43 = vpop.f32.mrf.mxu1 }
0x17b9   : > { %v3167_v44 = vpop.f32.mrf.mxu1 }
0x17ba   : > { %v3174_v45 = vmul.f32 0.35355338, %v3167_v44 }
0x17bb   : > { %v4416_v46 = vpop.f32.mrf.mxu1 }
0x17bc   : > { %v3176_v47 = vadd.f32 %v5708_v24, %v3174_v45  ;;  %v3373_v46 = vsub.s32 1, %v5669_v12 }
0x17bd   : > { %v3170_v48 = vpop.f32.mrf.mxu1 }
0x17be   : > { %v3180_v49 = vsel %vm2368_vm5, %v3176_v47, -inf }
0x17bf   : > { %3181 = vmax.xlane.f32.xlu1 %v3180_v49  ;;  %v4417_v50 = vpop.f32.mrf.mxu1  ;;  %v3374_v49 = vrot.slane %v5425_v0, %v3373_v46 }
0x17d0   : > { %3201 = vrot.lane.b32.xlu1 %v5685_v63, %s5034_s19 }
0x1817   : > { %v3191_v6 = vpop.xlane.xlu0 %3190 }
0x1818   : > { %4672 = vrcp.f32 %v3191_v6 }
0x1825   : > { %v4673_v34 = vpop.eup %4672 }
0x1826   : > { %v3197_v31 = vmul.f32 %v4673_v34, %v4671_v36 }
0x1828   : > { %v3199_v24 = vpack.c.bf16 %v3197_v31, %v3197_v31 }
0x1848   : > { %v3182_v15 = vpop.xlane.xlu1 %3181 }
0x1849   : > { %v3184_v7 = vsub.f32 %v3176_v47, %v3182_v15  ;;  %v3380_v15 = vrot.slane %v5427_v1, %v3373_v46 }
0x184b   : > { %v3187_v16 = vmul.f32 1.442695, %v3184_v7 }
0x184c   : > { %v3202_v33 = vpop.permute.xlu1 %3201 }
0x184d   : > { %4674 = vpow2.f32 %v3187_v16  ;;  %4419 = vmatpush3.bf16.msra.mxu0 %v3202_v33 }
0x184e   : > { %4430 = vmatprep.subr.bf16.mxu0 %v5024_v5 }
0x1850   : > { %4421 = vmatmul.mubr.msk.bf16.vlgmr.msra.gmra.mxu0 %vm2368_vm5, %v3199_v24  ;;  %v4607_v24 = vld [vmem:[%s5417_s18 + $0x10] sm:$0xff]  }
0x1851   : > { %4432 = vmatprep.mubr.msk.bf16.mxu0 %vm5025_vm1, %v5024_v5  ;;  %4431 = vmatpush3.bf16.msra.mxu0 %v3298_v53 }
0x1852   : > { %4444 = vmatprep.subr.bf16.mxu0 %v5024_v5 }
0x185a   : > { %v4675_v63 = vpop.eup %4674 }
0x185b   : > { %v3192_v51 = vsel %vm2368_vm5, %v4675_v63, 0.0 }
0x185c   : > { %3193 = vadd.xlane.f32.xlu0 %v3192_v51  ;;  %v4609_v51 = vld [vmem:[%s5417_s18] sm:$0xff]  }
0x1872   : > { %3247 = vrot.lane.b32.xlu0 %v5683_v61, %s5034_s19 }
0x18e5   : > { %v3194_v4 = vpop.xlane.xlu0 %3193 }
0x18e6   : > { %4676 = vrcp.f32 %v3194_v4 }
0x18e9   : > { %v3248_v21 = vpop.permute.xlu0 %3247 }
0x18ea   : > { %4425 = vmatpush3.bf16.msra.mxu1 %v3248_v21 }
0x18eb   : > { %4436 = vmatprep.subr.bf16.mxu1 %v5024_v5 }
0x18f3   : > { %v4677_v54 = vpop.eup %4676 }
0x18f4   : > { %v3198_v11 = vmul.f32 %v4677_v54, %v4675_v63  ;;  %v4608_v63 = vld [vmem:[%s5417_s18 + $0x8] sm:$0xff]  }
0x18f6   : > { %v3200_v57 = vpack.c.bf16 %v3198_v11, %v3198_v11 }
0x18f8   : > { %4427 = vmatmul.mubr.msk.bf16.vlgmr.msra.gmra.mxu1 %vm2368_vm5, %v3200_v57 }
0x18f9   : > { %4440 = vmatprep.mubr.msk.bf16.mxu1 %vm5025_vm1, %v5024_v5 }
0x1910   : > { %v3241_v61 = vpop.f32.mrf.mxu0 }
0x1912   : > { %v4422_v58 = vpop.f32.mrf.mxu0 }
0x1914   : > { %v3244_v59 = vpop.f32.mrf.mxu0 }
0x1916   : > { %v4423_v60 = vpop.f32.mrf.mxu0 }
0x1917   : > { %v4041_v60 = vld [vmem:[%s748_s26] ss:$0 sm:$0xff] }
0x19b8   : > { %v3287_v62 = vpop.f32.mrf.mxu1 }
0x19b9   : > { %v3293_v14 = vpack.c.bf16 %v3287_v62, %v3241_v61 }
0x19ba   : > { %v4428_v2 = vpop.f32.mrf.mxu1 }
0x19bb   : > { %4433 = vmatmul.mubr.msk.bf16.vlgmr.msra.gmra.mxu0 %vm971_vm3, %v3293_v14 }
0x19bc   : > { %v3290_v3 = vpop.f32.mrf.mxu1  ;;  %4452 = vmatprep.mubr.msk.bf16.mxu0 %vm5025_vm1, %v5024_v5  ;;  %4445 = vmatpush3.bf16.msra.mxu0 %v4606_v10 }
0x19bd   : > { %4446 = vmatprep.subr.bf16.mxu0 %v5024_v5 }
0x19be   : > { %v4429_v9 = vpop.f32.mrf.mxu1 }
0x19c0   : > { %4447 = vmatpush3.bf16.msra.mxu0 %v4607_v24 }
0x19c1   : > { %4448 = vmatprep.subr.bf16.mxu0 %v5024_v5 }
0x19c4   : > { %4449 = vmatpush3.bf16.msra.mxu0 %v4608_v63 }
0x19c5   : > { %4450 = vmatprep.subr.bf16.mxu0 %v5024_v5 }
0x19c8   : > { %4451 = vmatpush3.bf16.msra.mxu0 %v4609_v51 }
0x1a7b   : > { %v3334_v13 = vpop.f32.mrf.mxu0 }
0x1a7c   : > { %v3341_v18 = vadd.f32 %v3334_v13, %v3071_v39  ;;  %v4605_v39 = vld [vmem:[%s732_s8] sm:$0xff]  }
0x1a7d   : > { %v4434_v19 = vpop.f32.mrf.mxu0 }
0x1a7e   : > { %v3343_v20 = vadd.f32 %v3341_v18, %v5674_v55 }
0x1a7f   : > { %v3337_v22 = vpop.f32.mrf.mxu0 }
0x1a80   : > { %v3342_v23 = vadd.f32 %v3337_v22, %v3072_v42  ;;  %v3345_v25 = vsel %vm894_vm2, %v3343_v20, 0.0 }
0x1a81   : > { %3346 = vadd.xlane.f32.xlu1 %v3345_v25  ;;  %v4435_v26 = vpop.f32.mrf.mxu0 }
0x1a82   : > { %v3344_v27 = vadd.f32 %v3342_v23, %v5676_v56  ;;  %v4604_v56 = vld [vmem:[%s732_s8 + $0x8] sm:$0xff]  }
0x1a83   : > { %4437 = vmatpush3.bf16.msra.mxu1 %v4604_v56  ;;  %v3568_v56 = vsub.s32 2, %v5669_v12 }
0x1a84   : > { %v3348_v28 = vsel %vm894_vm2, %v3344_v27, 0.0  ;;  %4438 = vmatprep.subr.bf16.mxu1 %v5024_v5 }
0x1a85   : > { %3349 = vadd.xlane.f32.xlu0 %v3348_v28 }
0x1a87   : > { %4439 = vmatpush3.bf16.msra.mxu1 %v4605_v39  ;;  %v3569_v39 = vrot.slane %v5425_v0, %v3568_v56 }
0x1b0a   : > { %v3347_v29 = vpop.xlane.xlu1 %3346 }
0x1b0b   : > { %v3351_v17 = vmul.f32 0.03125, %v3347_v29 }
0x1b0d   : > { %v3353_v30 = vsub.f32 %v3343_v20, %v3351_v17 }
0x1b0e   : > { %v3350_v32 = vpop.xlane.xlu0 %3349 }
0x1b0f   : > { %v3352_v35 = vmul.f32 0.03125, %v3350_v32  ;;  %v3355_v55 = vmul.f32 %v3353_v30, %v3353_v30 }
0x1b11   : > { %v3354_v36 = vsub.f32 %v3344_v27, %v3352_v35  ;;  %v3357_v37 = vsel %vm894_vm2, %v3355_v55, 0.0 }
0x1b12   : > { %3358 = vadd.xlane.f32.xlu1 %v3357_v37 }
0x1b13   : > { %v3356_v38 = vmul.f32 %v3354_v36, %v3354_v36 }
0x1b15   : > { %v3360_v8 = vsel %vm894_vm2, %v3356_v38, 0.0 }
0x1b16   : > { %3361 = vadd.xlane.f32.xlu0 %v3360_v8 }
0x1b9b   : > { %v3359_v40 = vpop.xlane.xlu1 %3358 }
0x1b9c   : > { %v3363_v41 = vmul.f32 0.03125, %v3359_v40  ;;  %v3575_v40 = vrot.slane %v5427_v1, %v3568_v56 }
0x1b9e   : > { %v3365_v42 = vadd.f32 1e-05, %v3363_v41 }
0x1b9f   : > { %v3362_v43 = vpop.xlane.xlu0 %3361 }
0x1ba0   : > { %4678 = vrsqrt.f32 %v3365_v42  ;;  %v3364_v44 = vmul.f32 0.03125, %v3362_v43 }
0x1ba2   : > { %v3366_v45 = vadd.f32 1e-05, %v3364_v44 }
0x1ba4   : > { %4680 = vrsqrt.f32 %v3366_v45 }
0x1bad   : > { %v4679_v47 = vpop.eup %4678 }
0x1bae   : > { %v3369_v48 = vmul.f32 %v4679_v47, %v3353_v30 }
0x1bb0   : > { %v3375_v34 = vmul.f32 %v3374_v49, %v3369_v48 }
0x1bb1   : > { %v4681_v50 = vpop.eup %4680 }
0x1bb2   : > { %v3370_v6 = vmul.f32 %v4681_v50, %v3354_v36  ;;  %v3381_v31 = vadd.f32 %v3380_v15, %v3375_v34 }
0x1bb4   : > { %v3376_v7 = vmul.f32 %v3374_v49, %v3370_v6 }
0x1bb6   : > { %v3382_v16 = vadd.f32 %v3380_v15, %v3376_v7 }
0x1bb8   : > { %v3383_v33 = vpack.c.bf16 %v3382_v16, %v3381_v31 }
0x1bba   : > { %4441 = vmatmul.mubr.msk.bf16.vlgmr.msra.gmra.mxu1 %vm894_vm2, %v3383_v33 }
0x1c7a   : > { %v3444_v53 = vpop.f32.mrf.mxu1 }
0x1c7b   : > { %v3445_v21 = vadd.f32 %v4037_v52, %v3444_v53 }
0x1c7c   : > { %v4442_v4 = vpop.f32.mrf.mxu1 }
0x1c7d   : > { %v3451_v61 = vmax.f32 %v3445_v21, 0.0 }
0x1c7e   : > { %v3447_v54 = vpop.f32.mrf.mxu1 }
0x1c7f   : > { %v3448_v11 = vadd.f32 %v4037_v52, %v3447_v54 }
0x1c80   : > { %v4443_v57 = vpop.f32.mrf.mxu1 }
0x1c81   : > { %v3452_v58 = vmax.f32 %v3448_v11, 0.0 }
0x1c83   : > { %v3453_v59 = vpack.c.bf16 %v3452_v58, %v3451_v61 }
0x1c85   : > { %4453 = vmatmul.mubr.msk.bf16.vlgmr.msra.gmra.mxu0 %vm3493_vm6, %v3453_v59 }
0x1d45   : > { %v3531_v62 = vpop.f32.mrf.mxu0 }
0x1d46   : > { %v3532_v14 = vadd.f32 %v4041_v60, %v3531_v62 }
0x1d47   : > { %v4454_v5 = vpop.f32.mrf.mxu0 }
0x1d48   : > { %v3538_v2 = vadd.f32 %v3532_v14, %v3381_v31 }
0x1d49   : > { %v3534_v3 = vpop.f32.mrf.mxu0 }
0x1d4a   : > { %v3535_v9 = vadd.f32 %v4041_v60, %v3534_v3  ;;  %v3540_v13 = vsel %vm894_vm2, %v3538_v2, 0.0 }
0x1d4b   : > { %3541 = vadd.xlane.f32.xlu1 %v3540_v13  ;;  %v4455_v18 = vpop.f32.mrf.mxu0 }
0x1d4c   : > { %v3539_v19 = vadd.f32 %v3535_v9, %v3382_v16 }
0x1d4e   : > { %v3543_v20 = vsel %vm894_vm2, %v3539_v19, 0.0 }
0x1d4f   : > { %3544 = vadd.xlane.f32.xlu0 %v3543_v20 }
0x1dd4   : > { %v3542_v22 = vpop.xlane.xlu1 %3541 }
0x1dd5   : > { %v3546_v23 = vmul.f32 0.03125, %v3542_v22 }
0x1dd7   : > { %v3548_v25 = vsub.f32 %v3538_v2, %v3546_v23 }
0x1dd8   : > { %v3545_v26 = vpop.xlane.xlu0 %3544 }
0x1dd9   : > { %v3547_v27 = vmul.f32 0.03125, %v3545_v26  ;;  %v3550_v28 = vmul.f32 %v3548_v25, %v3548_v25 }
0x1ddb   : > { %v3549_v29 = vsub.f32 %v3539_v19, %v3547_v27  ;;  %v3552_v17 = vsel %vm894_vm2, %v3550_v28, 0.0 }
0x1ddc   : > { %3553 = vadd.xlane.f32.xlu1 %v3552_v17 }
0x1ddd   : > { %v3551_v30 = vmul.f32 %v3549_v29, %v3549_v29 }
0x1ddf   : > { %v3555_v32 = vsel %vm894_vm2, %v3551_v30, 0.0 }
0x1de0   : > { %3556 = vadd.xlane.f32.xlu0 %v3555_v32 }
0x1e65   : > { %v3554_v35 = vpop.xlane.xlu1 %3553 }
0x1e66   : > { %v3558_v55 = vmul.f32 0.03125, %v3554_v35 }
0x1e68   : > { %v3560_v36 = vadd.f32 1e-05, %v3558_v55 }
0x1e69   : > { %v3557_v37 = vpop.xlane.xlu0 %3556 }
0x1e6a   : > { %4682 = vrsqrt.f32 %v3560_v36  ;;  %v3559_v38 = vmul.f32 0.03125, %v3557_v37 }
0x1e6c   : > { %v3561_v8 = vadd.f32 1e-05, %v3559_v38 }
0x1e6e   : > { %4684 = vrsqrt.f32 %v3561_v8 }
0x1e77   : > { %v4683_v10 = vpop.eup %4682 }
0x1e78   : > { %v3564_v41 = vmul.f32 %v4683_v10, %v3548_v25 }
0x1e7a   : > { %v3570_v42 = vmul.f32 %v3569_v39, %v3564_v41 }
0x1e7b   : > { %v4685_v43 = vpop.eup %4684 }
0x1e7c   : > { %v3576_v44 = vadd.f32 %v3575_v40, %v3570_v42  ;;  %v3565_v45 = vmul.f32 %v4685_v43, %v3549_v29 }
0x1e7e   : > { %3578 = vst.msk [vmem:[#allocation2] sm:$0xff] %vm894_vm2, %v3576_v44  ;;  %v3571_v46 = vmul.f32 %v3569_v39, %v3565_v45  ;;  %3583 = sbr.rel (%p4047_p12) target bundleno = 8020 (0x1f54), region = 128 }
0x1e80   : > { %v3577_v47 = vadd.f32 %v3575_v40, %v3571_v46 }
0x1e82   : > { %3579 = vst.msk [vmem:[#allocation2 + $0x8] sm:$0xff] %vm894_vm2, %v3577_v47 }
0x1e83   : > { %v4686_v0 = vld [vmem:[%s6093_s27 + $0x8] sm:$0xff]   ;;  %v5037_v12 = vmov 0.0   ;;  %v4687_v1 = vld [vmem:[%s6094_s14] sm:$0xff]   ;;  %vm5038_vm7 = vmmov 0   ;;  %v3584_v48 = vpack.c.bf16 %v3577_v47, %v3576_v44 }
0x1e84   : > { %4456 = vmatprep.subr.bf16.mxu0 %v5037_v12  ;;  %4460 = vmatprep.mubr.msk.bf16.mxu0 %vm5038_vm7, %v5037_v12  ;;  %v4048_v49 = vld [vmem:[%s6095_s20] ss:$0 sm:$0xff] }
0x1e85   : > { %4457 = vmatpush3.bf16.msra.mxu0 %v4686_v0 }
0x1e86   : > { %4458 = vmatprep.subr.bf16.mxu0 %v5037_v12 }
0x1e89   : > { %4459 = vmatpush3.bf16.msra.mxu0 %v4687_v1 }
0x1e8c   : > { %4461 = vmatmul.mubr.msk.bf16.vlgmr.msra.gmra.mxu0 %vm894_vm2, %v3584_v48 }
0x1f4c   : > { %v3645_v50 = vpop.f32.mrf.mxu0 }
0x1f4d   : > { %v3646_v6 = vadd.f32 %v4048_v49, %v3645_v50 }
0x1f4e   : > { %v4462_v34 = vpop.f32.mrf.mxu0 }
0x1f4f   : > { %3652 = vst [vmem:[#allocation15] sm:$0xff] %v3646_v6 }
0x1f50   : > { %v3648_v15 = vpop.f32.mrf.mxu0 }
0x1f51   : > { %v3649_v7 = vadd.f32 %v4048_v49, %v3648_v15 }
0x1f52   : > { %v4463_v31 = vpop.f32.mrf.mxu0 }
0x1f53   : > { %3653 = vst [vmem:[#allocation15 + $0x8] sm:$0xff] %v3649_v7 }
0x1f54 PF: > { %s5039_s1 = smov [#allocation15]   ;;  %p6096_p10 = scmp.eq.s32.totalorder %s5159_s0, 1 }
0x1f55   : > { %s3665_s24 = sshll.u32 %s5039_s1, 4  ;;  %s3666_s24 = int_to_ptr.vmem [resolvable:$true] %s3665_s24 }
0x1f56   : > { %s4904_s8 = scalar_lea.vmem %s3666_s24, 256  ;;  %p4911_p4 = scmp.lt.s32.totalorder %s3666_s24, %s3666_s24 }
0x1f57   : > { %p4905_p5 = scmp.ne.s32.totalorder %s3666_s24, %s4904_s8  ;;  %p4912_p11 = scmp.lt.s32.totalorder %s4904_s8, %s4904_s8 }
0x1f59   : > { %p4906_p13 = pnand %p4905_p5, %p6096_p10  ;;  %p4913_p7 = por %p4912_p11, %p4911_p4 }
0x1f5b   : > { %p4907_p3 = pneg %p4906_p13 }
0x1f5d   : > { %p4914_p6 = pnand %p4913_p7, %p4907_p3 }
0x1f5f   : > { %4917 = shalt.err (!%p4914_p6)
}
0x1f60   : > { %s5040_s23 = smov 128   ;;  %s6097_s26 = sld [smem:[#allocation29_spill]] }
0x1f61   : > { %s5041_s3 = smov 8   ;;  %p6098_p0 = pmov %p6096_p10 }
0x1f62   : > { %s6099_s10 = sld [smem:[#allocation46_spill]]  ;;  %s4070_s17 = sshll.u32 %s5159_s0, 8 }
0x1f63   : > { %s3681_s22 = sshll.u32 %s5433_s15, 4  ;;  %s6100_s19 = sld [smem:[#allocation47_spill]]  ;;  %s5943_s22 = int_to_ptr.vmem [resolvable:$true] %s3681_s22 }
0x1f64   : > { %s3655_s2 = scalar_lea.sflag [#allocation17], %s5382_s21  ;;  %s4928_s25 = scalar_lea.vmem %s5943_s22, 256 }
0x1f65   : > { %p4929_p8 = scmp.ne.s32.totalorder %s5943_s22, %s4928_s25  ;;  %s5042_s11 = smov [#allocation16]  }
0x1f66   : > { %p6101_p1 = scmp.ne.s32.totalorder %s6097_s26, 0  ;;  %s4932_s27 = sshll.u32 %s5042_s11, 4  ;;  %s4933_s27 = int_to_ptr.vmem [resolvable:$false] %s4932_s27 }
0x1f67   : > { %s4934_s15 = scalar_lea.vmem %s4933_s27, 512  ;;  %p4935_p12 = scmp.lt.s32.totalorder %s5943_s22, %s4933_s27 }
0x1f68   : > { %4489 = dma.vmem_to_hbm [thread:$0]  (%p6098_p0), %s3666_s24, 256, %s6099_s10, [#allocation5], %s5040_s23, %s5040_s23, %s5041_s3  }
0x1f69   : > { %s5941_s29 = scalar_lea.hbm %s6100_s19, %s4070_s17  ;;  %p4930_p2 = pnand %p4929_p8, %p6101_p1 }
0x1f6a   : > { %p4936_p5 = scmp.lt.s32.totalorder %s4934_s15, %s4928_s25 }
0x1f6b   : > { %p4931_p9 = pneg %p4930_p2 }
0x1f6c   : > { %p4937_p10 = por %p4936_p5, %p4935_p12 }
0x1f6e   : > { %p4938_p13 = pnand %p4937_p10, %p4931_p9 }
0x1f70   : > { %4941 = shalt.err (!%p4938_p13)
}
0x1f71   : > { %s4942_s13 = scalar_lea.hbm %s5941_s29, 256  ;;  %s4946_s6 = scalar_lea.hbm %s6100_s19, 512 }
0x1f72   : > { %p4943_p3 = scmp.ne.s32.totalorder %s5941_s29, %s4942_s13  ;;  %p4947_p7 = scmp.lt.s32.totalorder %s5941_s29, %s6100_s19 }
0x1f73   : > { %p4948_p6 = scmp.lt.s32.totalorder %s4946_s6, %s4942_s13 }
0x1f74   : > { %p4944_p4 = pnand %p4943_p3, %p6101_p1 }
0x1f75   : > { %p4949_p0 = por %p4948_p6, %p4947_p7 }
0x1f76   : > { %p4945_p11 = pneg %p4944_p4 }
0x1f78   : > { %p4950_p8 = pnand %p4949_p0, %p4945_p11 }
0x1f7a   : > { %4953 = shalt.err (!%p4950_p8)
}
0x1f7b   : > { %4490 = dma.vmem_to_hbm [thread:$0]  (%p6101_p1), %s5943_s22, 256, %s5941_s29, %s3655_s2, %s5040_s23, %s5040_s23, %s5041_s3  }
0x1f7c   : > { %p6102_p2 = scmp.eq.s32.totalorder %s5159_s0, 1 }
0x1f7e   : > { %4987 = dma.done.wait (%p6102_p2), [#allocation5], 256   ;;  %p6103_p9 = pmov %p6102_p2 }
0x1f80   : > { %4989 = vsyncadd (%p6103_p9), [#allocation5], 4294967040 }
0x1f81 PF: > { %s6104_s1 = sld [smem:[#allocation24_spill]]  ;;  %p6107_p5 = scmp.ge.s32.totalorder %s5008_s30, 2 }
0x1f82   : > { %s6105_s24 = sld [smem:[#allocation26_spill]] }
0x1f87   : > { %s3700_s8 = sand.u32 1, %s6104_s1  }
0x1f88   : > { %p6106_p12 = scmp.ne.s32.totalorder %s6105_s24, 0  ;;  %s3701_s26 = scalar_lea.sflag [#allocation17], %s3700_s8 }
0x1f8a   : > { %p4521_p10 = pnand %p6107_p5, %p6106_p12 }
0x1f8c   : > { %p4522_p13 = pneg %p4521_p10 }
0x1f8e   : > { %4991 = dma.done.wait (%p4522_p13), %s3701_s26, 256  }
0x1f8f   : > { %4993 = vsyncadd (%p4522_p13), %s3701_s26, 4294967040  ;;  %s6108_s30 = sld [smem:[#allocation27_spill]]  ;;  %s6111_s27 = smov %s5000_s28 }
0x1f90   : > { %s6109_s23 = sld [smem:[#allocation25_spill]] }
0x1f91   : > { %s6110_s29 = sld [smem:[#allocation28_spill]] }
0x1f95   : > { %p33_p1 = scmp.ge.s32.totalorder %s6108_s30, 4  }
0x1f96   : > { %s6112_s28 = smov %s6109_s23 }
0x1f97   :  { %35 = sbr.rel (!%p33_p1) target bundleno = 26 (0x1a), region = 219 }
0x1f9c   :  { %3706 = vsyncpa [#allocation4], 1 }
0x1f9d   :  { %3708 = vsyncpa [#allocation4 + $0x1], 1 }
0x1f9e   :  { %3709 = vsyncpa [#allocation7], 1 }
0x1f9f   :  { %3710 = vsyncpa [#allocation10], 1 }
0x1fa0   :  { %3711 = vsyncpa [#allocation5], 1 }
0x1fa1   :  { %3713 = vsyncpa [#allocation5 + $0x1], 1 }
0x1fa2   :  { %3714 = vsyncpa [#allocation17], 1 }
0x1fa3   :  { %3716 = vsyncpa [#allocation17 + $0x1], 1 }

</bundles_post_ra>
